<compile_context>
chip_gen: v7x
topology: tpu7x:2x2x1
jax: 0.10.0
libtpu: 0.0.40
codegen_flags: <defaults>
</compile_context>

<pallas_src>
import functools

import jax
import jax.numpy as jnp
import numpy as np
from jax.experimental import pallas as pl
from jax.experimental.pallas import tpu as pltpu


def _gelu(x):
    return jax.nn.gelu(x, approximate=True)


_PAD = 128  # lane padding on each side of the flattened-spatial hidden buffer


# --------------------------------------------------------------------------
# Fused kernel (one batch image per grid step)
# --------------------------------------------------------------------------
def _mlp_kernel(x_ref, w1t_ref, s1_ref, b1_ref, wdwt_ref, bdw_ref, maskc_ref,
                s2_ref, b2_ref, w2t_ref, s3_ref, b3_ref, o_ref, hp_ref, *, W):
    """fc1 -> GELU -> BN1 -> dwconv(7x7)+x -> GELU -> BN2 -> fc2 -> BN3.

    Shapes inside the kernel (HW = H*W on the lane axis everywhere):
      x_ref    : (1, Cin, HW)  f32        w1t_ref : (Ch, Cin)   bf16
      wdwt_ref : (Ch, 49)      f32        maskc   : (7, HW)     f32 (0/1)
      w2t_ref  : (Cout, Ch)    bf16       o_ref   : (1, Cout, HW) f32
      BN / bias params are (C, 1) columns (broadcast along lanes)
      hp_ref   : (Ch, PAD + HW + PAD) f32 VMEM scratch
    """
    Cin, HW = x_ref.shape[1], x_ref.shape[2]
    Ch = w1t_ref.shape[0]

    # ---- fc1: 1x1 conv == (Ch, Cin) @ (Cin, HW) on the MXU (bf16, f32 acc) ----
    x = x_ref[0].astype(jnp.bfloat16)
    h = jnp.dot(w1t_ref[...], x, preferred_element_type=jnp.float32)   # (Ch, HW)
    h = _gelu(h)
    h = h * s1_ref[...] + b1_ref[...]                                  # BN1 folded

    # ---- stage the hidden activation with zero lane-pads on both sides ----
    # Only the two PAD-wide strips are re-zeroed each step (8 vector stores);
    # the interior is fully overwritten, so no state is carried across grid
    # steps and the batch axis stays safely "parallel" on multi-core chips.
    hp_ref[:, :_PAD] = jnp.zeros((Ch, _PAD), jnp.float32)
    hp_ref[:, _PAD + HW:] = jnp.zeros((Ch, _PAD), jnp.float32)
    hp_ref[:, _PAD:_PAD + HW] = h

    # ---- unified 7x7 multi-scale depthwise conv + residual ------------------
    # Spatial shift (di, dj) == constant lane offset di*W + dj on the flattened
    # HW axis.  Row over/underflow reads the zero pads (correct "same" padding);
    # column wrap-around is removed by the per-dj validity mask.  The residual
    # and the dwconv bias seed the accumulator.
    acc = h + bdw_ref[...]
    for j in range(7):
        dj = j - 3
        m = maskc_ref[j:j + 1, :]                                      # (1, HW)
        part = None
        for i in range(7):
            tap = i * 7 + j
            start = _PAD + (i - 3) * W + dj
            contrib = hp_ref[:, start:start + HW] * wdwt_ref[:, tap:tap + 1]
            part = contrib if part is None else part + contrib
        acc = acc + part * m

    y = _gelu(acc)
    y = y * s2_ref[...] + b2_ref[...]                                  # BN2 folded

    # ---- fc2: (Cout, Ch) @ (Ch, HW) on the MXU -> BN3 ------------------------
    z = jnp.dot(w2t_ref[...], y.astype(jnp.bfloat16),
                preferred_element_type=jnp.float32)                    # (Cout, HW)
    z = z * s3_ref[...] + b3_ref[...]
    o_ref[0] = z.astype(o_ref.dtype)                                   # lane-dense store


# --------------------------------------------------------------------------
# Wrapper
# --------------------------------------------------------------------------
def mlp_forward(x_nchw, params):
    B, Cin, H, W = x_nchw.shape
    Ch = params["w1"].shape[1]
    Cout = params["w2"].shape[1]
    HW = H * W
    assert HW % 128 == 0, "flattened spatial dim must be a multiple of 128"

    # NCHW is kept end-to-end; the reshapes below are free (bitcast-style).
    x = x_nchw.reshape(B, Cin, HW)

    # Weights transposed so both matmuls are canonical (M, K) @ (K, HW).
    w1t = params["w1"].T.astype(jnp.bfloat16)           # (Ch, Cin)
    w2t = params["w2"].T.astype(jnp.bfloat16)           # (Cout, Ch)
    wdwt = params["w_dw"].T                              # (Ch, 49)
    col = lambda a: a.reshape(-1, 1)
    s1, b1 = col(params["bn1_scale"]), col(params["bn1_bias"])
    bdw = col(params["b_dw"])
    s2, b2 = col(params["bn2_scale"]), col(params["bn2_bias"])
    s3, b3 = col(params["bn3_scale"]), col(params["bn3_bias"])

    # Per-dj column-validity masks (1 where the shifted column stays inside the
    # image), baked as constants on the host.
    w_idx = np.arange(HW) % W
    maskc = np.stack([((w_idx + (j - 3) >= 0) & (w_idx + (j - 3) < W))
                      for j in range(7)]).astype(np.float32)           # (7, HW)
    maskc = jnp.asarray(maskc)

    flops = 2 * B * HW * Ch * (Cin + Cout) + (2 * 49 + 8) * B * HW * Ch
    transcendentals = 2 * B * HW * Ch                   # two GELUs on the hidden
    bytes_accessed = (B * Cin * HW * 4 + B * Cout * HW * 4
                      + (Cin * Ch + Ch * Cout) * 2
                      + (49 + 5) * Ch * 4 + 2 * Cout * 4 + 7 * HW * 4)

    const = lambda *_: (0, 0)
    out = pl.pallas_call(
        functools.partial(_mlp_kernel, W=W),
        grid=(B,),
        in_specs=[
            pl.BlockSpec((1, Cin, HW), lambda b: (b, 0, 0)),
            pl.BlockSpec((Ch, Cin), const),
            pl.BlockSpec((Ch, 1), const),
            pl.BlockSpec((Ch, 1), const),
            pl.BlockSpec((Ch, 49), const),
            pl.BlockSpec((Ch, 1), const),
            pl.BlockSpec((7, HW), const),
            pl.BlockSpec((Ch, 1), const),
            pl.BlockSpec((Ch, 1), const),
            pl.BlockSpec((Cout, Ch), const),
            pl.BlockSpec((Cout, 1), const),
            pl.BlockSpec((Cout, 1), const),
        ],
        out_specs=pl.BlockSpec((1, Cout, HW), lambda b: (b, 0, 0)),
        out_shape=jax.ShapeDtypeStruct((B, Cout, HW), jnp.float32),
        scratch_shapes=[pltpu.VMEM((Ch, _PAD + HW + _PAD), jnp.float32)],
        compiler_params=pltpu.CompilerParams(
            dimension_semantics=("parallel",)),
        cost_estimate=pl.CostEstimate(flops=flops,
                                      transcendentals=transcendentals,
                                      bytes_accessed=bytes_accessed),
    )(x, w1t, s1, b1, wdwt, bdw, maskc, s2, b2, w2t, s3, b3)

    return out.reshape(B, Cout, H, W)                    # free reshape, still NCHW


# --------------------------------------------------------------------------
# Deterministic parameter init (synthetic, mirrors module __init__ shapes)
# --------------------------------------------------------------------------
def init_params(key, in_features, hidden_features, out_features, scale=(1, 3, 5, 7)):
    ks = jax.random.split(key, 16)
    eps = 1e-5

    def bn_fold(kg, kb, km, kv, c):
        gamma = 1.0 + 0.1 * jax.random.normal(kg, (c,), jnp.float32)
        beta = 0.1 * jax.random.normal(kb, (c,), jnp.float32)
        mean = 0.1 * jax.random.normal(km, (c,), jnp.float32)
        var = 1.0 + 0.2 * jax.random.uniform(kv, (c,), jnp.float32)
        s = gamma / jnp.sqrt(var + eps)
        b = beta - mean * s
        return s.reshape(1, c), b.reshape(1, c)

    w1 = 0.1 * jax.random.normal(ks[0], (in_features, hidden_features), jnp.float32)
    bn1_scale, bn1_bias = bn_fold(ks[1], ks[2], ks[3], ks[4], hidden_features)

    # MultiScaleDWConv channel split: first group gets the remainder
    n = len(scale)
    ch0 = hidden_features - (hidden_features // n) * (n - 1)
    chans = [ch0] + [hidden_features // n] * (n - 1)
    kmax = max(scale)
    w_dw = jnp.zeros((kmax, kmax, hidden_features), jnp.float32)
    b_dw = 0.1 * jax.random.normal(ks[5], (1, hidden_features), jnp.float32)
    kdw = jax.random.split(ks[6], n)
    off = 0
    for i, (k, c) in enumerate(zip(scale, chans)):
        wk = 0.2 * jax.random.normal(kdw[i], (k, k, c), jnp.float32)
        p = (kmax - k) // 2                               # center k x k in 7 x 7
        w_dw = w_dw.at[p:p + k, p:p + k, off:off + c].set(wk)
        off += c
    w_dw = w_dw.reshape(kmax * kmax, hidden_features)

    bn2_scale, bn2_bias = bn_fold(ks[7], ks[8], ks[9], ks[10], hidden_features)
    w2 = 0.1 * jax.random.normal(ks[11], (hidden_features, out_features), jnp.float32)
    bn3_scale, bn3_bias = bn_fold(ks[12], ks[13], ks[14], ks[15], out_features)

    return dict(w1=w1, bn1_scale=bn1_scale, bn1_bias=bn1_bias,
                w_dw=w_dw, b_dw=b_dw,
                bn2_scale=bn2_scale, bn2_bias=bn2_bias,
                w2=w2, bn3_scale=bn3_scale, bn3_bias=bn3_bias)


# --------------------------------------------------------------------------
# Pure-JAX reference (same math, incl. bf16 matmul operands) for correctness
# --------------------------------------------------------------------------
def mlp_reference(x_nchw, params):
    q = lambda a: a.astype(jnp.bfloat16).astype(jnp.float32)   # bf16 rounding
    x = jnp.transpose(x_nchw, (0, 2, 3, 1)).astype(jnp.float32)
    h = jnp.einsum("bhwc,cd->bhwd", q(x), q(params["w1"]))
    h = _gelu(h)
    h = h * params["bn1_scale"].reshape(1, 1, 1, -1) + params["bn1_bias"].reshape(1, 1, 1, -1)
    B, H, W, Ch = h.shape
    hp = jnp.pad(h, ((0, 0), (3, 3), (3, 3), (0, 0)))
    wdw = params["w_dw"].reshape(7, 7, Ch)
    d = jnp.zeros_like(h)
    for i in range(7):
        for j in range(7):
            d = d + hp[:, i:i + H, j:j + W, :] * wdw[i, j]
    y = d + params["b_dw"].reshape(1, 1, 1, -1) + h
    y = _gelu(y)
    y = y * params["bn2_scale"].reshape(1, 1, 1, -1) + params["bn2_bias"].reshape(1, 1, 1, -1)
    z = jnp.einsum("bhwc,cd->bhwd", q(y), q(params["w2"]))
    z = z * params["bn3_scale"].reshape(1, 1, 1, -1) + params["bn3_bias"].reshape(1, 1, 1, -1)
    return jnp.transpose(z, (0, 3, 1, 2))


if __name__ == "__main__":
    key = jax.random.PRNGKey(0)
    kx, kp = jax.random.split(key)

    B, Cin, H, W = 2, 16, 16, 16          # NCHW input, like the PyTorch module
    hidden = 32                           # divisible into 4 multi-scale groups
    x = jax.random.normal(kx, (B, Cin, H, W), jnp.float32)
    params = init_params(kp, Cin, hidden, Cin)

    out = jax.block_until_ready(mlp_forward(x, params))
    assert out.shape == (B, Cin, H, W)

    ref = mlp_reference(x, params)
    max_err = float(jnp.max(jnp.abs(out - ref)))
    assert max_err < 2e-2, f"kernel/reference mismatch: {max_err}"

    print("KERNEL_OK")
</pallas_src>

<mosaic_0001>
module attributes {stable_mosaic.version = 11 : i64} {
  func.func @_mlp_kernel(%arg0: i32, %arg1: memref<1x16x256xf32, #tpu.memory_space<vmem>>, %arg2: memref<32x16xbf16, #tpu.memory_space<vmem>>, %arg3: memref<32x1xf32, #tpu.memory_space<vmem>>, %arg4: memref<32x1xf32, #tpu.memory_space<vmem>>, %arg5: memref<32x49xf32, #tpu.memory_space<vmem>>, %arg6: memref<32x1xf32, #tpu.memory_space<vmem>>, %arg7: memref<7x256xf32, #tpu.memory_space<vmem>>, %arg8: memref<32x1xf32, #tpu.memory_space<vmem>>, %arg9: memref<32x1xf32, #tpu.memory_space<vmem>>, %arg10: memref<16x32xbf16, #tpu.memory_space<vmem>>, %arg11: memref<16x1xf32, #tpu.memory_space<vmem>>, %arg12: memref<16x1xf32, #tpu.memory_space<vmem>>, %arg13: memref<1x16x256xf32, #tpu.memory_space<vmem>>, %arg14: memref<32x512xf32, #tpu.memory_space<vmem>>) attributes {dimension_semantics = [#tpu.dimension_semantics<parallel>], iteration_bounds = array<i64: 2>, scalar_prefetch = 0 : i64, scratch_operands = 1 : i64, tpu.core_type = #tpu.core_type<tc>, window_params = [{transform_indices = @transform_0, window_bounds = array<i64: 1, 16, 256>}, {pipeline_mode = #tpu.pipeline_mode<synchronous>, transform_indices = @transform_1, window_bounds = array<i64: 32, 16>}, {pipeline_mode = #tpu.pipeline_mode<synchronous>, transform_indices = @transform_2, window_bounds = array<i64: 32, 1>}, {pipeline_mode = #tpu.pipeline_mode<synchronous>, transform_indices = @transform_3, window_bounds = array<i64: 32, 1>}, {pipeline_mode = #tpu.pipeline_mode<synchronous>, transform_indices = @transform_4, window_bounds = array<i64: 32, 49>}, {pipeline_mode = #tpu.pipeline_mode<synchronous>, transform_indices = @transform_5, window_bounds = array<i64: 32, 1>}, {pipeline_mode = #tpu.pipeline_mode<synchronous>, transform_indices = @transform_6, window_bounds = array<i64: 7, 256>}, {pipeline_mode = #tpu.pipeline_mode<synchronous>, transform_indices = @transform_7, window_bounds = array<i64: 32, 1>}, {pipeline_mode = #tpu.pipeline_mode<synchronous>, transform_indices = @transform_8, window_bounds = array<i64: 32, 1>}, {pipeline_mode = #tpu.pipeline_mode<synchronous>, transform_indices = @transform_9, window_bounds = array<i64: 16, 32>}, {pipeline_mode = #tpu.pipeline_mode<synchronous>, transform_indices = @transform_10, window_bounds = array<i64: 16, 1>}, {pipeline_mode = #tpu.pipeline_mode<synchronous>, transform_indices = @transform_11, window_bounds = array<i64: 16, 1>}, {transform_indices = @transform_12, window_bounds = array<i64: 1, 16, 256>}]} {
    %c0 = arith.constant 0 : index
    %c0_0 = arith.constant 0 : index
    %c0_1 = arith.constant 0 : index
    %0 = vector.load %arg1[%c0, %c0_0, %c0_1] : memref<1x16x256xf32, #tpu.memory_space<vmem>>, vector<1x16x256xf32>
    %1 = vector.shape_cast %0 : vector<1x16x256xf32> to vector<16x256xf32>
    %2 = arith.truncf %1 : vector<16x256xf32> to vector<16x256xbf16>
    %c0_2 = arith.constant 0 : index
    %c0_3 = arith.constant 0 : index
    %3 = vector.load %arg2[%c0_2, %c0_3] : memref<32x16xbf16, #tpu.memory_space<vmem>>, vector<32x16xbf16>
    %cst = arith.constant dense<0.000000e+00> : vector<32x256xf32>
    %4 = tpu.matmul %3, %2, %cst {dimension_numbers = #tpu.dot_dimension_numbers<[1], [0], [0], [1], [0, 0, 1, 1], [], []>} : vector<32x16xbf16>, vector<16x256xbf16>, vector<32x256xf32> -> vector<32x256xf32>
    %5 = arith.mulf %4, %4 : vector<32x256xf32>
    %6 = arith.mulf %4, %5 : vector<32x256xf32>
    %cst_4 = arith.constant 4.471500e-02 : f32
    %7 = vector.broadcast %cst_4 : f32 to vector<32x256xf32>
    %8 = arith.mulf %7, %6 : vector<32x256xf32>
    %9 = arith.addf %4, %8 : vector<32x256xf32>
    %cst_5 = arith.constant 0.797884583 : f32
    %10 = vector.broadcast %cst_5 : f32 to vector<32x256xf32>
    %11 = arith.mulf %10, %9 : vector<32x256xf32>
    %12 = math.tanh %11 : vector<32x256xf32>
    %cst_6 = arith.constant 1.000000e+00 : f32
    %13 = vector.broadcast %cst_6 : f32 to vector<32x256xf32>
    %14 = arith.addf %13, %12 : vector<32x256xf32>
    %cst_7 = arith.constant 5.000000e-01 : f32
    %15 = vector.broadcast %cst_7 : f32 to vector<32x256xf32>
    %16 = arith.mulf %15, %14 : vector<32x256xf32>
    %17 = arith.mulf %4, %16 : vector<32x256xf32>
    %c0_8 = arith.constant 0 : index
    %c0_9 = arith.constant 0 : index
    %18 = vector.load %arg3[%c0_8, %c0_9] : memref<32x1xf32, #tpu.memory_space<vmem>>, vector<32x1xf32>
    %19 = vector.broadcast %18 : vector<32x1xf32> to vector<32x256xf32>
    %20 = arith.mulf %17, %19 : vector<32x256xf32>
    %c0_10 = arith.constant 0 : index
    %c0_11 = arith.constant 0 : index
    %21 = vector.load %arg4[%c0_10, %c0_11] : memref<32x1xf32, #tpu.memory_space<vmem>>, vector<32x1xf32>
    %22 = vector.broadcast %21 : vector<32x1xf32> to vector<32x256xf32>
    %23 = arith.addf %20, %22 : vector<32x256xf32>
    %cst_12 = arith.constant 0.000000e+00 : f32
    %24 = vector.broadcast %cst_12 : f32 to vector<32x128xf32>
    %c0_13 = arith.constant 0 : index
    %c0_14 = arith.constant 0 : index
    %25 = vector.load %arg14[%c0_13, %c0_14] : memref<32x512xf32, #tpu.memory_space<vmem>>, vector<32x128xf32>
    tpu.vector_store %arg14[%c0_13, %c0_14], %24 {strides = array<i32>} : memref<32x512xf32, #tpu.memory_space<vmem>>, vector<32x128xf32>,
    %cst_15 = arith.constant 0.000000e+00 : f32
    %26 = vector.broadcast %cst_15 : f32 to vector<32x128xf32>
    %c0_16 = arith.constant 0 : index
    %c384 = arith.constant 384 : index
    %27 = vector.load %arg14[%c0_16, %c384] : memref<32x512xf32, #tpu.memory_space<vmem>>, vector<32x128xf32>
    tpu.vector_store %arg14[%c0_16, %c384], %26 {strides = array<i32>} : memref<32x512xf32, #tpu.memory_space<vmem>>, vector<32x128xf32>,
    %c0_17 = arith.constant 0 : index
    %c128 = arith.constant 128 : index
    %28 = vector.load %arg14[%c0_17, %c128] : memref<32x512xf32, #tpu.memory_space<vmem>>, vector<32x256xf32>
    tpu.vector_store %arg14[%c0_17, %c128], %23 {strides = array<i32>} : memref<32x512xf32, #tpu.memory_space<vmem>>, vector<32x256xf32>,
    %c0_18 = arith.constant 0 : index
    %c0_19 = arith.constant 0 : index
    %29 = vector.load %arg6[%c0_18, %c0_19] : memref<32x1xf32, #tpu.memory_space<vmem>>, vector<32x1xf32>
    %30 = vector.broadcast %29 : vector<32x1xf32> to vector<32x256xf32>
    %31 = arith.addf %23, %30 : vector<32x256xf32>
    %c0_20 = arith.constant 0 : index
    %c0_21 = arith.constant 0 : index
    %32 = vector.load %arg7[%c0_20, %c0_21] : memref<7x256xf32, #tpu.memory_space<vmem>>, vector<1x256xf32>
    %c0_22 = arith.constant 0 : index
    %c77 = arith.constant 77 : index
    %33 = vector.load %arg14[%c0_22, %c77] : memref<32x512xf32, #tpu.memory_space<vmem>>, vector<32x256xf32>
    %c0_23 = arith.constant 0 : index
    %c0_24 = arith.constant 0 : index
    %34 = vector.load %arg5[%c0_23, %c0_24] : memref<32x49xf32, #tpu.memory_space<vmem>>, vector<32x1xf32>
    %35 = vector.broadcast %34 : vector<32x1xf32> to vector<32x256xf32>
    %36 = arith.mulf %33, %35 : vector<32x256xf32>
    %c0_25 = arith.constant 0 : index
    %c93 = arith.constant 93 : index
    %37 = vector.load %arg14[%c0_25, %c93] : memref<32x512xf32, #tpu.memory_space<vmem>>, vector<32x256xf32>
    %c0_26 = arith.constant 0 : index
    %c7 = arith.constant 7 : index
    %38 = vector.load %arg5[%c0_26, %c7] : memref<32x49xf32, #tpu.memory_space<vmem>>, vector<32x1xf32>
    %39 = vector.broadcast %38 : vector<32x1xf32> to vector<32x256xf32>
    %40 = arith.mulf %37, %39 : vector<32x256xf32>
    %41 = arith.addf %36, %40 : vector<32x256xf32>
    %c0_27 = arith.constant 0 : index
    %c109 = arith.constant 109 : index
    %42 = vector.load %arg14[%c0_27, %c109] : memref<32x512xf32, #tpu.memory_space<vmem>>, vector<32x256xf32>
    %c0_28 = arith.constant 0 : index
    %c14 = arith.constant 14 : index
    %43 = vector.load %arg5[%c0_28, %c14] : memref<32x49xf32, #tpu.memory_space<vmem>>, vector<32x1xf32>
    %44 = vector.broadcast %43 : vector<32x1xf32> to vector<32x256xf32>
    %45 = arith.mulf %42, %44 : vector<32x256xf32>
    %46 = arith.addf %41, %45 : vector<32x256xf32>
    %c0_29 = arith.constant 0 : index
    %c125 = arith.constant 125 : index
    %47 = vector.load %arg14[%c0_29, %c125] : memref<32x512xf32, #tpu.memory_space<vmem>>, vector<32x256xf32>
    %c0_30 = arith.constant 0 : index
    %c21 = arith.constant 21 : index
    %48 = vector.load %arg5[%c0_30, %c21] : memref<32x49xf32, #tpu.memory_space<vmem>>, vector<32x1xf32>
    %49 = vector.broadcast %48 : vector<32x1xf32> to vector<32x256xf32>
    %50 = arith.mulf %47, %49 : vector<32x256xf32>
    %51 = arith.addf %46, %50 : vector<32x256xf32>
    %c0_31 = arith.constant 0 : index
    %c141 = arith.constant 141 : index
    %52 = vector.load %arg14[%c0_31, %c141] : memref<32x512xf32, #tpu.memory_space<vmem>>, vector<32x256xf32>
    %c0_32 = arith.constant 0 : index
    %c28 = arith.constant 28 : index
    %53 = vector.load %arg5[%c0_32, %c28] : memref<32x49xf32, #tpu.memory_space<vmem>>, vector<32x1xf32>
    %54 = vector.broadcast %53 : vector<32x1xf32> to vector<32x256xf32>
    %55 = arith.mulf %52, %54 : vector<32x256xf32>
    %56 = arith.addf %51, %55 : vector<32x256xf32>
    %c0_33 = arith.constant 0 : index
    %c157 = arith.constant 157 : index
    %57 = vector.load %arg14[%c0_33, %c157] : memref<32x512xf32, #tpu.memory_space<vmem>>, vector<32x256xf32>
    %c0_34 = arith.constant 0 : index
    %c35 = arith.constant 35 : index
    %58 = vector.load %arg5[%c0_34, %c35] : memref<32x49xf32, #tpu.memory_space<vmem>>, vector<32x1xf32>
    %59 = vector.broadcast %58 : vector<32x1xf32> to vector<32x256xf32>
    %60 = arith.mulf %57, %59 : vector<32x256xf32>
    %61 = arith.addf %56, %60 : vector<32x256xf32>
    %c0_35 = arith.constant 0 : index
    %c173 = arith.constant 173 : index
    %62 = vector.load %arg14[%c0_35, %c173] : memref<32x512xf32, #tpu.memory_space<vmem>>, vector<32x256xf32>
    %c0_36 = arith.constant 0 : index
    %c42 = arith.constant 42 : index
    %63 = vector.load %arg5[%c0_36, %c42] : memref<32x49xf32, #tpu.memory_space<vmem>>, vector<32x1xf32>
    %64 = vector.broadcast %63 : vector<32x1xf32> to vector<32x256xf32>
    %65 = arith.mulf %62, %64 : vector<32x256xf32>
    %66 = arith.addf %61, %65 : vector<32x256xf32>
    %67 = vector.broadcast %32 : vector<1x256xf32> to vector<32x256xf32>
    %68 = arith.mulf %66, %67 : vector<32x256xf32>
    %69 = arith.addf %31, %68 : vector<32x256xf32>
    %c1 = arith.constant 1 : index
    %c0_37 = arith.constant 0 : index
    %70 = vector.load %arg7[%c1, %c0_37] : memref<7x256xf32, #tpu.memory_space<vmem>>, vector<1x256xf32>
    %c0_38 = arith.constant 0 : index
    %c78 = arith.constant 78 : index
    %71 = vector.load %arg14[%c0_38, %c78] : memref<32x512xf32, #tpu.memory_space<vmem>>, vector<32x256xf32>
    %c0_39 = arith.constant 0 : index
    %c1_40 = arith.constant 1 : index
    %72 = vector.load %arg5[%c0_39, %c1_40] : memref<32x49xf32, #tpu.memory_space<vmem>>, vector<32x1xf32>
    %73 = vector.broadcast %72 : vector<32x1xf32> to vector<32x256xf32>
    %74 = arith.mulf %71, %73 : vector<32x256xf32>
    %c0_41 = arith.constant 0 : index
    %c94 = arith.constant 94 : index
    %75 = vector.load %arg14[%c0_41, %c94] : memref<32x512xf32, #tpu.memory_space<vmem>>, vector<32x256xf32>
    %c0_42 = arith.constant 0 : index
    %c8 = arith.constant 8 : index
    %76 = vector.load %arg5[%c0_42, %c8] : memref<32x49xf32, #tpu.memory_space<vmem>>, vector<32x1xf32>
    %77 = vector.broadcast %76 : vector<32x1xf32> to vector<32x256xf32>
    %78 = arith.mulf %75, %77 : vector<32x256xf32>
    %79 = arith.addf %74, %78 : vector<32x256xf32>
    %c0_43 = arith.constant 0 : index
    %c110 = arith.constant 110 : index
    %80 = vector.load %arg14[%c0_43, %c110] : memref<32x512xf32, #tpu.memory_space<vmem>>, vector<32x256xf32>
    %c0_44 = arith.constant 0 : index
    %c15 = arith.constant 15 : index
    %81 = vector.load %arg5[%c0_44, %c15] : memref<32x49xf32, #tpu.memory_space<vmem>>, vector<32x1xf32>
    %82 = vector.broadcast %81 : vector<32x1xf32> to vector<32x256xf32>
    %83 = arith.mulf %80, %82 : vector<32x256xf32>
    %84 = arith.addf %79, %83 : vector<32x256xf32>
    %c0_45 = arith.constant 0 : index
    %c126 = arith.constant 126 : index
    %85 = vector.load %arg14[%c0_45, %c126] : memref<32x512xf32, #tpu.memory_space<vmem>>, vector<32x256xf32>
    %c0_46 = arith.constant 0 : index
    %c22 = arith.constant 22 : index
    %86 = vector.load %arg5[%c0_46, %c22] : memref<32x49xf32, #tpu.memory_space<vmem>>, vector<32x1xf32>
    %87 = vector.broadcast %86 : vector<32x1xf32> to vector<32x256xf32>
    %88 = arith.mulf %85, %87 : vector<32x256xf32>
    %89 = arith.addf %84, %88 : vector<32x256xf32>
    %c0_47 = arith.constant 0 : index
    %c142 = arith.constant 142 : index
    %90 = vector.load %arg14[%c0_47, %c142] : memref<32x512xf32, #tpu.memory_space<vmem>>, vector<32x256xf32>
    %c0_48 = arith.constant 0 : index
    %c29 = arith.constant 29 : index
    %91 = vector.load %arg5[%c0_48, %c29] : memref<32x49xf32, #tpu.memory_space<vmem>>, vector<32x1xf32>
    %92 = vector.broadcast %91 : vector<32x1xf32> to vector<32x256xf32>
    %93 = arith.mulf %90, %92 : vector<32x256xf32>
    %94 = arith.addf %89, %93 : vector<32x256xf32>
    %c0_49 = arith.constant 0 : index
    %c158 = arith.constant 158 : index
    %95 = vector.load %arg14[%c0_49, %c158] : memref<32x512xf32, #tpu.memory_space<vmem>>, vector<32x256xf32>
    %c0_50 = arith.constant 0 : index
    %c36 = arith.constant 36 : index
    %96 = vector.load %arg5[%c0_50, %c36] : memref<32x49xf32, #tpu.memory_space<vmem>>, vector<32x1xf32>
    %97 = vector.broadcast %96 : vector<32x1xf32> to vector<32x256xf32>
    %98 = arith.mulf %95, %97 : vector<32x256xf32>
    %99 = arith.addf %94, %98 : vector<32x256xf32>
    %c0_51 = arith.constant 0 : index
    %c174 = arith.constant 174 : index
    %100 = vector.load %arg14[%c0_51, %c174] : memref<32x512xf32, #tpu.memory_space<vmem>>, vector<32x256xf32>
    %c0_52 = arith.constant 0 : index
    %c43 = arith.constant 43 : index
    %101 = vector.load %arg5[%c0_52, %c43] : memref<32x49xf32, #tpu.memory_space<vmem>>, vector<32x1xf32>
    %102 = vector.broadcast %101 : vector<32x1xf32> to vector<32x256xf32>
    %103 = arith.mulf %100, %102 : vector<32x256xf32>
    %104 = arith.addf %99, %103 : vector<32x256xf32>
    %105 = vector.broadcast %70 : vector<1x256xf32> to vector<32x256xf32>
    %106 = arith.mulf %104, %105 : vector<32x256xf32>
    %107 = arith.addf %69, %106 : vector<32x256xf32>
    %c2 = arith.constant 2 : index
    %c0_53 = arith.constant 0 : index
    %108 = vector.load %arg7[%c2, %c0_53] : memref<7x256xf32, #tpu.memory_space<vmem>>, vector<1x256xf32>
    %c0_54 = arith.constant 0 : index
    %c79 = arith.constant 79 : index
    %109 = vector.load %arg14[%c0_54, %c79] : memref<32x512xf32, #tpu.memory_space<vmem>>, vector<32x256xf32>
    %c0_55 = arith.constant 0 : index
    %c2_56 = arith.constant 2 : index
    %110 = vector.load %arg5[%c0_55, %c2_56] : memref<32x49xf32, #tpu.memory_space<vmem>>, vector<32x1xf32>
    %111 = vector.broadcast %110 : vector<32x1xf32> to vector<32x256xf32>
    %112 = arith.mulf %109, %111 : vector<32x256xf32>
    %c0_57 = arith.constant 0 : index
    %c95 = arith.constant 95 : index
    %113 = vector.load %arg14[%c0_57, %c95] : memref<32x512xf32, #tpu.memory_space<vmem>>, vector<32x256xf32>
    %c0_58 = arith.constant 0 : index
    %c9 = arith.constant 9 : index
    %114 = vector.load %arg5[%c0_58, %c9] : memref<32x49xf32, #tpu.memory_space<vmem>>, vector<32x1xf32>
    %115 = vector.broadcast %114 : vector<32x1xf32> to vector<32x256xf32>
    %116 = arith.mulf %113, %115 : vector<32x256xf32>
    %117 = arith.addf %112, %116 : vector<32x256xf32>
    %c0_59 = arith.constant 0 : index
    %c111 = arith.constant 111 : index
    %118 = vector.load %arg14[%c0_59, %c111] : memref<32x512xf32, #tpu.memory_space<vmem>>, vector<32x256xf32>
    %c0_60 = arith.constant 0 : index
    %c16 = arith.constant 16 : index
    %119 = vector.load %arg5[%c0_60, %c16] : memref<32x49xf32, #tpu.memory_space<vmem>>, vector<32x1xf32>
    %120 = vector.broadcast %119 : vector<32x1xf32> to vector<32x256xf32>
    %121 = arith.mulf %118, %120 : vector<32x256xf32>
    %122 = arith.addf %117, %121 : vector<32x256xf32>
    %c0_61 = arith.constant 0 : index
    %c127 = arith.constant 127 : index
    %123 = vector.load %arg14[%c0_61, %c127] : memref<32x512xf32, #tpu.memory_space<vmem>>, vector<32x256xf32>
    %c0_62 = arith.constant 0 : index
    %c23 = arith.constant 23 : index
    %124 = vector.load %arg5[%c0_62, %c23] : memref<32x49xf32, #tpu.memory_space<vmem>>, vector<32x1xf32>
    %125 = vector.broadcast %124 : vector<32x1xf32> to vector<32x256xf32>
    %126 = arith.mulf %123, %125 : vector<32x256xf32>
    %127 = arith.addf %122, %126 : vector<32x256xf32>
    %c0_63 = arith.constant 0 : index
    %c143 = arith.constant 143 : index
    %128 = vector.load %arg14[%c0_63, %c143] : memref<32x512xf32, #tpu.memory_space<vmem>>, vector<32x256xf32>
    %c0_64 = arith.constant 0 : index
    %c30 = arith.constant 30 : index
    %129 = vector.load %arg5[%c0_64, %c30] : memref<32x49xf32, #tpu.memory_space<vmem>>, vector<32x1xf32>
    %130 = vector.broadcast %129 : vector<32x1xf32> to vector<32x256xf32>
    %131 = arith.mulf %128, %130 : vector<32x256xf32>
    %132 = arith.addf %127, %131 : vector<32x256xf32>
    %c0_65 = arith.constant 0 : index
    %c159 = arith.constant 159 : index
    %133 = vector.load %arg14[%c0_65, %c159] : memref<32x512xf32, #tpu.memory_space<vmem>>, vector<32x256xf32>
    %c0_66 = arith.constant 0 : index
    %c37 = arith.constant 37 : index
    %134 = vector.load %arg5[%c0_66, %c37] : memref<32x49xf32, #tpu.memory_space<vmem>>, vector<32x1xf32>
    %135 = vector.broadcast %134 : vector<32x1xf32> to vector<32x256xf32>
    %136 = arith.mulf %133, %135 : vector<32x256xf32>
    %137 = arith.addf %132, %136 : vector<32x256xf32>
    %c0_67 = arith.constant 0 : index
    %c175 = arith.constant 175 : index
    %138 = vector.load %arg14[%c0_67, %c175] : memref<32x512xf32, #tpu.memory_space<vmem>>, vector<32x256xf32>
    %c0_68 = arith.constant 0 : index
    %c44 = arith.constant 44 : index
    %139 = vector.load %arg5[%c0_68, %c44] : memref<32x49xf32, #tpu.memory_space<vmem>>, vector<32x1xf32>
    %140 = vector.broadcast %139 : vector<32x1xf32> to vector<32x256xf32>
    %141 = arith.mulf %138, %140 : vector<32x256xf32>
    %142 = arith.addf %137, %141 : vector<32x256xf32>
    %143 = vector.broadcast %108 : vector<1x256xf32> to vector<32x256xf32>
    %144 = arith.mulf %142, %143 : vector<32x256xf32>
    %145 = arith.addf %107, %144 : vector<32x256xf32>
    %c3 = arith.constant 3 : index
    %c0_69 = arith.constant 0 : index
    %146 = vector.load %arg7[%c3, %c0_69] : memref<7x256xf32, #tpu.memory_space<vmem>>, vector<1x256xf32>
    %c0_70 = arith.constant 0 : index
    %c80 = arith.constant 80 : index
    %147 = vector.load %arg14[%c0_70, %c80] : memref<32x512xf32, #tpu.memory_space<vmem>>, vector<32x256xf32>
    %c0_71 = arith.constant 0 : index
    %c3_72 = arith.constant 3 : index
    %148 = vector.load %arg5[%c0_71, %c3_72] : memref<32x49xf32, #tpu.memory_space<vmem>>, vector<32x1xf32>
    %149 = vector.broadcast %148 : vector<32x1xf32> to vector<32x256xf32>
    %150 = arith.mulf %147, %149 : vector<32x256xf32>
    %c0_73 = arith.constant 0 : index
    %c96 = arith.constant 96 : index
    %151 = vector.load %arg14[%c0_73, %c96] : memref<32x512xf32, #tpu.memory_space<vmem>>, vector<32x256xf32>
    %c0_74 = arith.constant 0 : index
    %c10 = arith.constant 10 : index
    %152 = vector.load %arg5[%c0_74, %c10] : memref<32x49xf32, #tpu.memory_space<vmem>>, vector<32x1xf32>
    %153 = vector.broadcast %152 : vector<32x1xf32> to vector<32x256xf32>
    %154 = arith.mulf %151, %153 : vector<32x256xf32>
    %155 = arith.addf %150, %154 : vector<32x256xf32>
    %c0_75 = arith.constant 0 : index
    %c112 = arith.constant 112 : index
    %156 = vector.load %arg14[%c0_75, %c112] : memref<32x512xf32, #tpu.memory_space<vmem>>, vector<32x256xf32>
    %c0_76 = arith.constant 0 : index
    %c17 = arith.constant 17 : index
    %157 = vector.load %arg5[%c0_76, %c17] : memref<32x49xf32, #tpu.memory_space<vmem>>, vector<32x1xf32>
    %158 = vector.broadcast %157 : vector<32x1xf32> to vector<32x256xf32>
    %159 = arith.mulf %156, %158 : vector<32x256xf32>
    %160 = arith.addf %155, %159 : vector<32x256xf32>
    %c0_77 = arith.constant 0 : index
    %c128_78 = arith.constant 128 : index
    %161 = vector.load %arg14[%c0_77, %c128_78] : memref<32x512xf32, #tpu.memory_space<vmem>>, vector<32x256xf32>
    %c0_79 = arith.constant 0 : index
    %c24 = arith.constant 24 : index
    %162 = vector.load %arg5[%c0_79, %c24] : memref<32x49xf32, #tpu.memory_space<vmem>>, vector<32x1xf32>
    %163 = vector.broadcast %162 : vector<32x1xf32> to vector<32x256xf32>
    %164 = arith.mulf %161, %163 : vector<32x256xf32>
    %165 = arith.addf %160, %164 : vector<32x256xf32>
    %c0_80 = arith.constant 0 : index
    %c144 = arith.constant 144 : index
    %166 = vector.load %arg14[%c0_80, %c144] : memref<32x512xf32, #tpu.memory_space<vmem>>, vector<32x256xf32>
    %c0_81 = arith.constant 0 : index
    %c31 = arith.constant 31 : index
    %167 = vector.load %arg5[%c0_81, %c31] : memref<32x49xf32, #tpu.memory_space<vmem>>, vector<32x1xf32>
    %168 = vector.broadcast %167 : vector<32x1xf32> to vector<32x256xf32>
    %169 = arith.mulf %166, %168 : vector<32x256xf32>
    %170 = arith.addf %165, %169 : vector<32x256xf32>
    %c0_82 = arith.constant 0 : index
    %c160 = arith.constant 160 : index
    %171 = vector.load %arg14[%c0_82, %c160] : memref<32x512xf32, #tpu.memory_space<vmem>>, vector<32x256xf32>
    %c0_83 = arith.constant 0 : index
    %c38 = arith.constant 38 : index
    %172 = vector.load %arg5[%c0_83, %c38] : memref<32x49xf32, #tpu.memory_space<vmem>>, vector<32x1xf32>
    %173 = vector.broadcast %172 : vector<32x1xf32> to vector<32x256xf32>
    %174 = arith.mulf %171, %173 : vector<32x256xf32>
    %175 = arith.addf %170, %174 : vector<32x256xf32>
    %c0_84 = arith.constant 0 : index
    %c176 = arith.constant 176 : index
    %176 = vector.load %arg14[%c0_84, %c176] : memref<32x512xf32, #tpu.memory_space<vmem>>, vector<32x256xf32>
    %c0_85 = arith.constant 0 : index
    %c45 = arith.constant 45 : index
    %177 = vector.load %arg5[%c0_85, %c45] : memref<32x49xf32, #tpu.memory_space<vmem>>, vector<32x1xf32>
    %178 = vector.broadcast %177 : vector<32x1xf32> to vector<32x256xf32>
    %179 = arith.mulf %176, %178 : vector<32x256xf32>
    %180 = arith.addf %175, %179 : vector<32x256xf32>
    %181 = vector.broadcast %146 : vector<1x256xf32> to vector<32x256xf32>
    %182 = arith.mulf %180, %181 : vector<32x256xf32>
    %183 = arith.addf %145, %182 : vector<32x256xf32>
    %c4 = arith.constant 4 : index
    %c0_86 = arith.constant 0 : index
    %184 = vector.load %arg7[%c4, %c0_86] : memref<7x256xf32, #tpu.memory_space<vmem>>, vector<1x256xf32>
    %c0_87 = arith.constant 0 : index
    %c81 = arith.constant 81 : index
    %185 = vector.load %arg14[%c0_87, %c81] : memref<32x512xf32, #tpu.memory_space<vmem>>, vector<32x256xf32>
    %c0_88 = arith.constant 0 : index
    %c4_89 = arith.constant 4 : index
    %186 = vector.load %arg5[%c0_88, %c4_89] : memref<32x49xf32, #tpu.memory_space<vmem>>, vector<32x1xf32>
    %187 = vector.broadcast %186 : vector<32x1xf32> to vector<32x256xf32>
    %188 = arith.mulf %185, %187 : vector<32x256xf32>
    %c0_90 = arith.constant 0 : index
    %c97 = arith.constant 97 : index
    %189 = vector.load %arg14[%c0_90, %c97] : memref<32x512xf32, #tpu.memory_space<vmem>>, vector<32x256xf32>
    %c0_91 = arith.constant 0 : index
    %c11 = arith.constant 11 : index
    %190 = vector.load %arg5[%c0_91, %c11] : memref<32x49xf32, #tpu.memory_space<vmem>>, vector<32x1xf32>
    %191 = vector.broadcast %190 : vector<32x1xf32> to vector<32x256xf32>
    %192 = arith.mulf %189, %191 : vector<32x256xf32>
    %193 = arith.addf %188, %192 : vector<32x256xf32>
    %c0_92 = arith.constant 0 : index
    %c113 = arith.constant 113 : index
    %194 = vector.load %arg14[%c0_92, %c113] : memref<32x512xf32, #tpu.memory_space<vmem>>, vector<32x256xf32>
    %c0_93 = arith.constant 0 : index
    %c18 = arith.constant 18 : index
    %195 = vector.load %arg5[%c0_93, %c18] : memref<32x49xf32, #tpu.memory_space<vmem>>, vector<32x1xf32>
    %196 = vector.broadcast %195 : vector<32x1xf32> to vector<32x256xf32>
    %197 = arith.mulf %194, %196 : vector<32x256xf32>
    %198 = arith.addf %193, %197 : vector<32x256xf32>
    %c0_94 = arith.constant 0 : index
    %c129 = arith.constant 129 : index
    %199 = vector.load %arg14[%c0_94, %c129] : memref<32x512xf32, #tpu.memory_space<vmem>>, vector<32x256xf32>
    %c0_95 = arith.constant 0 : index
    %c25 = arith.constant 25 : index
    %200 = vector.load %arg5[%c0_95, %c25] : memref<32x49xf32, #tpu.memory_space<vmem>>, vector<32x1xf32>
    %201 = vector.broadcast %200 : vector<32x1xf32> to vector<32x256xf32>
    %202 = arith.mulf %199, %201 : vector<32x256xf32>
    %203 = arith.addf %198, %202 : vector<32x256xf32>
    %c0_96 = arith.constant 0 : index
    %c145 = arith.constant 145 : index
    %204 = vector.load %arg14[%c0_96, %c145] : memref<32x512xf32, #tpu.memory_space<vmem>>, vector<32x256xf32>
    %c0_97 = arith.constant 0 : index
    %c32 = arith.constant 32 : index
    %205 = vector.load %arg5[%c0_97, %c32] : memref<32x49xf32, #tpu.memory_space<vmem>>, vector<32x1xf32>
    %206 = vector.broadcast %205 : vector<32x1xf32> to vector<32x256xf32>
    %207 = arith.mulf %204, %206 : vector<32x256xf32>
    %208 = arith.addf %203, %207 : vector<32x256xf32>
    %c0_98 = arith.constant 0 : index
    %c161 = arith.constant 161 : index
    %209 = vector.load %arg14[%c0_98, %c161] : memref<32x512xf32, #tpu.memory_space<vmem>>, vector<32x256xf32>
    %c0_99 = arith.constant 0 : index
    %c39 = arith.constant 39 : index
    %210 = vector.load %arg5[%c0_99, %c39] : memref<32x49xf32, #tpu.memory_space<vmem>>, vector<32x1xf32>
    %211 = vector.broadcast %210 : vector<32x1xf32> to vector<32x256xf32>
    %212 = arith.mulf %209, %211 : vector<32x256xf32>
    %213 = arith.addf %208, %212 : vector<32x256xf32>
    %c0_100 = arith.constant 0 : index
    %c177 = arith.constant 177 : index
    %214 = vector.load %arg14[%c0_100, %c177] : memref<32x512xf32, #tpu.memory_space<vmem>>, vector<32x256xf32>
    %c0_101 = arith.constant 0 : index
    %c46 = arith.constant 46 : index
    %215 = vector.load %arg5[%c0_101, %c46] : memref<32x49xf32, #tpu.memory_space<vmem>>, vector<32x1xf32>
    %216 = vector.broadcast %215 : vector<32x1xf32> to vector<32x256xf32>
    %217 = arith.mulf %214, %216 : vector<32x256xf32>
    %218 = arith.addf %213, %217 : vector<32x256xf32>
    %219 = vector.broadcast %184 : vector<1x256xf32> to vector<32x256xf32>
    %220 = arith.mulf %218, %219 : vector<32x256xf32>
    %221 = arith.addf %183, %220 : vector<32x256xf32>
    %c5 = arith.constant 5 : index
    %c0_102 = arith.constant 0 : index
    %222 = vector.load %arg7[%c5, %c0_102] : memref<7x256xf32, #tpu.memory_space<vmem>>, vector<1x256xf32>
    %c0_103 = arith.constant 0 : index
    %c82 = arith.constant 82 : index
    %223 = vector.load %arg14[%c0_103, %c82] : memref<32x512xf32, #tpu.memory_space<vmem>>, vector<32x256xf32>
    %c0_104 = arith.constant 0 : index
    %c5_105 = arith.constant 5 : index
    %224 = vector.load %arg5[%c0_104, %c5_105] : memref<32x49xf32, #tpu.memory_space<vmem>>, vector<32x1xf32>
    %225 = vector.broadcast %224 : vector<32x1xf32> to vector<32x256xf32>
    %226 = arith.mulf %223, %225 : vector<32x256xf32>
    %c0_106 = arith.constant 0 : index
    %c98 = arith.constant 98 : index
    %227 = vector.load %arg14[%c0_106, %c98] : memref<32x512xf32, #tpu.memory_space<vmem>>, vector<32x256xf32>
    %c0_107 = arith.constant 0 : index
    %c12 = arith.constant 12 : index
    %228 = vector.load %arg5[%c0_107, %c12] : memref<32x49xf32, #tpu.memory_space<vmem>>, vector<32x1xf32>
    %229 = vector.broadcast %228 : vector<32x1xf32> to vector<32x256xf32>
    %230 = arith.mulf %227, %229 : vector<32x256xf32>
    %231 = arith.addf %226, %230 : vector<32x256xf32>
    %c0_108 = arith.constant 0 : index
    %c114 = arith.constant 114 : index
    %232 = vector.load %arg14[%c0_108, %c114] : memref<32x512xf32, #tpu.memory_space<vmem>>, vector<32x256xf32>
    %c0_109 = arith.constant 0 : index
    %c19 = arith.constant 19 : index
    %233 = vector.load %arg5[%c0_109, %c19] : memref<32x49xf32, #tpu.memory_space<vmem>>, vector<32x1xf32>
    %234 = vector.broadcast %233 : vector<32x1xf32> to vector<32x256xf32>
    %235 = arith.mulf %232, %234 : vector<32x256xf32>
    %236 = arith.addf %231, %235 : vector<32x256xf32>
    %c0_110 = arith.constant 0 : index
    %c130 = arith.constant 130 : index
    %237 = vector.load %arg14[%c0_110, %c130] : memref<32x512xf32, #tpu.memory_space<vmem>>, vector<32x256xf32>
    %c0_111 = arith.constant 0 : index
    %c26 = arith.constant 26 : index
    %238 = vector.load %arg5[%c0_111, %c26] : memref<32x49xf32, #tpu.memory_space<vmem>>, vector<32x1xf32>
    %239 = vector.broadcast %238 : vector<32x1xf32> to vector<32x256xf32>
    %240 = arith.mulf %237, %239 : vector<32x256xf32>
    %241 = arith.addf %236, %240 : vector<32x256xf32>
    %c0_112 = arith.constant 0 : index
    %c146 = arith.constant 146 : index
    %242 = vector.load %arg14[%c0_112, %c146] : memref<32x512xf32, #tpu.memory_space<vmem>>, vector<32x256xf32>
    %c0_113 = arith.constant 0 : index
    %c33 = arith.constant 33 : index
    %243 = vector.load %arg5[%c0_113, %c33] : memref<32x49xf32, #tpu.memory_space<vmem>>, vector<32x1xf32>
    %244 = vector.broadcast %243 : vector<32x1xf32> to vector<32x256xf32>
    %245 = arith.mulf %242, %244 : vector<32x256xf32>
    %246 = arith.addf %241, %245 : vector<32x256xf32>
    %c0_114 = arith.constant 0 : index
    %c162 = arith.constant 162 : index
    %247 = vector.load %arg14[%c0_114, %c162] : memref<32x512xf32, #tpu.memory_space<vmem>>, vector<32x256xf32>
    %c0_115 = arith.constant 0 : index
    %c40 = arith.constant 40 : index
    %248 = vector.load %arg5[%c0_115, %c40] : memref<32x49xf32, #tpu.memory_space<vmem>>, vector<32x1xf32>
    %249 = vector.broadcast %248 : vector<32x1xf32> to vector<32x256xf32>
    %250 = arith.mulf %247, %249 : vector<32x256xf32>
    %251 = arith.addf %246, %250 : vector<32x256xf32>
    %c0_116 = arith.constant 0 : index
    %c178 = arith.constant 178 : index
    %252 = vector.load %arg14[%c0_116, %c178] : memref<32x512xf32, #tpu.memory_space<vmem>>, vector<32x256xf32>
    %c0_117 = arith.constant 0 : index
    %c47 = arith.constant 47 : index
    %253 = vector.load %arg5[%c0_117, %c47] : memref<32x49xf32, #tpu.memory_space<vmem>>, vector<32x1xf32>
    %254 = vector.broadcast %253 : vector<32x1xf32> to vector<32x256xf32>
    %255 = arith.mulf %252, %254 : vector<32x256xf32>
    %256 = arith.addf %251, %255 : vector<32x256xf32>
    %257 = vector.broadcast %222 : vector<1x256xf32> to vector<32x256xf32>
    %258 = arith.mulf %256, %257 : vector<32x256xf32>
    %259 = arith.addf %221, %258 : vector<32x256xf32>
    %c6 = arith.constant 6 : index
    %c0_118 = arith.constant 0 : index
    %260 = vector.load %arg7[%c6, %c0_118] : memref<7x256xf32, #tpu.memory_space<vmem>>, vector<1x256xf32>
    %c0_119 = arith.constant 0 : index
    %c83 = arith.constant 83 : index
    %261 = vector.load %arg14[%c0_119, %c83] : memref<32x512xf32, #tpu.memory_space<vmem>>, vector<32x256xf32>
    %c0_120 = arith.constant 0 : index
    %c6_121 = arith.constant 6 : index
    %262 = vector.load %arg5[%c0_120, %c6_121] : memref<32x49xf32, #tpu.memory_space<vmem>>, vector<32x1xf32>
    %263 = vector.broadcast %262 : vector<32x1xf32> to vector<32x256xf32>
    %264 = arith.mulf %261, %263 : vector<32x256xf32>
    %c0_122 = arith.constant 0 : index
    %c99 = arith.constant 99 : index
    %265 = vector.load %arg14[%c0_122, %c99] : memref<32x512xf32, #tpu.memory_space<vmem>>, vector<32x256xf32>
    %c0_123 = arith.constant 0 : index
    %c13 = arith.constant 13 : index
    %266 = vector.load %arg5[%c0_123, %c13] : memref<32x49xf32, #tpu.memory_space<vmem>>, vector<32x1xf32>
    %267 = vector.broadcast %266 : vector<32x1xf32> to vector<32x256xf32>
    %268 = arith.mulf %265, %267 : vector<32x256xf32>
    %269 = arith.addf %264, %268 : vector<32x256xf32>
    %c0_124 = arith.constant 0 : index
    %c115 = arith.constant 115 : index
    %270 = vector.load %arg14[%c0_124, %c115] : memref<32x512xf32, #tpu.memory_space<vmem>>, vector<32x256xf32>
    %c0_125 = arith.constant 0 : index
    %c20 = arith.constant 20 : index
    %271 = vector.load %arg5[%c0_125, %c20] : memref<32x49xf32, #tpu.memory_space<vmem>>, vector<32x1xf32>
    %272 = vector.broadcast %271 : vector<32x1xf32> to vector<32x256xf32>
    %273 = arith.mulf %270, %272 : vector<32x256xf32>
    %274 = arith.addf %269, %273 : vector<32x256xf32>
    %c0_126 = arith.constant 0 : index
    %c131 = arith.constant 131 : index
    %275 = vector.load %arg14[%c0_126, %c131] : memref<32x512xf32, #tpu.memory_space<vmem>>, vector<32x256xf32>
    %c0_127 = arith.constant 0 : index
    %c27 = arith.constant 27 : index
    %276 = vector.load %arg5[%c0_127, %c27] : memref<32x49xf32, #tpu.memory_space<vmem>>, vector<32x1xf32>
    %277 = vector.broadcast %276 : vector<32x1xf32> to vector<32x256xf32>
    %278 = arith.mulf %275, %277 : vector<32x256xf32>
    %279 = arith.addf %274, %278 : vector<32x256xf32>
    %c0_128 = arith.constant 0 : index
    %c147 = arith.constant 147 : index
    %280 = vector.load %arg14[%c0_128, %c147] : memref<32x512xf32, #tpu.memory_space<vmem>>, vector<32x256xf32>
    %c0_129 = arith.constant 0 : index
    %c34 = arith.constant 34 : index
    %281 = vector.load %arg5[%c0_129, %c34] : memref<32x49xf32, #tpu.memory_space<vmem>>, vector<32x1xf32>
    %282 = vector.broadcast %281 : vector<32x1xf32> to vector<32x256xf32>
    %283 = arith.mulf %280, %282 : vector<32x256xf32>
    %284 = arith.addf %279, %283 : vector<32x256xf32>
    %c0_130 = arith.constant 0 : index
    %c163 = arith.constant 163 : index
    %285 = vector.load %arg14[%c0_130, %c163] : memref<32x512xf32, #tpu.memory_space<vmem>>, vector<32x256xf32>
    %c0_131 = arith.constant 0 : index
    %c41 = arith.constant 41 : index
    %286 = vector.load %arg5[%c0_131, %c41] : memref<32x49xf32, #tpu.memory_space<vmem>>, vector<32x1xf32>
    %287 = vector.broadcast %286 : vector<32x1xf32> to vector<32x256xf32>
    %288 = arith.mulf %285, %287 : vector<32x256xf32>
    %289 = arith.addf %284, %288 : vector<32x256xf32>
    %c0_132 = arith.constant 0 : index
    %c179 = arith.constant 179 : index
    %290 = vector.load %arg14[%c0_132, %c179] : memref<32x512xf32, #tpu.memory_space<vmem>>, vector<32x256xf32>
    %c0_133 = arith.constant 0 : index
    %c48 = arith.constant 48 : index
    %291 = vector.load %arg5[%c0_133, %c48] : memref<32x49xf32, #tpu.memory_space<vmem>>, vector<32x1xf32>
    %292 = vector.broadcast %291 : vector<32x1xf32> to vector<32x256xf32>
    %293 = arith.mulf %290, %292 : vector<32x256xf32>
    %294 = arith.addf %289, %293 : vector<32x256xf32>
    %295 = vector.broadcast %260 : vector<1x256xf32> to vector<32x256xf32>
    %296 = arith.mulf %294, %295 : vector<32x256xf32>
    %297 = arith.addf %259, %296 : vector<32x256xf32>
    %298 = arith.mulf %297, %297 : vector<32x256xf32>
    %299 = arith.mulf %297, %298 : vector<32x256xf32>
    %cst_134 = arith.constant 4.471500e-02 : f32
    %300 = vector.broadcast %cst_134 : f32 to vector<32x256xf32>
    %301 = arith.mulf %300, %299 : vector<32x256xf32>
    %302 = arith.addf %297, %301 : vector<32x256xf32>
    %cst_135 = arith.constant 0.797884583 : f32
    %303 = vector.broadcast %cst_135 : f32 to vector<32x256xf32>
    %304 = arith.mulf %303, %302 : vector<32x256xf32>
    %305 = math.tanh %304 : vector<32x256xf32>
    %cst_136 = arith.constant 1.000000e+00 : f32
    %306 = vector.broadcast %cst_136 : f32 to vector<32x256xf32>
    %307 = arith.addf %306, %305 : vector<32x256xf32>
    %cst_137 = arith.constant 5.000000e-01 : f32
    %308 = vector.broadcast %cst_137 : f32 to vector<32x256xf32>
    %309 = arith.mulf %308, %307 : vector<32x256xf32>
    %310 = arith.mulf %297, %309 : vector<32x256xf32>
    %c0_138 = arith.constant 0 : index
    %c0_139 = arith.constant 0 : index
    %311 = vector.load %arg8[%c0_138, %c0_139] : memref<32x1xf32, #tpu.memory_space<vmem>>, vector<32x1xf32>
    %312 = vector.broadcast %311 : vector<32x1xf32> to vector<32x256xf32>
    %313 = arith.mulf %310, %312 : vector<32x256xf32>
    %c0_140 = arith.constant 0 : index
    %c0_141 = arith.constant 0 : index
    %314 = vector.load %arg9[%c0_140, %c0_141] : memref<32x1xf32, #tpu.memory_space<vmem>>, vector<32x1xf32>
    %315 = vector.broadcast %314 : vector<32x1xf32> to vector<32x256xf32>
    %316 = arith.addf %313, %315 : vector<32x256xf32>
    %c0_142 = arith.constant 0 : index
    %c0_143 = arith.constant 0 : index
    %317 = vector.load %arg10[%c0_142, %c0_143] : memref<16x32xbf16, #tpu.memory_space<vmem>>, vector<16x32xbf16>
    %318 = arith.truncf %316 : vector<32x256xf32> to vector<32x256xbf16>
    %cst_144 = arith.constant dense<0.000000e+00> : vector<16x256xf32>
    %319 = tpu.matmul %317, %318, %cst_144 {dimension_numbers = #tpu.dot_dimension_numbers<[1], [0], [0], [1], [0, 0, 1, 1], [], []>} : vector<16x32xbf16>, vector<32x256xbf16>, vector<16x256xf32> -> vector<16x256xf32>
    %c0_145 = arith.constant 0 : index
    %c0_146 = arith.constant 0 : index
    %320 = vector.load %arg11[%c0_145, %c0_146] : memref<16x1xf32, #tpu.memory_space<vmem>>, vector<16x1xf32>
    %321 = vector.broadcast %320 : vector<16x1xf32> to vector<16x256xf32>
    %322 = arith.mulf %319, %321 : vector<16x256xf32>
    %c0_147 = arith.constant 0 : index
    %c0_148 = arith.constant 0 : index
    %323 = vector.load %arg12[%c0_147, %c0_148] : memref<16x1xf32, #tpu.memory_space<vmem>>, vector<16x1xf32>
    %324 = vector.broadcast %323 : vector<16x1xf32> to vector<16x256xf32>
    %325 = arith.addf %322, %324 : vector<16x256xf32>
    %c0_149 = arith.constant 0 : index
    %c0_150 = arith.constant 0 : index
    %c0_151 = arith.constant 0 : index
    %326 = vector.load %arg13[%c0_149, %c0_150, %c0_151] : memref<1x16x256xf32, #tpu.memory_space<vmem>>, vector<1x16x256xf32>
    %327 = vector.shape_cast %326 : vector<1x16x256xf32> to vector<16x256xf32>
    %328 = vector.shape_cast %325 : vector<16x256xf32> to vector<1x16x256xf32>
    tpu.vector_store %arg13[%c0_149, %c0_150, %c0_151], %328 {strides = array<i32>} : memref<1x16x256xf32, #tpu.memory_space<vmem>>, vector<1x16x256xf32>,
    return
  }
  func.func @transform_0(%arg0: i32) -> (i32, i32, i32) {
    %c0_i32 = arith.constant 0 : i32
    %c0_i32_0 = arith.constant 0 : i32
    %c0_i32_1 = arith.constant 0 : i32
    return %arg0, %c0_i32, %c0_i32_0 : i32, i32, i32
  }
  func.func @transform_1(%arg0: i32) -> (i32, i32) {
    %c0_i32 = arith.constant 0 : i32
    %c0_i32_0 = arith.constant 0 : i32
    %c0_i32_1 = arith.constant 0 : i32
    return %c0_i32, %c0_i32_0 : i32, i32
  }
  func.func @transform_2(%arg0: i32) -> (i32, i32) {
    %c0_i32 = arith.constant 0 : i32
    %c0_i32_0 = arith.constant 0 : i32
    %c0_i32_1 = arith.constant 0 : i32
    return %c0_i32, %c0_i32_0 : i32, i32
  }
  func.func @transform_3(%arg0: i32) -> (i32, i32) {
    %c0_i32 = arith.constant 0 : i32
    %c0_i32_0 = arith.constant 0 : i32
    %c0_i32_1 = arith.constant 0 : i32
    return %c0_i32, %c0_i32_0 : i32, i32
  }
  func.func @transform_4(%arg0: i32) -> (i32, i32) {
    %c0_i32 = arith.constant 0 : i32
    %c0_i32_0 = arith.constant 0 : i32
    %c0_i32_1 = arith.constant 0 : i32
    return %c0_i32, %c0_i32_0 : i32, i32
  }
  func.func @transform_5(%arg0: i32) -> (i32, i32) {
    %c0_i32 = arith.constant 0 : i32
    %c0_i32_0 = arith.constant 0 : i32
    %c0_i32_1 = arith.constant 0 : i32
    return %c0_i32, %c0_i32_0 : i32, i32
  }
  func.func @transform_6(%arg0: i32) -> (i32, i32) {
    %c0_i32 = arith.constant 0 : i32
    %c0_i32_0 = arith.constant 0 : i32
    %c0_i32_1 = arith.constant 0 : i32
    return %c0_i32, %c0_i32_0 : i32, i32
  }
  func.func @transform_7(%arg0: i32) -> (i32, i32) {
    %c0_i32 = arith.constant 0 : i32
    %c0_i32_0 = arith.constant 0 : i32
    %c0_i32_1 = arith.constant 0 : i32
    return %c0_i32, %c0_i32_0 : i32, i32
  }
  func.func @transform_8(%arg0: i32) -> (i32, i32) {
    %c0_i32 = arith.constant 0 : i32
    %c0_i32_0 = arith.constant 0 : i32
    %c0_i32_1 = arith.constant 0 : i32
    return %c0_i32, %c0_i32_0 : i32, i32
  }
  func.func @transform_9(%arg0: i32) -> (i32, i32) {
    %c0_i32 = arith.constant 0 : i32
    %c0_i32_0 = arith.constant 0 : i32
    %c0_i32_1 = arith.constant 0 : i32
    return %c0_i32, %c0_i32_0 : i32, i32
  }
  func.func @transform_10(%arg0: i32) -> (i32, i32) {
    %c0_i32 = arith.constant 0 : i32
    %c0_i32_0 = arith.constant 0 : i32
    %c0_i32_1 = arith.constant 0 : i32
    return %c0_i32, %c0_i32_0 : i32, i32
  }
  func.func @transform_11(%arg0: i32) -> (i32, i32) {
    %c0_i32 = arith.constant 0 : i32
    %c0_i32_0 = arith.constant 0 : i32
    %c0_i32_1 = arith.constant 0 : i32
    return %c0_i32, %c0_i32_0 : i32, i32
  }
  func.func @transform_12(%arg0: i32) -> (i32, i32, i32) {
    %c0_i32 = arith.constant 0 : i32
    %c0_i32_0 = arith.constant 0 : i32
    %c0_i32_1 = arith.constant 0 : i32
    return %arg0, %c0_i32, %c0_i32_0 : i32, i32, i32
  }
}

</mosaic_0001>

<bundles_post_ra>
// kernel: tpu_custom_call.1
= control target key start
LH: loop header
LB: loop body
LE: loop exit
PB: predicated region body
PF: predicated region fallthrough
CT: control target
= control target key end

     0   :  { %s11020_s0 = inlined_call_operand.vmem [shape: f32[2,16,256], index: 0, kind: input, shape index: {}]   ;;  %s11021_s1 = inlined_call_operand.vmem [shape: bf16[32,16], index: 1, kind: input, shape index: {}]   ;;  %s11022_s2 = inlined_call_operand.vmem [shape: f32[32,1], index: 2, kind: input, shape index: {}]   ;;  %s11023_s3 = inlined_call_operand.vmem [shape: f32[32,1], index: 3, kind: input, shape index: {}]   ;;  %s11024_s4 = inlined_call_operand.vmem [shape: f32[32,49], index: 4, kind: input, shape index: {}]   ;;  %s11025_s5 = inlined_call_operand.vmem [shape: f32[32,1], index: 5, kind: input, shape index: {}]   ;;  %s11026_s6 = inlined_call_operand.vmem [shape: f32[7,256], index: 6, kind: input, shape index: {}]   ;;  %s11027_s7 = inlined_call_operand.vmem [shape: f32[32,1], index: 7, kind: input, shape index: {}]   ;;  %s11028_s8 = inlined_call_operand.vmem [shape: f32[32,1], index: 8, kind: input, shape index: {}]   ;;  %s11029_s9 = inlined_call_operand.vmem [shape: bf16[16,32], index: 9, kind: input, shape index: {}]   ;;  %s11030_s10 = inlined_call_operand.vmem [shape: f32[16,1], index: 10, kind: input, shape index: {}]   ;;  %s11031_s11 = inlined_call_operand.vmem [shape: f32[16,1], index: 11, kind: input, shape index: {}]   ;;  %s11032_s12 = inlined_call_operand.hbm [shape: f32[2,16,256], index: 12, kind: output, shape index: {}]  }
   0x1   :  { %11287 = sst [smem:[#allocation145_spill]] %s11020_s0 }
   0x2   :  { %11288 = sst [smem:[#allocation146_spill]] %s11021_s1 }
   0x3   :  { %11289 = sst [smem:[#allocation147_spill]] %s11022_s2 }
   0x4   :  { %11290 = sst [smem:[#allocation148_spill]] %s11023_s3 }
   0x5   :  { %17 = vsyncpa [#allocation4], 0 }
   0x6   :  { %19 = vsyncpa [#allocation4 + $0x1], 0  ;;  %s6372_s21 = smov 0   ;;  %s6374_s22 = smov 0  }
   0x7   :  { %s6376_s23 = smov 0   ;;  %s6378_s24 = smov 0  }
   0x8 LB: > { %s6393_s25 = sadd.s32 4294967295, %s6235_s24   ;;  %s5876_s26 = sadd.s32 4294967294, %s6235_s24   ;;  %s6235_s24 = sphi %s6378_s24, %s11963_s24   ;;  %s6231_s23 = sphi %s6376_s23, %s11962_s23   ;;  %s6227_s22 = sphi %s6374_s22, %s11961_s22   ;;  %s6223_s21 = sphi %s6372_s21, %s11960_s21  }
   0x9   : > { %s6397_s27 = sadd.s32 1, %s6235_s24   ;;  %s289_s28 = sadd.s32 1, %s6231_s23 }
   0xa   : > { %s286_s29 = ssub.s32 %s6235_s24, %s6397_s27  ;;  %p299_p0 = scmp.ne.s32.totalorder %s6231_s23, %s6227_s22 }
   0xb   : > { %p287_p1 = scmp.eq.s32.totalorder %s286_s29, 0  ;;  %p300_p2 = scmp.eq.s32.totalorder %s6393_s25, 1 }
   0xc   : > { %p305_p3 = scmp.ne.s32.totalorder %s6227_s22, %s6223_s21  ;;  %p306_p4 = scmp.eq.s32.totalorder %s5876_s26, 1 }
   0xd   : > { %s6408_s30 = scalar_select %p287_p1, %s6231_s23, %s289_s28  }
   0xe   : > { %p6410_p5 = por %p300_p2, %p299_p0  ;;  %p6414_p6 = por %p306_p4, %p305_p3 }
   0xf   : > { %p5879_p7 = scmp.ge.s32.totalorder %s6235_s24, 1  ;;  %p365_p8 = scmp.lt.s32.totalorder %s6235_s24, 3 }
  0x11   : > { %p366_p9 = pnand %p5879_p7, %p365_p8 }
  0x13   : > { %369 = sbr.rel (%p366_p9) target bundleno = 6148 (0x1804), region = 68 }
  0x1a   : > { %s11293_s2 = sld [smem:[#allocation147_spill]]  ;;  %p407_p10 = scmp.lt.s32.totalorder %s6393_s25, 1  ;;  %v11033_v2 = vmov 0   ;;  %vm433_vm0 = vcmask 130048   ;;  %v646_v16 = vld [vmem:[%s11025_s5 + $0x8] sm:$0xff]  ;;  %v645_v17 = vld [vmem:[%s11025_s5] sm:$0xff] }
  0x1b   : > { %6011 = vset.pattern.permute.xlu1 %v11033_v2  ;;  %6010 = vset.pattern.permute.xlu0 %v11033_v2  ;;  %s11294_s0 = sld [smem:[#allocation145_spill]]  ;;  %s11295_s3 = sld [smem:[#allocation148_spill]]  ;;  %v648_v19 = vld [vmem:[%s11025_s5 + $0x18] sm:$0xff]  ;;  %v647_v20 = vld [vmem:[%s11025_s5 + $0x10] sm:$0xff]  ;;  %v6475_v21 = vld [vmem:[%s11024_s4 + $0x8] sm:$0xff]  ;;  %v6238_v25 = vmov 7  }
  0x1c   : > { %s408_s19 = scalar_select %p407_p10, %s6393_s25, 1  ;;  %472 = vmatprep.mubr.bf16.mxu0 %v11033_v2  ;;  %5753 = vmatprep.mubr.bf16.mxu1 %v11033_v2  ;;  %v6480_v22 = vld [vmem:[%s11024_s4] sm:$0xff]  ;;  %v6487_v23 = vld [vmem:[%s11024_s4 + $0x18] sm:$0xff]  ;;  %v6492_v24 = vld [vmem:[%s11024_s4 + $0x10] sm:$0xff]  ;;  %v6239_v26 = vmov 14   ;;  %v6240_v27 = vmov 21  }
  0x1d   : > { %s11296_s1 = sld [smem:[#allocation146_spill]]  ;;  %v6241_v28 = vmov 28   ;;  %v6242_v29 = vmov 35   ;;  %v6243_v30 = vmov 42   ;;  %v6244_v31 = vmov 1   ;;  %s11068_s20 = smov 112  }
  0x1e   : > { %s5900_s15 = sshll.u32 %s408_s19, 5  ;;  %s11072_s26 = smov 96   ;;  %vm790_vm1 = vcmask 916480   ;;  %vm887_vm2 = vcmask 785408   ;;  %vm984_vm3 = vcmask 654336   ;;  %vm1093_vm4 = vcmask 523264  }
  0x1f   : > { %s11158_s28 = smov 64   ;;  %s11120_s29 = smov 48   ;;  %vm1190_vm5 = vcmask 392192   ;;  %vm1333_vm6 = vcmask 629760   ;;  %vm1287_vm7 = vcmask 261120   ;;  %vm2030_vm8 = vcmask 637952  }
  0x20   : > { %v567_v0 = vld [vmem:[%s11293_s2 + $0x10] sm:$0xff]  ;;  %v565_v1 = vld [vmem:[%s11293_s2] sm:$0xff]  ;;  %v568_v3 = vld [vmem:[%s11293_s2 + $0x18] sm:$0xff]  ;;  %s11070_s19 = smov 32   ;;  %s6251_s16 = smov 77   ;;  %vm2727_vm9 = vcmask 646144  }
  0x21   : > { %581 = vperm.xlu1 %6011, %v567_v0   ;;  %571 = vperm.xlu0 %6010, %v565_v1   ;;  %v566_v4 = vld [vmem:[%s11293_s2 + $0x8] sm:$0xff]  ;;  %s411_s18 = scalar_lea.vmem %s11294_s0, %s5900_s15  ;;  %v597_v10 = vld [vmem:[%s11295_s3] sm:$0xff]  ;;  %v600_v14 = vld [vmem:[%s11295_s3 + $0x18] sm:$0xff]  ;;  %s6259_s0 = smov 78   ;;  %vm4099_vm10 = vcmask 662528   ;;  %vm4796_vm11 = vcmask 670720  }
  0x22   : > { %v414_v5 = vld [vmem:[%s411_s18 + $0x8] sm:$0xff]  ;;  %v416_v6 = vld [vmem:[%s411_s18 + $0x18] sm:$0xff]  ;;  %v413_v7 = vld [vmem:[%s411_s18] sm:$0xff]  ;;  %s6270_s17 = smov 49   ;;  %s6286_s15 = smov 47   ;;  %vm5493_vm12 = vcmask 678912  }
  0x23   : > { %v418_v8 = vpack.c.bf16 %v416_v6, %v414_v5  ;;  %v598_v9 = vld [vmem:[%s11295_s3 + $0x8] sm:$0xff]  ;;  %v415_v11 = vld [vmem:[%s411_s18 + $0x10] sm:$0xff]  ;;  %v6118_v13 = vld [vmem:[%s11296_s1] sm:$0xff]   ;;  %s11160_s18 = smov 80   ;;  %vm1386_vm13 = vcmask 416768   ;;  %vm2083_vm14 = vcmask 408576  }
  0x24   : > { %v417_v12 = vpack.c.bf16 %v415_v11, %v413_v7  ;;  %v599_v15 = vld [vmem:[%s11295_s3 + $0x10] sm:$0xff]  ;;  %v6119_v18 = vld [vmem:[%s11296_s1 + $0x8] sm:$0xff]   ;;  %s11600_s1 = smov 80   ;;  %vm2780_vm15 = vcmask 400384   ;;  %s404_s2 = sand.u32 1, %s6227_s22  }
  0x25   : > { %586 = vperm.xlu1 %6011, %v568_v3   ;;  %576 = vperm.xlu0 %6010, %v566_v4   ;;  %s5880_s3 = sshll.u32 %s404_s2, 5 }
  0x26   : > { %440 = vmatprep.subr.bf16.mxu0 %v418_v8 }
  0x27   : > { %441 = vmatpush1.bf16.msra.mxu0 %v417_v12 }
  0x29   : > { %608 = vperm.xlu1 %6011, %v598_v9   ;;  %603 = vperm.xlu0 %6010, %v597_v10  }
  0x2a   : > { %5885 = vmatmul.mubr.msk.bf16.vlgmr.msra.gmra.mrb[0].mxu0 %vm433_vm0, %v6118_v13 }
  0x2b   : > { %482 = vmatprep.mubr.bf16.mxu0 %v11033_v2 }
  0x2d   : > { %618 = vperm.xlu1 %6011, %v600_v14   ;;  %613 = vperm.xlu0 %6010, %v599_v15  }
  0x31   : > { %656 = vperm.xlu1 %6011, %v646_v16   ;;  %651 = vperm.xlu0 %6010, %v645_v17  }
  0x32   : > { %5886 = vmatmul.mubr.msk.bf16.gmra.mrb[4].mxu0 %vm433_vm0, %v6119_v18  ;;  %vm4152_vm0 = vcmask 384000  }
  0x35   : > { %666 = vperm.xlu1 %6011, %v648_v19   ;;  %661 = vperm.xlu0 %6010, %v647_v20  }
  0x39   : > { %701 = vperm.xlu1 %6011, %v6475_v21   ;;  %696 = vperm.xlu0 %6010, %v6480_v22  }
  0x3d   : > { %711 = vperm.xlu1 %6011, %v6487_v23   ;;  %706 = vperm.xlu0 %6010, %v6492_v24  }
  0x41   : > { %6013 = vset.pattern.permute.xlu1 %v6238_v25  ;;  %6012 = vset.pattern.permute.xlu0 %v6238_v25 }
  0x42   : > { %731 = vperm.xlu1 %6013, %v6475_v21   ;;  %727 = vperm.xlu0 %6012, %v6480_v22  }
  0x46   : > { %735 = vperm.xlu1 %6013, %v6492_v24   ;;  %739 = vperm.xlu0 %6012, %v6487_v23  }
  0x4a   : > { %6014 = vset.pattern.permute.xlu1 %v6239_v26  ;;  %6015 = vset.pattern.permute.xlu0 %v6239_v26 }
  0x4b   : > { %824 = vperm.xlu1 %6014, %v6480_v22   ;;  %828 = vperm.xlu0 %6015, %v6475_v21  }
  0x4f   : > { %832 = vperm.xlu1 %6014, %v6492_v24   ;;  %6016 = vset.pattern.permute.xlu0 %v6240_v27 }
  0x50   : > { %921 = vperm.xlu0 %6016, %v6480_v22  }
  0x53   : > { %836 = vperm.xlu1 %6014, %v6487_v23  }
  0x54   : > { %933 = vperm.xlu0 %6016, %v6487_v23  }
  0x57   : > { %6017 = vset.pattern.permute.xlu1 %v6240_v27 }
  0x58   : > { %925 = vperm.xlu1 %6017, %v6475_v21   ;;  %6019 = vset.pattern.permute.xlu0 %v6241_v28 }
  0x59   : > { %1034 = vperm.xlu0 %6019, %v6475_v21  }
  0x5c   : > { %929 = vperm.xlu1 %6017, %v6492_v24  }
  0x5d   : > { %6020 = vset.pattern.permute.xlu0 %v6242_v29 }
  0x5e   : > { %1127 = vperm.xlu0 %6020, %v6480_v22  }
  0x60   : > { %6018 = vset.pattern.permute.xlu1 %v6241_v28 }
  0x61   : > { %1030 = vperm.xlu1 %6018, %v6480_v22  }
  0x62   : > { %1139 = vperm.xlu0 %6020, %v6487_v23  }
  0x65   : > { %1038 = vperm.xlu1 %6018, %v6492_v24  }
  0x66   : > { %6023 = vset.pattern.permute.xlu0 %v6243_v30 }
  0x67   : > { %1228 = vperm.xlu0 %6023, %v6475_v21  }
  0x69   : > { %1042 = vperm.xlu1 %6018, %v6487_v23  }
  0x6b   : > { %6024 = vset.pattern.permute.xlu0 %v6244_v31 }
  0x6d   : > { %6021 = vset.pattern.permute.xlu1 %v6242_v29  ;;  %v1321_v29 = vlaneseq }
  0x6e   : > { %1131 = vperm.xlu1 %6021, %v6475_v21  }
  0x72   : > { %1135 = vperm.xlu1 %6021, %v6492_v24  }
  0x76   : > { %6022 = vset.pattern.permute.xlu1 %v6243_v30 }
  0x77   : > { %1224 = vperm.xlu1 %6022, %v6480_v22  }
  0x7b   : > { %1232 = vperm.xlu1 %6022, %v6492_v24  }
  0x7f   : > { %1236 = vperm.xlu1 %6022, %v6487_v23  }
  0x83   : > { %6025 = vset.pattern.permute.xlu1 %v6244_v31 }
  0xa0   : > { %v6520_v32 = vpop.permute.xlu1 %581  ;;  %v6522_v33 = vpop.permute.xlu0 %571 }
  0xa4   : > { %v6524_v34 = vpop.permute.xlu1 %586  ;;  %v6526_v35 = vpop.permute.xlu0 %576 }
  0xa8   : > { %v6528_v36 = vpop.permute.xlu1 %608  ;;  %v6530_v37 = vpop.permute.xlu0 %603 }
  0xac   : > { %v6532_v38 = vpop.permute.xlu1 %618  ;;  %v6534_v39 = vpop.permute.xlu0 %613 }
  0xb0   : > { %v6536_v40 = vpop.permute.xlu1 %656  ;;  %v6538_v41 = vpop.permute.xlu0 %651 }
  0xb1   : > { %11297 = vst [vmem:[#allocation6_spill] sm:$0xff] %v6536_v40  ;;  %11298 = vst [vmem:[#allocation7_spill] sm:$0xff] %v6538_v41 }
  0xb4   : > { %v6540_v42 = vpop.permute.xlu1 %666  ;;  %v6542_v43 = vpop.permute.xlu0 %661 }
  0xb5   : > { %11299 = vst [vmem:[#allocation8_spill] sm:$0xff] %v6540_v42  ;;  %11300 = vst [vmem:[#allocation9_spill] sm:$0xff] %v6542_v43 }
  0xb8   : > { %v6544_v44 = vpop.permute.xlu1 %701  ;;  %v6546_v45 = vpop.permute.xlu0 %696 }
  0xb9   : > { %11301 = vst [vmem:[#allocation10_spill] sm:$0xff] %v6544_v44 }
  0xbc   : > { %v6548_v46 = vpop.permute.xlu1 %711  ;;  %v6550_v47 = vpop.permute.xlu0 %706 }
  0xbd   : > { %11302 = vst [vmem:[#allocation11_spill] sm:$0xff] %v6548_v46  ;;  %11303 = vst [vmem:[#allocation12_spill] sm:$0xff] %v6550_v47 }
  0xc1   : > { %v6552_v48 = vpop.permute.xlu1 %731  ;;  %v6554_v49 = vpop.permute.xlu0 %727 }
  0xc2   : > { %v745_v50 = vmul.f32 0.0, %v6552_v48  ;;  %v742_v51 = vmul.f32 0.0, %v6554_v49 }
  0xc4   : > { %772 = vrot.lane.b32.xlu0 %v745_v50, %s11068_s20  ;;  %766 = vrot.lane.b32.xlu1 %v742_v51, %s11068_s20  ;;  %v1322_v50 = vshrl.u32 %v1321_v29, 7 }
  0xc5   : > { %v6560_v52 = vpop.permute.xlu1 %735  ;;  %v6562_v53 = vpop.permute.xlu0 %739 }
  0xc6   : > { %v748_v54 = vmul.f32 0.0, %v6560_v52  ;;  %v751_v55 = vmul.f32 0.0, %v6562_v53 }
  0xc8   : > { %778 = vrot.lane.b32.xlu1 %v748_v54, %s11068_s20  ;;  %784 = vrot.lane.b32.xlu0 %v751_v55, %s11068_s20  ;;  %v6640_v55 = vsub.s32 0, %v1322_v50 }
  0xca   : > { %v6568_v56 = vpop.permute.xlu1 %824  ;;  %v6571_v58 = vpop.permute.xlu0 %828  ;;  %11304 = vst [vmem:[#allocation13_spill] sm:$0xff] %v6640_v55 }
  0xcb   : > { %v839_v57 = vmul.f32 0.0, %v6568_v56  ;;  %v842_v59 = vmul.f32 0.0, %v6571_v58 }
  0xcd   : > { %863 = vrot.lane.b32.xlu0 %v839_v57, %s11072_s26  ;;  %869 = vrot.lane.b32.xlu1 %v842_v59, %s11072_s26  ;;  %v677_v59 = vld [vmem:[%s11026_s6] ss:$8 sm:$0x3] }
  0xce   : > { %v6575_v60 = vpop.permute.xlu1 %832 }
  0xcf   : > { %v845_v61 = vmul.f32 0.0, %v6575_v60  ;;  %v6580_v62 = vpop.permute.xlu0 %921 }
  0xd0   : > { %v936_v1 = vmul.f32 0.0, %v6580_v62 }
  0xd1   : > { %875 = vrot.lane.b32.xlu0 %v845_v61, %s11072_s26 }
  0xd2   : > { %v6582_v63 = vpop.permute.xlu1 %836 }
  0xd3   : > { %v848_v0 = vmul.f32 0.0, %v6582_v63  ;;  %v6589_v4 = vpop.permute.xlu0 %933 }
  0xd4   : > { %v945_v6 = vmul.f32 0.0, %v6589_v4 }
  0xd5   : > { %881 = vrot.lane.b32.xlu1 %v848_v0, %s11072_s26  ;;  %v1324_v0 = vrot.slane %v677_v59, %v6640_v55 }
  0xd7   : > { %v6587_v3 = vpop.permute.xlu1 %925 }
  0xd8   : > { %v939_v5 = vmul.f32 0.0, %v6587_v3  ;;  %v6597_v8 = vpop.permute.xlu0 %1034 }
  0xd9   : > { %960 = vrot.lane.b32.xlu1 %v936_v1, %s11160_s18  ;;  %v1050_v10 = vmul.f32 0.0, %v6597_v8  ;;  %v6650_v1 = vsub.s32 1, %v1322_v50 }
  0xda   : > { %966 = vrot.lane.b32.xlu0 %v939_v5, %s11160_s18 }
  0xdb   : > { %v6595_v7 = vpop.permute.xlu1 %929  ;;  %11305 = vst [vmem:[#allocation14_spill] sm:$0xff] %v6650_v1 }
  0xdc   : > { %v942_v9 = vmul.f32 0.0, %v6595_v7 }
  0xdd   : > { %v6612_v15 = vpop.permute.xlu0 %1127 }
  0xde   : > { %972 = vrot.lane.b32.xlu1 %v942_v9, %s11160_s18  ;;  %978 = vrot.lane.b32.xlu0 %v945_v6, %s11160_s18  ;;  %v1144_v18 = vmul.f32 0.0, %v6612_v15 }
  0xe0   : > { %v6603_v11 = vpop.permute.xlu1 %1030 }
  0xe1   : > { %v1047_v12 = vmul.f32 0.0, %v6603_v11  ;;  %v6621_v20 = vpop.permute.xlu0 %1139 }
  0xe2   : > { %1079 = vrot.lane.b32.xlu1 %v1050_v10, %s11158_s28  ;;  %v1153_v26 = vmul.f32 0.0, %v6621_v20 }
  0xe3   : > { %1073 = vrot.lane.b32.xlu0 %v1047_v12, %s11158_s28  ;;  %v1328_v12 = vrot.slane %v677_v59, %v6650_v1 }
  0xe4   : > { %v6608_v13 = vpop.permute.xlu1 %1038 }
  0xe5   : > { %v1053_v14 = vmul.f32 0.0, %v6608_v13 }
  0xe6   : > { %v6629_v28 = vpop.permute.xlu0 %1228 }
  0xe7   : > { %1085 = vrot.lane.b32.xlu0 %v1053_v14, %s11158_s28  ;;  %v1244_v31 = vmul.f32 0.0, %v6629_v28 }
  0xe8   : > { %v6614_v16 = vpop.permute.xlu1 %1042 }
  0xe9   : > { %v1056_v17 = vmul.f32 0.0, %v6614_v16 }
  0xeb   : > { %1091 = vrot.lane.b32.xlu1 %v1056_v17, %s11158_s28 }
  0xed   : > { %v6619_v19 = vpop.permute.xlu1 %1131 }
  0xee   : > { %v1147_v25 = vmul.f32 0.0, %v6619_v19 }
  0xef   : > { %1170 = vrot.lane.b32.xlu1 %v1144_v18, %s11120_s29 }
  0xf0   : > { %1176 = vrot.lane.b32.xlu0 %v1147_v25, %s11120_s29 }
  0xf1   : > { %v6627_v27 = vpop.permute.xlu1 %1135 }
  0xf2   : > { %v1150_v30 = vmul.f32 0.0, %v6627_v27 }
  0xf4   : > { %1182 = vrot.lane.b32.xlu1 %v1150_v30, %s11120_s29  ;;  %1188 = vrot.lane.b32.xlu0 %v1153_v26, %s11120_s29  ;;  %v6252_v30 = vmov 8  }
  0xf6   : > { %v6635_v51 = vpop.permute.xlu1 %1224 }
  0xf7   : > { %v1241_v54 = vmul.f32 0.0, %v6635_v51 }
  0xf8   : > { %1273 = vrot.lane.b32.xlu1 %v1244_v31, %s11070_s19 }
  0xf9   : > { %1267 = vrot.lane.b32.xlu0 %v1241_v54, %s11070_s19 }
  0xfa   : > { %v6642_v57 = vpop.permute.xlu1 %1232 }
  0xfb   : > { %v1247_v61 = vmul.f32 0.0, %v6642_v57 }
  0xfd   : > { %1279 = vrot.lane.b32.xlu0 %v1247_v61, %s11070_s19  ;;  %v6655_v9 = vpop.f32.mrb[0].mxu0 }
  0xfe   : > { %v6652_v5 = vpop.permute.xlu1 %1236  ;;  %v6657_v10 = vpop.f32.mrb[1].mxu0  ;;  %v493_v43 = vmul.f32 %v6655_v9, %v6655_v9 }
  0xff   : > { %v1250_v6 = vmul.f32 0.0, %v6652_v5  ;;  %v6661_v14 = vpop.f32.mrb[2].mxu0 }
 0x100   : > { %v6663_v17 = vpop.f32.mrb[3].mxu0  ;;  %v501_v55 = vmul.f32 %v493_v43, %v6655_v9 }
 0x101   : > { %1329 = vrot.lane.b32.xlu0 %v1324_v0, %s6251_s16  ;;  %1285 = vrot.lane.b32.xlu1 %v1250_v6, %s11070_s19 }
 0x105   : > { %1414 = vperm.xlu0 %6024, %v6480_v22   ;;  %1331 = vrot.lane.b32.xlu1 %v1328_v12, %s6251_s16  ;;  %v6666_v18 = vpop.f32.mrb[4].mxu0  ;;  %s6261_s16 = smov 50  }
 0x106   : > { %v6668_v25 = vpop.f32.mrb[5].mxu0 }
 0x107   : > { %v6672_v26 = vpop.f32.mrb[6].mxu0 }
 0x108   : > { %v6674_v29 = vpop.f32.mrb[7].mxu0 }
 0x109   : > { %1426 = vperm.xlu0 %6024, %v6487_v23   ;;  %1418 = vperm.xlu1 %6025, %v6475_v21  }
 0x10d   : > { %6027 = vset.pattern.permute.xlu0 %v6252_v30  ;;  %1422 = vperm.xlu1 %6025, %v6492_v24  }
 0x10e   : > { %1446 = vperm.xlu0 %6027, %v6475_v21  }
 0x111   : > { %6026 = vset.pattern.permute.xlu1 %v6252_v30 }
 0x112   : > { %1442 = vperm.xlu1 %6026, %v6480_v22  }
 0x116   : > { %1450 = vperm.xlu1 %6026, %v6492_v24  }
 0x11a   : > { %1454 = vperm.xlu1 %6026, %v6487_v23  }
 0x136   : > { %v6681_v31 = vpop.permute.xlu0 %772  ;;  %v6683_v50 = vpop.permute.xlu1 %766 }
 0x13a   : > { %v6685_v54 = vpop.permute.xlu0 %784  ;;  %v6687_v59 = vpop.permute.xlu1 %778 }
 0x13b   : > { %11306 = vst [vmem:[#allocation15_spill] sm:$0xff] %v6685_v54  ;;  %11307 = vst [vmem:[#allocation16_spill] sm:$0xff] %v6687_v59  ;;  %v509_v54 = vmul.f32 0.044715, %v501_v55 }
 0x13d   : > { %v517_v59 = vadd.f32 %v509_v54, %v6655_v9 }
 0x13f   : > { %v6689_v61 = vpop.permute.xlu0 %863  ;;  %v6691_v0 = vpop.permute.xlu1 %869  ;;  %v525_v47 = vmul.f32 0.7978846, %v517_v59  ;;  %v495_v59 = vmul.f32 %v6661_v14, %v6661_v14 }
 0x140   : > { %11308 = vst [vmem:[#allocation17_spill] sm:$0xff] %v6691_v0 }
 0x141   : > { %6121 = vtanh.f32 %v525_v47 }
 0x143   : > { %v6693_v6 = vpop.permute.xlu0 %875 }
 0x144   : > { %11309 = vst [vmem:[#allocation18_spill] sm:$0xff] %v6693_v6 }
 0x147   : > { %v6695_v12 = vpop.permute.xlu1 %881 }
 0x148   : > { %11310 = vst [vmem:[#allocation19_spill] sm:$0xff] %v6695_v12 }
 0x14b   : > { %v6699_v2 = vpop.permute.xlu1 %960 }
 0x14c   : > { %v6697_v30 = vpop.permute.xlu0 %966 }
 0x14d   : > { %11311 = vst [vmem:[#allocation20_spill] sm:$0xff] %v6697_v30 }
 0x150   : > { %v6701_v42 = vpop.permute.xlu0 %978  ;;  %v6705_v40 = vpop.permute.xlu1 %972 }
 0x151   : > { %11312 = vst [vmem:[#allocation21_spill] sm:$0xff] %v6701_v42  ;;  %11313 = vst [vmem:[#allocation22_spill] sm:$0xff] %v6705_v40  ;;  %v494_v42 = vmul.f32 %v6657_v10, %v6657_v10 }
 0x153   : > { %v502_v40 = vmul.f32 %v494_v42, %v6657_v10 }
 0x154   : > { %v6710_v1 = vpop.permute.xlu1 %1079 }
 0x155   : > { %v6707_v41 = vpop.permute.xlu0 %1073  ;;  %11315 = vst [vmem:[#allocation24_spill] sm:$0xff] %v6710_v1  ;;  %v510_v55 = vmul.f32 0.044715, %v502_v40 }
 0x156   : > { %11314 = vst [vmem:[#allocation23_spill] sm:$0xff] %v6707_v41 }
 0x159   : > { %v6712_v6 = vpop.permute.xlu0 %1085 }
 0x15a   : > { %11316 = vst [vmem:[#allocation25_spill] sm:$0xff] %v6712_v6 }
 0x15d   : > { %v6714_v12 = vpop.permute.xlu1 %1091 }
 0x15e   : > { %11317 = vst [vmem:[#allocation26_spill] sm:$0xff] %v6714_v12  ;;  %v518_v12 = vadd.f32 %v510_v55, %v6657_v10 }
 0x160   : > { %v526_v46 = vmul.f32 0.7978846, %v518_v12 }
 0x161   : > { %v6722_v41 = vpop.permute.xlu1 %1170 }
 0x162   : > { %v6719_v30 = vpop.permute.xlu0 %1176  ;;  %11319 = vst [vmem:[#allocation28_spill] sm:$0xff] %v6722_v41  ;;  %6123 = vtanh.f32 %v526_v46 }
 0x163   : > { %11318 = vst [vmem:[#allocation27_spill] sm:$0xff] %v6719_v30  ;;  %v6122_v30 = vpop.eup %6121 }
 0x164   : > { %v541_v47 = vadd.f32 1.0, %v6122_v30  ;;  %v6253_v30 = vmov 15  }
 0x165   : > { %6029 = vset.pattern.permute.xlu1 %v6253_v30  ;;  %6028 = vset.pattern.permute.xlu0 %v6253_v30 }
 0x166   : > { %v6724_v43 = vpop.permute.xlu0 %1188  ;;  %v6726_v1 = vpop.permute.xlu1 %1182  ;;  %v549_v41 = vmul.f32 0.5, %v541_v47 }
 0x167   : > { %11320 = vst [vmem:[#allocation29_spill] sm:$0xff] %v6724_v43  ;;  %11321 = vst [vmem:[#allocation30_spill] sm:$0xff] %v6726_v1  ;;  %v503_v43 = vmul.f32 %v495_v59, %v6661_v14 }
 0x168   : > { %v557_v0 = vmul.f32 %v549_v41, %v6655_v9 }
 0x169   : > { %v511_v55 = vmul.f32 0.044715, %v503_v43  ;;  %v496_v43 = vmul.f32 %v6663_v17, %v6663_v17 }
 0x16a   : > { %v6731_v54 = vpop.permute.xlu1 %1273  ;;  %v589_v47 = vmul.f32 %v6522_v33, %v557_v0 }
 0x16b   : > { %v6729_v6 = vpop.permute.xlu0 %1267  ;;  %11323 = vst [vmem:[#allocation32_spill] sm:$0xff] %v6731_v54  ;;  %v519_v12 = vadd.f32 %v511_v55, %v6661_v14  ;;  %v504_v41 = vmul.f32 %v496_v43, %v6663_v17 }
 0x16c   : > { %11322 = vst [vmem:[#allocation31_spill] sm:$0xff] %v6729_v6  ;;  %v6124_v44 = vpop.eup %6123  ;;  %v6761_v55 = vadd.f32 %v6530_v37, %v589_v47 }
 0x16d   : > { %v527_v59 = vmul.f32 0.7978846, %v519_v12  ;;  %v512_v12 = vmul.f32 0.044715, %v504_v41 }
 0x16e   : > { %11330 = vst [vmem:[#allocation39_spill] sm:$0xff] %v6761_v55  ;;  %v1142_v41 = vmul.f32 %v6612_v15, %v6761_v55 }
 0x16f   : > { %v6735_v42 = vpop.permute.xlu0 %1279  ;;  %6125 = vtanh.f32 %v527_v59  ;;  %v840_v59 = vmul.f32 %v6568_v56, %v6761_v55  ;;  %v520_v43 = vadd.f32 %v512_v12, %v6663_v17 }
 0x170   : > { %11324 = vst [vmem:[#allocation33_spill] sm:$0xff] %v6735_v42 }
 0x173   : > { %v6738_v40 = vpop.permute.xlu1 %1285  ;;  %v6740_v1 = vpop.permute.xlu0 %1329 }
 0x174   : > { %11325 = vst [vmem:[#allocation34_spill] sm:$0xff] %v6738_v40  ;;  %v542_v40 = vadd.f32 1.0, %v6124_v44 }
 0x177   : > { %v6742_v6 = vpop.permute.xlu1 %1331 }
 0x184   : > { %v6744_v54 = vpop.permute.xlu0 %1414 }
 0x185   : > { %11326 = vst [vmem:[#allocation35_spill] sm:$0xff] %v6744_v54 }
 0x188   : > { %v6748_v42 = vpop.permute.xlu1 %1418  ;;  %v6750_v46 = vpop.permute.xlu0 %1426 }
 0x189   : > { %11327 = vst [vmem:[#allocation36_spill] sm:$0xff] %v6748_v42  ;;  %11328 = vst [vmem:[#allocation37_spill] sm:$0xff] %v6750_v46  ;;  %v550_v46 = vmul.f32 0.5, %v542_v40  ;;  %v497_v40 = vmul.f32 %v6666_v18, %v6666_v18 }
 0x18b   : > { %v558_v0 = vmul.f32 %v550_v46, %v6657_v10  ;;  %v743_v10 = vmul.f32 %v6554_v49, %v6761_v55  ;;  %v6126_v46 = vpop.eup %6125 }
 0x18c   : > { %v6755_v54 = vpop.permute.xlu1 %1422 }
 0x18d   : > { %11329 = vst [vmem:[#allocation38_spill] sm:$0xff] %v6755_v54  ;;  %v6758_v9 = vpop.permute.xlu0 %1446  ;;  %v590_v47 = vmul.f32 %v6522_v33, %v558_v0  ;;  %v937_v0 = vmul.f32 %v6580_v62, %v6761_v55 }
 0x18e   : > { %v1460_v30 = vmul.f32 0.0, %v6758_v9 }
 0x18f   : > { %v6782_v12 = vadd.f32 %v6530_v37, %v590_v47  ;;  %v1045_v37 = vmul.f32 %v6603_v11, %v6761_v55 }
 0x190   : > { %1487 = vrot.lane.b32.xlu1 %v1460_v30, %s11068_s20  ;;  %v528_v30 = vmul.f32 0.7978846, %v520_v43  ;;  %v498_v43 = vmul.f32 %v6668_v25, %v6668_v25 }
 0x191   : > { %v1443_v42 = vpop.permute.xlu1 %1442  ;;  %11331 = vst [vmem:[#allocation40_spill] sm:$0xff] %v6782_v12 }
 0x192   : > { %v1457_v44 = vmul.f32 0.0, %v1443_v42  ;;  %v1458_v33 = vmul.f32 %v1443_v42, %v6761_v55  ;;  %6127 = vtanh.f32 %v528_v30 }
 0x194   : > { %1481 = vrot.lane.b32.xlu0 %v1457_v44, %s11068_s20  ;;  %865 = vrot.lane.b32.xlu1 %v840_v59, %s11072_s26  ;;  %v505_v44 = vmul.f32 %v497_v40, %v6666_v18  ;;  %v543_v59 = vadd.f32 1.0, %v6126_v46  ;;  %v744_v40 = vmul.f32 %v6554_v49, %v6782_v12  ;;  %v506_v46 = vmul.f32 %v498_v43, %v6668_v25 }
 0x198   : > { %1166 = vrot.lane.b32.xlu1 %v1142_v41, %s11120_s29  ;;  %768 = vrot.lane.b32.xlu0 %v743_v10, %s11068_s20  ;;  %v513_v41 = vmul.f32 0.044715, %v505_v44  ;;  %v551_v10 = vmul.f32 0.5, %v543_v59  ;;  %v1239_v44 = vmul.f32 %v6635_v51, %v6761_v55  ;;  %v938_v59 = vmul.f32 %v6580_v62, %v6782_v12 }
 0x19a   : > { %v521_v47 = vadd.f32 %v513_v41, %v6666_v18  ;;  %v559_v30 = vmul.f32 %v551_v10, %v6661_v14  ;;  %v841_v41 = vmul.f32 %v6568_v56, %v6782_v12  ;;  %v1046_v14 = vmul.f32 %v6603_v11, %v6782_v12 }
 0x19b   : > { %v1240_v56 = vmul.f32 %v6635_v51, %v6782_v12 }
 0x19c   : > { %1483 = vrot.lane.b32.xlu1 %v1458_v33, %s11068_s20  ;;  %962 = vrot.lane.b32.xlu0 %v937_v0, %s11160_s18  ;;  %v529_v49 = vmul.f32 0.7978846, %v521_v47  ;;  %v514_v33 = vmul.f32 0.044715, %v506_v46  ;;  %v591_v0 = vmul.f32 %v6526_v35, %v559_v30  ;;  %v6128_v43 = vpop.eup %6127  ;;  %v499_v47 = vmul.f32 %v6672_v26, %v6672_v26 }
 0x19e   : > { %6129 = vtanh.f32 %v529_v49  ;;  %v522_v62 = vadd.f32 %v514_v33, %v6668_v25  ;;  %v6815_v10 = vadd.f32 %v6528_v36, %v591_v0 }
 0x1a0   : > { %1069 = vrot.lane.b32.xlu0 %v1045_v37, %s11158_s28  ;;  %770 = vrot.lane.b32.xlu1 %v744_v40, %s11068_s20  ;;  %11332 = vst [vmem:[#allocation41_spill] sm:$0xff] %v6815_v10  ;;  %v544_v37 = vadd.f32 1.0, %v6128_v43  ;;  %v1143_v40 = vmul.f32 %v6612_v15, %v6782_v12  ;;  %v530_v11 = vmul.f32 0.7978846, %v522_v62  ;;  %v746_v46 = vmul.f32 %v6552_v48, %v6815_v10 }
 0x1a1   : > { %v507_v15 = vmul.f32 %v499_v47, %v6672_v26  ;;  %v940_v51 = vmul.f32 %v6587_v3, %v6815_v10  ;;  %v843_v49 = vmul.f32 %v6571_v58, %v6815_v10  ;;  %v1048_v0 = vmul.f32 %v6597_v8, %v6815_v10 }
 0x1a2   : > { %v552_v30 = vmul.f32 0.5, %v544_v37  ;;  %6131 = vtanh.f32 %v530_v11  ;;  %v1145_v43 = vmul.f32 %v6619_v19, %v6815_v10  ;;  %v500_v62 = vmul.f32 %v6674_v29, %v6674_v29 }
 0x1a3   : > { %v1242_v37 = vmul.f32 %v6629_v28, %v6815_v10 }
 0x1a4   : > { %1263 = vrot.lane.b32.xlu0 %v1239_v44, %s11070_s19  ;;  %964 = vrot.lane.b32.xlu1 %v938_v59, %s11160_s18  ;;  %v1459_v44 = vmul.f32 %v1443_v42, %v6782_v12  ;;  %v560_v59 = vmul.f32 %v552_v30, %v6663_v17  ;;  %v515_v42 = vmul.f32 0.044715, %v507_v15 }
 0x1a6   : > { %v523_v17 = vadd.f32 %v515_v42, %v6672_v26 }
 0x1a8   : > { %867 = vrot.lane.b32.xlu0 %v841_v41, %s11072_s26  ;;  %1071 = vrot.lane.b32.xlu1 %v1046_v14, %s11158_s28  ;;  %v6130_v33 = vpop.eup %6129  ;;  %v592_v41 = vmul.f32 %v6526_v35, %v560_v59  ;;  %v531_v47 = vmul.f32 0.7978846, %v523_v17 }
 0x1a9   : > { %v545_v14 = vadd.f32 1.0, %v6130_v33 }
 0x1aa   : > { %6133 = vtanh.f32 %v531_v47 }
 0x1ab   : > { %v553_v35 = vmul.f32 0.5, %v545_v14 }
 0x1ac   : > { %1168 = vrot.lane.b32.xlu0 %v1143_v40, %s11120_s29  ;;  %1265 = vrot.lane.b32.xlu1 %v1240_v56, %s11070_s19  ;;  %v6851_v40 = vadd.f32 %v6528_v36, %v592_v41  ;;  %v1461_v56 = vmul.f32 %v6758_v9, %v6815_v10  ;;  %v6132_v11 = vpop.eup %6131 }
 0x1ad   : > { %v546_v15 = vadd.f32 1.0, %v6132_v11 }
 0x1ae   : > { %11333 = vst [vmem:[#allocation42_spill] sm:$0xff] %v6851_v40  ;;  %v844_v30 = vmul.f32 %v6571_v58, %v6851_v40  ;;  %v747_v36 = vmul.f32 %v6552_v48, %v6851_v40  ;;  %v1146_v59 = vmul.f32 %v6619_v19, %v6851_v40  ;;  %v941_v58 = vmul.f32 %v6587_v3, %v6851_v40 }
 0x1af   : > { %v554_v33 = vmul.f32 0.5, %v546_v15  ;;  %v1462_v19 = vmul.f32 %v6758_v9, %v6851_v40 }
 0x1b0   : > { %1485 = vrot.lane.b32.xlu0 %v1459_v44, %s11068_s20  ;;  %774 = vrot.lane.b32.xlu1 %v746_v46, %s11068_s20  ;;  %v508_v46 = vmul.f32 %v500_v62, %v6674_v29  ;;  %v561_v44 = vmul.f32 %v553_v35, %v6666_v18 }
 0x1b1   : > { %v562_v42 = vmul.f32 %v554_v33, %v6668_v25 }
 0x1b3   : > { %v594_v14 = vmul.f32 %v6520_v32, %v562_v42 }
 0x1b4   : > { %871 = vrot.lane.b32.xlu0 %v843_v49, %s11072_s26  ;;  %968 = vrot.lane.b32.xlu1 %v940_v51, %s11160_s18  ;;  %v516_v51 = vmul.f32 0.044715, %v508_v46  ;;  %v593_v49 = vmul.f32 %v6520_v32, %v561_v44  ;;  %v6134_v25 = vpop.eup %6133 }
 0x1b5   : > { %v6893_v9 = vadd.f32 %v6534_v39, %v594_v14  ;;  %v547_v17 = vadd.f32 1.0, %v6134_v25 }
 0x1b6   : > { %v524_v48 = vadd.f32 %v516_v51, %v6674_v29  ;;  %v6874_v18 = vadd.f32 %v6534_v39, %v593_v49 }
 0x1b7   : > { %11335 = vst [vmem:[#allocation44_spill] sm:$0xff] %v6893_v9  ;;  %v944_v35 = vmul.f32 %v6595_v7, %v6893_v9  ;;  %v1052_v47 = vmul.f32 %v6608_v13, %v6893_v9 }
 0x1b8   : > { %1172 = vrot.lane.b32.xlu0 %v1145_v43, %s11120_s29  ;;  %1075 = vrot.lane.b32.xlu1 %v1048_v0, %s11158_s28  ;;  %11334 = vst [vmem:[#allocation43_spill] sm:$0xff] %v6874_v18  ;;  %v1049_v0 = vmul.f32 %v6597_v8, %v6851_v40  ;;  %v532_v3 = vmul.f32 0.7978846, %v524_v48  ;;  %v846_v41 = vmul.f32 %v6575_v60, %v6874_v18  ;;  %v1451_v48 = vpop.permute.xlu1 %1450 }
 0x1b9   : > { %v1243_v43 = vmul.f32 %v6629_v28, %v6851_v40  ;;  %v1148_v8 = vmul.f32 %v6627_v27, %v6874_v18  ;;  %v749_v62 = vmul.f32 %v6560_v52, %v6874_v18  ;;  %v943_v32 = vmul.f32 %v6595_v7, %v6874_v18 }
 0x1ba   : > { %6135 = vtanh.f32 %v532_v3  ;;  %v750_v28 = vmul.f32 %v6560_v52, %v6893_v9  ;;  %v1051_v39 = vmul.f32 %v6608_v13, %v6874_v18  ;;  %v1245_v52 = vmul.f32 %v6642_v57, %v6874_v18 }
 0x1bb   : > { %v847_v7 = vmul.f32 %v6575_v60, %v6893_v9  ;;  %v1149_v13 = vmul.f32 %v6627_v27, %v6893_v9 }
 0x1bc   : > { %1489 = vrot.lane.b32.xlu0 %v1461_v56, %s11068_s20  ;;  %1269 = vrot.lane.b32.xlu1 %v1242_v37, %s11070_s19  ;;  %v555_v37 = vmul.f32 0.5, %v547_v17 }
 0x1be   : > { %v563_v56 = vmul.f32 %v555_v37, %v6672_v26  ;;  %v1246_v26 = vmul.f32 %v6642_v57, %v6893_v9 }
 0x1c0   : > { %873 = vrot.lane.b32.xlu1 %v844_v30, %s11072_s26  ;;  %776 = vrot.lane.b32.xlu0 %v747_v36, %s11068_s20  ;;  %v595_v46 = vmul.f32 %v6524_v34, %v563_v56 }
 0x1c2   : > { %v6924_v44 = vadd.f32 %v6532_v38, %v595_v46 }
 0x1c4   : > { %1174 = vrot.lane.b32.xlu1 %v1146_v59, %s11120_s29  ;;  %970 = vrot.lane.b32.xlu0 %v941_v58, %s11160_s18  ;;  %v6136_v11 = vpop.eup %6135  ;;  %11336 = vst [vmem:[#allocation45_spill] sm:$0xff] %v6924_v44  ;;  %v752_v36 = vmul.f32 %v6562_v53, %v6924_v44  ;;  %v849_v60 = vmul.f32 %v6582_v63, %v6924_v44 }
 0x1c5   : > { %v548_v30 = vadd.f32 1.0, %v6136_v11  ;;  %v946_v57 = vmul.f32 %v6589_v4, %v6924_v44  ;;  %v1054_v27 = vmul.f32 %v6614_v16, %v6924_v44 }
 0x1c7   : > { %v556_v15 = vmul.f32 0.5, %v548_v30 }
 0x1c8   : > { %1491 = vrot.lane.b32.xlu1 %v1462_v19, %s11068_s20  ;;  %1077 = vrot.lane.b32.xlu0 %v1049_v0, %s11158_s28  ;;  %v1455_v19 = vpop.permute.xlu1 %1454  ;;  %v1463_v0 = vmul.f32 0.0, %v1451_v48 }
 0x1c9   : > { %v564_v51 = vmul.f32 %v556_v15, %v6674_v29  ;;  %v1151_v29 = vmul.f32 %v6621_v20, %v6924_v44  ;;  %v1466_v3 = vmul.f32 0.0, %v1455_v19 }
 0x1cb   : > { %v596_v59 = vmul.f32 %v6524_v34, %v564_v51  ;;  %v1248_v34 = vmul.f32 %v6652_v5, %v6924_v44 }
 0x1cc   : > { %1271 = vrot.lane.b32.xlu0 %v1243_v43, %s11070_s19  ;;  %877 = vrot.lane.b32.xlu1 %v846_v41, %s11072_s26 }
 0x1cd   : > { %v6947_v49 = vadd.f32 %v6532_v38, %v596_v59 }
 0x1cf   : > { %11337 = vst [vmem:[#allocation46_spill] sm:$0xff] %v6947_v49  ;;  %v753_v33 = vmul.f32 %v6562_v53, %v6947_v49  ;;  %v850_v58 = vmul.f32 %v6582_v63, %v6947_v49  ;;  %v947_v38 = vmul.f32 %v6589_v4, %v6947_v49  ;;  %v1055_v42 = vmul.f32 %v6614_v16, %v6947_v49 }
 0x1d0   : > { %1178 = vrot.lane.b32.xlu1 %v1148_v8, %s11120_s29  ;;  %780 = vrot.lane.b32.xlu0 %v749_v62, %s11068_s20  ;;  %v1152_v53 = vmul.f32 %v6621_v20, %v6947_v49  ;;  %v1249_v63 = vmul.f32 %v6652_v5, %v6947_v49  ;;  %v1464_v4 = vmul.f32 %v1451_v48, %v6874_v18 }
 0x1d1   : > { %v1465_v16 = vmul.f32 %v1451_v48, %v6893_v9  ;;  %v1468_v20 = vmul.f32 %v1455_v19, %v6947_v49  ;;  %v1467_v5 = vmul.f32 %v1455_v19, %v6924_v44 }
 0x1d4   : > { %974 = vrot.lane.b32.xlu0 %v943_v32, %s11160_s18  ;;  %782 = vrot.lane.b32.xlu1 %v750_v28, %s11068_s20 }
 0x1d8   : > { %1081 = vrot.lane.b32.xlu0 %v1051_v39, %s11158_s28  ;;  %976 = vrot.lane.b32.xlu1 %v944_v35, %s11160_s18 }
 0x1dc   : > { %1275 = vrot.lane.b32.xlu0 %v1245_v52, %s11070_s19  ;;  %1083 = vrot.lane.b32.xlu1 %v1052_v47, %s11158_s28 }
 0x1e0   : > { %879 = vrot.lane.b32.xlu0 %v847_v7, %s11072_s26  ;;  %1277 = vrot.lane.b32.xlu1 %v1246_v26, %s11070_s19 }
 0x1e4   : > { %1180 = vrot.lane.b32.xlu0 %v1149_v13, %s11120_s29  ;;  %786 = vrot.lane.b32.xlu1 %v752_v36, %s11068_s20 }
 0x1e8   : > { %883 = vrot.lane.b32.xlu0 %v849_v60, %s11072_s26  ;;  %980 = vrot.lane.b32.xlu1 %v946_v57, %s11160_s18 }
 0x1ec   : > { %1184 = vrot.lane.b32.xlu0 %v1151_v29, %s11120_s29  ;;  %1087 = vrot.lane.b32.xlu1 %v1054_v27, %s11158_s28 }
 0x1f0   : > { %1281 = vrot.lane.b32.xlu1 %v1248_v34, %s11070_s19  ;;  %788 = vrot.lane.b32.xlu0 %v753_v33, %s11068_s20 }
 0x1f4   : > { %885 = vrot.lane.b32.xlu1 %v850_v58, %s11072_s26  ;;  %982 = vrot.lane.b32.xlu0 %v947_v38, %s11160_s18 }
 0x1f8   : > { %1186 = vrot.lane.b32.xlu1 %v1152_v53, %s11120_s29  ;;  %1089 = vrot.lane.b32.xlu0 %v1055_v42, %s11158_s28 }
 0x1fc   : > { %1495 = vrot.lane.b32.xlu1 %v1464_v4, %s11068_s20  ;;  %1283 = vrot.lane.b32.xlu0 %v1249_v63, %s11070_s19  ;;  %s11531_s19 = smov 48  }
 0x200   : > { %1499 = vrot.lane.b32.xlu1 %v1466_v3, %s11068_s20  ;;  %1493 = vrot.lane.b32.xlu0 %v1463_v0, %s11068_s20 }
 0x202   : > { %v6978_v41 = vpop.permute.xlu1 %1487 }
 0x203   : > { %11338 = vst [vmem:[#allocation47_spill] sm:$0xff] %v6978_v41 }
 0x204   : > { %1503 = vrot.lane.b32.xlu1 %v1468_v20, %s11068_s20  ;;  %1497 = vrot.lane.b32.xlu0 %v1465_v16, %s11068_s20 }
 0x206   : > { %v6983_v14 = vpop.permute.xlu0 %1481  ;;  %v6985_v43 = vpop.permute.xlu1 %865 }
 0x207   : > { %11339 = vst [vmem:[#allocation48_spill] sm:$0xff] %v6983_v14 }
 0x208   : > { %1542 = vperm.xlu1 %6029, %v6475_v21   ;;  %1501 = vrot.lane.b32.xlu0 %v1467_v5, %s11068_s20  ;;  %s6257_s20 = smov 51  }
 0x20a   : > { %v6989_v25 = vpop.permute.xlu1 %1166  ;;  %v6991_v8 = vpop.permute.xlu0 %768 }
 0x20c   : > { %1546 = vperm.xlu1 %6029, %v6492_v24   ;;  %1538 = vperm.xlu0 %6028, %v6480_v22  }
 0x20e   : > { %v6995_v17 = vpop.permute.xlu1 %1483  ;;  %v6997_v62 = vpop.permute.xlu0 %962 }
 0x20f   : > { %11340 = vst [vmem:[#allocation49_spill] sm:$0xff] %v6995_v17 }
 0x210   : > { %1550 = vperm.xlu0 %6028, %v6487_v23   ;;  %v6254_v23 = vmov 22  }
 0x211   : > { %6030 = vset.pattern.permute.xlu1 %v6254_v23 }
 0x212   : > { %v7000_v32 = vpop.permute.xlu0 %1069  ;;  %v7002_v28 = vpop.permute.xlu1 %770 }
 0x214   : > { %6031 = vset.pattern.permute.xlu0 %v6254_v23 }
 0x216   : > { %v7004_v21 = vpop.permute.xlu0 %1263  ;;  %v7006_v37 = vpop.permute.xlu1 %964 }
 0x21a   : > { %v7008_v39 = vpop.permute.xlu0 %867  ;;  %v7010_v35 = vpop.permute.xlu1 %1071 }
 0x21e   : > { %v7012_v24 = vpop.permute.xlu0 %1168  ;;  %v7014_v22 = vpop.permute.xlu1 %1265 }
 0x222   : > { %v7016_v56 = vpop.permute.xlu0 %1485  ;;  %v7018_v11 = vpop.permute.xlu1 %774 }
 0x223   : > { %11341 = vst [vmem:[#allocation50_spill] sm:$0xff] %v7016_v56 }
 0x226   : > { %v7020_v52 = vpop.permute.xlu0 %871  ;;  %v7022_v47 = vpop.permute.xlu1 %968 }
 0x22a   : > { %v7024_v46 = vpop.permute.xlu0 %1172  ;;  %v7026_v30 = vpop.permute.xlu1 %1075 }
 0x22e   : > { %v7028_v7 = vpop.permute.xlu0 %1489  ;;  %v7030_v26 = vpop.permute.xlu1 %1269 }
 0x22f   : > { %11342 = vst [vmem:[#allocation51_spill] sm:$0xff] %v7028_v7  ;;  %11343 = vst [vmem:[#allocation52_spill] sm:$0xff] %v7030_v26 }
 0x232   : > { %v7032_v15 = vpop.permute.xlu1 %873  ;;  %v7034_v13 = vpop.permute.xlu0 %776 }
 0x236   : > { %v7036_v36 = vpop.permute.xlu1 %1174  ;;  %v7038_v51 = vpop.permute.xlu0 %970 }
 0x23a   : > { %v7040_v60 = vpop.permute.xlu1 %1491  ;;  %v7042_v57 = vpop.permute.xlu0 %1077 }
 0x23b   : > { %11344 = vst [vmem:[#allocation53_spill] sm:$0xff] %v7040_v60 }
 0x23e   : > { %v7044_v59 = vpop.permute.xlu0 %1271  ;;  %v7046_v27 = vpop.permute.xlu1 %877 }
 0x242   : > { %v7048_v29 = vpop.permute.xlu1 %1178  ;;  %v7050_v34 = vpop.permute.xlu0 %780 }
 0x243   : > { %11345 = vst [vmem:[#allocation54_spill] sm:$0xff] %v7048_v29 }
 0x246   : > { %v7052_v33 = vpop.permute.xlu0 %974  ;;  %v7054_v58 = vpop.permute.xlu1 %782 }
 0x24a   : > { %v7056_v38 = vpop.permute.xlu0 %1081  ;;  %v7058_v48 = vpop.permute.xlu1 %976 }
 0x24b   : > { %11346 = vst [vmem:[#allocation55_spill] sm:$0xff] %v7056_v38 }
 0x24e   : > { %v7060_v42 = vpop.permute.xlu0 %1275  ;;  %v7062_v53 = vpop.permute.xlu1 %1083 }
 0x24f   : > { %11347 = vst [vmem:[#allocation56_spill] sm:$0xff] %v7060_v42  ;;  %11348 = vst [vmem:[#allocation57_spill] sm:$0xff] %v7062_v53 }
 0x252   : > { %v7064_v63 = vpop.permute.xlu0 %879  ;;  %v7066_v4 = vpop.permute.xlu1 %1277 }
 0x253   : > { %11349 = vst [vmem:[#allocation58_spill] sm:$0xff] %v7066_v4 }
 0x256   : > { %v7068_v19 = vpop.permute.xlu0 %1180  ;;  %v7070_v0 = vpop.permute.xlu1 %786 }
 0x257   : > { %11350 = vst [vmem:[#allocation59_spill] sm:$0xff] %v7068_v19 }
 0x25a   : > { %v7072_v3 = vpop.permute.xlu0 %883  ;;  %v7076_v20 = vpop.permute.xlu1 %980 }
 0x25b   : > { %11352 = vst [vmem:[#allocation61_spill] sm:$0xff] %v7076_v20 }
 0x25e   : > { %v7074_v16 = vpop.permute.xlu0 %1184  ;;  %v7080_v23 = vpop.permute.xlu1 %1087 }
 0x25f   : > { %11351 = vst [vmem:[#allocation60_spill] sm:$0xff] %v7074_v16  ;;  %11353 = vst [vmem:[#allocation62_spill] sm:$0xff] %v7080_v23 }
 0x262   : > { %v7078_v5 = vpop.permute.xlu0 %788  ;;  %v7084_v41 = vpop.permute.xlu1 %1281 }
 0x263   : > { %11355 = vst [vmem:[#allocation64_spill] sm:$0xff] %v7084_v41 }
 0x266   : > { %v7082_v60 = vpop.permute.xlu0 %982  ;;  %v7088_v54 = vpop.permute.xlu1 %885 }
 0x267   : > { %11354 = vst [vmem:[#allocation63_spill] sm:$0xff] %v7082_v60 }
 0x26a   : > { %v7086_v7 = vpop.permute.xlu0 %1089  ;;  %v7092_v14 = vpop.permute.xlu1 %1186 }
 0x26b   : > { %11356 = vst [vmem:[#allocation65_spill] sm:$0xff] %v7086_v7  ;;  %11358 = vst [vmem:[#allocation67_spill] sm:$0xff] %v7092_v14 }
 0x26e   : > { %v7090_v56 = vpop.permute.xlu0 %1283  ;;  %v7096_v16 = vpop.permute.xlu1 %1495 }
 0x26f   : > { %11357 = vst [vmem:[#allocation66_spill] sm:$0xff] %v7090_v56  ;;  %11360 = vst [vmem:[#allocation69_spill] sm:$0xff] %v7096_v16 }
 0x272   : > { %v7094_v17 = vpop.permute.xlu0 %1493  ;;  %v7100_v42 = vpop.permute.xlu1 %1499 }
 0x273   : > { %11359 = vst [vmem:[#allocation68_spill] sm:$0xff] %v7094_v17  ;;  %11362 = vst [vmem:[#allocation71_spill] sm:$0xff] %v7100_v42 }
 0x276   : > { %v7098_v4 = vpop.permute.xlu0 %1497  ;;  %v7104_v19 = vpop.permute.xlu1 %1503 }
 0x277   : > { %11361 = vst [vmem:[#allocation70_spill] sm:$0xff] %v7098_v4  ;;  %11364 = vst [vmem:[#allocation73_spill] sm:$0xff] %v7104_v19 }
 0x27a   : > { %v7102_v23 = vpop.permute.xlu0 %1501 }
 0x27b   : > { %11363 = vst [vmem:[#allocation72_spill] sm:$0xff] %v7102_v23 }
 0x287   : > { %v1543_v60 = vpop.permute.xlu1 %1542 }
 0x288   : > { %v1556_v56 = vmul.f32 0.0, %v1543_v60  ;;  %v1557_v42 = vmul.f32 %v1543_v60, %v6815_v10  ;;  %v1558_v19 = vmul.f32 %v1543_v60, %v6851_v40 }
 0x28b   : > { %v1539_v41 = vpop.permute.xlu0 %1538  ;;  %v1547_v23 = vpop.permute.xlu1 %1546 }
 0x28c   : > { %v1553_v7 = vmul.f32 0.0, %v1539_v41  ;;  %v1554_v29 = vmul.f32 %v1539_v41, %v6761_v55  ;;  %v1555_v17 = vmul.f32 %v1539_v41, %v6782_v12  ;;  %v1559_v4 = vmul.f32 0.0, %v1547_v23 }
 0x28d   : > { %v1561_v41 = vmul.f32 %v1547_v23, %v6893_v9 }
 0x28e   : > { %1577 = vrot.lane.b32.xlu1 %v1553_v7, %s11072_s26  ;;  %1579 = vrot.lane.b32.xlu0 %v1554_v29, %s11072_s26  ;;  %v1560_v7 = vmul.f32 %v1547_v23, %v6874_v18  ;;  %v7129_v29 = vld [vmem:[%s11024_s4] sm:$0xff] }
 0x28f   : > { %v1551_v16 = vpop.permute.xlu0 %1550 }
 0x290   : > { %v1564_v60 = vmul.f32 %v1551_v16, %v6947_v49 }
 0x292   : > { %1581 = vrot.lane.b32.xlu1 %v1555_v17, %s11072_s26  ;;  %1583 = vrot.lane.b32.xlu0 %v1556_v56, %s11072_s26  ;;  %v1562_v17 = vmul.f32 0.0, %v1551_v16  ;;  %v1563_v56 = vmul.f32 %v1551_v16, %v6924_v44  ;;  %v6255_v16 = vmov 29  }
 0x296   : > { %1585 = vrot.lane.b32.xlu1 %v1557_v42, %s11072_s26  ;;  %1587 = vrot.lane.b32.xlu0 %v1558_v19, %s11072_s26  ;;  %v7135_v42 = vld [vmem:[%s11024_s4 + $0x8] sm:$0xff]  ;;  %v7147_v19 = vld [vmem:[%s11024_s4 + $0x18] sm:$0xff] }
 0x297   : > { %11365 = vst [vmem:[#allocation74_spill] sm:$0xff] %v7147_v19 }
 0x29a   : > { %1589 = vrot.lane.b32.xlu1 %v1559_v4, %s11072_s26  ;;  %1591 = vrot.lane.b32.xlu0 %v1560_v7, %s11072_s26  ;;  %v7141_v4 = vld [vmem:[%s11024_s4 + $0x10] sm:$0xff] }
 0x29e   : > { %1593 = vrot.lane.b32.xlu1 %v1561_v41, %s11072_s26  ;;  %1595 = vrot.lane.b32.xlu0 %v1562_v17, %s11072_s26 }
 0x2a2   : > { %1597 = vrot.lane.b32.xlu1 %v1563_v56, %s11072_s26  ;;  %1599 = vrot.lane.b32.xlu0 %v1564_v60, %s11072_s26  ;;  %s11444_s26 = smov 32  }
 0x2a6   : > { %1634 = vperm.xlu1 %6030, %v7129_v29   ;;  %1638 = vperm.xlu0 %6031, %v7135_v42  }
 0x2aa   : > { %1642 = vperm.xlu1 %6030, %v7141_v4   ;;  %6032 = vset.pattern.permute.xlu0 %v6255_v16 }
 0x2ae   : > { %1646 = vperm.xlu1 %6030, %v7147_v19  }
 0x2b2   : > { %6033 = vset.pattern.permute.xlu1 %v6255_v16 }
 0x300   : > { %v7150_v23 = vpop.permute.xlu1 %1577  ;;  %v7152_v7 = vpop.permute.xlu0 %1579 }
 0x301   : > { %11366 = vst [vmem:[#allocation75_spill] sm:$0xff] %v7150_v23  ;;  %11367 = vst [vmem:[#allocation76_spill] sm:$0xff] %v7152_v7 }
 0x304   : > { %v7154_v41 = vpop.permute.xlu1 %1581  ;;  %v7156_v17 = vpop.permute.xlu0 %1583 }
 0x305   : > { %11368 = vst [vmem:[#allocation77_spill] sm:$0xff] %v7154_v41  ;;  %11369 = vst [vmem:[#allocation78_spill] sm:$0xff] %v7156_v17 }
 0x308   : > { %v7158_v56 = vpop.permute.xlu1 %1585  ;;  %v7160_v60 = vpop.permute.xlu0 %1587 }
 0x309   : > { %11370 = vst [vmem:[#allocation79_spill] sm:$0xff] %v7158_v56  ;;  %11371 = vst [vmem:[#allocation80_spill] sm:$0xff] %v7160_v60 }
 0x30c   : > { %v7162_v14 = vpop.permute.xlu1 %1589  ;;  %v7164_v20 = vpop.permute.xlu0 %1591 }
 0x30d   : > { %11372 = vst [vmem:[#allocation81_spill] sm:$0xff] %v7162_v14  ;;  %11373 = vst [vmem:[#allocation82_spill] sm:$0xff] %v7164_v20 }
 0x310   : > { %v7166_v53 = vpop.permute.xlu1 %1593  ;;  %v7168_v38 = vpop.permute.xlu0 %1595 }
 0x311   : > { %11374 = vst [vmem:[#allocation83_spill] sm:$0xff] %v7166_v53  ;;  %11375 = vst [vmem:[#allocation84_spill] sm:$0xff] %v7168_v38 }
 0x314   : > { %v7170_v16 = vpop.permute.xlu1 %1597  ;;  %v7172_v23 = vpop.permute.xlu0 %1599 }
 0x315   : > { %11376 = vst [vmem:[#allocation85_spill] sm:$0xff] %v7170_v16  ;;  %11377 = vst [vmem:[#allocation86_spill] sm:$0xff] %v7172_v23 }
 0x325   : > { %v1635_v7 = vpop.permute.xlu1 %1634  ;;  %v1639_v26 = vpop.permute.xlu0 %1638 }
 0x326   : > { %v1649_v41 = vmul.f32 0.0, %v1635_v7  ;;  %v1650_v17 = vmul.f32 %v1635_v7, %v6761_v55  ;;  %v1652_v56 = vmul.f32 0.0, %v1639_v26  ;;  %v1651_v14 = vmul.f32 %v1635_v7, %v6782_v12 }
 0x327   : > { %v1653_v16 = vmul.f32 %v1639_v26, %v6815_v10  ;;  %v1654_v23 = vmul.f32 %v1639_v26, %v6851_v40 }
 0x328   : > { %1675 = vrot.lane.b32.xlu1 %v1650_v17, %s11160_s18  ;;  %1673 = vrot.lane.b32.xlu0 %v1649_v41, %s11160_s18 }
 0x329   : > { %v1643_v38 = vpop.permute.xlu1 %1642 }
 0x32a   : > { %v1655_v53 = vmul.f32 0.0, %v1643_v38  ;;  %v1656_v17 = vmul.f32 %v1643_v38, %v6874_v18 }
 0x32c   : > { %1677 = vrot.lane.b32.xlu0 %v1651_v14, %s11160_s18  ;;  %1679 = vrot.lane.b32.xlu1 %v1652_v56, %s11160_s18  ;;  %v1657_v14 = vmul.f32 %v1643_v38, %v6893_v9  ;;  %v6256_v38 = vmov 36  }
 0x32d   : > { %v1647_v20 = vpop.permute.xlu1 %1646 }
 0x32e   : > { %v1658_v7 = vmul.f32 0.0, %v1647_v20  ;;  %v1659_v26 = vmul.f32 %v1647_v20, %v6924_v44  ;;  %v1660_v41 = vmul.f32 %v1647_v20, %v6947_v49 }
 0x330   : > { %1681 = vrot.lane.b32.xlu0 %v1653_v16, %s11160_s18  ;;  %1683 = vrot.lane.b32.xlu1 %v1654_v23, %s11160_s18  ;;  %v791_v16 = vsel %vm790_vm1, %v6683_v50, %v6991_v8  ;;  %v716_v50 = vmul.f32 %v6546_v45, %v6782_v12 }
 0x334   : > { %1685 = vrot.lane.b32.xlu0 %v1655_v53, %s11160_s18  ;;  %1687 = vrot.lane.b32.xlu1 %v1656_v17, %s11160_s18  ;;  %v714_v17 = vmul.f32 0.0, %v6546_v45 }
 0x338   : > { %1689 = vrot.lane.b32.xlu0 %v1657_v14, %s11160_s18  ;;  %1691 = vrot.lane.b32.xlu1 %v1658_v7, %s11160_s18  ;;  %v811_v7 = vadd.f32 %v791_v16, %v714_v17  ;;  %v792_v16 = vsel %vm790_vm1, %v6991_v8, %v7002_v28  ;;  %v813_v17 = vadd.f32 %v7002_v28, %v716_v50  ;;  %v11388_v50 = vld [vmem:[#allocation17_spill] sm:$0xff] }
 0x339   : > { %v793_v28 = vsel %vm790_vm1, %v6681_v31, %v7018_v11 }
 0x33c   : > { %1693 = vrot.lane.b32.xlu0 %v1659_v26, %s11160_s18  ;;  %1695 = vrot.lane.b32.xlu1 %v1660_v41, %s11160_s18  ;;  %v888_v41 = vsel %vm887_vm2, %v6689_v61, %v6985_v43 }
 0x340   : > { %1730 = vperm.xlu0 %6032, %v7129_v29   ;;  %1734 = vperm.xlu1 %6033, %v7135_v42  }
 0x344   : > { %1742 = vperm.xlu0 %6032, %v7147_v19   ;;  %1738 = vperm.xlu1 %6033, %v7141_v4  }
 0x348   : > { %6035 = vset.pattern.permute.xlu0 %v6256_v38  ;;  %6034 = vset.pattern.permute.xlu1 %v6256_v38  ;;  %v908_v38 = vadd.f32 %v888_v41, %v811_v7  ;;  %v910_v41 = vadd.f32 %v7008_v39, %v813_v17 }
 0x39a   : > { %v7198_v53 = vpop.permute.xlu0 %1673  ;;  %v7200_v23 = vpop.permute.xlu1 %1675 }
 0x39b   : > { %11378 = vst [vmem:[#allocation87_spill] sm:$0xff] %v7198_v53  ;;  %11379 = vst [vmem:[#allocation88_spill] sm:$0xff] %v7200_v23 }
 0x39e   : > { %v7202_v20 = vpop.permute.xlu0 %1677  ;;  %v7204_v56 = vpop.permute.xlu1 %1679 }
 0x39f   : > { %11380 = vst [vmem:[#allocation89_spill] sm:$0xff] %v7202_v20  ;;  %11381 = vst [vmem:[#allocation90_spill] sm:$0xff] %v7204_v56  ;;  %v985_v56 = vsel %vm984_vm3, %v6699_v2, %v6997_v62  ;;  %v889_v2 = vsel %vm887_vm2, %v6985_v43, %v7008_v39  ;;  %v890_v43 = vsel %vm887_vm2, %v11388_v50, %v7020_v52 }
 0x3a0   : > { %v1005_v61 = vadd.f32 %v985_v56, %v908_v38  ;;  %v1007_v38 = vadd.f32 %v7006_v37, %v910_v41  ;;  %v794_v50 = vsel %vm790_vm1, %v7018_v11, %v7034_v13 }
 0x3a2   : > { %v7210_v14 = vpop.permute.xlu0 %1681  ;;  %v7212_v26 = vpop.permute.xlu1 %1683  ;;  %v1114_v53 = vadd.f32 %v7000_v32, %v1005_v61 }
 0x3a3   : > { %11382 = vst [vmem:[#allocation91_spill] sm:$0xff] %v7210_v14  ;;  %11383 = vst [vmem:[#allocation92_spill] sm:$0xff] %v7212_v26  ;;  %v715_v26 = vmul.f32 %v6546_v45, %v6761_v55  ;;  %v11387_v45 = vld [vmem:[#allocation10_spill] sm:$0xff] }
 0x3a4   : > { %v717_v56 = vmul.f32 0.0, %v11387_v45  ;;  %v1211_v17 = vadd.f32 %v6989_v25, %v1114_v53 }
 0x3a5   : > { %v812_v14 = vadd.f32 %v792_v16, %v715_v26  ;;  %v11390_v26 = vld [vmem:[#allocation11_spill] sm:$0xff] }
 0x3a6   : > { %v7222_v20 = vpop.permute.xlu0 %1685  ;;  %v7230_v7 = vpop.permute.xlu1 %1687  ;;  %v7250_v16 = vmul.f32 0.0, %v11390_v26  ;;  %v814_v31 = vadd.f32 %v793_v28, %v717_v56  ;;  %v11394_v28 = vld [vmem:[#allocation28_spill] sm:$0xff]  ;;  %v1094_v56 = vsel %vm1093_vm4, %v7000_v32, %v7010_v35 }
 0x3a7   : > { %11384 = vst [vmem:[#allocation93_spill] sm:$0xff] %v7222_v20  ;;  %11385 = vst [vmem:[#allocation94_spill] sm:$0xff] %v7230_v7  ;;  %v909_v8 = vadd.f32 %v889_v2, %v812_v14  ;;  %v986_v14 = vsel %vm984_vm3, %v6997_v62, %v7006_v37  ;;  %v11391_v2 = vld [vmem:[#allocation23_spill] sm:$0xff]  ;;  %v718_v7 = vmul.f32 %v11387_v45, %v6815_v10 }
 0x3a8   : > { %v1095_v41 = vsel %vm1093_vm4, %v7010_v35, %v11391_v2  ;;  %v911_v62 = vadd.f32 %v890_v43, %v814_v31  ;;  %v1192_v11 = vsel %vm1190_vm5, %v7012_v24, %v11394_v28  ;;  %v1308_v31 = vadd.f32 %v7004_v21, %v1211_v17  ;;  %v11396_v28 = vld [vmem:[#allocation16_spill] sm:$0xff] }
 0x3a9   : > { %v1006_v61 = vadd.f32 %v986_v14, %v909_v8  ;;  %v1116_v23 = vadd.f32 %v1095_v41, %v1007_v38  ;;  %v7271_v8 = vmul.f32 %v11390_v26, %v6924_v44  ;;  %v719_v38 = vmul.f32 %v11387_v45, %v6851_v40  ;;  %v11395_v41 = vld [vmem:[#allocation20_spill] sm:$0xff] }
 0x3aa   : > { %v7236_v20 = vpop.permute.xlu0 %1689  ;;  %v7247_v39 = vpop.permute.xlu1 %1691  ;;  %v815_v43 = vadd.f32 %v794_v50, %v718_v7  ;;  %v795_v60 = vsel %vm790_vm1, %v11396_v28, %v7050_v34  ;;  %v7294_v7 = vmul.f32 %v11390_v26, %v6947_v49  ;;  %v891_v17 = vsel %vm887_vm2, %v7020_v52, %v7032_v15 }
 0x3ab   : > { %11386 = vst [vmem:[#allocation95_spill] sm:$0xff] %v7236_v20  ;;  %11389 = vst [vmem:[#allocation10_spill] sm:$0xff] %v7247_v39  ;;  %v11392_v39 = vld [vmem:[#allocation12_spill] sm:$0xff]  ;;  %v1115_v2 = vadd.f32 %v1094_v56, %v1006_v61  ;;  %v1213_v32 = vadd.f32 %v1192_v11, %v1116_v23  ;;  %v816_v61 = vadd.f32 %v7034_v13, %v719_v38 }
 0x3ac   : > { %v720_v20 = vmul.f32 0.0, %v11392_v39  ;;  %v721_v53 = vmul.f32 %v11392_v39, %v6874_v18  ;;  %v722_v14 = vmul.f32 %v11392_v39, %v6893_v9  ;;  %v7298_v39 = vsel %vm1333_vm6, %v6740_v1, %v6742_v6 }
 0x3ad   : > { %v1191_v23 = vsel %vm1190_vm5, %v6989_v25, %v7012_v24  ;;  %v7310_v11 = vmul.f32 %v6740_v1, %v1308_v31  ;;  %v988_v13 = vsel %vm984_vm3, %v7022_v47, %v7038_v51  ;;  %v1288_v25 = vsel %vm1287_vm7, %v7004_v21, %v7014_v22  ;;  %v11398_v31 = vld [vmem:[#allocation18_spill] sm:$0xff] }
 0x3ae   : > { %v7265_v37 = vpop.permute.xlu0 %1693  ;;  %v7290_v19 = vpop.permute.xlu1 %1695  ;;  %v817_v26 = vadd.f32 %v795_v60, %v720_v20  ;;  %v1212_v56 = vadd.f32 %v1191_v23, %v1115_v2  ;;  %v796_v20 = vsel %vm790_vm1, %v7050_v34, %v7054_v58  ;;  %v892_v21 = vsel %vm887_vm2, %v11398_v31, %v7046_v27 }
 0x3af   : > { %11393 = vst [vmem:[#allocation17_spill] sm:$0xff] %v7265_v37  ;;  %v987_v37 = vsel %vm984_vm3, %v11395_v41, %v7022_v47  ;;  %v11397_v41 = vld [vmem:[#allocation31_spill] sm:$0xff]  ;;  %v1096_v47 = vsel %vm1093_vm4, %v7026_v30, %v7042_v57  ;;  %v819_v23 = vadd.f32 %v7054_v58, %v722_v14 }
 0x3b0   : > { %v1008_v35 = vadd.f32 %v987_v37, %v911_v62  ;;  %v912_v62 = vadd.f32 %v891_v17, %v815_v43  ;;  %v1289_v52 = vsel %vm1287_vm7, %v7014_v22, %v11397_v41  ;;  %v913_v43 = vadd.f32 %v7032_v15, %v816_v61  ;;  %v11399_v17 = vld [vmem:[#allocation24_spill] sm:$0xff]  ;;  %v11402_v14 = vld [vmem:[#allocation19_spill] sm:$0xff] }
 0x3b1   : > { %v7322_v24 = vadd.f32 %v1289_v52, %v1213_v32  ;;  %v914_v28 = vadd.f32 %v892_v21, %v817_v26  ;;  %v893_v32 = vsel %vm887_vm2, %v7046_v27, %v7064_v63  ;;  %v1097_v15 = vsel %vm1093_vm4, %v7042_v57, %v11399_v17  ;;  %v11406_v17 = vld [vmem:[#allocation32_spill] sm:$0xff] }
 0x3b2   : > { %v1117_v60 = vadd.f32 %v7026_v30, %v1008_v35  ;;  %v1009_v2 = vadd.f32 %v988_v13, %v912_v62  ;;  %v1309_v35 = vadd.f32 %v1288_v25, %v1212_v56  ;;  %v11400_v30 = vld [vmem:[#allocation22_spill] sm:$0xff]  ;;  %v11401_v62 = vld [vmem:[#allocation15_spill] sm:$0xff]  ;;  %v798_v56 = vsel %vm790_vm1, %v7070_v0, %v7078_v5 }
 0x3b3   : > { %v989_v61 = vsel %vm984_vm3, %v11400_v30, %v7052_v33  ;;  %v797_v27 = vsel %vm790_vm1, %v11401_v62, %v7070_v0  ;;  %v916_v58 = vadd.f32 %v7064_v63, %v819_v23  ;;  %v894_v13 = vsel %vm887_vm2, %v11402_v14, %v7072_v3  ;;  %v11409_v23 = vld [vmem:[#allocation61_spill] sm:$0xff]  ;;  %v11414_v14 = vld [vmem:[#allocation59_spill] sm:$0xff] }
 0x3b4   : > { %v1214_v41 = vadd.f32 %v7024_v46, %v1117_v60  ;;  %v1011_v52 = vadd.f32 %v989_v61, %v914_v28  ;;  %v820_v0 = vadd.f32 %v797_v27, %v7250_v16  ;;  %v1339_v63 = vmul.f32 %v7298_v39, %v1309_v35  ;;  %v11405_v28 = vld [vmem:[#allocation55_spill] sm:$0xff]  ;;  %v11410_v62 = vld [vmem:[#allocation21_spill] sm:$0xff] }
 0x3b5   : > { %v822_v30 = vadd.f32 %v7078_v5, %v7294_v7  ;;  %v991_v27 = vsel %vm984_vm3, %v11410_v62, %v11409_v23  ;;  %v11425_v62 = vld [vmem:[#allocation29_spill] sm:$0xff] }
 0x3b6   : > { %v917_v21 = vadd.f32 %v894_v13, %v820_v0 }
 0x3b7   : > { %v919_v7 = vadd.f32 %v7088_v54, %v822_v30 }
 0x3b8   : > { %v1014_v5 = vadd.f32 %v991_v27, %v917_v21 }
 0x3bf   : > { %v1731_v45 = vpop.permute.xlu0 %1730  ;;  %v1735_v38 = vpop.permute.xlu1 %1734 }
 0x3c0   : > { %v1745_v50 = vmul.f32 %v1731_v45, %v6761_v55  ;;  %v1746_v37 = vmul.f32 %v1731_v45, %v6782_v12  ;;  %v1747_v22 = vmul.f32 0.0, %v1731_v45  ;;  %v1748_v34 = vmul.f32 %v1735_v38, %v6815_v10 }
 0x3c1   : > { %v1118_v45 = vadd.f32 %v1096_v47, %v1009_v2  ;;  %v1750_v26 = vmul.f32 0.0, %v1735_v38  ;;  %v821_v47 = vadd.f32 %v798_v56, %v7271_v8  ;;  %v11412_v56 = vld [vmem:[#allocation54_spill] sm:$0xff] }
 0x3c2   : > { %1769 = vrot.lane.b32.xlu1 %v1745_v50, %s11158_s28  ;;  %1771 = vrot.lane.b32.xlu0 %v1746_v37, %s11158_s28  ;;  %v818_v50 = vadd.f32 %v796_v20, %v721_v53  ;;  %v1010_v37 = vadd.f32 %v7038_v51, %v913_v43  ;;  %v1749_v53 = vmul.f32 %v1735_v38, %v6851_v40 }
 0x3c3   : > { %v7362_v25 = vpop.permute.xlu1 %1738  ;;  %v1193_v51 = vsel %vm1190_vm5, %v7024_v46, %v7036_v36  ;;  %v895_v38 = vsel %vm887_vm2, %v7072_v3, %v7088_v54  ;;  %v990_v43 = vsel %vm984_vm3, %v7052_v33, %v7058_v48  ;;  %v11403_v46 = vld [vmem:[#allocation52_spill] sm:$0xff]  ;;  %v1013_v33 = vadd.f32 %v7058_v48, %v916_v58  ;;  %v11413_v58 = vld [vmem:[#allocation30_spill] sm:$0xff] }
 0x3c4   : > { %v915_v57 = vadd.f32 %v893_v32, %v818_v50  ;;  %v1119_v20 = vadd.f32 %v1097_v15, %v1010_v37  ;;  %v1215_v60 = vadd.f32 %v1193_v51, %v1118_v45  ;;  %v1290_v16 = vsel %vm1287_vm7, %v11403_v46, %v7044_v59  ;;  %v11407_v50 = vld [vmem:[#allocation57_spill] sm:$0xff]  ;;  %v11416_v51 = vld [vmem:[#allocation62_spill] sm:$0xff] }
 0x3c5   : > { %v1751_v3 = vmul.f32 %v7362_v25, %v6874_v18  ;;  %v1120_v32 = vadd.f32 %v11405_v28, %v1011_v52  ;;  %v918_v8 = vadd.f32 %v895_v38, %v821_v47  ;;  %v1291_v15 = vsel %vm1287_vm7, %v7044_v59, %v11406_v17  ;;  %v11408_v45 = vld [vmem:[#allocation25_spill] sm:$0xff]  ;;  %v11422_v17 = vld [vmem:[#allocation67_spill] sm:$0xff] }
 0x3c6   : > { %1773 = vrot.lane.b32.xlu1 %v1747_v22, %s11158_s28  ;;  %1775 = vrot.lane.b32.xlu0 %v1748_v34, %s11158_s28  ;;  %v1012_v31 = vadd.f32 %v990_v43, %v915_v57  ;;  %v11404_v22 = vld [vmem:[#allocation27_spill] sm:$0xff]  ;;  %v1311_v34 = vadd.f32 %v11403_v46, %v1214_v41  ;;  %v1312_v61 = vadd.f32 %v1290_v16, %v1215_v60  ;;  %v11417_v46 = vld [vmem:[#allocation56_spill] sm:$0xff] }
 0x3c7   : > { %v1194_v2 = vsel %vm1190_vm5, %v7036_v36, %v11404_v22  ;;  %v1098_v36 = vsel %vm1093_vm4, %v11405_v28, %v11407_v50  ;;  %v1099_v48 = vsel %vm1093_vm4, %v11407_v50, %v11408_v45  ;;  %v1340_v57 = vmul.f32 %v6742_v6, %v7322_v24  ;;  %v11423_v45 = vld [vmem:[#allocation66_spill] sm:$0xff] }
 0x3c8   : > { %v1216_v35 = vadd.f32 %v1194_v2, %v1119_v20  ;;  %v1121_v59 = vadd.f32 %v1098_v36, %v1012_v31  ;;  %v1122_v41 = vadd.f32 %v1099_v48, %v1013_v33  ;;  %v1196_v13 = vsel %vm1190_vm5, %v11414_v14, %v11413_v58  ;;  %v11419_v2 = vld [vmem:[#allocation58_spill] sm:$0xff]  ;;  %v11424_v48 = vld [vmem:[#allocation64_spill] sm:$0xff] }
 0x3c9   : > { %v1341_v54 = vmul.f32 %v6740_v1, %v1311_v34  ;;  %v1195_v24 = vsel %vm1190_vm5, %v11412_v56, %v11414_v14  ;;  %v1342_v38 = vmul.f32 %v7298_v39, %v1312_v61  ;;  %v1123_v43 = vadd.f32 %v11416_v51, %v1014_v5  ;;  %v11421_v34 = vld [vmem:[#allocation60_spill] sm:$0xff] }
 0x3ca   : > { %1777 = vrot.lane.b32.xlu1 %v1749_v53, %s11158_s28  ;;  %1779 = vrot.lane.b32.xlu0 %v1750_v26, %s11158_s28  ;;  %v11411_v26 = vld [vmem:[#allocation63_spill] sm:$0xff]  ;;  %v1217_v53 = vadd.f32 %v11412_v56, %v1120_v32  ;;  %v1313_v0 = vadd.f32 %v1291_v15, %v1216_v35  ;;  %v1218_v60 = vadd.f32 %v1195_v24, %v1121_v59  ;;  %v11420_v32 = vld [vmem:[#allocation33_spill] sm:$0xff] }
 0x3cb   : > { %v992_v37 = vsel %vm984_vm3, %v11409_v23, %v11411_v26  ;;  %v1016_v47 = vadd.f32 %v11411_v26, %v919_v7  ;;  %v1219_v31 = vadd.f32 %v1196_v13, %v1122_v41  ;;  %v1292_v28 = vsel %vm1287_vm7, %v11417_v46, %v11419_v2  ;;  %v11426_v26 = vld [vmem:[#allocation34_spill] sm:$0xff]  ;;  %v1743_v13 = vpop.permute.xlu0 %1742 }
 0x3cc   : > { %v1015_v52 = vadd.f32 %v992_v37, %v918_v8  ;;  %v1314_v16 = vadd.f32 %v11417_v46, %v1217_v53  ;;  %v1343_v22 = vmul.f32 %v6742_v6, %v1313_v0  ;;  %v1293_v33 = vsel %vm1287_vm7, %v11419_v2, %v11420_v32 }
 0x3cd   : > { %v1315_v8 = vadd.f32 %v1292_v28, %v1218_v60  ;;  %v1220_v35 = vadd.f32 %v11421_v34, %v1123_v43  ;;  %v1197_v15 = vsel %vm1190_vm5, %v11421_v34, %v11422_v17  ;;  %v1316_v50 = vadd.f32 %v1293_v33, %v1219_v31 }
 0x3ce   : > { %1781 = vrot.lane.b32.xlu1 %v1751_v3, %s11158_s28  ;;  %1362 = vrot.lane.b32.xlu0 %v7310_v11, %s6257_s20  ;;  %v11415_v11 = vld [vmem:[#allocation65_spill] sm:$0xff]  ;;  %v1344_v61 = vmul.f32 %v6740_v1, %v1314_v16  ;;  %v1294_v23 = vsel %vm1287_vm7, %v11424_v48, %v11423_v45  ;;  %v1198_v27 = vsel %vm1190_vm5, %v11422_v17, %v11425_v62 }
 0x3cf   : > { %v1100_v20 = vsel %vm1093_vm4, %v11416_v51, %v11415_v11  ;;  %v1317_v59 = vadd.f32 %v11424_v48, %v1220_v35  ;;  %v1345_v7 = vmul.f32 %v7298_v39, %v1315_v8  ;;  %v1295_v37 = vsel %vm1287_vm7, %v11423_v45, %v11426_v26 }
 0x3d0   : > { %v1124_v3 = vadd.f32 %v1100_v20, %v1015_v52  ;;  %v1346_v56 = vmul.f32 %v6742_v6, %v1316_v50  ;;  %v1752_v14 = vmul.f32 %v7362_v25, %v6893_v9  ;;  %v1756_v51 = vmul.f32 0.0, %v1743_v13 }
 0x3d1   : > { %v1347_v53 = vmul.f32 %v6740_v1, %v1317_v59  ;;  %v1754_v1 = vmul.f32 %v1743_v13, %v6924_v44 }
 0x3d2   : > { %1364 = vrot.lane.b32.xlu1 %v1339_v63, %s6257_s20  ;;  %1366 = vrot.lane.b32.xlu0 %v1340_v57, %s6257_s20  ;;  %v11418_v63 = vld [vmem:[#allocation26_spill] sm:$0xff]  ;;  %v1221_v36 = vadd.f32 %v1197_v15, %v1124_v3 }
 0x3d3   : > { %v1101_v21 = vsel %vm1093_vm4, %v11415_v11, %v11418_v63  ;;  %v1753_v11 = vmul.f32 0.0, %v7362_v25  ;;  %v6258_v25 = vmov 43  }
 0x3d4   : > { %v1125_v30 = vadd.f32 %v1101_v21, %v1016_v47  ;;  %v1318_v57 = vadd.f32 %v1294_v23, %v1221_v36 }
 0x3d6   : > { %1368 = vrot.lane.b32.xlu1 %v1341_v54, %s6257_s20  ;;  %1370 = vrot.lane.b32.xlu0 %v1342_v38, %s6257_s20  ;;  %v1222_v5 = vadd.f32 %v1198_v27, %v1125_v30  ;;  %v1348_v52 = vmul.f32 %v7298_v39, %v1318_v57  ;;  %v1755_v39 = vmul.f32 %v1743_v13, %v6947_v49 }
 0x3d8   : > { %v1319_v41 = vadd.f32 %v1295_v37, %v1222_v5 }
 0x3da   : > { %1372 = vrot.lane.b32.xlu1 %v1343_v22, %s6257_s20  ;;  %1374 = vrot.lane.b32.xlu0 %v1344_v61, %s6257_s20  ;;  %v1349_v58 = vmul.f32 %v6742_v6, %v1319_v41  ;;  %v11427_v6 = vld [vmem:[#allocation74_spill] sm:$0xff] }
 0x3de   : > { %1376 = vrot.lane.b32.xlu1 %v1345_v7, %s6257_s20  ;;  %1378 = vrot.lane.b32.xlu0 %v1346_v56, %s6257_s20 }
 0x3e2   : > { %1380 = vrot.lane.b32.xlu1 %v1347_v53, %s6257_s20  ;;  %1382 = vrot.lane.b32.xlu0 %v1348_v52, %s6257_s20 }
 0x3e6   : > { %1384 = vrot.lane.b32.xlu1 %v1349_v58, %s6257_s20  ;;  %1783 = vrot.lane.b32.xlu0 %v1752_v14, %s11158_s28  ;;  %s11517_s20 = smov 96  }
 0x3ea   : > { %1785 = vrot.lane.b32.xlu1 %v1753_v11, %s11158_s28  ;;  %1787 = vrot.lane.b32.xlu0 %v1754_v1, %s11158_s28 }
 0x3ee   : > { %1789 = vrot.lane.b32.xlu1 %v1755_v39, %s11158_s28  ;;  %1791 = vrot.lane.b32.xlu0 %v1756_v51, %s11158_s28 }
 0x3f2   : > { %1826 = vperm.xlu1 %6034, %v7129_v29   ;;  %1830 = vperm.xlu0 %6035, %v7135_v42  }
 0x3f6   : > { %1834 = vperm.xlu1 %6034, %v7141_v4   ;;  %6036 = vset.pattern.permute.xlu0 %v6258_v25 }
 0x3fa   : > { %1838 = vperm.xlu1 %6034, %v11427_v6  }
 0x3fe   : > { %6037 = vset.pattern.permute.xlu1 %v6258_v25 }
 0x434   : > { %v7482_v20 = vpop.permute.xlu1 %1769  ;;  %v7484_v54 = vpop.permute.xlu0 %1771 }
 0x438   : > { %v7486_v0 = vpop.permute.xlu1 %1773  ;;  %v7488_v24 = vpop.permute.xlu0 %1775 }
 0x43c   : > { %v7490_v38 = vpop.permute.xlu1 %1777  ;;  %v7492_v60 = vpop.permute.xlu0 %1779 }
 0x440   : > { %v7494_v43 = vpop.permute.xlu1 %1781  ;;  %v7496_v47 = vpop.permute.xlu0 %1362 }
 0x441   : > { %11428 = vst [vmem:[#allocation11_spill] sm:$0xff] %v7496_v47  ;;  %v11456_v47 = vld [vmem:[#allocation53_spill] sm:$0xff] }
 0x444   : > { %v7498_v46 = vpop.permute.xlu1 %1364  ;;  %v7500_v16 = vpop.permute.xlu0 %1366 }
 0x445   : > { %11429 = vst [vmem:[#allocation23_spill] sm:$0xff] %v7498_v46  ;;  %11430 = vst [vmem:[#allocation12_spill] sm:$0xff] %v7500_v16  ;;  %v11457_v16 = vld [vmem:[#allocation69_spill] sm:$0xff] }
 0x448   : > { %v7502_v31 = vpop.permute.xlu1 %1368  ;;  %v7504_v63 = vpop.permute.xlu0 %1370 }
 0x449   : > { %11431 = vst [vmem:[#allocation28_spill] sm:$0xff] %v7502_v31  ;;  %11432 = vst [vmem:[#allocation20_spill] sm:$0xff] %v7504_v63 }
 0x44c   : > { %v7506_v21 = vpop.permute.xlu1 %1372  ;;  %v7508_v3 = vpop.permute.xlu0 %1374 }
 0x44d   : > { %11433 = vst [vmem:[#allocation16_spill] sm:$0xff] %v7506_v21  ;;  %11434 = vst [vmem:[#allocation31_spill] sm:$0xff] %v7508_v3 }
 0x450   : > { %v7510_v22 = vpop.permute.xlu1 %1376  ;;  %v7512_v2 = vpop.permute.xlu0 %1378 }
 0x451   : > { %11435 = vst [vmem:[#allocation18_spill] sm:$0xff] %v7510_v22  ;;  %11436 = vst [vmem:[#allocation24_spill] sm:$0xff] %v7512_v2  ;;  %v11454_v22 = vld [vmem:[#allocation51_spill] sm:$0xff] }
 0x452   : > { %v11455_v2 = vld [vmem:[#allocation47_spill] sm:$0xff] }
 0x454   : > { %v7514_v28 = vpop.permute.xlu1 %1380  ;;  %v7516_v32 = vpop.permute.xlu0 %1382 }
 0x455   : > { %11437 = vst [vmem:[#allocation22_spill] sm:$0xff] %v7514_v28  ;;  %11438 = vst [vmem:[#allocation15_spill] sm:$0xff] %v7516_v32  ;;  %v11453_v32 = vld [vmem:[#allocation38_spill] sm:$0xff] }
 0x456   : > { %v1436_v3 = vmul.f32 %v11453_v32, %v6874_v18  ;;  %v1435_v46 = vmul.f32 0.0, %v11453_v32 }
 0x458   : > { %v7518_v33 = vpop.permute.xlu1 %1384  ;;  %v7520_v8 = vpop.permute.xlu0 %1783 }
 0x459   : > { %11439 = vst [vmem:[#allocation19_spill] sm:$0xff] %v7518_v33  ;;  %v11452_v33 = vld [vmem:[#allocation50_spill] sm:$0xff] }
 0x45c   : > { %v7522_v34 = vpop.permute.xlu1 %1785  ;;  %v7524_v35 = vpop.permute.xlu0 %1787 }
 0x45d   : > { %11440 = vst [vmem:[#allocation52_spill] sm:$0xff] %v7524_v35 }
 0x460   : > { %v7526_v17 = vpop.permute.xlu1 %1789  ;;  %v7528_v15 = vpop.permute.xlu0 %1791 }
 0x471   : > { %v1827_v30 = vpop.permute.xlu1 %1826  ;;  %v1831_v36 = vpop.permute.xlu0 %1830 }
 0x472   : > { %v1841_v61 = vmul.f32 %v1827_v30, %v6761_v55  ;;  %v1842_v50 = vmul.f32 %v1827_v30, %v6782_v12  ;;  %v1844_v45 = vmul.f32 %v1831_v36, %v6815_v10  ;;  %v1843_v48 = vmul.f32 0.0, %v1827_v30 }
 0x473   : > { %v1846_v23 = vmul.f32 0.0, %v1831_v36  ;;  %v1845_v27 = vmul.f32 %v1831_v36, %v6851_v40 }
 0x474   : > { %1867 = vrot.lane.b32.xlu1 %v1842_v50, %s11120_s29  ;;  %1865 = vrot.lane.b32.xlu0 %v1841_v61, %s11120_s29 }
 0x475   : > { %v1835_v62 = vpop.permute.xlu1 %1834 }
 0x476   : > { %v1847_v59 = vmul.f32 %v1835_v62, %v6874_v18  ;;  %v1848_v5 = vmul.f32 %v1835_v62, %v6893_v9  ;;  %v1849_v26 = vmul.f32 0.0, %v1835_v62 }
 0x478   : > { %1871 = vrot.lane.b32.xlu1 %v1844_v45, %s11120_s29  ;;  %1869 = vrot.lane.b32.xlu0 %v1843_v48, %s11120_s29 }
 0x479   : > { %v1839_v7 = vpop.permute.xlu1 %1838 }
 0x47a   : > { %v1850_v37 = vmul.f32 %v1839_v7, %v6924_v44  ;;  %v1851_v57 = vmul.f32 %v1839_v7, %v6947_v49  ;;  %v1852_v56 = vmul.f32 0.0, %v1839_v7  ;;  %v5887_v7 = vld [vmem:[%s11026_s6 + $0x1] ss:$8 sm:$0x3] }
 0x47c   : > { %1875 = vrot.lane.b32.xlu1 %v1846_v23, %s11120_s29  ;;  %1873 = vrot.lane.b32.xlu0 %v1845_v27, %s11120_s29 }
 0x480   : > { %1879 = vrot.lane.b32.xlu1 %v1848_v5, %s11120_s29  ;;  %1877 = vrot.lane.b32.xlu0 %v1847_v59, %s11120_s29 }
 0x484   : > { %1881 = vrot.lane.b32.xlu0 %v1849_v26, %s11120_s29  ;;  %1883 = vrot.lane.b32.xlu1 %v1850_v37, %s11120_s29 }
 0x488   : > { %1885 = vrot.lane.b32.xlu0 %v1851_v57, %s11120_s29  ;;  %1887 = vrot.lane.b32.xlu1 %v1852_v56, %s11120_s29  ;;  %v11445_v57 = vld [vmem:[#allocation14_spill] sm:$0xff]  ;;  %s11509_s29 = smov 112  }
 0x489   : > { %v2025_v56 = vrot.slane %v5887_v7, %v11445_v57  ;;  %v11458_v57 = vld [vmem:[#allocation68_spill] sm:$0xff] }
 0x48c   : > { %1922 = vperm.xlu0 %6036, %v7129_v29   ;;  %1926 = vperm.xlu1 %6037, %v7135_v42  }
 0x490   : > { %1934 = vperm.xlu0 %6036, %v11427_v6   ;;  %1930 = vperm.xlu1 %6037, %v7141_v4  }
 0x4e6   : > { %v7554_v53 = vpop.permute.xlu0 %1865  ;;  %v7556_v41 = vpop.permute.xlu1 %1867 }
 0x4ea   : > { %v7558_v52 = vpop.permute.xlu0 %1869  ;;  %v7560_v58 = vpop.permute.xlu1 %1871 }
 0x4ee   : > { %v7562_v14 = vpop.permute.xlu0 %1873  ;;  %v7564_v13 = vpop.permute.xlu1 %1875 }
 0x4f2   : > { %v7566_v11 = vpop.permute.xlu0 %1877  ;;  %v7568_v29 = vpop.permute.xlu1 %1879 }
 0x4f6   : > { %v7570_v42 = vpop.permute.xlu0 %1881  ;;  %v7572_v1 = vpop.permute.xlu1 %1883 }
 0x4f7   : > { %11441 = vst [vmem:[#allocation27_spill] sm:$0xff] %v7572_v1  ;;  %v11462_v1 = vld [vmem:[#allocation73_spill] sm:$0xff] }
 0x4fa   : > { %v7574_v4 = vpop.permute.xlu0 %1885  ;;  %v7576_v39 = vpop.permute.xlu1 %1887 }
 0x4fb   : > { %11442 = vst [vmem:[#allocation55_spill] sm:$0xff] %v7574_v4  ;;  %11443 = vst [vmem:[#allocation32_spill] sm:$0xff] %v7576_v39  ;;  %v11475_v4 = vld [vmem:[#allocation85_spill] sm:$0xff]  ;;  %v11476_v39 = vld [vmem:[#allocation84_spill] sm:$0xff] }
 0x50b   : > { %v1923_v51 = vpop.permute.xlu0 %1922  ;;  %v1927_v30 = vpop.permute.xlu1 %1926 }
 0x50c   : > { %v1937_v6 = vmul.f32 %v1923_v51, %v6761_v55  ;;  %v1938_v25 = vmul.f32 %v1923_v51, %v6782_v12  ;;  %v1939_v61 = vmul.f32 0.0, %v1923_v51  ;;  %v1940_v50 = vmul.f32 %v1927_v30, %v6815_v10  ;;  %v11446_v51 = vld [vmem:[#allocation13_spill] sm:$0xff] }
 0x50d   : > { %v1941_v36 = vmul.f32 %v1927_v30, %v6851_v40  ;;  %v1942_v45 = vmul.f32 0.0, %v1927_v30 }
 0x50e   : > { %1963 = vrot.lane.b32.xlu0 %v1938_v25, %s11444_s26  ;;  %1961 = vrot.lane.b32.xlu1 %v1937_v6, %s11444_s26  ;;  %v2021_v6 = vrot.slane %v5887_v7, %v11446_v51  ;;  %v6260_v25 = vmov 2   ;;  %v11449_v7 = vld [vmem:[#allocation37_spill] sm:$0xff] }
 0x50f   : > { %v1931_v48 = vpop.permute.xlu1 %1930  ;;  %v1935_v27 = vpop.permute.xlu0 %1934  ;;  %6038 = vset.pattern.permute.xlu1 %v6260_v25  ;;  %6039 = vset.pattern.permute.xlu0 %v6260_v25  ;;  %v1440_v63 = vmul.f32 %v11449_v7, %v6947_v49 }
 0x510   : > { %v1943_v23 = vmul.f32 %v1931_v48, %v6874_v18  ;;  %v1944_v62 = vmul.f32 %v1931_v48, %v6893_v9  ;;  %v1946_v59 = vmul.f32 %v1935_v27, %v6924_v44  ;;  %v1945_v5 = vmul.f32 0.0, %v1931_v48 }
 0x511   : > { %v1947_v26 = vmul.f32 %v1935_v27, %v6947_v49  ;;  %v1948_v37 = vmul.f32 0.0, %v1935_v27  ;;  %v11459_v49 = vld [vmem:[#allocation70_spill] sm:$0xff] }
 0x512   : > { %1965 = vrot.lane.b32.xlu1 %v1939_v61, %s11444_s26  ;;  %1967 = vrot.lane.b32.xlu0 %v1940_v50, %s11444_s26  ;;  %v1510_v18 = vsel %vm790_vm1, %v11457_v16, %v11459_v49 }
 0x516   : > { %1969 = vrot.lane.b32.xlu1 %v1941_v36, %s11444_s26  ;;  %1971 = vrot.lane.b32.xlu0 %v1942_v45, %s11444_s26  ;;  %v11447_v45 = vld [vmem:[#allocation35_spill] sm:$0xff] }
 0x517   : > { %v1429_v48 = vmul.f32 0.0, %v11447_v45 }
 0x51a   : > { %1975 = vrot.lane.b32.xlu0 %v1944_v62, %s11444_s26  ;;  %1973 = vrot.lane.b32.xlu1 %v1943_v23, %s11444_s26  ;;  %v1430_v23 = vmul.f32 %v11447_v45, %v6761_v55  ;;  %v11448_v62 = vld [vmem:[#allocation36_spill] sm:$0xff] }
 0x51b   : > { %v1432_v27 = vmul.f32 0.0, %v11448_v62  ;;  %v1434_v31 = vmul.f32 %v11448_v62, %v6851_v40 }
 0x51e   : > { %1979 = vrot.lane.b32.xlu0 %v1946_v59, %s11444_s26  ;;  %1977 = vrot.lane.b32.xlu1 %v1945_v5, %s11444_s26  ;;  %v1433_v59 = vmul.f32 %v11448_v62, %v6815_v10  ;;  %v1431_v5 = vmul.f32 %v11447_v45, %v6782_v12  ;;  %v1507_v45 = vsel %vm790_vm1, %v11455_v2, %v11454_v22  ;;  %v11460_v10 = vld [vmem:[#allocation72_spill] sm:$0xff]  ;;  %v11461_v12 = vld [vmem:[#allocation71_spill] sm:$0xff] }
 0x51f   : > { %v1509_v2 = vsel %vm790_vm1, %v11458_v57, %v11457_v16  ;;  %v1437_v62 = vmul.f32 %v11453_v32, %v6893_v9  ;;  %v1528_v40 = vadd.f32 %v1507_v45, %v1432_v27  ;;  %v1511_v55 = vsel %vm790_vm1, %v11461_v12, %v11460_v10  ;;  %v11465_v12 = vld [vmem:[#allocation77_spill] sm:$0xff]  ;;  %v11468_v45 = vld [vmem:[#allocation80_spill] sm:$0xff]  ;;  %v11473_v9 = vld [vmem:[#allocation83_spill] sm:$0xff] }
 0x520   : > { %v1512_v57 = vsel %vm790_vm1, %v11460_v10, %v11462_v1  ;;  %v11466_v10 = vld [vmem:[#allocation79_spill] sm:$0xff] }
 0x522   : > { %1983 = vrot.lane.b32.xlu0 %v1948_v37, %s11444_s26  ;;  %1981 = vrot.lane.b32.xlu1 %v1947_v26, %s11444_s26  ;;  %v1438_v26 = vmul.f32 0.0, %v11449_v7  ;;  %v1439_v37 = vmul.f32 %v11449_v7, %v6924_v44  ;;  %v1527_v7 = vadd.f32 %v11452_v33, %v1431_v5 }
 0x526   : > { %2028 = vrot.lane.b32.xlu0 %v2025_v56, %s6259_s0  ;;  %2026 = vrot.lane.b32.xlu1 %v2021_v6, %s6259_s0  ;;  %v11450_v56 = vld [vmem:[#allocation49_spill] sm:$0xff]  ;;  %v11451_v6 = vld [vmem:[#allocation48_spill] sm:$0xff]  ;;  %s6304_s0 = smov [#allocation3]  }
 0x527   : > { %v1505_v25 = vsel %vm790_vm1, %v11451_v6, %v11450_v56  ;;  %v1506_v28 = vsel %vm790_vm1, %v11450_v56, %v11452_v33  ;;  %v1508_v56 = vsel %vm790_vm1, %v11454_v22, %v11456_v47  ;;  %v1530_v22 = vadd.f32 %v11456_v47, %v1434_v31  ;;  %v11463_v33 = vld [vmem:[#allocation76_spill] sm:$0xff] }
 0x528   : > { %v1525_v51 = vadd.f32 %v1505_v25, %v1429_v48  ;;  %v1526_v44 = vadd.f32 %v1506_v28, %v1430_v23  ;;  %v1529_v32 = vadd.f32 %v1508_v56, %v1433_v59  ;;  %v1531_v48 = vadd.f32 %v1509_v2, %v1435_v46  ;;  %v11464_v23 = vld [vmem:[#allocation75_spill] sm:$0xff]  ;;  %v11467_v59 = vld [vmem:[#allocation78_spill] sm:$0xff]  ;;  %v11469_v2 = vld [vmem:[#allocation88_spill] sm:$0xff] }
 0x529   : > { %v1536_v28 = vadd.f32 %v11462_v1, %v1440_v63  ;;  %v1601_v5 = vsel %vm887_vm2, %v11464_v23, %v11463_v33  ;;  %v1532_v47 = vadd.f32 %v1510_v18, %v1436_v3  ;;  %v1533_v31 = vadd.f32 %v11459_v49, %v1437_v62  ;;  %v11470_v23 = vld [vmem:[#allocation87_spill] sm:$0xff]  ;;  %v11471_v3 = vld [vmem:[#allocation82_spill] sm:$0xff]  ;;  %v11472_v62 = vld [vmem:[#allocation81_spill] sm:$0xff] }
 0x52a   : > { %v1602_v25 = vsel %vm887_vm2, %v11463_v33, %v11465_v12  ;;  %v1603_v46 = vsel %vm887_vm2, %v11467_v59, %v11466_v10  ;;  %v1534_v63 = vadd.f32 %v1511_v55, %v1438_v26  ;;  %v7676_v1 = vadd.f32 %v1512_v57, %v1439_v37  ;;  %v11474_v55 = vld [vmem:[#allocation89_spill] sm:$0xff] }
 0x52b   : > { %v1604_v56 = vsel %vm887_vm2, %v11466_v10, %v11468_v45  ;;  %v1697_v18 = vsel %vm984_vm3, %v11470_v23, %v11469_v2  ;;  %v1621_v49 = vadd.f32 %v1601_v5, %v1525_v51  ;;  %v1605_v33 = vsel %vm887_vm2, %v11472_v62, %v11471_v3 }
 0x52c   : > { %v1606_v59 = vsel %vm887_vm2, %v11471_v3, %v11473_v9  ;;  %v1698_v26 = vsel %vm984_vm3, %v11469_v2, %v11474_v55  ;;  %v1622_v37 = vadd.f32 %v1602_v25, %v1526_v44  ;;  %v1623_v57 = vadd.f32 %v11465_v12, %v1527_v7 }
 0x52d   : > { %v1624_v10 = vadd.f32 %v1603_v46, %v1528_v40  ;;  %v1607_v51 = vsel %vm887_vm2, %v11476_v39, %v11475_v4  ;;  %v1625_v62 = vadd.f32 %v1604_v56, %v1529_v32  ;;  %v1626_v35 = vadd.f32 %v11468_v45, %v1530_v22  ;;  %v11478_v39 = vld [vmem:[#allocation91_spill] sm:$0xff]  ;;  %v11479_v46 = vld [vmem:[#allocation90_spill] sm:$0xff] }
 0x52e   : > { %v1717_v3 = vadd.f32 %v1697_v18, %v1621_v49  ;;  %v1793_v2 = vsel %vm1093_vm4, %v7482_v20, %v7484_v54  ;;  %v1627_v44 = vadd.f32 %v1605_v33, %v1531_v48  ;;  %v1628_v25 = vadd.f32 %v1606_v59, %v1532_v47  ;;  %v11480_v45 = vld [vmem:[#allocation86_spill] sm:$0xff]  ;;  %v11481_v47 = vld [vmem:[#allocation92_spill] sm:$0xff] }
 0x52f   : > { %v1629_v40 = vadd.f32 %v11473_v9, %v1533_v31  ;;  %v1718_v7 = vadd.f32 %v1698_v26, %v1622_v37  ;;  %v7706_v12 = vadd.f32 %v1607_v51, %v1534_v63  ;;  %v1889_v22 = vsel %vm1190_vm5, %v7554_v53, %v7556_v41  ;;  %v11482_v37 = vld [vmem:[#allocation94_spill] sm:$0xff]  ;;  %v11483_v51 = vld [vmem:[#allocation93_spill] sm:$0xff] }
 0x530   : > { %v1813_v32 = vadd.f32 %v7482_v20, %v1717_v3  ;;  %v1608_v48 = vsel %vm887_vm2, %v11475_v4, %v11480_v45  ;;  %v1700_v9 = vsel %vm984_vm3, %v11478_v39, %v11481_v47  ;;  %v1794_v63 = vsel %vm1093_vm4, %v7484_v54, %v7486_v0 }
 0x531   : > { %v1814_v31 = vadd.f32 %v1793_v2, %v1718_v7  ;;  %v7729_v18 = vadd.f32 %v11480_v45, %v1536_v28  ;;  %v1719_v49 = vadd.f32 %v11474_v55, %v1623_v57  ;;  %v1890_v54 = vsel %vm1190_vm5, %v7556_v41, %v7558_v52 }
 0x532   : > { %v1909_v4 = vadd.f32 %v7554_v53, %v1813_v32  ;;  %v1721_v0 = vadd.f32 %v1700_v9, %v1625_v62  ;;  %v1701_v28 = vsel %vm984_vm3, %v11483_v51, %v11482_v37  ;;  %v1795_v57 = vsel %vm1093_vm4, %v7488_v24, %v7490_v38 }
 0x533   : > { %v1910_v26 = vadd.f32 %v1889_v22, %v1814_v31  ;;  %v1815_v3 = vadd.f32 %v1794_v63, %v1719_v49  ;;  %v1796_v62 = vsel %vm1093_vm4, %v7490_v38, %v7492_v60  ;;  %v1892_v32 = vsel %vm1190_vm5, %v7562_v14, %v7564_v13 }
 0x534   : > { %v1817_v60 = vadd.f32 %v1795_v57, %v1721_v0  ;;  %v1797_v9 = vsel %vm1093_vm4, %v7494_v43, %v7520_v8 }
 0x580   : > { %v7603_v30 = vpop.permute.xlu0 %1963  ;;  %v7605_v61 = vpop.permute.xlu1 %1961 }
 0x581   : > { %v1985_v33 = vsel %vm1287_vm7, %v7605_v61, %v7603_v30  ;;  %v2005_v55 = vadd.f32 %v7605_v61, %v1909_v4  ;;  %v1911_v61 = vadd.f32 %v1890_v54, %v1815_v3  ;;  %v1893_v54 = vsel %vm1190_vm5, %v7566_v11, %v7568_v29 }
 0x582   : > { %v1728_v3 = vadd.f32 %v7290_v19, %v7729_v18 }
 0x584   : > { %v7607_v50 = vpop.permute.xlu0 %1967  ;;  %v7609_v36 = vpop.permute.xlu1 %1965 }
 0x585   : > { %v1986_v41 = vsel %vm1287_vm7, %v7603_v30, %v7609_v36  ;;  %v1891_v30 = vsel %vm1190_vm5, %v7560_v58, %v7562_v14 }
 0x586   : > { %v2007_v22 = vadd.f32 %v1986_v41, %v1911_v61  ;;  %v1913_v31 = vadd.f32 %v1891_v30, %v1817_v60  ;;  %v11489_v41 = vld [vmem:[#allocation55_spill] sm:$0xff] }
 0x588   : > { %v7637_v21 = vpop.permute.xlu0 %1971  ;;  %v7639_v6 = vpop.permute.xlu1 %1969 }
 0x589   : > { %v1988_v14 = vsel %vm1287_vm7, %v7639_v6, %v7637_v21 }
 0x58c   : > { %v7665_v16 = vpop.permute.xlu0 %1975  ;;  %v7667_v27 = vpop.permute.xlu1 %1973 }
 0x590   : > { %v7697_v5 = vpop.permute.xlu0 %1979  ;;  %v7699_v23 = vpop.permute.xlu1 %1977 }
 0x591   : > { %11477 = vst [vmem:[#allocation57_spill] sm:$0xff] %v7697_v5  ;;  %v1699_v5 = vsel %vm984_vm3, %v11479_v46, %v11478_v39  ;;  %v11484_v46 = vld [vmem:[#allocation95_spill] sm:$0xff] }
 0x592   : > { %v1720_v59 = vadd.f32 %v1699_v5, %v1624_v10  ;;  %v2006_v10 = vadd.f32 %v1985_v33, %v1910_v26  ;;  %v1702_v38 = vsel %vm984_vm3, %v11482_v37, %v11484_v46  ;;  %v11486_v33 = vld [vmem:[#allocation10_spill] sm:$0xff]  ;;  %v1725_v21 = vadd.f32 %v11484_v46, %v1629_v40 }
 0x593   : > { %v1724_v63 = vadd.f32 %v1702_v38, %v1628_v25  ;;  %v1989_v37 = vsel %vm1287_vm7, %v7667_v27, %v7665_v16 }
 0x594   : > { %v7724_v56 = vpop.permute.xlu0 %1983  ;;  %v7726_v20 = vpop.permute.xlu1 %1981  ;;  %v1816_v53 = vadd.f32 %v7488_v24, %v1720_v59  ;;  %v1722_v24 = vadd.f32 %v11481_v47, %v1626_v35  ;;  %v1723_v35 = vadd.f32 %v1701_v28, %v1627_v44  ;;  %v1631_v44 = vadd.f32 %v1608_v48, %v7676_v1 }
 0x595   : > { %v1798_v1 = vsel %vm1093_vm4, %v7520_v8, %v7522_v34  ;;  %v1894_v8 = vsel %vm1190_vm5, %v7568_v29, %v7570_v42  ;;  %v1992_v30 = vsel %vm1287_vm7, %v7726_v20, %v7724_v56 }
 0x596   : > { %v1912_v39 = vadd.f32 %v7560_v58, %v1816_v53  ;;  %v1818_v45 = vadd.f32 %v1796_v62, %v1722_v24  ;;  %v1987_v58 = vsel %vm1287_vm7, %v7607_v50, %v7639_v6  ;;  %v1819_v26 = vadd.f32 %v7494_v43, %v1723_v35 }
 0x597   : > { %v2009_v0 = vadd.f32 %v1987_v58, %v1913_v31  ;;  %v1820_v6 = vadd.f32 %v1797_v9, %v1724_v63  ;;  %v7878_v9 = vld [vmem:[%s11024_s4 + $0x18] sm:$0xff]  ;;  %v6263_v31 = vmov 16  }
 0x598   : > { %v7750_v52 = vpop.permute.xlu0 %2028  ;;  %v7752_v5 = vpop.permute.xlu1 %2026  ;;  %v2008_v47 = vadd.f32 %v7607_v50, %v1912_v39  ;;  %v1914_v49 = vadd.f32 %v1892_v32, %v1818_v45  ;;  %v11485_v50 = vld [vmem:[#allocation17_spill] sm:$0xff]  ;;  %v1915_v48 = vadd.f32 %v7566_v11, %v1819_v26  ;;  %v1800_v11 = vsel %vm1093_vm4, %v7526_v17, %v7528_v15  ;;  %v11488_v15 = vld [vmem:[#allocation32_spill] sm:$0xff]  ;;  %11495 = vst [vmem:[#allocation63_spill] sm:$0xff] %v7878_v9 }
 0x599   : > { %v2035_v2 = vmul.f32 %v7752_v5, %v2005_v55  ;;  %v7760_v7 = vsel %vm2030_vm8, %v7752_v5, %v7750_v52  ;;  %v2037_v13 = vmul.f32 %v7750_v52, %v2007_v22  ;;  %v1703_v59 = vsel %vm984_vm3, %v11486_v33, %v11485_v50  ;;  %v11491_v46 = vld [vmem:[#allocation57_spill] sm:$0xff] }
 0x59a   : > { %v2036_v36 = vmul.f32 %v7760_v7, %v2006_v10  ;;  %v2038_v4 = vmul.f32 %v7752_v5, %v2008_v47  ;;  %v2010_v25 = vadd.f32 %v1988_v14, %v1914_v49  ;;  %v1704_v43 = vsel %vm984_vm3, %v11485_v50, %v7290_v19 }
 0x59b   : > { %2059 = vrot.lane.b32.xlu1 %v2035_v2, %s6261_s16  ;;  %v2039_v40 = vmul.f32 %v7760_v7, %v2009_v0  ;;  %v1726_v51 = vadd.f32 %v1703_v59, %v7706_v12  ;;  %v1916_v28 = vadd.f32 %v1893_v54, %v1820_v6  ;;  %v1821_v55 = vadd.f32 %v1798_v1, %v1725_v21  ;;  %v11487_v12 = vld [vmem:[#allocation52_spill] sm:$0xff]  ;;  %v11490_v2 = vld [vmem:[#allocation27_spill] sm:$0xff] }
 0x59c   : > { %2061 = vrot.lane.b32.xlu0 %v2036_v36, %s6261_s16  ;;  %v2040_v34 = vmul.f32 %v7750_v52, %v2010_v25  ;;  %v2011_v53 = vadd.f32 %v7667_v27, %v1915_v48  ;;  %v1799_v29 = vsel %vm1093_vm4, %v11487_v12, %v7526_v17  ;;  %v1990_v19 = vsel %vm1287_vm7, %v7665_v16, %v7699_v23  ;;  %v11508_v48 = vld [vmem:[#allocation39_spill] sm:$0xff] }
 0x59d   : > { %v1822_v57 = vadd.f32 %v11487_v12, %v1726_v51  ;;  %v2012_v42 = vadd.f32 %v1989_v37, %v1916_v28  ;;  %v1727_v18 = vadd.f32 %v1704_v43, %v1631_v44  ;;  %v1917_v10 = vadd.f32 %v1894_v8, %v1821_v55  ;;  %v11510_v51 = vld [vmem:[#allocation40_spill] sm:$0xff] }
 0x59e   : > { %v1896_v27 = vsel %vm1190_vm5, %v11489_v41, %v11488_v15  ;;  %v2041_v62 = vmul.f32 %v7752_v5, %v2011_v53  ;;  %v1824_v61 = vadd.f32 %v1800_v11, %v1728_v3  ;;  %v1895_v17 = vsel %vm1190_vm5, %v11490_v2, %v11489_v41  ;;  %v11511_v3 = vld [vmem:[#allocation41_spill] sm:$0xff]  ;;  %v11512_v53 = vld [vmem:[#allocation42_spill] sm:$0xff] }
 0x59f   : > { %2063 = vrot.lane.b32.xlu1 %v2037_v13, %s6261_s16  ;;  %v1918_v24 = vadd.f32 %v11490_v2, %v1822_v57  ;;  %v2042_v39 = vmul.f32 %v7760_v7, %v2012_v42  ;;  %v1823_v16 = vadd.f32 %v1799_v29, %v1727_v18  ;;  %v2013_v23 = vadd.f32 %v1990_v19, %v1917_v10  ;;  %v11513_v29 = vld [vmem:[#allocation43_spill] sm:$0xff]  ;;  %v11514_v18 = vld [vmem:[#allocation44_spill] sm:$0xff]  ;;  %v11515_v41 = vld [vmem:[#allocation45_spill] sm:$0xff] }
 0x5a0   : > { %2065 = vrot.lane.b32.xlu0 %v2038_v4, %s6261_s16  ;;  %v1920_v36 = vadd.f32 %v1896_v27, %v1824_v61  ;;  %v1991_v60 = vsel %vm1287_vm7, %v11491_v46, %v7726_v20  ;;  %v7859_v20 = vld [vmem:[%s11024_s4] sm:$0xff]  ;;  %v6264_v2 = vmov 23  }
 0x5a1   : > { %v2014_v38 = vadd.f32 %v11491_v46, %v1918_v24  ;;  %v1919_v32 = vadd.f32 %v1895_v17, %v1823_v16  ;;  %v2043_v22 = vmul.f32 %v7750_v52, %v2013_v23  ;;  %11492 = vst [vmem:[#allocation25_spill] sm:$0xff] %v7859_v20 }
 0x5a2   : > { %v2016_v35 = vadd.f32 %v1992_v30, %v1920_v36 }
 0x5a3   : > { %2067 = vrot.lane.b32.xlu1 %v2039_v40, %s6261_s16  ;;  %v2044_v45 = vmul.f32 %v7752_v5, %v2014_v38  ;;  %v2015_v47 = vadd.f32 %v1991_v60, %v1919_v32  ;;  %v7865_v5 = vld [vmem:[%s11024_s4 + $0x8] sm:$0xff] }
 0x5a4   : > { %2069 = vrot.lane.b32.xlu0 %v2040_v34, %s6261_s16  ;;  %v2046_v58 = vmul.f32 %v7750_v52, %v2016_v35  ;;  %11493 = vst [vmem:[#allocation61_spill] sm:$0xff] %v7865_v5  ;;  %v7871_v52 = vld [vmem:[%s11024_s4 + $0x10] sm:$0xff] }
 0x5a5   : > { %v2045_v56 = vmul.f32 %v7760_v7, %v2015_v47  ;;  %11494 = vst [vmem:[#allocation21_spill] sm:$0xff] %v7871_v52  ;;  %v6262_v7 = vmov 9  }
 0x5a7   : > { %2071 = vrot.lane.b32.xlu1 %v2041_v62, %s6261_s16  ;;  %v11516_v62 = vld [vmem:[#allocation46_spill] sm:$0xff] }
 0x5a8   : > { %2073 = vrot.lane.b32.xlu0 %v2042_v39, %s6261_s16 }
 0x5ab   : > { %2075 = vrot.lane.b32.xlu1 %v2043_v22, %s6261_s16 }
 0x5ac   : > { %2077 = vrot.lane.b32.xlu0 %v2044_v45, %s6261_s16 }
 0x5af   : > { %2079 = vrot.lane.b32.xlu1 %v2045_v56, %s6261_s16 }
 0x5b0   : > { %2081 = vrot.lane.b32.xlu0 %v2046_v58, %s6261_s16  ;;  %s6268_s16 = smov 79  }
 0x5b3   : > { %2111 = vperm.xlu1 %6038, %v7859_v20  }
 0x5b4   : > { %2115 = vperm.xlu0 %6039, %v7865_v5  }
 0x5b7   : > { %2119 = vperm.xlu1 %6038, %v7871_v52  }
 0x5b8   : > { %6040 = vset.pattern.permute.xlu0 %v6262_v7 }
 0x5b9   : > { %2139 = vperm.xlu0 %6040, %v7859_v20  }
 0x5bb   : > { %2123 = vperm.xlu1 %6038, %v7878_v9  }
 0x5bd   : > { %2151 = vperm.xlu0 %6040, %v7878_v9  }
 0x5bf   : > { %6041 = vset.pattern.permute.xlu1 %v6262_v7 }
 0x5c0   : > { %2143 = vperm.xlu1 %6041, %v7865_v5  }
 0x5c1   : > { %6043 = vset.pattern.permute.xlu0 %v6263_v31 }
 0x5c4   : > { %2147 = vperm.xlu1 %6041, %v7871_v52  }
 0x5c8   : > { %6042 = vset.pattern.permute.xlu1 %v6263_v31 }
 0x60d   : > { %v7884_v14 = vpop.permute.xlu1 %2059 }
 0x60e   : > { %11496 = vst [vmem:[#allocation54_spill] sm:$0xff] %v7884_v14  ;;  %v7886_v13 = vpop.permute.xlu0 %2061 }
 0x60f   : > { %11497 = vst [vmem:[#allocation30_spill] sm:$0xff] %v7886_v13 }
 0x611   : > { %v7888_v44 = vpop.permute.xlu1 %2063 }
 0x612   : > { %11498 = vst [vmem:[#allocation59_spill] sm:$0xff] %v7888_v44  ;;  %v7890_v63 = vpop.permute.xlu0 %2065 }
 0x613   : > { %11499 = vst [vmem:[#allocation65_spill] sm:$0xff] %v7890_v63 }
 0x615   : > { %v7892_v49 = vpop.permute.xlu1 %2067 }
 0x616   : > { %11500 = vst [vmem:[#allocation62_spill] sm:$0xff] %v7892_v49  ;;  %v7894_v4 = vpop.permute.xlu0 %2069 }
 0x617   : > { %11501 = vst [vmem:[#allocation56_spill] sm:$0xff] %v7894_v4 }
 0x619   : > { %v7896_v50 = vpop.permute.xlu1 %2071 }
 0x61a   : > { %11502 = vst [vmem:[#allocation26_spill] sm:$0xff] %v7896_v50  ;;  %v7898_v33 = vpop.permute.xlu0 %2073 }
 0x61b   : > { %11503 = vst [vmem:[#allocation58_spill] sm:$0xff] %v7898_v33 }
 0x61d   : > { %v7900_v59 = vpop.permute.xlu1 %2075 }
 0x61e   : > { %11504 = vst [vmem:[#allocation33_spill] sm:$0xff] %v7900_v59  ;;  %v7902_v26 = vpop.permute.xlu0 %2077 }
 0x61f   : > { %11505 = vst [vmem:[#allocation60_spill] sm:$0xff] %v7902_v26 }
 0x621   : > { %v7904_v54 = vpop.permute.xlu1 %2079 }
 0x622   : > { %11506 = vst [vmem:[#allocation67_spill] sm:$0xff] %v7904_v54  ;;  %v7906_v0 = vpop.permute.xlu0 %2081 }
 0x623   : > { %11507 = vst [vmem:[#allocation66_spill] sm:$0xff] %v7906_v0 }
 0x632   : > { %v7908_v21 = vpop.permute.xlu1 %2111 }
 0x633   : > { %v7910_v6 = vpop.permute.xlu0 %2115 }
 0x636   : > { %v7912_v1 = vpop.permute.xlu1 %2119 }
 0x638   : > { %v2140_v25 = vpop.permute.xlu0 %2139 }
 0x639   : > { %v2154_v43 = vmul.f32 0.0, %v2140_v25  ;;  %v2155_v37 = vmul.f32 %v2140_v25, %v11508_v48  ;;  %v2156_v28 = vmul.f32 %v2140_v25, %v11510_v51 }
 0x63a   : > { %v7915_v40 = vpop.permute.xlu1 %2123 }
 0x63b   : > { %2180 = vrot.lane.b32.xlu0 %v2155_v37, %s11509_s29  ;;  %2178 = vrot.lane.b32.xlu1 %v2154_v43, %s11509_s29 }
 0x63c   : > { %v2152_v19 = vpop.permute.xlu0 %2151 }
 0x63d   : > { %v2163_v15 = vmul.f32 0.0, %v2152_v19  ;;  %v2164_v27 = vmul.f32 %v2152_v19, %v11515_v41  ;;  %v2165_v61 = vmul.f32 %v2152_v19, %v11516_v62 }
 0x63f   : > { %v2144_v8 = vpop.permute.xlu1 %2143  ;;  %2182 = vrot.lane.b32.xlu1 %v2156_v28, %s11509_s29 }
 0x640   : > { %v2157_v34 = vmul.f32 0.0, %v2144_v8  ;;  %v2158_v55 = vmul.f32 %v2144_v8, %v11511_v3  ;;  %v2159_v12 = vmul.f32 %v2144_v8, %v11512_v53 }
 0x642   : > { %2184 = vrot.lane.b32.xlu0 %v2157_v34, %s11509_s29 }
 0x643   : > { %v2148_v11 = vpop.permute.xlu1 %2147  ;;  %2186 = vrot.lane.b32.xlu1 %v2158_v55, %s11509_s29 }
 0x644   : > { %v2160_v57 = vmul.f32 0.0, %v2148_v11  ;;  %v2161_v42 = vmul.f32 %v2148_v11, %v11513_v29  ;;  %v2162_v10 = vmul.f32 %v2148_v11, %v11514_v18 }
 0x646   : > { %2188 = vrot.lane.b32.xlu0 %v2159_v12, %s11509_s29 }
 0x647   : > { %2190 = vrot.lane.b32.xlu1 %v2160_v57, %s11509_s29  ;;  %v6265_v57 = vmov 30  }
 0x64a   : > { %2192 = vrot.lane.b32.xlu0 %v2161_v42, %s11509_s29 }
 0x64b   : > { %2194 = vrot.lane.b32.xlu1 %v2162_v10, %s11509_s29 }
 0x64e   : > { %2196 = vrot.lane.b32.xlu0 %v2163_v15, %s11509_s29 }
 0x64f   : > { %2198 = vrot.lane.b32.xlu1 %v2164_v27, %s11509_s29 }
 0x652   : > { %2200 = vrot.lane.b32.xlu0 %v2165_v61, %s11509_s29 }
 0x653   : > { %2235 = vperm.xlu1 %6042, %v7859_v20  }
 0x656   : > { %2239 = vperm.xlu0 %6043, %v7865_v5  }
 0x657   : > { %2243 = vperm.xlu1 %6042, %v7871_v52  }
 0x65a   : > { %6044 = vset.pattern.permute.xlu0 %v6264_v2 }
 0x65b   : > { %2247 = vperm.xlu1 %6042, %v7878_v9  }
 0x65f   : > { %6045 = vset.pattern.permute.xlu1 %v6264_v2 }
 0x6ad   : > { %v7940_v24 = vpop.permute.xlu1 %2178  ;;  %v7942_v17 = vpop.permute.xlu0 %2180 }
 0x6b1   : > { %v7944_v39 = vpop.permute.xlu1 %2182 }
 0x6b4   : > { %v7946_v16 = vpop.permute.xlu0 %2184 }
 0x6b5   : > { %v7948_v23 = vpop.permute.xlu1 %2186 }
 0x6b8   : > { %v7950_v30 = vpop.permute.xlu0 %2188 }
 0x6b9   : > { %v7952_v36 = vpop.permute.xlu1 %2190 }
 0x6bc   : > { %v7954_v46 = vpop.permute.xlu0 %2192 }
 0x6bd   : > { %v7956_v38 = vpop.permute.xlu1 %2194 }
 0x6c0   : > { %v7958_v60 = vpop.permute.xlu0 %2196 }
 0x6c1   : > { %v7960_v32 = vpop.permute.xlu1 %2198 }
 0x6c4   : > { %v7962_v22 = vpop.permute.xlu0 %2200 }
 0x6d2   : > { %v2236_v35 = vpop.permute.xlu1 %2235 }
 0x6d3   : > { %v2250_v45 = vmul.f32 0.0, %v2236_v35  ;;  %v2251_v47 = vmul.f32 %v2236_v35, %v11508_v48  ;;  %v2252_v7 = vmul.f32 %v2236_v35, %v11510_v51 }
 0x6d5   : > { %2276 = vrot.lane.b32.xlu1 %v2251_v47, %s11517_s20  ;;  %2274 = vrot.lane.b32.xlu0 %v2250_v45, %s11517_s20  ;;  %v2240_v56 = vpop.permute.xlu0 %2239 }
 0x6d6   : > { %v2253_v58 = vmul.f32 0.0, %v2240_v56  ;;  %v2244_v31 = vpop.permute.xlu1 %2243  ;;  %v2254_v25 = vmul.f32 %v2240_v56, %v11511_v3  ;;  %v2255_v43 = vmul.f32 %v2240_v56, %v11512_v53 }
 0x6d7   : > { %v2256_v37 = vmul.f32 0.0, %v2244_v31  ;;  %v2257_v28 = vmul.f32 %v2244_v31, %v11513_v29  ;;  %v2258_v34 = vmul.f32 %v2244_v31, %v11514_v18 }
 0x6d9   : > { %2278 = vrot.lane.b32.xlu0 %v2252_v7, %s11517_s20  ;;  %2280 = vrot.lane.b32.xlu1 %v2253_v58, %s11517_s20 }
 0x6da   : > { %v2248_v8 = vpop.permute.xlu1 %2247 }
 0x6db   : > { %v2259_v55 = vmul.f32 0.0, %v2248_v8  ;;  %v2260_v11 = vmul.f32 %v2248_v8, %v11515_v41  ;;  %v2261_v12 = vmul.f32 %v2248_v8, %v11516_v62 }
 0x6dd   : > { %2282 = vrot.lane.b32.xlu0 %v2254_v25, %s11517_s20  ;;  %2284 = vrot.lane.b32.xlu1 %v2255_v43, %s11517_s20 }
 0x6e1   : > { %2286 = vrot.lane.b32.xlu0 %v2256_v37, %s11517_s20  ;;  %2288 = vrot.lane.b32.xlu1 %v2257_v28, %s11517_s20 }
 0x6e5   : > { %2290 = vrot.lane.b32.xlu0 %v2258_v34, %s11517_s20  ;;  %2292 = vrot.lane.b32.xlu1 %v2259_v55, %s11517_s20 }
 0x6e9   : > { %2294 = vrot.lane.b32.xlu0 %v2260_v11, %s11517_s20  ;;  %2296 = vrot.lane.b32.xlu1 %v2261_v12, %s11517_s20 }
 0x6ed   : > { %2331 = vperm.xlu0 %6044, %v7859_v20   ;;  %2335 = vperm.xlu1 %6045, %v7865_v5  }
 0x6f1   : > { %2343 = vperm.xlu0 %6044, %v7878_v9   ;;  %2339 = vperm.xlu1 %6045, %v7871_v52  }
 0x6f5   : > { %6047 = vset.pattern.permute.xlu0 %v6265_v57  ;;  %6046 = vset.pattern.permute.xlu1 %v6265_v57 }
 0x747   : > { %v7988_v42 = vpop.permute.xlu0 %2274  ;;  %v7990_v19 = vpop.permute.xlu1 %2276 }
 0x74b   : > { %v7992_v10 = vpop.permute.xlu0 %2278  ;;  %v7994_v15 = vpop.permute.xlu1 %2280 }
 0x74f   : > { %v7996_v27 = vpop.permute.xlu0 %2282  ;;  %v7998_v61 = vpop.permute.xlu1 %2284 }
 0x753   : > { %v8000_v2 = vpop.permute.xlu0 %2286  ;;  %v8002_v35 = vpop.permute.xlu1 %2288 }
 0x757   : > { %v8004_v45 = vpop.permute.xlu0 %2290  ;;  %v8006_v47 = vpop.permute.xlu1 %2292 }
 0x75b   : > { %v8008_v56 = vpop.permute.xlu0 %2294  ;;  %v8010_v58 = vpop.permute.xlu1 %2296 }
 0x76c   : > { %v2332_v7 = vpop.permute.xlu0 %2331  ;;  %v2336_v43 = vpop.permute.xlu1 %2335 }
 0x76d   : > { %v2346_v31 = vmul.f32 0.0, %v2332_v7  ;;  %v2347_v25 = vmul.f32 %v2332_v7, %v11508_v48  ;;  %v2349_v37 = vmul.f32 0.0, %v2336_v43  ;;  %v2348_v28 = vmul.f32 %v2332_v7, %v11510_v51 }
 0x76e   : > { %v2350_v8 = vmul.f32 %v2336_v43, %v11511_v3  ;;  %v2351_v34 = vmul.f32 %v2336_v43, %v11512_v53 }
 0x76f   : > { %2370 = vrot.lane.b32.xlu1 %v2346_v31, %s11160_s18  ;;  %2372 = vrot.lane.b32.xlu0 %v2347_v25, %s11160_s18 }
 0x770   : > { %v2340_v55 = vpop.permute.xlu1 %2339  ;;  %v2344_v57 = vpop.permute.xlu0 %2343 }
 0x771   : > { %v2352_v11 = vmul.f32 0.0, %v2340_v55  ;;  %v2353_v12 = vmul.f32 %v2340_v55, %v11513_v29  ;;  %v2354_v7 = vmul.f32 %v2340_v55, %v11514_v18  ;;  %v2355_v31 = vmul.f32 0.0, %v2344_v57 }
 0x772   : > { %v2356_v25 = vmul.f32 %v2344_v57, %v11515_v41  ;;  %v2357_v43 = vmul.f32 %v2344_v57, %v11516_v62 }
 0x773   : > { %2374 = vrot.lane.b32.xlu1 %v2348_v28, %s11160_s18  ;;  %2376 = vrot.lane.b32.xlu0 %v2349_v37, %s11160_s18  ;;  %v6266_v37 = vmov 37  }
 0x777   : > { %2378 = vrot.lane.b32.xlu1 %v2350_v8, %s11160_s18  ;;  %2380 = vrot.lane.b32.xlu0 %v2351_v34, %s11160_s18 }
 0x77b   : > { %2382 = vrot.lane.b32.xlu1 %v2352_v11, %s11160_s18  ;;  %2384 = vrot.lane.b32.xlu0 %v2353_v12, %s11160_s18 }
 0x77f   : > { %2386 = vrot.lane.b32.xlu1 %v2354_v7, %s11160_s18  ;;  %2388 = vrot.lane.b32.xlu0 %v2355_v31, %s11160_s18 }
 0x783   : > { %2390 = vrot.lane.b32.xlu1 %v2356_v25, %s11160_s18  ;;  %2392 = vrot.lane.b32.xlu0 %v2357_v43, %s11160_s18  ;;  %s11605_s18 = smov 64  }
 0x787   : > { %2427 = vperm.xlu1 %6046, %v7859_v20   ;;  %2431 = vperm.xlu0 %6047, %v7865_v5  }
 0x78b   : > { %2435 = vperm.xlu1 %6046, %v7871_v52   ;;  %6048 = vset.pattern.permute.xlu0 %v6266_v37 }
 0x78f   : > { %2439 = vperm.xlu1 %6046, %v7878_v9  }
 0x793   : > { %6049 = vset.pattern.permute.xlu1 %v6266_v37 }
 0x7e1   : > { %v8036_v28 = vpop.permute.xlu1 %2370  ;;  %v8038_v8 = vpop.permute.xlu0 %2372 }
 0x7e5   : > { %v8040_v34 = vpop.permute.xlu1 %2374  ;;  %v8042_v55 = vpop.permute.xlu0 %2376 }
 0x7e9   : > { %v8044_v11 = vpop.permute.xlu1 %2378  ;;  %v8046_v12 = vpop.permute.xlu0 %2380 }
 0x7ed   : > { %v8048_v57 = vpop.permute.xlu1 %2382  ;;  %v8050_v7 = vpop.permute.xlu0 %2384 }
 0x7f1   : > { %v8052_v31 = vpop.permute.xlu1 %2386  ;;  %v8054_v25 = vpop.permute.xlu0 %2388 }
 0x7f2   : > { %11518 = vst [vmem:[#allocation64_spill] sm:$0xff] %v8052_v31  ;;  %11519 = vst [vmem:[#allocation29_spill] sm:$0xff] %v8054_v25 }
 0x7f5   : > { %v8056_v43 = vpop.permute.xlu1 %2390  ;;  %v8058_v37 = vpop.permute.xlu0 %2392 }
 0x7f6   : > { %11520 = vst [vmem:[#allocation34_spill] sm:$0xff] %v8056_v43  ;;  %11521 = vst [vmem:[#allocation74_spill] sm:$0xff] %v8058_v37 }
 0x806   : > { %v2428_v26 = vpop.permute.xlu1 %2427  ;;  %v2432_v50 = vpop.permute.xlu0 %2431 }
 0x807   : > { %v2442_v54 = vmul.f32 %v2428_v26, %v11508_v48  ;;  %v2443_v0 = vmul.f32 %v2428_v26, %v11510_v51  ;;  %v2444_v33 = vmul.f32 0.0, %v2428_v26  ;;  %v2445_v59 = vmul.f32 %v2432_v50, %v11511_v3 }
 0x808   : > { %v2447_v63 = vmul.f32 0.0, %v2432_v50  ;;  %v2446_v4 = vmul.f32 %v2432_v50, %v11512_v53 }
 0x809   : > { %2468 = vrot.lane.b32.xlu1 %v2443_v0, %s11158_s28  ;;  %2466 = vrot.lane.b32.xlu0 %v2442_v54, %s11158_s28 }
 0x80a   : > { %v2436_v49 = vpop.permute.xlu1 %2435 }
 0x80b   : > { %v2448_v14 = vmul.f32 %v2436_v49, %v11513_v29  ;;  %v2449_v0 = vmul.f32 %v2436_v49, %v11514_v18  ;;  %v2450_v26 = vmul.f32 0.0, %v2436_v49 }
 0x80d   : > { %2470 = vrot.lane.b32.xlu0 %v2444_v33, %s11158_s28  ;;  %2472 = vrot.lane.b32.xlu1 %v2445_v59, %s11158_s28 }
 0x80e   : > { %v2440_v54 = vpop.permute.xlu1 %2439 }
 0x80f   : > { %v2451_v33 = vmul.f32 %v2440_v54, %v11515_v41  ;;  %v2453_v50 = vmul.f32 0.0, %v2440_v54 }
 0x811   : > { %2474 = vrot.lane.b32.xlu0 %v2446_v4, %s11158_s28  ;;  %2476 = vrot.lane.b32.xlu1 %v2447_v63, %s11158_s28  ;;  %v2452_v4 = vmul.f32 %v2440_v54, %v11516_v62 }
 0x815   : > { %2478 = vrot.lane.b32.xlu0 %v2448_v14, %s11158_s28  ;;  %2480 = vrot.lane.b32.xlu1 %v2449_v0, %s11158_s28  ;;  %v6267_v14 = vmov 44  }
 0x819   : > { %2482 = vrot.lane.b32.xlu0 %v2450_v26, %s11158_s28  ;;  %2484 = vrot.lane.b32.xlu1 %v2451_v33, %s11158_s28 }
 0x81d   : > { %2486 = vrot.lane.b32.xlu0 %v2452_v4, %s11158_s28  ;;  %2488 = vrot.lane.b32.xlu1 %v2453_v50, %s11158_s28  ;;  %s5901_s28 = sshll.u32 %s6393_s25, 9  ;;  %s10979_s25 = scalar_lea.sflag [#allocation4], %s404_s2 }
 0x821   : > { %2523 = vperm.xlu0 %6048, %v7859_v20   ;;  %2527 = vperm.xlu1 %6049, %v7865_v5  }
 0x825   : > { %2535 = vperm.xlu0 %6048, %v7878_v9   ;;  %2531 = vperm.xlu1 %6049, %v7871_v52  }
 0x829   : > { %6051 = vset.pattern.permute.xlu0 %v6267_v14  ;;  %6050 = vset.pattern.permute.xlu1 %v6267_v14 }
 0x87b   : > { %v8084_v63 = vpop.permute.xlu0 %2466  ;;  %v8086_v49 = vpop.permute.xlu1 %2468 }
 0x87f   : > { %v8088_v59 = vpop.permute.xlu0 %2470  ;;  %v8090_v0 = vpop.permute.xlu1 %2472 }
 0x880   : > { %11522 = vst [vmem:[#allocation35_spill] sm:$0xff] %v8090_v0 }
 0x883   : > { %v8092_v54 = vpop.permute.xlu0 %2474  ;;  %v8094_v26 = vpop.permute.xlu1 %2476 }
 0x884   : > { %11523 = vst [vmem:[#allocation36_spill] sm:$0xff] %v8092_v54  ;;  %11524 = vst [vmem:[#allocation37_spill] sm:$0xff] %v8094_v26 }
 0x887   : > { %v8096_v33 = vpop.permute.xlu0 %2478  ;;  %v8098_v4 = vpop.permute.xlu1 %2480 }
 0x888   : > { %11525 = vst [vmem:[#allocation49_spill] sm:$0xff] %v8096_v33  ;;  %11526 = vst [vmem:[#allocation48_spill] sm:$0xff] %v8098_v4 }
 0x88b   : > { %v8100_v50 = vpop.permute.xlu0 %2482  ;;  %v8102_v13 = vpop.permute.xlu1 %2484 }
 0x88c   : > { %11527 = vst [vmem:[#allocation50_spill] sm:$0xff] %v8100_v50  ;;  %11528 = vst [vmem:[#allocation38_spill] sm:$0xff] %v8102_v13 }
 0x88f   : > { %v8104_v14 = vpop.permute.xlu0 %2486  ;;  %v8106_v44 = vpop.permute.xlu1 %2488 }
 0x890   : > { %11529 = vst [vmem:[#allocation51_spill] sm:$0xff] %v8104_v14  ;;  %11530 = vst [vmem:[#allocation47_spill] sm:$0xff] %v8106_v44 }
 0x8a0   : > { %v2524_v37 = vpop.permute.xlu0 %2523  ;;  %v2528_v31 = vpop.permute.xlu1 %2527 }
 0x8a1   : > { %v2538_v25 = vmul.f32 %v2524_v37, %v11508_v48  ;;  %v2539_v43 = vmul.f32 %v2524_v37, %v11510_v51  ;;  %v2540_v33 = vmul.f32 0.0, %v2524_v37  ;;  %v2541_v4 = vmul.f32 %v2528_v31, %v11511_v3 }
 0x8a2   : > { %v2543_v13 = vmul.f32 0.0, %v2528_v31  ;;  %v2542_v14 = vmul.f32 %v2528_v31, %v11512_v53 }
 0x8a3   : > { %2562 = vrot.lane.b32.xlu1 %v2538_v25, %s11531_s19  ;;  %2564 = vrot.lane.b32.xlu0 %v2539_v43, %s11531_s19 }
 0x8a4   : > { %v2532_v44 = vpop.permute.xlu1 %2531  ;;  %v2536_v43 = vpop.permute.xlu0 %2535 }
 0x8a5   : > { %v2544_v50 = vmul.f32 %v2532_v44, %v11513_v29  ;;  %v2545_v25 = vmul.f32 %v2532_v44, %v11514_v18  ;;  %v2546_v37 = vmul.f32 0.0, %v2532_v44  ;;  %v2548_v31 = vmul.f32 %v2536_v43, %v11516_v62 }
 0x8a7   : > { %2566 = vrot.lane.b32.xlu1 %v2540_v33, %s11531_s19  ;;  %2568 = vrot.lane.b32.xlu0 %v2541_v4, %s11531_s19  ;;  %v2547_v33 = vmul.f32 %v2536_v43, %v11515_v41  ;;  %v2549_v4 = vmul.f32 0.0, %v2536_v43 }
 0x8ab   : > { %2570 = vrot.lane.b32.xlu1 %v2542_v14, %s11531_s19  ;;  %2572 = vrot.lane.b32.xlu0 %v2543_v13, %s11531_s19 }
 0x8af   : > { %2574 = vrot.lane.b32.xlu1 %v2544_v50, %s11531_s19  ;;  %2576 = vrot.lane.b32.xlu0 %v2545_v25, %s11531_s19 }
 0x8b3   : > { %2578 = vrot.lane.b32.xlu1 %v2546_v37, %s11531_s19  ;;  %2580 = vrot.lane.b32.xlu0 %v2547_v33, %s11531_s19 }
 0x8b7   : > { %2582 = vrot.lane.b32.xlu1 %v2548_v31, %s11531_s19  ;;  %2584 = vrot.lane.b32.xlu0 %v2549_v4, %s11531_s19 }
 0x8bb   : > { %2619 = vperm.xlu1 %6050, %v7859_v20   ;;  %2623 = vperm.xlu0 %6051, %v7865_v5  }
 0x8bf   : > { %2627 = vperm.xlu1 %6050, %v7871_v52  }
 0x8c3   : > { %2631 = vperm.xlu1 %6050, %v7878_v9  }
 0x915   : > { %v8132_v13 = vpop.permute.xlu1 %2562  ;;  %v8134_v44 = vpop.permute.xlu0 %2564 }
 0x919   : > { %v8136_v50 = vpop.permute.xlu1 %2566  ;;  %v8138_v14 = vpop.permute.xlu0 %2568 }
 0x91a   : > { %11532 = vst [vmem:[#allocation53_spill] sm:$0xff] %v8138_v14 }
 0x91d   : > { %v8140_v25 = vpop.permute.xlu1 %2570  ;;  %v8142_v43 = vpop.permute.xlu0 %2572 }
 0x91e   : > { %11533 = vst [vmem:[#allocation69_spill] sm:$0xff] %v8140_v25  ;;  %11534 = vst [vmem:[#allocation68_spill] sm:$0xff] %v8142_v43 }
 0x921   : > { %v8144_v37 = vpop.permute.xlu1 %2574  ;;  %v8146_v33 = vpop.permute.xlu0 %2576 }
 0x922   : > { %11535 = vst [vmem:[#allocation70_spill] sm:$0xff] %v8144_v37  ;;  %11536 = vst [vmem:[#allocation72_spill] sm:$0xff] %v8146_v33 }
 0x925   : > { %v8148_v31 = vpop.permute.xlu1 %2578  ;;  %v8150_v4 = vpop.permute.xlu0 %2580 }
 0x926   : > { %11537 = vst [vmem:[#allocation71_spill] sm:$0xff] %v8148_v31  ;;  %11538 = vst [vmem:[#allocation73_spill] sm:$0xff] %v8150_v4 }
 0x929   : > { %v8152_v52 = vpop.permute.xlu1 %2582  ;;  %v8154_v9 = vpop.permute.xlu0 %2584 }
 0x92a   : > { %11539 = vst [vmem:[#allocation76_spill] sm:$0xff] %v8152_v52  ;;  %11540 = vst [vmem:[#allocation75_spill] sm:$0xff] %v8154_v9 }
 0x93a   : > { %v2620_v5 = vpop.permute.xlu1 %2619  ;;  %v2624_v25 = vpop.permute.xlu0 %2623 }
 0x93b   : > { %v2634_v20 = vmul.f32 %v2620_v5, %v11508_v48  ;;  %v2635_v14 = vmul.f32 %v2620_v5, %v11510_v51  ;;  %v2636_v37 = vmul.f32 0.0, %v2620_v5  ;;  %v2637_v33 = vmul.f32 %v2624_v25, %v11511_v3 }
 0x93c   : > { %v2638_v52 = vmul.f32 %v2624_v25, %v11512_v53  ;;  %v2639_v9 = vmul.f32 0.0, %v2624_v25 }
 0x93d   : > { %2660 = vrot.lane.b32.xlu1 %v2635_v14, %s11444_s26  ;;  %2658 = vrot.lane.b32.xlu0 %v2634_v20, %s11444_s26 }
 0x93e   : > { %v2628_v4 = vpop.permute.xlu1 %2627 }
 0x93f   : > { %v2640_v31 = vmul.f32 %v2628_v4, %v11513_v29  ;;  %v2641_v14 = vmul.f32 %v2628_v4, %v11514_v18  ;;  %v2642_v5 = vmul.f32 0.0, %v2628_v4  ;;  %v11542_v4 = vld [vmem:[#allocation14_spill] sm:$0xff] }
 0x941   : > { %2662 = vrot.lane.b32.xlu0 %v2636_v37, %s11444_s26  ;;  %2664 = vrot.lane.b32.xlu1 %v2637_v33, %s11444_s26  ;;  %v11541_v33 = vld [vmem:[#allocation13_spill] sm:$0xff] }
 0x942   : > { %v2632_v20 = vpop.permute.xlu1 %2631 }
 0x943   : > { %v2643_v37 = vmul.f32 %v2632_v20, %v11515_v41  ;;  %v2645_v25 = vmul.f32 0.0, %v2632_v20 }
 0x945   : > { %2666 = vrot.lane.b32.xlu0 %v2638_v52, %s11444_s26  ;;  %2668 = vrot.lane.b32.xlu1 %v2639_v9, %s11444_s26  ;;  %v5888_v52 = vld [vmem:[%s11026_s6 + $0x2] ss:$8 sm:$0x3]  ;;  %v2644_v9 = vmul.f32 %v2632_v20, %v11516_v62 }
 0x949   : > { %2670 = vrot.lane.b32.xlu0 %v2640_v31, %s11444_s26  ;;  %2672 = vrot.lane.b32.xlu1 %v2641_v14, %s11444_s26  ;;  %v2718_v31 = vrot.slane %v5888_v52, %v11541_v33  ;;  %v2722_v14 = vrot.slane %v5888_v52, %v11542_v4  ;;  %v2129_v52 = vmul.f32 0.0, %v7910_v6  ;;  %v2133_v33 = vmul.f32 %v7912_v1, %v11513_v29 }
 0x94a   : > { %v2202_v4 = vsel %vm790_vm1, %v7940_v24, %v7942_v17  ;;  %v2134_v29 = vmul.f32 %v7912_v1, %v11514_v18  ;;  %v2208_v18 = vsel %vm790_vm1, %v7958_v60, %v7960_v32 }
 0x94c   : > { %v2230_v0 = vadd.f32 %v7956_v38, %v2134_v29 }
 0x94d   : > { %2674 = vrot.lane.b32.xlu0 %v2642_v5, %s11444_s26  ;;  %2676 = vrot.lane.b32.xlu1 %v2643_v37, %s11444_s26  ;;  %v6269_v5 = vmov 3  }
 0x94e   : > { %6052 = vset.pattern.permute.xlu0 %v6269_v5  ;;  %6053 = vset.pattern.permute.xlu1 %v6269_v5  ;;  %v2132_v5 = vmul.f32 0.0, %v7912_v1  ;;  %v2207_v1 = vsel %vm790_vm1, %v7954_v46, %v7956_v38  ;;  %v2302_v38 = vsel %vm887_vm2, %v8000_v2, %v8002_v35 }
 0x94f   : > { %v2229_v60 = vadd.f32 %v2207_v1, %v2133_v33 }
 0x951   : > { %2678 = vrot.lane.b32.xlu0 %v2644_v9, %s11444_s26  ;;  %2680 = vrot.lane.b32.xlu1 %v2645_v25, %s11444_s26  ;;  %v2126_v9 = vmul.f32 0.0, %v7908_v21  ;;  %v2127_v25 = vmul.f32 %v7908_v21, %v11508_v48  ;;  %v2131_v48 = vmul.f32 %v7910_v6, %v11512_v53  ;;  %v2137_v53 = vmul.f32 %v7915_v40, %v11516_v62 }
 0x953   : > { %v2227_v54 = vadd.f32 %v7950_v30, %v2131_v48  ;;  %v2299_v48 = vsel %vm887_vm2, %v7990_v19, %v7992_v10  ;;  %v2233_v29 = vadd.f32 %v7962_v22, %v2137_v53  ;;  %v2395_v53 = vsel %vm984_vm3, %v8038_v8, %v8040_v34 }
 0x955   : > { %2723 = vrot.lane.b32.xlu0 %v2718_v31, %s6268_s16  ;;  %2725 = vrot.lane.b32.xlu1 %v2722_v14, %s6268_s16  ;;  %v2130_v31 = vmul.f32 %v7910_v6, %v11511_v3  ;;  %v2128_v14 = vmul.f32 %v7908_v21, %v11510_v51  ;;  %v2204_v21 = vsel %vm790_vm1, %v7946_v16, %v7948_v23  ;;  %v2135_v6 = vmul.f32 0.0, %v7915_v40  ;;  %s6301_s16 = smov 83  }
 0x956   : > { %v2205_v3 = vsel %vm790_vm1, %v7948_v23, %v7950_v30  ;;  %v2206_v16 = vsel %vm790_vm1, %v7952_v36, %v7954_v46  ;;  %v2222_v23 = vadd.f32 %v2202_v4, %v2126_v9  ;;  %v2301_v30 = vsel %vm887_vm2, %v7996_v27, %v7998_v61 }
 0x957   : > { %v2228_v36 = vadd.f32 %v2206_v16, %v2132_v5 }
 0x9af   : > { %v8181_v37 = vpop.permute.xlu1 %2660  ;;  %v8183_v43 = vpop.permute.xlu0 %2658 }
 0x9b3   : > { %v8185_v26 = vpop.permute.xlu1 %2664  ;;  %v8187_v20 = vpop.permute.xlu0 %2662 }
 0x9b4   : > { %11543 = vst [vmem:[#allocation77_spill] sm:$0xff] %v8185_v26  ;;  %11544 = vst [vmem:[#allocation79_spill] sm:$0xff] %v8187_v20  ;;  %v2203_v26 = vsel %vm790_vm1, %v7942_v17, %v7944_v39  ;;  %v2136_v17 = vmul.f32 %v7915_v40, %v11515_v41  ;;  %v2224_v20 = vadd.f32 %v7944_v39, %v2128_v14 }
 0x9b5   : > { %v2225_v41 = vadd.f32 %v2204_v21, %v2129_v52  ;;  %v2209_v40 = vsel %vm790_vm1, %v7960_v32, %v7962_v22  ;;  %v2298_v39 = vsel %vm887_vm2, %v7988_v42, %v7990_v19  ;;  %v2303_v19 = vsel %vm887_vm2, %v8002_v35, %v8004_v45 }
 0x9b6   : > { %v8263_v32 = vadd.f32 %v2209_v40, %v2136_v17  ;;  %v2318_v42 = vadd.f32 %v2298_v39, %v2222_v23  ;;  %v2490_v35 = vsel %vm1093_vm4, %v8084_v63, %v8086_v49  ;;  %v2491_v14 = vsel %vm1093_vm4, %v8086_v49, %v8088_v59  ;;  %v11548_v23 = vld [vmem:[#allocation36_spill] sm:$0xff] }
 0x9b7   : > { %v8216_v51 = vpop.permute.xlu1 %2668  ;;  %v8218_v24 = vpop.permute.xlu0 %2666  ;;  %v2398_v59 = vsel %vm984_vm3, %v8048_v57, %v8050_v7 }
 0x9b8   : > { %11545 = vst [vmem:[#allocation78_spill] sm:$0xff] %v8216_v51  ;;  %11546 = vst [vmem:[#allocation80_spill] sm:$0xff] %v8218_v24  ;;  %v2223_v51 = vadd.f32 %v2203_v26, %v2127_v25  ;;  %v2226_v24 = vadd.f32 %v2205_v3, %v2130_v31  ;;  %v2231_v26 = vadd.f32 %v2208_v18, %v2135_v6 }
 0x9b9   : > { %v2300_v3 = vsel %vm887_vm2, %v7994_v15, %v7996_v27  ;;  %v2394_v18 = vsel %vm984_vm3, %v8036_v28, %v8038_v8  ;;  %v2320_v15 = vadd.f32 %v7992_v10, %v2224_v20  ;;  %v2323_v27 = vadd.f32 %v7998_v61, %v2227_v54 }
 0x9ba   : > { %v2319_v22 = vadd.f32 %v2299_v48, %v2223_v51  ;;  %v2321_v2 = vadd.f32 %v2300_v3, %v2225_v41  ;;  %v2322_v9 = vadd.f32 %v2301_v30, %v2226_v24  ;;  %v2324_v25 = vadd.f32 %v2302_v38, %v2228_v36 }
 0x9bb   : > { %v8243_v46 = vpop.permute.xlu1 %2672  ;;  %v8245_v4 = vpop.permute.xlu0 %2670  ;;  %v2414_v52 = vadd.f32 %v2394_v18, %v2318_v42  ;;  %v2325_v31 = vadd.f32 %v2303_v19, %v2229_v60  ;;  %v8281_v8 = vadd.f32 %v8004_v45, %v2230_v0  ;;  %v2304_v51 = vsel %vm887_vm2, %v8006_v47, %v8008_v56  ;;  %v11549_v40 = vld [vmem:[#allocation79_spill] sm:$0xff]  ;;  %v11550_v60 = vld [vmem:[#allocation37_spill] sm:$0xff]  ;;  %v11553_v42 = vld [vmem:[#allocation64_spill] sm:$0xff] }
 0x9bc   : > { %v2415_v41 = vadd.f32 %v2395_v53, %v2319_v22  ;;  %v8287_v10 = vadd.f32 %v8010_v58, %v2233_v29  ;;  %v2396_v61 = vsel %vm984_vm3, %v8042_v55, %v8044_v11  ;;  %v2586_v20 = vsel %vm1190_vm5, %v8132_v13, %v8134_v44  ;;  %v11551_v29 = vld [vmem:[#allocation53_spill] sm:$0xff]  ;;  %v11554_v22 = vld [vmem:[#allocation68_spill] sm:$0xff] }
 0x9bd   : > { %v2510_v54 = vadd.f32 %v8084_v63, %v2414_v52  ;;  %v2305_v45 = vsel %vm887_vm2, %v8008_v56, %v8010_v58  ;;  %v2397_v47 = vsel %vm984_vm3, %v8044_v11, %v8046_v12  ;;  %v2327_v5 = vadd.f32 %v2304_v51, %v2231_v26 }
 0x9be   : > { %v2511_v0 = vadd.f32 %v2490_v35, %v2415_v41  ;;  %v2416_v21 = vadd.f32 %v8040_v34, %v2320_v15  ;;  %v2682_v56 = vsel %vm1287_vm7, %v8183_v43, %v8181_v37  ;;  %v2417_v58 = vadd.f32 %v2396_v61, %v2321_v2  ;;  %v11558_v41 = vld [vmem:[#allocation49_spill] sm:$0xff] }
 0x9bf   : > { %v8273_v33 = vpop.permute.xlu1 %2676  ;;  %v8275_v28 = vpop.permute.xlu0 %2674  ;;  %v2606_v24 = vadd.f32 %v8132_v13, %v2510_v54  ;;  %v2587_v6 = vsel %vm1190_vm5, %v8134_v44, %v8136_v50  ;;  %v2418_v49 = vadd.f32 %v2397_v47, %v2322_v9  ;;  %v11547_v13 = vld [vmem:[#allocation35_spill] sm:$0xff]  ;;  %v2683_v44 = vsel %vm1287_vm7, %v8181_v37, %v11549_v40  ;;  %v11552_v37 = vld [vmem:[#allocation69_spill] sm:$0xff]  ;;  %v11556_v35 = vld [vmem:[#allocation80_spill] sm:$0xff] }
 0x9c0   : > { %v2607_v11 = vadd.f32 %v2586_v20, %v2511_v0  ;;  %v2512_v17 = vadd.f32 %v2491_v14, %v2416_v21  ;;  %v2513_v16 = vadd.f32 %v11547_v13, %v2417_v58  ;;  %v2492_v1 = vsel %vm1093_vm4, %v11547_v13, %v11548_v23  ;;  %v11555_v9 = vld [vmem:[#allocation77_spill] sm:$0xff]  ;;  %v11559_v20 = vld [vmem:[#allocation78_spill] sm:$0xff] }
 0x9c1   : > { %v2702_v34 = vadd.f32 %v8183_v43, %v2606_v24  ;;  %v2493_v57 = vsel %vm1093_vm4, %v11548_v23, %v11550_v60  ;;  %v2419_v3 = vadd.f32 %v8046_v12, %v2323_v27  ;;  %v2588_v38 = vsel %vm1190_vm5, %v11551_v29, %v11552_v37  ;;  %v11560_v14 = vld [vmem:[#allocation34_spill] sm:$0xff]  ;;  %v11561_v21 = vld [vmem:[#allocation29_spill] sm:$0xff] }
 0x9c2   : > { %v2703_v36 = vadd.f32 %v2682_v56, %v2607_v11  ;;  %v2608_v43 = vadd.f32 %v2587_v6, %v2512_v17  ;;  %v2609_v30 = vadd.f32 %v11551_v29, %v2513_v16  ;;  %v2399_v19 = vsel %vm984_vm3, %v8050_v7, %v11553_v42  ;;  %v11557_v7 = vld [vmem:[#allocation48_spill] sm:$0xff]  ;;  %v11564_v16 = vld [vmem:[#allocation50_spill] sm:$0xff]  ;;  %v11567_v29 = vld [vmem:[#allocation47_spill] sm:$0xff] }
 0x9c3   : > { %v8305_v55 = vpop.permute.xlu1 %2680  ;;  %v8307_v63 = vpop.permute.xlu0 %2678  ;;  %v2514_v53 = vadd.f32 %v2492_v1, %v2418_v49  ;;  %v2589_v15 = vsel %vm1190_vm5, %v11552_v37, %v11554_v22  ;;  %v2420_v12 = vadd.f32 %v2398_v59, %v2324_v25  ;;  %v2515_v27 = vadd.f32 %v2493_v57, %v2419_v3  ;;  %v11562_v49 = vld [vmem:[#allocation72_spill] sm:$0xff]  ;;  %v11563_v59 = vld [vmem:[#allocation70_spill] sm:$0xff]  ;;  %v11566_v57 = vld [vmem:[#allocation71_spill] sm:$0xff] }
 0x9c4   : > { %v2704_v2 = vadd.f32 %v2683_v44, %v2608_v43  ;;  %v2705_v52 = vadd.f32 %v11555_v9, %v2609_v30  ;;  %v2684_v51 = vsel %vm1287_vm7, %v11555_v9, %v11556_v35  ;;  %v2494_v61 = vsel %vm1093_vm4, %v11558_v41, %v11557_v7  ;;  %v11565_v44 = vld [vmem:[#allocation74_spill] sm:$0xff]  ;;  %v11568_v30 = vld [vmem:[#allocation51_spill] sm:$0xff] }
 0x9c5   : > { %v2610_v54 = vadd.f32 %v2588_v38, %v2514_v53  ;;  %v2685_v47 = vsel %vm1287_vm7, %v11556_v35, %v11559_v20  ;;  %v2421_v0 = vadd.f32 %v2399_v19, %v2325_v31  ;;  %v2400_v24 = vsel %vm984_vm3, %v11561_v21, %v11560_v14 }
 0x9c6   : > { %v2611_v56 = vadd.f32 %v2589_v15, %v2515_v27  ;;  %v2328_v11 = vadd.f32 %v2305_v45, %v8263_v32  ;;  %v2516_v6 = vadd.f32 %v11558_v41, %v2420_v12  ;;  %v2590_v17 = vsel %vm1190_vm5, %v11563_v59, %v11562_v49  ;;  %v11571_v12 = vld [vmem:[#allocation76_spill] sm:$0xff] }
 0x9c7   : > { %v8328_v50 = vpop.permute.xlu1 %2725  ;;  %v8330_v39 = vpop.permute.xlu0 %2723  ;;  %v2422_v31 = vadd.f32 %v11553_v42, %v8281_v8  ;;  %v2517_v13 = vadd.f32 %v2494_v61, %v2421_v0  ;;  %v2495_v23 = vsel %vm1093_vm4, %v11557_v7, %v11564_v16  ;;  %v2423_v32 = vadd.f32 %v2400_v24, %v2327_v5 }
 0x9c8   : > { %v2732_v26 = vmul.f32 %v8330_v39, %v2702_v34  ;;  %v8338_v48 = vsel %vm2727_vm9, %v8330_v39, %v8328_v50  ;;  %v2734_v25 = vmul.f32 %v8328_v50, %v2704_v2  ;;  %v2735_v58 = vmul.f32 %v8330_v39, %v2705_v52  ;;  %v11570_v2 = vld [vmem:[#allocation75_spill] sm:$0xff]  ;;  %v11572_v52 = vld [vmem:[#allocation73_spill] sm:$0xff] }
 0x9c9   : > { %v2733_v18 = vmul.f32 %v8338_v48, %v2703_v36  ;;  %v2706_v34 = vadd.f32 %v2684_v51, %v2610_v54  ;;  %v2707_v1 = vadd.f32 %v2685_v47, %v2611_v56  ;;  %v2612_v45 = vadd.f32 %v11563_v59, %v2516_v6  ;;  %v11575_v56 = vld [vmem:[#allocation63_spill] sm:$0xff] }
 0x9ca   : > { %2756 = vrot.lane.b32.xlu0 %v2732_v26, %s6270_s17  ;;  %v2686_v36 = vsel %vm1287_vm7, %v8245_v4, %v8243_v46  ;;  %v2401_v8 = vsel %vm984_vm3, %v11560_v14, %v11565_v44  ;;  %v2613_v60 = vadd.f32 %v2590_v17, %v2517_v13  ;;  %v2591_v43 = vsel %vm1190_vm5, %v11562_v49, %v11566_v57 }
 0x9cb   : > { %2758 = vrot.lane.b32.xlu1 %v2733_v18, %s6270_s17  ;;  %v2736_v40 = vmul.f32 %v8338_v48, %v2706_v34  ;;  %v2737_v26 = vmul.f32 %v8328_v50, %v2707_v1  ;;  %v2425_v5 = vadd.f32 %v11565_v44, %v8287_v10  ;;  %v2518_v3 = vadd.f32 %v2495_v23, %v2422_v31  ;;  %v11569_v18 = vld [vmem:[#allocation38_spill] sm:$0xff] }
 0x9cc   : > { %v2497_v37 = vsel %vm1093_vm4, %v11568_v30, %v11567_v29  ;;  %v2708_v38 = vadd.f32 %v8245_v4, %v2612_v45  ;;  %v2519_v42 = vadd.f32 %v11569_v18, %v2423_v32  ;;  %v2496_v19 = vsel %vm1093_vm4, %v11569_v18, %v11568_v30  ;;  %v11591_v30 = vld [vmem:[#allocation41_spill] sm:$0xff] }
 0x9cd   : > { %v2709_v53 = vadd.f32 %v2686_v36, %v2613_v60  ;;  %v2687_v10 = vsel %vm1287_vm7, %v8243_v46, %v8275_v28  ;;  %v2424_v22 = vadd.f32 %v2401_v8, %v2328_v11  ;;  %v2614_v15 = vadd.f32 %v2591_v43, %v2518_v3  ;;  %v11589_v60 = vld [vmem:[#allocation39_spill] sm:$0xff] }
 0x9ce   : > { %2760 = vrot.lane.b32.xlu0 %v2734_v25, %s6270_s17  ;;  %v2593_v4 = vsel %vm1190_vm5, %v11571_v12, %v11570_v2  ;;  %v2738_v27 = vmul.f32 %v8330_v39, %v2708_v38  ;;  %v2521_v9 = vadd.f32 %v2497_v37, %v2425_v5  ;;  %v2615_v35 = vadd.f32 %v11572_v52, %v2519_v42  ;;  %v11590_v5 = vld [vmem:[#allocation40_spill] sm:$0xff]  ;;  %v11592_v38 = vld [vmem:[#allocation42_spill] sm:$0xff] }
 0x9cf   : > { %2762 = vrot.lane.b32.xlu1 %v2735_v58, %s6270_s17  ;;  %v2592_v51 = vsel %vm1190_vm5, %v11572_v52, %v11571_v12  ;;  %v2739_v7 = vmul.f32 %v8338_v48, %v2709_v53  ;;  %v2520_v46 = vadd.f32 %v2496_v19, %v2424_v22  ;;  %v2710_v28 = vadd.f32 %v2687_v10, %v2614_v15  ;;  %v11593_v19 = vld [vmem:[#allocation43_spill] sm:$0xff]  ;;  %v11594_v22 = vld [vmem:[#allocation44_spill] sm:$0xff]  ;;  %v11595_v12 = vld [vmem:[#allocation45_spill] sm:$0xff] }
 0x9d0   : > { %v2689_v41 = vsel %vm1287_vm7, %v8307_v63, %v8305_v55  ;;  %v2617_v61 = vadd.f32 %v2593_v4, %v2521_v9  ;;  %v2711_v54 = vadd.f32 %v8273_v33, %v2615_v35  ;;  %v2688_v20 = vsel %vm1287_vm7, %v8273_v33, %v8307_v63  ;;  %v11573_v33 = vld [vmem:[#allocation25_spill] sm:$0xff]  ;;  %v8497_v9 = vld [vmem:[%s11024_s4] sm:$0xff]  ;;  %v8503_v52 = vld [vmem:[%s11024_s4 + $0x8] sm:$0xff] }
 0x9d1   : > { %v2616_v47 = vadd.f32 %v2592_v51, %v2520_v46  ;;  %v2740_v25 = vmul.f32 %v8328_v50, %v2710_v28  ;;  %v11574_v63 = vld [vmem:[#allocation61_spill] sm:$0xff]  ;;  %v6271_v58 = vmov 10   ;;  %11596 = vst [vmem:[#allocation94_spill] sm:$0xff] %v8497_v9  ;;  %11597 = vst [vmem:[#allocation93_spill] sm:$0xff] %v8503_v52  ;;  %v8515_v51 = vld [vmem:[%s11024_s4 + $0x10] sm:$0xff] }
 0x9d2   : > { %2764 = vrot.lane.b32.xlu0 %v2736_v40, %s6270_s17  ;;  %v2713_v0 = vadd.f32 %v2689_v41, %v2617_v61  ;;  %v2741_v14 = vmul.f32 %v8330_v39, %v2711_v54  ;;  %v11576_v39 = vld [vmem:[#allocation21_spill] sm:$0xff]  ;;  %11599 = vst [vmem:[#allocation17_spill] sm:$0xff] %v8515_v51 }
 0x9d3   : > { %2766 = vrot.lane.b32.xlu1 %v2737_v26, %s6270_s17  ;;  %v2712_v21 = vadd.f32 %v2688_v20, %v2616_v47  ;;  %v8509_v35 = vld [vmem:[%s11024_s4 + $0x18] sm:$0xff] }
 0x9d4   : > { %v2743_v24 = vmul.f32 %v8328_v50, %v2713_v0  ;;  %v6272_v50 = vmov 17   ;;  %11598 = vst [vmem:[#allocation95_spill] sm:$0xff] %v8509_v35 }
 0x9d5   : > { %v2742_v55 = vmul.f32 %v8338_v48, %v2712_v21 }
 0x9d6   : > { %2768 = vrot.lane.b32.xlu0 %v2738_v27, %s6270_s17 }
 0x9d7   : > { %2770 = vrot.lane.b32.xlu1 %v2739_v7, %s6270_s17  ;;  %v6273_v7 = vmov 24  }
 0x9da   : > { %2772 = vrot.lane.b32.xlu0 %v2740_v25, %s6270_s17 }
 0x9db   : > { %2774 = vrot.lane.b32.xlu1 %v2741_v14, %s6270_s17 }
 0x9de   : > { %2776 = vrot.lane.b32.xlu0 %v2742_v55, %s6270_s17 }
 0x9df   : > { %2778 = vrot.lane.b32.xlu1 %v2743_v24, %s6270_s17  ;;  %s6284_s17 = smov 81  }
 0x9e2   : > { %2808 = vperm.xlu0 %6052, %v11573_v33  }
 0x9e3   : > { %2812 = vperm.xlu1 %6053, %v11574_v63  }
 0x9e6   : > { %2820 = vperm.xlu0 %6052, %v11575_v56  }
 0x9e7   : > { %2816 = vperm.xlu1 %6053, %v11576_v39  }
 0x9ea   : > { %6055 = vset.pattern.permute.xlu0 %v6271_v58 }
 0x9eb   : > { %2840 = vperm.xlu0 %6055, %v11574_v63   ;;  %6054 = vset.pattern.permute.xlu1 %v6271_v58 }
 0x9ec   : > { %2836 = vperm.xlu1 %6054, %v11573_v33  }
 0x9ef   : > { %6056 = vset.pattern.permute.xlu0 %v6272_v50 }
 0x9f0   : > { %2844 = vperm.xlu1 %6054, %v11576_v39  }
 0x9f4   : > { %2848 = vperm.xlu1 %6054, %v11575_v56  }
 0x9f8   : > { %6057 = vset.pattern.permute.xlu1 %v6272_v50 }
 0xa3c   : > { %v8442_v48 = vpop.permute.xlu0 %2756 }
 0xa3d   : > { %11577 = vst [vmem:[#allocation88_spill] sm:$0xff] %v8442_v48  ;;  %v8444_v11 = vpop.permute.xlu1 %2758 }
 0xa3e   : > { %11578 = vst [vmem:[#allocation87_spill] sm:$0xff] %v8444_v11 }
 0xa40   : > { %v8446_v6 = vpop.permute.xlu0 %2760 }
 0xa41   : > { %11579 = vst [vmem:[#allocation82_spill] sm:$0xff] %v8446_v6  ;;  %v8448_v49 = vpop.permute.xlu1 %2762 }
 0xa42   : > { %11580 = vst [vmem:[#allocation81_spill] sm:$0xff] %v8448_v49 }
 0xa44   : > { %v8450_v59 = vpop.permute.xlu0 %2764 }
 0xa45   : > { %11581 = vst [vmem:[#allocation83_spill] sm:$0xff] %v8450_v59  ;;  %v8452_v17 = vpop.permute.xlu1 %2766 }
 0xa46   : > { %11582 = vst [vmem:[#allocation89_spill] sm:$0xff] %v8452_v17 }
 0xa48   : > { %v8454_v34 = vpop.permute.xlu0 %2768 }
 0xa49   : > { %11583 = vst [vmem:[#allocation85_spill] sm:$0xff] %v8454_v34  ;;  %v8456_v31 = vpop.permute.xlu1 %2770 }
 0xa4a   : > { %11584 = vst [vmem:[#allocation84_spill] sm:$0xff] %v8456_v31 }
 0xa4c   : > { %v8458_v13 = vpop.permute.xlu0 %2772 }
 0xa4d   : > { %11585 = vst [vmem:[#allocation91_spill] sm:$0xff] %v8458_v13  ;;  %v8460_v16 = vpop.permute.xlu1 %2774 }
 0xa4e   : > { %11586 = vst [vmem:[#allocation90_spill] sm:$0xff] %v8460_v16 }
 0xa50   : > { %v8462_v23 = vpop.permute.xlu0 %2776 }
 0xa51   : > { %11587 = vst [vmem:[#allocation86_spill] sm:$0xff] %v8462_v23  ;;  %v8464_v1 = vpop.permute.xlu1 %2778 }
 0xa52   : > { %11588 = vst [vmem:[#allocation92_spill] sm:$0xff] %v8464_v1 }
 0xa61   : > { %v8466_v32 = vpop.permute.xlu0 %2808 }
 0xa62   : > { %v8468_v45 = vpop.permute.xlu1 %2812 }
 0xa65   : > { %v8472_v40 = vpop.permute.xlu0 %2820 }
 0xa66   : > { %v8470_v36 = vpop.permute.xlu1 %2816 }
 0xa6a   : > { %v2841_v43 = vpop.permute.xlu0 %2840 }
 0xa6b   : > { %v2837_v44 = vpop.permute.xlu1 %2836  ;;  %v2854_v26 = vmul.f32 0.0, %v2841_v43  ;;  %v2855_v37 = vmul.f32 %v2841_v43, %v11591_v30  ;;  %v2856_v18 = vmul.f32 %v2841_v43, %v11592_v38 }
 0xa6c   : > { %v2851_v8 = vmul.f32 0.0, %v2837_v44  ;;  %v2852_v57 = vmul.f32 %v2837_v44, %v11589_v60  ;;  %v2853_v3 = vmul.f32 %v2837_v44, %v11590_v5 }
 0xa6e   : > { %2877 = vrot.lane.b32.xlu1 %v2852_v57, %s11509_s29  ;;  %2875 = vrot.lane.b32.xlu0 %v2851_v8, %s11509_s29 }
 0xa6f   : > { %v2845_v29 = vpop.permute.xlu1 %2844 }
 0xa70   : > { %v2857_v42 = vmul.f32 0.0, %v2845_v29  ;;  %v2858_v53 = vmul.f32 %v2845_v29, %v11593_v19  ;;  %v2859_v15 = vmul.f32 %v2845_v29, %v11594_v22 }
 0xa72   : > { %2881 = vrot.lane.b32.xlu1 %v2854_v26, %s11509_s29  ;;  %2879 = vrot.lane.b32.xlu0 %v2853_v3, %s11509_s29 }
 0xa73   : > { %v2849_v10 = vpop.permute.xlu1 %2848 }
 0xa74   : > { %v2860_v2 = vmul.f32 0.0, %v2849_v10  ;;  %v2861_v4 = vmul.f32 %v2849_v10, %v11595_v12  ;;  %v2862_v27 = vmul.f32 %v2849_v10, %v11516_v62 }
 0xa76   : > { %2885 = vrot.lane.b32.xlu1 %v2856_v18, %s11509_s29  ;;  %2883 = vrot.lane.b32.xlu0 %v2855_v37, %s11509_s29 }
 0xa7a   : > { %2889 = vrot.lane.b32.xlu1 %v2858_v53, %s11509_s29  ;;  %2887 = vrot.lane.b32.xlu0 %v2857_v42, %s11509_s29  ;;  %v6274_v42 = vmov 31  }
 0xa7e   : > { %2891 = vrot.lane.b32.xlu0 %v2859_v15, %s11509_s29  ;;  %2893 = vrot.lane.b32.xlu1 %v2860_v2, %s11509_s29 }
 0xa82   : > { %2895 = vrot.lane.b32.xlu0 %v2861_v4, %s11509_s29  ;;  %2897 = vrot.lane.b32.xlu1 %v2862_v27, %s11509_s29 }
 0xa86   : > { %2932 = vperm.xlu0 %6056, %v8497_v9   ;;  %2936 = vperm.xlu1 %6057, %v8503_v52  }
 0xa8a   : > { %2944 = vperm.xlu0 %6056, %v8509_v35   ;;  %2940 = vperm.xlu1 %6057, %v8515_v51  }
 0xa8e   : > { %6059 = vset.pattern.permute.xlu0 %v6273_v7  ;;  %6058 = vset.pattern.permute.xlu1 %v6273_v7 }
 0xae0   : > { %v8518_v46 = vpop.permute.xlu0 %2875  ;;  %v8520_v28 = vpop.permute.xlu1 %2877 }
 0xae4   : > { %v8522_v41 = vpop.permute.xlu0 %2879  ;;  %v8524_v61 = vpop.permute.xlu1 %2881 }
 0xae8   : > { %v8526_v54 = vpop.permute.xlu0 %2883  ;;  %v8528_v20 = vpop.permute.xlu1 %2885 }
 0xaec   : > { %v8530_v47 = vpop.permute.xlu0 %2887  ;;  %v8532_v25 = vpop.permute.xlu1 %2889 }
 0xaf0   : > { %v8534_v0 = vpop.permute.xlu0 %2891  ;;  %v8536_v14 = vpop.permute.xlu1 %2893 }
 0xaf4   : > { %v8538_v21 = vpop.permute.xlu0 %2895  ;;  %v8540_v55 = vpop.permute.xlu1 %2897 }
 0xb05   : > { %v2933_v24 = vpop.permute.xlu0 %2932  ;;  %v2937_v56 = vpop.permute.xlu1 %2936 }
 0xb06   : > { %v2947_v33 = vmul.f32 0.0, %v2933_v24  ;;  %v2948_v63 = vmul.f32 %v2933_v24, %v11589_v60  ;;  %v2950_v39 = vmul.f32 0.0, %v2937_v56  ;;  %v2949_v58 = vmul.f32 %v2933_v24, %v11590_v5 }
 0xb07   : > { %v2951_v50 = vmul.f32 %v2937_v56, %v11591_v30  ;;  %v2952_v44 = vmul.f32 %v2937_v56, %v11592_v38 }
 0xb08   : > { %2973 = vrot.lane.b32.xlu0 %v2948_v63, %s11517_s20  ;;  %2971 = vrot.lane.b32.xlu1 %v2947_v33, %s11517_s20 }
 0xb09   : > { %v2941_v8 = vpop.permute.xlu1 %2940  ;;  %v2945_v26 = vpop.permute.xlu0 %2944 }
 0xb0a   : > { %v2953_v57 = vmul.f32 0.0, %v2941_v8  ;;  %v2954_v43 = vmul.f32 %v2941_v8, %v11593_v19  ;;  %v2956_v3 = vmul.f32 0.0, %v2945_v26  ;;  %v2955_v29 = vmul.f32 %v2941_v8, %v11594_v22 }
 0xb0b   : > { %v2957_v37 = vmul.f32 %v2945_v26, %v11595_v12  ;;  %v2958_v18 = vmul.f32 %v2945_v26, %v11516_v62 }
 0xb0c   : > { %2975 = vrot.lane.b32.xlu1 %v2949_v58, %s11517_s20  ;;  %2977 = vrot.lane.b32.xlu0 %v2950_v39, %s11517_s20 }
 0xb10   : > { %2979 = vrot.lane.b32.xlu1 %v2951_v50, %s11517_s20  ;;  %2981 = vrot.lane.b32.xlu0 %v2952_v44, %s11517_s20 }
 0xb14   : > { %2985 = vrot.lane.b32.xlu0 %v2954_v43, %s11517_s20  ;;  %2983 = vrot.lane.b32.xlu1 %v2953_v57, %s11517_s20 }
 0xb18   : > { %2989 = vrot.lane.b32.xlu0 %v2956_v3, %s11517_s20  ;;  %2987 = vrot.lane.b32.xlu1 %v2955_v29, %s11517_s20 }
 0xb1c   : > { %2993 = vrot.lane.b32.xlu0 %v2958_v18, %s11517_s20  ;;  %2991 = vrot.lane.b32.xlu1 %v2957_v37, %s11517_s20 }
 0xb20   : > { %3032 = vperm.xlu0 %6059, %v8503_v52   ;;  %3028 = vperm.xlu1 %6058, %v8497_v9  }
 0xb24   : > { %3036 = vperm.xlu1 %6058, %v8515_v51   ;;  %6060 = vset.pattern.permute.xlu0 %v6274_v42 }
 0xb28   : > { %3040 = vperm.xlu1 %6058, %v8509_v35  }
 0xb2c   : > { %6061 = vset.pattern.permute.xlu1 %v6274_v42 }
 0xb7a   : > { %v8566_v53 = vpop.permute.xlu1 %2971  ;;  %v8568_v10 = vpop.permute.xlu0 %2973 }
 0xb7e   : > { %v8570_v15 = vpop.permute.xlu1 %2975  ;;  %v8572_v2 = vpop.permute.xlu0 %2977 }
 0xb82   : > { %v8574_v4 = vpop.permute.xlu1 %2979  ;;  %v8576_v27 = vpop.permute.xlu0 %2981 }
 0xb86   : > { %v8578_v7 = vpop.permute.xlu1 %2983  ;;  %v8580_v24 = vpop.permute.xlu0 %2985 }
 0xb8a   : > { %v8582_v33 = vpop.permute.xlu1 %2987  ;;  %v8584_v63 = vpop.permute.xlu0 %2989 }
 0xb8e   : > { %v8586_v56 = vpop.permute.xlu1 %2991  ;;  %v8588_v39 = vpop.permute.xlu0 %2993 }
 0xb9f   : > { %v3029_v58 = vpop.permute.xlu1 %3028  ;;  %v3033_v8 = vpop.permute.xlu0 %3032 }
 0xba0   : > { %v3043_v50 = vmul.f32 %v3029_v58, %v11589_v60  ;;  %v3044_v44 = vmul.f32 %v3029_v58, %v11590_v5  ;;  %v3045_v43 = vmul.f32 %v3033_v8, %v11591_v30  ;;  %v3046_v26 = vmul.f32 %v3033_v8, %v11592_v38 }
 0xba1   : > { %v6275_v58 = vmov 38  }
 0xba2   : > { %3061 = vrot.lane.b32.xlu1 %v3044_v44, %s11600_s1  ;;  %3059 = vrot.lane.b32.xlu0 %v3043_v50, %s11600_s1 }
 0xba3   : > { %v3037_v57 = vpop.permute.xlu1 %3036 }
 0xba4   : > { %v3047_v3 = vmul.f32 %v3037_v57, %v11593_v19  ;;  %v3048_v29 = vmul.f32 %v3037_v57, %v11594_v22 }
 0xba6   : > { %3065 = vrot.lane.b32.xlu1 %v3046_v26, %s11600_s1  ;;  %3063 = vrot.lane.b32.xlu0 %v3045_v43, %s11600_s1 }
 0xba7   : > { %v3041_v37 = vpop.permute.xlu1 %3040 }
 0xba8   : > { %v3049_v18 = vmul.f32 %v3041_v37, %v11595_v12  ;;  %v3050_v42 = vmul.f32 %v3041_v37, %v11516_v62 }
 0xbaa   : > { %3069 = vrot.lane.b32.xlu1 %v3048_v29, %s11600_s1  ;;  %3067 = vrot.lane.b32.xlu0 %v3047_v3, %s11600_s1 }
 0xbae   : > { %3073 = vrot.lane.b32.xlu1 %v3050_v42, %s11600_s1  ;;  %3071 = vrot.lane.b32.xlu0 %v3049_v18, %s11600_s1 }
 0xbb2   : > { %3108 = vperm.xlu1 %6061, %v8503_v52   ;;  %3104 = vperm.xlu0 %6060, %v8497_v9  }
 0xbb6   : > { %3112 = vperm.xlu1 %6061, %v8515_v51   ;;  %3116 = vperm.xlu0 %6060, %v8509_v35  }
 0xbba   : > { %6062 = vset.pattern.permute.xlu1 %v6275_v58  ;;  %6063 = vset.pattern.permute.xlu0 %v6275_v58 }
 0xc14   : > { %v8610_v50 = vpop.permute.xlu0 %3059  ;;  %v8612_v44 = vpop.permute.xlu1 %3061 }
 0xc18   : > { %v8614_v8 = vpop.permute.xlu0 %3063  ;;  %v8616_v57 = vpop.permute.xlu1 %3065 }
 0xc1c   : > { %v8618_v43 = vpop.permute.xlu0 %3067  ;;  %v8620_v26 = vpop.permute.xlu1 %3069 }
 0xc1d   : > { %11601 = vst [vmem:[#allocation10_spill] sm:$0xff] %v8618_v43  ;;  %11602 = vst [vmem:[#allocation52_spill] sm:$0xff] %v8620_v26  ;;  %v2833_v26 = vmul.f32 %v8472_v40, %v11595_v12 }
 0xc20   : > { %v8622_v3 = vpop.permute.xlu0 %3071  ;;  %v8624_v29 = vpop.permute.xlu1 %3073 }
 0xc21   : > { %11603 = vst [vmem:[#allocation32_spill] sm:$0xff] %v8622_v3  ;;  %11604 = vst [vmem:[#allocation55_spill] sm:$0xff] %v8624_v29 }
 0xc31   : > { %v3105_v37 = vpop.permute.xlu0 %3104  ;;  %v3109_v58 = vpop.permute.xlu1 %3108 }
 0xc32   : > { %v3119_v18 = vmul.f32 %v3105_v37, %v11589_v60  ;;  %v3120_v42 = vmul.f32 %v3105_v37, %v11590_v5  ;;  %v3121_v16 = vmul.f32 0.0, %v3105_v37  ;;  %v3122_v34 = vmul.f32 %v3109_v58, %v11591_v30 }
 0xc33   : > { %v3124_v23 = vmul.f32 0.0, %v3109_v58  ;;  %v3123_v1 = vmul.f32 %v3109_v58, %v11592_v38 }
 0xc34   : > { %3145 = vrot.lane.b32.xlu0 %v3120_v42, %s11605_s18  ;;  %3143 = vrot.lane.b32.xlu1 %v3119_v18, %s11605_s18 }
 0xc35   : > { %v3113_v31 = vpop.permute.xlu1 %3112  ;;  %v3117_v18 = vpop.permute.xlu0 %3116 }
 0xc36   : > { %v3125_v13 = vmul.f32 %v3113_v31, %v11593_v19  ;;  %v3126_v42 = vmul.f32 %v3113_v31, %v11594_v22  ;;  %v3127_v37 = vmul.f32 0.0, %v3113_v31  ;;  %v6276_v31 = vmov 45  }
 0xc38   : > { %3147 = vrot.lane.b32.xlu1 %v3121_v16, %s11605_s18  ;;  %3149 = vrot.lane.b32.xlu0 %v3122_v34, %s11605_s18  ;;  %v3128_v16 = vmul.f32 %v3117_v18, %v11595_v12  ;;  %v3129_v34 = vmul.f32 %v3117_v18, %v11516_v62 }
 0xc3c   : > { %3151 = vrot.lane.b32.xlu1 %v3123_v1, %s11605_s18  ;;  %3153 = vrot.lane.b32.xlu0 %v3124_v23, %s11605_s18  ;;  %v3130_v1 = vmul.f32 0.0, %v3117_v18 }
 0xc40   : > { %3157 = vrot.lane.b32.xlu0 %v3126_v42, %s11605_s18  ;;  %3155 = vrot.lane.b32.xlu1 %v3125_v13, %s11605_s18 }
 0xc44   : > { %3161 = vrot.lane.b32.xlu0 %v3128_v16, %s11605_s18  ;;  %3159 = vrot.lane.b32.xlu1 %v3127_v37, %s11605_s18 }
 0xc48   : > { %3165 = vrot.lane.b32.xlu0 %v3130_v1, %s11605_s18  ;;  %3163 = vrot.lane.b32.xlu1 %v3129_v34, %s11605_s18 }
 0xc4c   : > { %3204 = vperm.xlu0 %6063, %v8503_v52   ;;  %3200 = vperm.xlu1 %6062, %v8497_v9  }
 0xc50   : > { %3208 = vperm.xlu1 %6062, %v8515_v51   ;;  %6064 = vset.pattern.permute.xlu0 %v6276_v31 }
 0xc54   : > { %3212 = vperm.xlu1 %6062, %v8509_v35  }
 0xc58   : > { %6065 = vset.pattern.permute.xlu1 %v6276_v31 }
 0xca6   : > { %v8650_v13 = vpop.permute.xlu1 %3143  ;;  %v8652_v23 = vpop.permute.xlu0 %3145 }
 0xcaa   : > { %v8654_v58 = vpop.permute.xlu1 %3147  ;;  %v8656_v42 = vpop.permute.xlu0 %3149 }
 0xcae   : > { %v8658_v18 = vpop.permute.xlu1 %3151  ;;  %v8660_v16 = vpop.permute.xlu0 %3153 }
 0xcb2   : > { %v8662_v37 = vpop.permute.xlu1 %3155  ;;  %v8664_v34 = vpop.permute.xlu0 %3157 }
 0xcb3   : > { %11606 = vst [vmem:[#allocation27_spill] sm:$0xff] %v8662_v37  ;;  %11607 = vst [vmem:[#allocation57_spill] sm:$0xff] %v8664_v34 }
 0xcb6   : > { %v8666_v1 = vpop.permute.xlu1 %3159  ;;  %v8668_v48 = vpop.permute.xlu0 %3161 }
 0xcb7   : > { %11608 = vst [vmem:[#allocation35_spill] sm:$0xff] %v8666_v1  ;;  %11609 = vst [vmem:[#allocation36_spill] sm:$0xff] %v8668_v48 }
 0xcba   : > { %v8670_v31 = vpop.permute.xlu1 %3163  ;;  %v8672_v49 = vpop.permute.xlu0 %3165 }
 0xcbb   : > { %11610 = vst [vmem:[#allocation79_spill] sm:$0xff] %v8670_v31  ;;  %11611 = vst [vmem:[#allocation37_spill] sm:$0xff] %v8672_v49 }
 0xccb   : > { %v3201_v59 = vpop.permute.xlu1 %3200  ;;  %v3205_v6 = vpop.permute.xlu0 %3204 }
 0xccc   : > { %v3215_v17 = vmul.f32 %v3201_v59, %v11589_v60  ;;  %v3216_v11 = vmul.f32 %v3201_v59, %v11590_v5  ;;  %v3217_v29 = vmul.f32 0.0, %v3201_v59  ;;  %v3218_v3 = vmul.f32 %v3205_v6, %v11591_v30 }
 0xccd   : > { %v3220_v48 = vmul.f32 0.0, %v3205_v6  ;;  %v3219_v31 = vmul.f32 %v3205_v6, %v11592_v38 }
 0xcce   : > { %3239 = vrot.lane.b32.xlu0 %v3215_v17, %s11531_s19  ;;  %3241 = vrot.lane.b32.xlu1 %v3216_v11, %s11531_s19 }
 0xccf   : > { %v3209_v49 = vpop.permute.xlu1 %3208 }
 0xcd0   : > { %v3221_v1 = vmul.f32 %v3209_v49, %v11593_v19  ;;  %v3222_v17 = vmul.f32 %v3209_v49, %v11594_v22  ;;  %v3223_v59 = vmul.f32 0.0, %v3209_v49 }
 0xcd2   : > { %3243 = vrot.lane.b32.xlu0 %v3217_v29, %s11531_s19  ;;  %3245 = vrot.lane.b32.xlu1 %v3218_v3, %s11531_s19 }
 0xcd3   : > { %v3213_v11 = vpop.permute.xlu1 %3212 }
 0xcd4   : > { %v3224_v29 = vmul.f32 %v3213_v11, %v11595_v12  ;;  %v3225_v6 = vmul.f32 %v3213_v11, %v11516_v62  ;;  %v3226_v3 = vmul.f32 0.0, %v3213_v11 }
 0xcd6   : > { %3247 = vrot.lane.b32.xlu0 %v3219_v31, %s11531_s19  ;;  %3249 = vrot.lane.b32.xlu1 %v3220_v48, %s11531_s19 }
 0xcda   : > { %3251 = vrot.lane.b32.xlu0 %v3221_v1, %s11531_s19  ;;  %3253 = vrot.lane.b32.xlu1 %v3222_v17, %s11531_s19 }
 0xcde   : > { %3255 = vrot.lane.b32.xlu0 %v3223_v59, %s11531_s19  ;;  %3257 = vrot.lane.b32.xlu1 %v3224_v29, %s11531_s19 }
 0xce2   : > { %3259 = vrot.lane.b32.xlu0 %v3225_v6, %s11531_s19  ;;  %3261 = vrot.lane.b32.xlu1 %v3226_v3, %s11531_s19 }
 0xce6   : > { %3296 = vperm.xlu0 %6064, %v8497_v9   ;;  %3300 = vperm.xlu1 %6065, %v8503_v52  }
 0xcea   : > { %3308 = vperm.xlu0 %6064, %v8509_v35   ;;  %3304 = vperm.xlu1 %6065, %v8515_v51  }
 0xd40   : > { %v8698_v48 = vpop.permute.xlu0 %3239  ;;  %v8700_v49 = vpop.permute.xlu1 %3241 }
 0xd44   : > { %v8702_v1 = vpop.permute.xlu0 %3243  ;;  %v8704_v31 = vpop.permute.xlu1 %3245 }
 0xd48   : > { %v8706_v17 = vpop.permute.xlu0 %3247  ;;  %v8708_v11 = vpop.permute.xlu1 %3249 }
 0xd49   : > { %11612 = vst [vmem:[#allocation53_spill] sm:$0xff] %v8708_v11 }
 0xd4c   : > { %v8710_v59 = vpop.permute.xlu0 %3251  ;;  %v8712_v29 = vpop.permute.xlu1 %3253 }
 0xd4d   : > { %11613 = vst [vmem:[#allocation69_spill] sm:$0xff] %v8710_v59  ;;  %11614 = vst [vmem:[#allocation64_spill] sm:$0xff] %v8712_v29 }
 0xd50   : > { %v8714_v6 = vpop.permute.xlu0 %3255  ;;  %v8716_v3 = vpop.permute.xlu1 %3257 }
 0xd51   : > { %11615 = vst [vmem:[#allocation68_spill] sm:$0xff] %v8714_v6  ;;  %11616 = vst [vmem:[#allocation77_spill] sm:$0xff] %v8716_v3 }
 0xd54   : > { %v8718_v35 = vpop.permute.xlu0 %3259  ;;  %v8720_v51 = vpop.permute.xlu1 %3261 }
 0xd55   : > { %11617 = vst [vmem:[#allocation80_spill] sm:$0xff] %v8718_v35  ;;  %11618 = vst [vmem:[#allocation48_spill] sm:$0xff] %v8720_v51 }
 0xd65   : > { %v3297_v52 = vpop.permute.xlu0 %3296  ;;  %v3301_v34 = vpop.permute.xlu1 %3300 }
 0xd66   : > { %v3311_v9 = vmul.f32 %v3297_v52, %v11589_v60  ;;  %v3312_v37 = vmul.f32 %v3297_v52, %v11590_v5  ;;  %v3313_v59 = vmul.f32 0.0, %v3297_v52  ;;  %v3314_v29 = vmul.f32 %v3301_v34, %v11591_v30 }
 0xd67   : > { %v3315_v3 = vmul.f32 %v3301_v34, %v11592_v38  ;;  %v3316_v35 = vmul.f32 0.0, %v3301_v34 }
 0xd68   : > { %3337 = vrot.lane.b32.xlu0 %v3312_v37, %s11444_s26  ;;  %3335 = vrot.lane.b32.xlu1 %v3311_v9, %s11444_s26 }
 0xd69   : > { %v3305_v51 = vpop.permute.xlu1 %3304  ;;  %v3309_v9 = vpop.permute.xlu0 %3308 }
 0xd6a   : > { %v3317_v6 = vmul.f32 %v3305_v51, %v11593_v19  ;;  %v3318_v37 = vmul.f32 %v3305_v51, %v11594_v22  ;;  %v3320_v52 = vmul.f32 %v3309_v9, %v11595_v12  ;;  %v3321_v34 = vmul.f32 %v3309_v9, %v11516_v62 }
 0xd6b   : > { %v2902_v12 = vsel %vm790_vm1, %v8526_v54, %v8528_v20 }
 0xd6c   : > { %3339 = vrot.lane.b32.xlu1 %v3313_v59, %s11444_s26  ;;  %3341 = vrot.lane.b32.xlu0 %v3314_v29, %s11444_s26  ;;  %v3319_v59 = vmul.f32 0.0, %v3305_v51  ;;  %v3322_v29 = vmul.f32 0.0, %v3309_v9  ;;  %v6277_v51 = vmov 4  }
 0xd6d   : > { %6066 = vset.pattern.permute.xlu1 %v6277_v51  ;;  %6067 = vset.pattern.permute.xlu0 %v6277_v51  ;;  %v2827_v51 = vmul.f32 %v8468_v45, %v11591_v30  ;;  %v2901_v30 = vsel %vm790_vm1, %v8524_v61, %v8526_v54  ;;  %v2903_v61 = vsel %vm790_vm1, %v8530_v47, %v8532_v25 }
 0xd6e   : > { %v2995_v54 = vsel %vm887_vm2, %v8566_v53, %v8568_v10  ;;  %v2905_v47 = vsel %vm790_vm1, %v8536_v14, %v8538_v21  ;;  %v2998_v14 = vsel %vm887_vm2, %v8574_v4, %v8576_v27 }
 0xd70   : > { %3343 = vrot.lane.b32.xlu1 %v3315_v3, %s11444_s26  ;;  %3345 = vrot.lane.b32.xlu0 %v3316_v35, %s11444_s26  ;;  %v5889_v35 = vld [vmem:[%s11026_s6 + $0x3] ss:$8 sm:$0x3] }
 0xd71   : > { %v11619_v3 = vld [vmem:[#allocation14_spill] sm:$0xff] }
 0xd74   : > { %3349 = vrot.lane.b32.xlu0 %v3318_v37, %s11444_s26  ;;  %3347 = vrot.lane.b32.xlu1 %v3317_v6, %s11444_s26  ;;  %v3399_v6 = vrot.slane %v5889_v35, %v11619_v3  ;;  %v11620_v37 = vld [vmem:[#allocation13_spill] sm:$0xff]  ;;  %v2832_v3 = vmul.f32 0.0, %v8472_v40 }
 0xd75   : > { %v3395_v11 = vrot.slane %v5889_v35, %v11620_v37  ;;  %v2824_v35 = vmul.f32 %v8466_v32, %v11589_v60  ;;  %v2899_v37 = vsel %vm790_vm1, %v8518_v46, %v8520_v28  ;;  %v2834_v46 = vmul.f32 %v8472_v40, %v11516_v62 }
 0xd76   : > { %v2904_v40 = vsel %vm790_vm1, %v8532_v25, %v8534_v0  ;;  %v2906_v25 = vsel %vm790_vm1, %v8538_v21, %v8540_v55  ;;  %v3075_v21 = vsel %vm984_vm3, %v8610_v50, %v8612_v44 }
 0xd78   : > { %3353 = vrot.lane.b32.xlu0 %v3320_v52, %s11444_s26  ;;  %3351 = vrot.lane.b32.xlu1 %v3319_v59, %s11444_s26 }
 0xd7c   : > { %3357 = vrot.lane.b32.xlu0 %v3322_v29, %s11444_s26  ;;  %3355 = vrot.lane.b32.xlu1 %v3321_v34, %s11444_s26  ;;  %v2823_v34 = vmul.f32 0.0, %v8466_v32 }
 0xd80   : > { %3402 = vrot.lane.b32.xlu0 %v3399_v6, %s11600_s1  ;;  %3400 = vrot.lane.b32.xlu1 %v3395_v11, %s11600_s1  ;;  %v2826_v6 = vmul.f32 0.0, %v8468_v45  ;;  %v2825_v11 = vmul.f32 %v8466_v32, %v11590_v5  ;;  %v2900_v32 = vsel %vm790_vm1, %v8520_v28, %v8522_v41  ;;  %v2831_v5 = vmul.f32 %v8470_v36, %v11594_v22 }
 0xd81   : > { %v2919_v28 = vadd.f32 %v2899_v37, %v2823_v34  ;;  %v2920_v62 = vadd.f32 %v2900_v32, %v2824_v35  ;;  %v2930_v34 = vadd.f32 %v8540_v55, %v2834_v46 }
 0xd82   : > { %v2927_v53 = vadd.f32 %v8534_v0, %v2831_v5  ;;  %v2999_v0 = vsel %vm887_vm2, %v8578_v7, %v8580_v24 }
 0xd83   : > { %v3015_v35 = vadd.f32 %v2995_v54, %v2919_v28  ;;  %v3264_v54 = vsel %vm1190_vm5, %v8700_v49, %v8702_v1 }
 0xd84   : > { %v3023_v46 = vadd.f32 %v8582_v33, %v2927_v53  ;;  %v11624_v53 = vld [vmem:[#allocation52_spill] sm:$0xff] }
 0xdda   : > { %v8749_v52 = vpop.permute.xlu0 %3337  ;;  %v8751_v59 = vpop.permute.xlu1 %3335 }
 0xdde   : > { %v8753_v9 = vpop.permute.xlu0 %3341  ;;  %v8755_v29 = vpop.permute.xlu1 %3339 }
 0xddf   : > { %11621 = vst [vmem:[#allocation49_spill] sm:$0xff] %v8753_v9  ;;  %v2828_v9 = vmul.f32 %v8468_v45, %v11592_v38  ;;  %v2829_v45 = vmul.f32 0.0, %v8470_v36  ;;  %v2830_v38 = vmul.f32 %v8470_v36, %v11593_v19  ;;  %v2922_v19 = vadd.f32 %v2901_v30, %v2826_v6 }
 0xde0   : > { %v2996_v30 = vsel %vm887_vm2, %v8568_v10, %v8570_v15  ;;  %v8828_v10 = vadd.f32 %v2905_v47, %v2832_v3  ;;  %v3091_v3 = vadd.f32 %v8610_v50, %v3015_v35  ;;  %v3076_v50 = vsel %vm984_vm3, %v8614_v8, %v8616_v57  ;;  %v11626_v35 = vld [vmem:[#allocation53_spill] sm:$0xff] }
 0xde1   : > { %v3016_v5 = vadd.f32 %v2996_v30, %v2920_v62  ;;  %v3167_v62 = vsel %vm1093_vm4, %v8650_v13, %v8652_v23  ;;  %v3360_v30 = vsel %vm1287_vm7, %v8749_v52, %v8755_v29  ;;  %v3265_v29 = vsel %vm1190_vm5, %v8704_v31, %v8706_v17 }
 0xde2   : > { %v8771_v43 = vpop.permute.xlu0 %3345  ;;  %v8773_v60 = vpop.permute.xlu1 %3343 }
 0xde3   : > { %11622 = vst [vmem:[#allocation78_spill] sm:$0xff] %v8771_v43  ;;  %11623 = vst [vmem:[#allocation34_spill] sm:$0xff] %v8773_v60  ;;  %v2921_v43 = vadd.f32 %v8522_v41, %v2825_v11  ;;  %v2924_v60 = vadd.f32 %v8528_v20, %v2828_v9  ;;  %v2923_v41 = vadd.f32 %v2902_v12, %v2827_v51 }
 0xde4   : > { %v2925_v20 = vadd.f32 %v2903_v61, %v2829_v45  ;;  %v2926_v9 = vadd.f32 %v2904_v40, %v2830_v38  ;;  %v2997_v12 = vsel %vm887_vm2, %v8572_v2, %v8574_v4  ;;  %v8830_v38 = vadd.f32 %v2906_v25, %v2833_v26 }
 0xde5   : > { %v3017_v6 = vadd.f32 %v8570_v15, %v2921_v43  ;;  %v3000_v4 = vsel %vm887_vm2, %v8580_v24, %v8582_v33  ;;  %v3020_v26 = vadd.f32 %v8576_v27, %v2924_v60  ;;  %v3018_v11 = vadd.f32 %v2997_v12, %v2922_v19 }
 0xde6   : > { %v8804_v36 = vpop.permute.xlu0 %3349  ;;  %v8806_v37 = vpop.permute.xlu1 %3347  ;;  %v3019_v7 = vadd.f32 %v2998_v14, %v2923_v41  ;;  %v3092_v51 = vadd.f32 %v3075_v21, %v3016_v5  ;;  %v3021_v32 = vadd.f32 %v2999_v0, %v2925_v20  ;;  %v3187_v15 = vadd.f32 %v8650_v13, %v3091_v3  ;;  %v11627_v5 = vld [vmem:[#allocation49_spill] sm:$0xff]  ;;  %v11630_v3 = vld [vmem:[#allocation27_spill] sm:$0xff] }
 0xde7   : > { %v3263_v24 = vsel %vm1190_vm5, %v8698_v48, %v8700_v49  ;;  %v3022_v43 = vadd.f32 %v3000_v4, %v2926_v9  ;;  %v3168_v60 = vsel %vm1093_vm4, %v8652_v23, %v8654_v58  ;;  %v3026_v33 = vadd.f32 %v8588_v39, %v2930_v34  ;;  %v11629_v4 = vld [vmem:[#allocation57_spill] sm:$0xff] }
 0xde8   : > { %v3188_v45 = vadd.f32 %v3167_v62, %v3092_v51  ;;  %v3093_v13 = vadd.f32 %v8612_v44, %v3017_v6  ;;  %v3283_v28 = vadd.f32 %v8698_v48, %v3187_v15  ;;  %v3359_v61 = vsel %vm1287_vm7, %v8751_v59, %v8749_v52 }
 0xde9   : > { %v3001_v40 = vsel %vm887_vm2, %v8584_v63, %v8586_v56  ;;  %v3094_v23 = vadd.f32 %v8614_v8, %v3018_v11  ;;  %v3002_v44 = vsel %vm887_vm2, %v8586_v56, %v8588_v39  ;;  %v3095_v48 = vadd.f32 %v3076_v50, %v3019_v7 }
 0xdea   : > { %v8835_v55 = vpop.permute.xlu0 %3353  ;;  %v8837_v2 = vpop.permute.xlu1 %3351  ;;  %v3284_v58 = vadd.f32 %v3263_v24, %v3188_v45  ;;  %v3189_v41 = vadd.f32 %v3168_v60, %v3093_v13  ;;  %v3379_v47 = vadd.f32 %v8751_v59, %v3283_v28  ;;  %v3169_v63 = vsel %vm1093_vm4, %v8656_v42, %v8658_v18  ;;  %v11632_v60 = vld [vmem:[#allocation64_spill] sm:$0xff]  ;;  %v11633_v13 = vld [vmem:[#allocation69_spill] sm:$0xff] }
 0xdeb   : > { %v3190_v25 = vadd.f32 %v8656_v42, %v3094_v23  ;;  %v3170_v56 = vsel %vm1093_vm4, %v8658_v18, %v8660_v16  ;;  %v3096_v20 = vadd.f32 %v8616_v57, %v3020_v26  ;;  %v11625_v18 = vld [vmem:[#allocation10_spill] sm:$0xff]  ;;  %v3191_v34 = vadd.f32 %v3169_v63, %v3095_v48  ;;  %v11637_v63 = vld [vmem:[#allocation68_spill] sm:$0xff] }
 0xdec   : > { %v3380_v8 = vadd.f32 %v3359_v61, %v3284_v58  ;;  %v3285_v39 = vadd.f32 %v3264_v54, %v3189_v41  ;;  %v3077_v16 = vsel %vm984_vm3, %v11625_v18, %v11624_v53  ;;  %v3266_v12 = vsel %vm1190_vm5, %v8706_v17, %v11626_v35  ;;  %v11631_v17 = vld [vmem:[#allocation78_spill] sm:$0xff]  ;;  %v11634_v54 = vld [vmem:[#allocation35_spill] sm:$0xff] }
 0xded   : > { %v3286_v52 = vadd.f32 %v8704_v31, %v3190_v25  ;;  %v3097_v57 = vadd.f32 %v11625_v18, %v3021_v32  ;;  %v3192_v21 = vadd.f32 %v3170_v56, %v3096_v20  ;;  %v11628_v31 = vld [vmem:[#allocation34_spill] sm:$0xff]  ;;  %v3171_v62 = vsel %vm1093_vm4, %v11630_v3, %v11629_v4  ;;  %v11639_v20 = vld [vmem:[#allocation79_spill] sm:$0xff] }
 0xdee   : > { %v8859_v19 = vpop.permute.xlu0 %3357  ;;  %v8861_v27 = vpop.permute.xlu1 %3355  ;;  %v3381_v14 = vadd.f32 %v3360_v30, %v3285_v39  ;;  %v3361_v6 = vsel %vm1287_vm7, %v11627_v5, %v11628_v31  ;;  %v3287_v26 = vadd.f32 %v3265_v29, %v3191_v34  ;;  %v3362_v11 = vsel %vm1287_vm7, %v11628_v31, %v11631_v17 }
 0xdef   : > { %v3382_v0 = vadd.f32 %v11627_v5, %v3286_v52  ;;  %v3024_v51 = vadd.f32 %v3001_v40, %v8828_v10  ;;  %v3098_v32 = vadd.f32 %v3077_v16, %v3022_v43  ;;  %v3288_v15 = vadd.f32 %v3266_v12, %v3192_v21  ;;  %v11641_v12 = vld [vmem:[#allocation48_spill] sm:$0xff]  ;;  %v11643_v5 = vld [vmem:[#allocation77_spill] sm:$0xff] }
 0xdf0   : > { %v3025_v50 = vadd.f32 %v3002_v44, %v8830_v38  ;;  %v3193_v45 = vadd.f32 %v11630_v3, %v3097_v57  ;;  %v3267_v28 = vsel %vm1190_vm5, %v11633_v13, %v11632_v60  ;;  %v3383_v61 = vadd.f32 %v3361_v6, %v3287_v26  ;;  %v11635_v38 = vld [vmem:[#allocation32_spill] sm:$0xff] }
 0xdf1   : > { %v3099_v23 = vadd.f32 %v11624_v53, %v3023_v46  ;;  %v3194_v58 = vadd.f32 %v3171_v62, %v3098_v32  ;;  %v3172_v10 = vsel %vm1093_vm4, %v11629_v4, %v11634_v54  ;;  %v3384_v43 = vadd.f32 %v3362_v11, %v3288_v15 }
 0xdf2   : > { %v8887_v49 = vpop.permute.xlu0 %3402  ;;  %v8889_v1 = vpop.permute.xlu1 %3400  ;;  %v3100_v40 = vadd.f32 %v11635_v38, %v3024_v51  ;;  %v3289_v44 = vadd.f32 %v11633_v13, %v3193_v45  ;;  %v3363_v48 = vsel %vm1287_vm7, %v8806_v37, %v8804_v36  ;;  %v3366_v4 = vsel %vm1287_vm7, %v8861_v27, %v8859_v19 }
 0xdf3   : > { %v3408_v59 = vmul.f32 %v8889_v1, %v3379_v47  ;;  %v8898_v42 = vsel %vm984_vm3, %v8889_v1, %v8887_v49  ;;  %v3410_v7 = vmul.f32 %v8887_v49, %v3381_v14  ;;  %v3411_v24 = vmul.f32 %v8889_v1, %v3382_v0  ;;  %v11636_v47 = vld [vmem:[#allocation55_spill] sm:$0xff]  ;;  %v11642_v14 = vld [vmem:[#allocation80_spill] sm:$0xff] }
 0xdf4   : > { %v3409_v9 = vmul.f32 %v8898_v42, %v3380_v8  ;;  %v3412_v41 = vmul.f32 %v8898_v42, %v3383_v61  ;;  %v3078_v46 = vsel %vm984_vm3, %v11635_v38, %v11636_v47  ;;  %v3290_v25 = vadd.f32 %v3267_v28, %v3194_v58 }
 0xdf5   : > { %3432 = vrot.lane.b32.xlu1 %v3408_v59, %s11531_s19  ;;  %v3268_v8 = vsel %vm1190_vm5, %v11632_v60, %v11637_v63  ;;  %v3413_v30 = vmul.f32 %v8887_v49, %v3384_v43  ;;  %v3102_v56 = vadd.f32 %v11636_v47, %v3026_v33  ;;  %v3195_v39 = vadd.f32 %v3172_v10, %v3099_v23  ;;  %v11638_v59 = vld [vmem:[#allocation37_spill] sm:$0xff] }
 0xdf6   : > { %3434 = vrot.lane.b32.xlu0 %v3409_v9, %s11531_s19  ;;  %v3174_v52 = vsel %vm1093_vm4, %v11639_v20, %v11638_v59  ;;  %v3385_v29 = vadd.f32 %v8806_v37, %v3289_v44  ;;  %v11640_v9 = vld [vmem:[#allocation36_spill] sm:$0xff]  ;;  %v3386_v16 = vadd.f32 %v3363_v48, %v3290_v25  ;;  %v3364_v33 = vsel %vm1287_vm7, %v8804_v36, %v8837_v2  ;;  %v11662_v59 = vld [vmem:[#allocation41_spill] sm:$0xff] }
 0xdf7   : > { %v3196_v53 = vadd.f32 %v11640_v9, %v3100_v40  ;;  %v3173_v18 = vsel %vm1093_vm4, %v11640_v9, %v11639_v20  ;;  %v3101_v34 = vadd.f32 %v3078_v46, %v3025_v50  ;;  %v3291_v35 = vadd.f32 %v3268_v8, %v3195_v39  ;;  %v11647_v50 = vld [vmem:[#allocation95_spill] sm:$0xff]  ;;  %v11661_v8 = vld [vmem:[#allocation40_spill] sm:$0xff] }
 0xdf8   : > { %v3270_v37 = vsel %vm1190_vm5, %v11642_v14, %v11641_v12  ;;  %v3414_v57 = vmul.f32 %v8889_v1, %v3385_v29  ;;  %v3198_v21 = vadd.f32 %v3174_v52, %v3102_v56  ;;  %v3269_v31 = vsel %vm1190_vm5, %v11643_v5, %v11642_v14  ;;  %v11660_v46 = vld [vmem:[#allocation39_spill] sm:$0xff]  ;;  %v11663_v29 = vld [vmem:[#allocation42_spill] sm:$0xff]  ;;  %v11665_v12 = vld [vmem:[#allocation45_spill] sm:$0xff] }
 0xdf9   : > { %3436 = vrot.lane.b32.xlu1 %v3410_v7, %s11531_s19  ;;  %v3292_v0 = vadd.f32 %v11643_v5, %v3196_v53  ;;  %v3415_v6 = vmul.f32 %v8898_v42, %v3386_v16  ;;  %v3197_v36 = vadd.f32 %v3173_v18, %v3101_v34  ;;  %v3387_v2 = vadd.f32 %v3364_v33, %v3291_v35  ;;  %v11664_v18 = vld [vmem:[#allocation43_spill] sm:$0xff] }
 0xdfa   : > { %3438 = vrot.lane.b32.xlu0 %v3411_v24, %s11531_s19  ;;  %v3294_v3 = vadd.f32 %v3270_v37, %v3198_v21  ;;  %v3365_v26 = vsel %vm1287_vm7, %v8835_v55, %v8861_v27  ;;  %v11645_v27 = vld [vmem:[#allocation93_spill] sm:$0xff]  ;;  %v11666_v37 = vld [vmem:[#allocation46_spill] sm:$0xff]  ;;  %v6280_v21 = vmov 25  }
 0xdfb   : > { %v3388_v62 = vadd.f32 %v8835_v55, %v3292_v0  ;;  %v3293_v17 = vadd.f32 %v3269_v31, %v3197_v36  ;;  %v3416_v11 = vmul.f32 %v8887_v49, %v3387_v2  ;;  %v11644_v55 = vld [vmem:[#allocation94_spill] sm:$0xff]  ;;  %v11646_v24 = vld [vmem:[#allocation17_spill] sm:$0xff] }
 0xdfc   : > { %v3390_v7 = vadd.f32 %v3366_v4, %v3294_v3 }
 0xdfd   : > { %3440 = vrot.lane.b32.xlu1 %v3412_v41, %s11531_s19  ;;  %v3417_v51 = vmul.f32 %v8889_v1, %v3388_v62  ;;  %v3389_v32 = vadd.f32 %v3365_v26, %v3293_v17  ;;  %v6278_v1 = vmov 11  }
 0xdfe   : > { %3442 = vrot.lane.b32.xlu0 %v3413_v30, %s11531_s19  ;;  %v3419_v15 = vmul.f32 %v8887_v49, %v3390_v7  ;;  %v6279_v49 = vmov 18  }
 0xdff   : > { %v3418_v19 = vmul.f32 %v8898_v42, %v3389_v32 }
 0xe01   : > { %3444 = vrot.lane.b32.xlu1 %v3414_v57, %s11531_s19 }
 0xe02   : > { %3446 = vrot.lane.b32.xlu0 %v3415_v6, %s11531_s19 }
 0xe05   : > { %3448 = vrot.lane.b32.xlu1 %v3416_v11, %s11531_s19 }
 0xe06   : > { %3450 = vrot.lane.b32.xlu0 %v3417_v51, %s11531_s19 }
 0xe09   : > { %3452 = vrot.lane.b32.xlu1 %v3418_v19, %s11531_s19 }
 0xe0a   : > { %3454 = vrot.lane.b32.xlu0 %v3419_v15, %s11531_s19 }
 0xe0d   : > { %3483 = vperm.xlu1 %6066, %v11644_v55  }
 0xe0e   : > { %3487 = vperm.xlu0 %6067, %v11645_v27  }
 0xe11   : > { %3491 = vperm.xlu1 %6066, %v11646_v24  }
 0xe12   : > { %6068 = vset.pattern.permute.xlu0 %v6278_v1 }
 0xe13   : > { %3511 = vperm.xlu0 %6068, %v11644_v55  }
 0xe15   : > { %3495 = vperm.xlu1 %6066, %v11647_v50  }
 0xe17   : > { %3523 = vperm.xlu0 %6068, %v11647_v50  }
 0xe19   : > { %6069 = vset.pattern.permute.xlu1 %v6278_v1 }
 0xe1a   : > { %3515 = vperm.xlu1 %6069, %v11645_v27  }
 0xe1b   : > { %6071 = vset.pattern.permute.xlu0 %v6279_v49 }
 0xe1e   : > { %3519 = vperm.xlu1 %6069, %v11646_v24  }
 0xe22   : > { %6070 = vset.pattern.permute.xlu1 %v6279_v49 }
 0xe67   : > { %v9000_v42 = vpop.permute.xlu1 %3432 }
 0xe68   : > { %11648 = vst [vmem:[#allocation29_spill] sm:$0xff] %v9000_v42  ;;  %v9002_v45 = vpop.permute.xlu0 %3434 }
 0xe69   : > { %11649 = vst [vmem:[#allocation72_spill] sm:$0xff] %v9002_v45 }
 0xe6b   : > { %v9004_v60 = vpop.permute.xlu1 %3436 }
 0xe6c   : > { %11650 = vst [vmem:[#allocation70_spill] sm:$0xff] %v9004_v60  ;;  %v9006_v13 = vpop.permute.xlu0 %3438 }
 0xe6d   : > { %11651 = vst [vmem:[#allocation50_spill] sm:$0xff] %v9006_v13 }
 0xe6f   : > { %v9008_v28 = vpop.permute.xlu1 %3440 }
 0xe70   : > { %11652 = vst [vmem:[#allocation74_spill] sm:$0xff] %v9008_v28  ;;  %v9010_v61 = vpop.permute.xlu0 %3442 }
 0xe71   : > { %11653 = vst [vmem:[#allocation71_spill] sm:$0xff] %v9010_v61 }
 0xe73   : > { %v9012_v23 = vpop.permute.xlu1 %3444 }
 0xe74   : > { %11654 = vst [vmem:[#allocation47_spill] sm:$0xff] %v9012_v23  ;;  %v9014_v58 = vpop.permute.xlu0 %3446 }
 0xe75   : > { %11655 = vst [vmem:[#allocation51_spill] sm:$0xff] %v9014_v58 }
 0xe77   : > { %v9016_v54 = vpop.permute.xlu1 %3448 }
 0xe78   : > { %11656 = vst [vmem:[#allocation38_spill] sm:$0xff] %v9016_v54  ;;  %v9018_v10 = vpop.permute.xlu0 %3450 }
 0xe79   : > { %11657 = vst [vmem:[#allocation75_spill] sm:$0xff] %v9018_v10 }
 0xe7b   : > { %v9020_v43 = vpop.permute.xlu1 %3452 }
 0xe7c   : > { %11658 = vst [vmem:[#allocation76_spill] sm:$0xff] %v9020_v43  ;;  %v9022_v38 = vpop.permute.xlu0 %3454 }
 0xe7d   : > { %11659 = vst [vmem:[#allocation73_spill] sm:$0xff] %v9022_v38 }
 0xe8c   : > { %v9024_v40 = vpop.permute.xlu1 %3483 }
 0xe8d   : > { %v9026_v44 = vpop.permute.xlu0 %3487 }
 0xe90   : > { %v9028_v48 = vpop.permute.xlu1 %3491 }
 0xe92   : > { %v3512_v41 = vpop.permute.xlu0 %3511 }
 0xe93   : > { %v3526_v47 = vmul.f32 0.0, %v3512_v41  ;;  %v3527_v25 = vmul.f32 %v3512_v41, %v11660_v46  ;;  %v3528_v30 = vmul.f32 %v3512_v41, %v11661_v8 }
 0xe94   : > { %v9031_v63 = vpop.permute.xlu1 %3495 }
 0xe95   : > { %3552 = vrot.lane.b32.xlu0 %v3527_v25, %s11509_s29  ;;  %3550 = vrot.lane.b32.xlu1 %v3526_v47, %s11509_s29 }
 0xe96   : > { %v3524_v33 = vpop.permute.xlu0 %3523 }
 0xe97   : > { %v3535_v35 = vmul.f32 0.0, %v3524_v33  ;;  %v3536_v14 = vmul.f32 %v3524_v33, %v11665_v12  ;;  %v3537_v57 = vmul.f32 %v3524_v33, %v11666_v37 }
 0xe99   : > { %v3516_v56 = vpop.permute.xlu1 %3515  ;;  %3554 = vrot.lane.b32.xlu1 %v3528_v30, %s11509_s29 }
 0xe9a   : > { %v3529_v39 = vmul.f32 0.0, %v3516_v56  ;;  %v3530_v20 = vmul.f32 %v3516_v56, %v11662_v59  ;;  %v3531_v9 = vmul.f32 %v3516_v56, %v11663_v29 }
 0xe9c   : > { %3556 = vrot.lane.b32.xlu0 %v3529_v39, %s11509_s29 }
 0xe9d   : > { %v3520_v52 = vpop.permute.xlu1 %3519  ;;  %3558 = vrot.lane.b32.xlu1 %v3530_v20, %s11509_s29 }
 0xe9e   : > { %v3532_v53 = vmul.f32 0.0, %v3520_v52  ;;  %v3533_v16 = vmul.f32 %v3520_v52, %v11664_v18  ;;  %v3534_v34 = vmul.f32 %v3520_v52, %v11594_v22 }
 0xea0   : > { %3560 = vrot.lane.b32.xlu0 %v3531_v9, %s11509_s29 }
 0xea1   : > { %3562 = vrot.lane.b32.xlu1 %v3532_v53, %s11509_s29  ;;  %v6281_v53 = vmov 32  }
 0xea4   : > { %3564 = vrot.lane.b32.xlu0 %v3533_v16, %s11509_s29 }
 0xea5   : > { %3566 = vrot.lane.b32.xlu1 %v3534_v34, %s11509_s29 }
 0xea8   : > { %3568 = vrot.lane.b32.xlu0 %v3535_v35, %s11509_s29 }
 0xea9   : > { %3570 = vrot.lane.b32.xlu1 %v3536_v14, %s11509_s29 }
 0xeac   : > { %3572 = vrot.lane.b32.xlu0 %v3537_v57, %s11509_s29 }
 0xead   : > { %3607 = vperm.xlu1 %6070, %v11644_v55  }
 0xeb0   : > { %3611 = vperm.xlu0 %6071, %v11645_v27  }
 0xeb1   : > { %3615 = vperm.xlu1 %6070, %v11646_v24  }
 0xeb4   : > { %6072 = vset.pattern.permute.xlu0 %v6280_v21 }
 0xeb5   : > { %3619 = vperm.xlu1 %6070, %v11647_v50  }
 0xeb9   : > { %6073 = vset.pattern.permute.xlu1 %v6280_v21 }
 0xf07   : > { %v9056_v5 = vpop.permute.xlu1 %3550  ;;  %v9058_v0 = vpop.permute.xlu0 %3552 }
 0xf0b   : > { %v9060_v31 = vpop.permute.xlu1 %3554 }
 0xf0e   : > { %v9062_v6 = vpop.permute.xlu0 %3556 }
 0xf0f   : > { %v9064_v36 = vpop.permute.xlu1 %3558 }
 0xf12   : > { %v9066_v2 = vpop.permute.xlu0 %3560 }
 0xf13   : > { %v9068_v4 = vpop.permute.xlu1 %3562 }
 0xf16   : > { %v9070_v3 = vpop.permute.xlu0 %3564 }
 0xf17   : > { %v9072_v62 = vpop.permute.xlu1 %3566 }
 0xf1a   : > { %v9074_v26 = vpop.permute.xlu0 %3568 }
 0xf1b   : > { %v9076_v17 = vpop.permute.xlu1 %3570 }
 0xf1e   : > { %v9078_v11 = vpop.permute.xlu0 %3572 }
 0xf2c   : > { %v3608_v7 = vpop.permute.xlu1 %3607 }
 0xf2d   : > { %v3622_v51 = vmul.f32 0.0, %v3608_v7  ;;  %v3623_v32 = vmul.f32 %v3608_v7, %v11660_v46  ;;  %v3624_v1 = vmul.f32 %v3608_v7, %v11661_v8 }
 0xf2f   : > { %3648 = vrot.lane.b32.xlu1 %v3623_v32, %s11517_s20  ;;  %3646 = vrot.lane.b32.xlu0 %v3622_v51, %s11517_s20  ;;  %v3612_v19 = vpop.permute.xlu0 %3611 }
 0xf30   : > { %v3625_v15 = vmul.f32 0.0, %v3612_v19  ;;  %v3616_v49 = vpop.permute.xlu1 %3615  ;;  %v3626_v41 = vmul.f32 %v3612_v19, %v11662_v59  ;;  %v3627_v47 = vmul.f32 %v3612_v19, %v11663_v29 }
 0xf31   : > { %v3628_v25 = vmul.f32 0.0, %v3616_v49  ;;  %v3629_v30 = vmul.f32 %v3616_v49, %v11664_v18  ;;  %v3630_v39 = vmul.f32 %v3616_v49, %v11594_v22 }
 0xf33   : > { %3650 = vrot.lane.b32.xlu0 %v3624_v1, %s11517_s20  ;;  %3652 = vrot.lane.b32.xlu1 %v3625_v15, %s11517_s20 }
 0xf34   : > { %v3620_v56 = vpop.permute.xlu1 %3619 }
 0xf35   : > { %v3631_v20 = vmul.f32 0.0, %v3620_v56  ;;  %v3632_v52 = vmul.f32 %v3620_v56, %v11665_v12  ;;  %v3633_v9 = vmul.f32 %v3620_v56, %v11666_v37 }
 0xf37   : > { %3654 = vrot.lane.b32.xlu0 %v3626_v41, %s11517_s20  ;;  %3656 = vrot.lane.b32.xlu1 %v3627_v47, %s11517_s20 }
 0xf3b   : > { %3658 = vrot.lane.b32.xlu0 %v3628_v25, %s11517_s20  ;;  %3660 = vrot.lane.b32.xlu1 %v3629_v30, %s11517_s20 }
 0xf3f   : > { %3662 = vrot.lane.b32.xlu0 %v3630_v39, %s11517_s20  ;;  %3664 = vrot.lane.b32.xlu1 %v3631_v20, %s11517_s20 }
 0xf43   : > { %3666 = vrot.lane.b32.xlu0 %v3632_v52, %s11517_s20  ;;  %3668 = vrot.lane.b32.xlu1 %v3633_v9, %s11517_s20 }
 0xf47   : > { %3703 = vperm.xlu0 %6072, %v11644_v55   ;;  %3707 = vperm.xlu1 %6073, %v11645_v27  }
 0xf4b   : > { %3715 = vperm.xlu0 %6072, %v11647_v50   ;;  %3711 = vperm.xlu1 %6073, %v11646_v24  }
 0xf4f   : > { %6075 = vset.pattern.permute.xlu0 %v6281_v53  ;;  %6074 = vset.pattern.permute.xlu1 %v6281_v53 }
 0xfa1   : > { %v9104_v16 = vpop.permute.xlu0 %3646  ;;  %v9106_v33 = vpop.permute.xlu1 %3648 }
 0xfa5   : > { %v9108_v34 = vpop.permute.xlu0 %3650  ;;  %v9110_v35 = vpop.permute.xlu1 %3652 }
 0xfa9   : > { %v9112_v14 = vpop.permute.xlu0 %3654  ;;  %v9114_v55 = vpop.permute.xlu1 %3656 }
 0xfad   : > { %v9116_v27 = vpop.permute.xlu0 %3658  ;;  %v9118_v50 = vpop.permute.xlu1 %3660 }
 0xfb1   : > { %v9120_v24 = vpop.permute.xlu0 %3662  ;;  %v9122_v57 = vpop.permute.xlu1 %3664 }
 0xfb5   : > { %v9124_v21 = vpop.permute.xlu0 %3666  ;;  %v9126_v7 = vpop.permute.xlu1 %3668 }
 0xfc6   : > { %v3704_v51 = vpop.permute.xlu0 %3703  ;;  %v3708_v15 = vpop.permute.xlu1 %3707 }
 0xfc7   : > { %v3718_v32 = vmul.f32 %v3704_v51, %v11660_v46  ;;  %v3719_v19 = vmul.f32 %v3704_v51, %v11661_v8  ;;  %v3720_v1 = vmul.f32 0.0, %v3704_v51  ;;  %v3721_v49 = vmul.f32 %v3708_v15, %v11662_v59  ;;  %v9151_v51 = vld [vmem:[%s11024_s4] sm:$0xff] }
 0xfc8   : > { %v3723_v41 = vmul.f32 0.0, %v3708_v15  ;;  %v3722_v47 = vmul.f32 %v3708_v15, %v11663_v29  ;;  %11667 = vst [vmem:[#allocation25_spill] sm:$0xff] %v9151_v51  ;;  %v9169_v15 = vld [vmem:[%s11024_s4 + $0x18] sm:$0xff] }
 0xfc9   : > { %3742 = vrot.lane.b32.xlu1 %v3718_v32, %s11600_s1  ;;  %3744 = vrot.lane.b32.xlu0 %v3719_v19, %s11600_s1  ;;  %v9157_v32 = vld [vmem:[%s11024_s4 + $0x8] sm:$0xff]  ;;  %v9163_v19 = vld [vmem:[%s11024_s4 + $0x10] sm:$0xff]  ;;  %11670 = vst [vmem:[#allocation21_spill] sm:$0xff] %v9169_v15 }
 0xfca   : > { %v3712_v25 = vpop.permute.xlu1 %3711  ;;  %v3716_v39 = vpop.permute.xlu0 %3715  ;;  %11668 = vst [vmem:[#allocation61_spill] sm:$0xff] %v9157_v32  ;;  %11669 = vst [vmem:[#allocation63_spill] sm:$0xff] %v9163_v19 }
 0xfcb   : > { %v3724_v30 = vmul.f32 %v3712_v25, %v11664_v18  ;;  %v3725_v56 = vmul.f32 %v3712_v25, %v11594_v22  ;;  %v3726_v20 = vmul.f32 0.0, %v3712_v25  ;;  %v3727_v52 = vmul.f32 %v3716_v39, %v11665_v12 }
 0xfcc   : > { %v3728_v9 = vmul.f32 %v3716_v39, %v11666_v37  ;;  %v3729_v53 = vmul.f32 0.0, %v3716_v39 }
 0xfcd   : > { %3746 = vrot.lane.b32.xlu1 %v3720_v1, %s11600_s1  ;;  %3748 = vrot.lane.b32.xlu0 %v3721_v49, %s11600_s1  ;;  %v6282_v1 = vmov 39  }
 0xfd1   : > { %3750 = vrot.lane.b32.xlu1 %v3722_v47, %s11600_s1  ;;  %3752 = vrot.lane.b32.xlu0 %v3723_v41, %s11600_s1 }
 0xfd5   : > { %3754 = vrot.lane.b32.xlu1 %v3724_v30, %s11600_s1  ;;  %3756 = vrot.lane.b32.xlu0 %v3725_v56, %s11600_s1 }
 0xfd9   : > { %3758 = vrot.lane.b32.xlu1 %v3726_v20, %s11600_s1  ;;  %3760 = vrot.lane.b32.xlu0 %v3727_v52, %s11600_s1 }
 0xfdd   : > { %3762 = vrot.lane.b32.xlu1 %v3728_v9, %s11600_s1  ;;  %3764 = vrot.lane.b32.xlu0 %v3729_v53, %s11600_s1 }
 0xfe1   : > { %3799 = vperm.xlu1 %6074, %v9151_v51   ;;  %3803 = vperm.xlu0 %6075, %v9157_v32  }
 0xfe5   : > { %3807 = vperm.xlu1 %6074, %v9163_v19   ;;  %6076 = vset.pattern.permute.xlu0 %v6282_v1 }
 0xfe9   : > { %3811 = vperm.xlu1 %6074, %v9169_v15  }
 0xfed   : > { %6077 = vset.pattern.permute.xlu1 %v6282_v1 }
0x103b   : > { %v9172_v49 = vpop.permute.xlu1 %3742  ;;  %v9174_v41 = vpop.permute.xlu0 %3744 }
0x103f   : > { %v9176_v47 = vpop.permute.xlu1 %3746  ;;  %v9178_v25 = vpop.permute.xlu0 %3748 }
0x1043   : > { %v9180_v30 = vpop.permute.xlu1 %3750  ;;  %v9182_v56 = vpop.permute.xlu0 %3752 }
0x1047   : > { %v9184_v39 = vpop.permute.xlu1 %3754  ;;  %v9186_v20 = vpop.permute.xlu0 %3756 }
0x1048   : > { %11671 = vst [vmem:[#allocation52_spill] sm:$0xff] %v9184_v39  ;;  %11672 = vst [vmem:[#allocation10_spill] sm:$0xff] %v9186_v20 }
0x104b   : > { %v9188_v52 = vpop.permute.xlu1 %3758  ;;  %v9190_v9 = vpop.permute.xlu0 %3760 }
0x104c   : > { %11673 = vst [vmem:[#allocation53_spill] sm:$0xff] %v9188_v52  ;;  %11674 = vst [vmem:[#allocation49_spill] sm:$0xff] %v9190_v9 }
0x104f   : > { %v9192_v53 = vpop.permute.xlu1 %3762  ;;  %v9194_v1 = vpop.permute.xlu0 %3764 }
0x1050   : > { %11675 = vst [vmem:[#allocation34_spill] sm:$0xff] %v9192_v53  ;;  %11676 = vst [vmem:[#allocation57_spill] sm:$0xff] %v9194_v1 }
0x1060   : > { %v3800_v10 = vpop.permute.xlu1 %3799  ;;  %v3804_v38 = vpop.permute.xlu0 %3803 }
0x1061   : > { %v3814_v23 = vmul.f32 %v3800_v10, %v11660_v46  ;;  %v3815_v43 = vmul.f32 %v3800_v10, %v11661_v8  ;;  %v3816_v58 = vmul.f32 0.0, %v3800_v10  ;;  %v3817_v54 = vmul.f32 %v3804_v38, %v11662_v59 }
0x1062   : > { %v3819_v42 = vmul.f32 0.0, %v3804_v38  ;;  %v3818_v28 = vmul.f32 %v3804_v38, %v11663_v29 }
0x1063   : > { %3840 = vrot.lane.b32.xlu1 %v3815_v43, %s11605_s18  ;;  %3838 = vrot.lane.b32.xlu0 %v3814_v23, %s11605_s18 }
0x1064   : > { %v3808_v13 = vpop.permute.xlu1 %3807 }
0x1065   : > { %v3820_v61 = vmul.f32 %v3808_v13, %v11664_v18  ;;  %v3821_v43 = vmul.f32 %v3808_v13, %v11594_v22  ;;  %v3822_v10 = vmul.f32 0.0, %v3808_v13 }
0x1067   : > { %3842 = vrot.lane.b32.xlu0 %v3816_v58, %s11605_s18  ;;  %3844 = vrot.lane.b32.xlu1 %v3817_v54, %s11605_s18 }
0x1068   : > { %v3812_v23 = vpop.permute.xlu1 %3811 }
0x1069   : > { %v3823_v58 = vmul.f32 %v3812_v23, %v11665_v12  ;;  %v3825_v54 = vmul.f32 0.0, %v3812_v23 }
0x106b   : > { %3846 = vrot.lane.b32.xlu0 %v3818_v28, %s11605_s18  ;;  %3848 = vrot.lane.b32.xlu1 %v3819_v42, %s11605_s18  ;;  %v3824_v28 = vmul.f32 %v3812_v23, %v11666_v37  ;;  %v6283_v42 = vmov 46  }
0x106f   : > { %3850 = vrot.lane.b32.xlu0 %v3820_v61, %s11605_s18  ;;  %3852 = vrot.lane.b32.xlu1 %v3821_v43, %s11605_s18 }
0x1073   : > { %3854 = vrot.lane.b32.xlu0 %v3822_v10, %s11605_s18  ;;  %3856 = vrot.lane.b32.xlu1 %v3823_v58, %s11605_s18 }
0x1077   : > { %3858 = vrot.lane.b32.xlu0 %v3824_v28, %s11605_s18  ;;  %3860 = vrot.lane.b32.xlu1 %v3825_v54, %s11605_s18 }
0x107b   : > { %3895 = vperm.xlu0 %6076, %v9151_v51   ;;  %3899 = vperm.xlu1 %6077, %v9157_v32  }
0x107f   : > { %3907 = vperm.xlu0 %6076, %v9169_v15   ;;  %3903 = vperm.xlu1 %6077, %v9163_v19  }
0x1083   : > { %6079 = vset.pattern.permute.xlu0 %v6283_v42  ;;  %6078 = vset.pattern.permute.xlu1 %v6283_v42 }
0x10d5   : > { %v9220_v13 = vpop.permute.xlu0 %3838  ;;  %v9222_v61 = vpop.permute.xlu1 %3840 }
0x10d9   : > { %v9224_v38 = vpop.permute.xlu0 %3842  ;;  %v9226_v43 = vpop.permute.xlu1 %3844 }
0x10dd   : > { %v9228_v23 = vpop.permute.xlu0 %3846  ;;  %v9230_v10 = vpop.permute.xlu1 %3848 }
0x10e1   : > { %v9232_v58 = vpop.permute.xlu0 %3850  ;;  %v9234_v28 = vpop.permute.xlu1 %3852 }
0x10e2   : > { %11677 = vst [vmem:[#allocation27_spill] sm:$0xff] %v9232_v58  ;;  %11678 = vst [vmem:[#allocation78_spill] sm:$0xff] %v9234_v28 }
0x10e5   : > { %v9236_v54 = vpop.permute.xlu0 %3854  ;;  %v9238_v45 = vpop.permute.xlu1 %3856 }
0x10e6   : > { %11679 = vst [vmem:[#allocation64_spill] sm:$0xff] %v9236_v54  ;;  %11680 = vst [vmem:[#allocation69_spill] sm:$0xff] %v9238_v45 }
0x10e9   : > { %v9240_v42 = vpop.permute.xlu0 %3858  ;;  %v9242_v60 = vpop.permute.xlu1 %3860 }
0x10ea   : > { %11681 = vst [vmem:[#allocation35_spill] sm:$0xff] %v9240_v42  ;;  %11682 = vst [vmem:[#allocation32_spill] sm:$0xff] %v9242_v60 }
0x10fa   : > { %v3896_v9 = vpop.permute.xlu0 %3895  ;;  %v3900_v52 = vpop.permute.xlu1 %3899 }
0x10fb   : > { %v3910_v53 = vmul.f32 %v3896_v9, %v11660_v46  ;;  %v3911_v1 = vmul.f32 %v3896_v9, %v11661_v8  ;;  %v3912_v58 = vmul.f32 0.0, %v3896_v9  ;;  %v3913_v28 = vmul.f32 %v3900_v52, %v11662_v59 }
0x10fc   : > { %v3915_v45 = vmul.f32 0.0, %v3900_v52  ;;  %v3914_v42 = vmul.f32 %v3900_v52, %v11663_v29 }
0x10fd   : > { %3934 = vrot.lane.b32.xlu1 %v3910_v53, %s11531_s19  ;;  %3936 = vrot.lane.b32.xlu0 %v3911_v1, %s11531_s19 }
0x10fe   : > { %v3904_v60 = vpop.permute.xlu1 %3903  ;;  %v3908_v1 = vpop.permute.xlu0 %3907 }
0x10ff   : > { %v3916_v54 = vmul.f32 %v3904_v60, %v11664_v18  ;;  %v3917_v53 = vmul.f32 %v3904_v60, %v11594_v22  ;;  %v3918_v9 = vmul.f32 0.0, %v3904_v60  ;;  %v3920_v52 = vmul.f32 %v3908_v1, %v11666_v37 }
0x1101   : > { %3938 = vrot.lane.b32.xlu1 %v3912_v58, %s11531_s19  ;;  %3940 = vrot.lane.b32.xlu0 %v3913_v28, %s11531_s19  ;;  %v3919_v58 = vmul.f32 %v3908_v1, %v11665_v12  ;;  %v3921_v28 = vmul.f32 0.0, %v3908_v1 }
0x1105   : > { %3942 = vrot.lane.b32.xlu1 %v3914_v42, %s11531_s19  ;;  %3944 = vrot.lane.b32.xlu0 %v3915_v45, %s11531_s19 }
0x1109   : > { %3946 = vrot.lane.b32.xlu1 %v3916_v54, %s11531_s19  ;;  %3948 = vrot.lane.b32.xlu0 %v3917_v53, %s11531_s19 }
0x110d   : > { %3950 = vrot.lane.b32.xlu1 %v3918_v9, %s11531_s19  ;;  %3952 = vrot.lane.b32.xlu0 %v3919_v58, %s11531_s19 }
0x1111   : > { %3954 = vrot.lane.b32.xlu1 %v3920_v52, %s11531_s19  ;;  %3956 = vrot.lane.b32.xlu0 %v3921_v28, %s11531_s19 }
0x1115   : > { %3991 = vperm.xlu1 %6078, %v9151_v51   ;;  %3995 = vperm.xlu0 %6079, %v9157_v32  }
0x1119   : > { %3999 = vperm.xlu1 %6078, %v9163_v19  }
0x111d   : > { %4003 = vperm.xlu1 %6078, %v9169_v15  }
0x116f   : > { %v9268_v45 = vpop.permute.xlu1 %3934  ;;  %v9270_v60 = vpop.permute.xlu0 %3936 }
0x1173   : > { %v9272_v54 = vpop.permute.xlu1 %3938  ;;  %v9274_v42 = vpop.permute.xlu0 %3940 }
0x1174   : > { %11683 = vst [vmem:[#allocation55_spill] sm:$0xff] %v9274_v42 }
0x1177   : > { %v9276_v53 = vpop.permute.xlu1 %3942  ;;  %v9278_v1 = vpop.permute.xlu0 %3944 }
0x1178   : > { %11684 = vst [vmem:[#allocation68_spill] sm:$0xff] %v9276_v53  ;;  %11685 = vst [vmem:[#allocation37_spill] sm:$0xff] %v9278_v1 }
0x117b   : > { %v9280_v9 = vpop.permute.xlu1 %3946  ;;  %v9282_v58 = vpop.permute.xlu0 %3948 }
0x117c   : > { %11686 = vst [vmem:[#allocation79_spill] sm:$0xff] %v9280_v9  ;;  %11687 = vst [vmem:[#allocation36_spill] sm:$0xff] %v9282_v58 }
0x117f   : > { %v9284_v52 = vpop.permute.xlu1 %3950  ;;  %v9286_v28 = vpop.permute.xlu0 %3952 }
0x1180   : > { %11688 = vst [vmem:[#allocation48_spill] sm:$0xff] %v9284_v52  ;;  %11689 = vst [vmem:[#allocation80_spill] sm:$0xff] %v9286_v28 }
0x1183   : > { %v9288_v19 = vpop.permute.xlu1 %3954  ;;  %v9290_v15 = vpop.permute.xlu0 %3956 }
0x1184   : > { %11690 = vst [vmem:[#allocation77_spill] sm:$0xff] %v9288_v19  ;;  %11691 = vst [vmem:[#allocation94_spill] sm:$0xff] %v9290_v15 }
0x1194   : > { %v3992_v32 = vpop.permute.xlu1 %3991  ;;  %v3996_v53 = vpop.permute.xlu0 %3995 }
0x1195   : > { %v4006_v51 = vmul.f32 %v3992_v32, %v11660_v46  ;;  %v4007_v20 = vmul.f32 %v3992_v32, %v11661_v8  ;;  %v4008_v9 = vmul.f32 0.0, %v3992_v32  ;;  %v4009_v58 = vmul.f32 %v3996_v53, %v11662_v59 }
0x1196   : > { %v4010_v19 = vmul.f32 %v3996_v53, %v11663_v29  ;;  %v4011_v15 = vmul.f32 0.0, %v3996_v53 }
0x1197   : > { %4032 = vrot.lane.b32.xlu1 %v4007_v20, %s11444_s26  ;;  %4030 = vrot.lane.b32.xlu0 %v4006_v51, %s11444_s26 }
0x1198   : > { %v4000_v28 = vpop.permute.xlu1 %3999 }
0x1199   : > { %v4012_v52 = vmul.f32 %v4000_v28, %v11664_v18  ;;  %v4013_v20 = vmul.f32 %v4000_v28, %v11594_v22  ;;  %v4014_v32 = vmul.f32 0.0, %v4000_v28  ;;  %v11693_v28 = vld [vmem:[#allocation14_spill] sm:$0xff] }
0x119b   : > { %4034 = vrot.lane.b32.xlu0 %v4008_v9, %s11444_s26  ;;  %4036 = vrot.lane.b32.xlu1 %v4009_v58, %s11444_s26  ;;  %v11692_v58 = vld [vmem:[#allocation13_spill] sm:$0xff] }
0x119c   : > { %v4004_v51 = vpop.permute.xlu1 %4003 }
0x119d   : > { %v4015_v9 = vmul.f32 %v4004_v51, %v11665_v12  ;;  %v4017_v53 = vmul.f32 0.0, %v4004_v51 }
0x119f   : > { %4038 = vrot.lane.b32.xlu0 %v4010_v19, %s11444_s26  ;;  %4040 = vrot.lane.b32.xlu1 %v4011_v15, %s11444_s26  ;;  %v5890_v19 = vld [vmem:[%s11026_s6 + $0x4] ss:$8 sm:$0x3]  ;;  %v4016_v15 = vmul.f32 %v4004_v51, %v11666_v37 }
0x11a3   : > { %4042 = vrot.lane.b32.xlu0 %v4012_v52, %s11444_s26  ;;  %4044 = vrot.lane.b32.xlu1 %v4013_v20, %s11444_s26  ;;  %v4090_v52 = vrot.slane %v5890_v19, %v11692_v58  ;;  %v4094_v20 = vrot.slane %v5890_v19, %v11693_v28  ;;  %v3501_v19 = vmul.f32 0.0, %v9026_v44  ;;  %v3574_v28 = vsel %vm790_vm1, %v9056_v5, %v9058_v0 }
0x11a4   : > { %v3575_v58 = vsel %vm790_vm1, %v9058_v0, %v9060_v31  ;;  %v3508_v0 = vmul.f32 %v9031_v63, %v11665_v12 }
0x11a7   : > { %4046 = vrot.lane.b32.xlu0 %v4014_v32, %s11444_s26  ;;  %4048 = vrot.lane.b32.xlu1 %v4015_v9, %s11444_s26  ;;  %v6285_v32 = vmov 5  }
0x11a8   : > { %6080 = vset.pattern.permute.xlu0 %v6285_v32  ;;  %6081 = vset.pattern.permute.xlu1 %v6285_v32  ;;  %v3504_v32 = vmul.f32 0.0, %v9028_v48 }
0x11ab   : > { %4050 = vrot.lane.b32.xlu0 %v4016_v15, %s11444_s26  ;;  %4052 = vrot.lane.b32.xlu1 %v4017_v53, %s11444_s26  ;;  %v3498_v15 = vmul.f32 0.0, %v9024_v40  ;;  %v3499_v53 = vmul.f32 %v9024_v40, %v11660_v46  ;;  %v3503_v46 = vmul.f32 %v9026_v44, %v11663_v29 }
0x11ad   : > { %v3594_v29 = vadd.f32 %v3574_v28, %v3498_v15 }
0x11af   : > { %4095 = vrot.lane.b32.xlu0 %v4090_v52, %s6284_s17  ;;  %4097 = vrot.lane.b32.xlu1 %v4094_v20, %s6284_s17  ;;  %v3502_v52 = vmul.f32 %v9026_v44, %v11662_v59  ;;  %v3500_v20 = vmul.f32 %v9024_v40, %v11661_v8  ;;  %v3507_v59 = vmul.f32 0.0, %v9031_v63  ;;  %v3576_v40 = vsel %vm790_vm1, %v9062_v6, %v9064_v36  ;;  %s406_s17 = scalar_lea.vmem [#allocation3], %s5880_s3 }
0x11b0   : > { %v3506_v8 = vmul.f32 %v9028_v48, %v11594_v22  ;;  %v3577_v44 = vsel %vm790_vm1, %v9064_v36, %v9066_v2  ;;  %v3509_v6 = vmul.f32 %v9031_v63, %v11666_v37  ;;  %v3597_v12 = vadd.f32 %v3576_v40, %v3501_v19 }
0x11b1   : > { %v3596_v22 = vadd.f32 %v9060_v31, %v3500_v20  ;;  %v3580_v36 = vsel %vm790_vm1, %v9074_v26, %v9076_v17  ;;  %v3598_v63 = vadd.f32 %v3577_v44, %v3502_v52  ;;  %v3670_v31 = vsel %vm887_vm2, %v9104_v16, %v9106_v33 }
0x11b2   : > { %v3672_v26 = vsel %vm887_vm2, %v9110_v35, %v9112_v14  ;;  %v3674_v16 = vsel %vm887_vm2, %v9116_v27, %v9118_v50  ;;  %v3675_v35 = vsel %vm887_vm2, %v9118_v50, %v9120_v24  ;;  %v3862_v27 = vsel %vm1093_vm4, %v9220_v13, %v9222_v61 }
0x11b3   : > { %v3693_v19 = vadd.f32 %v3672_v26, %v3597_v12  ;;  %v3958_v40 = vsel %vm1190_vm5, %v9268_v45, %v9270_v60  ;;  %v11698_v26 = vld [vmem:[#allocation55_spill] sm:$0xff] }
0x1209   : > { %v9317_v9 = vpop.permute.xlu1 %4032  ;;  %v9319_v1 = vpop.permute.xlu0 %4030 }
0x120d   : > { %v9321_v42 = vpop.permute.xlu1 %4036  ;;  %v9323_v51 = vpop.permute.xlu0 %4034 }
0x120e   : > { %11694 = vst [vmem:[#allocation93_spill] sm:$0xff] %v9321_v42  ;;  %v3505_v42 = vmul.f32 %v9028_v48, %v11664_v18  ;;  %v3578_v18 = vsel %vm790_vm1, %v9068_v4, %v9070_v3  ;;  %v3595_v48 = vadd.f32 %v3575_v58, %v3499_v53  ;;  %v3581_v4 = vsel %vm790_vm1, %v9076_v17, %v9078_v11 }
0x120f   : > { %v3600_v28 = vadd.f32 %v3578_v18, %v3504_v32  ;;  %v3602_v58 = vadd.f32 %v9072_v62, %v3506_v8  ;;  %v3673_v8 = vsel %vm887_vm2, %v9112_v14, %v9114_v55  ;;  %v3603_v18 = vadd.f32 %v3580_v36, %v3507_v59 }
0x1210   : > { %v3605_v17 = vadd.f32 %v9078_v11, %v3509_v6  ;;  %v3766_v14 = vsel %vm984_vm3, %v9172_v49, %v9174_v41  ;;  %v3694_v11 = vadd.f32 %v3673_v8, %v3598_v63  ;;  %v4054_v6 = vsel %vm1287_vm7, %v9319_v1, %v9317_v9 }
0x1211   : > { %v9350_v5 = vpop.permute.xlu1 %4040  ;;  %v9352_v39 = vpop.permute.xlu0 %4038 }
0x1212   : > { %11695 = vst [vmem:[#allocation17_spill] sm:$0xff] %v9350_v5  ;;  %11696 = vst [vmem:[#allocation95_spill] sm:$0xff] %v9352_v39  ;;  %v3579_v5 = vsel %vm790_vm1, %v9070_v3, %v9072_v62  ;;  %v3599_v39 = vadd.f32 %v9066_v2, %v3503_v46  ;;  %v3671_v2 = vsel %vm887_vm2, %v9106_v33, %v9108_v34 }
0x1213   : > { %v3601_v46 = vadd.f32 %v3579_v5, %v3505_v42  ;;  %v9392_v62 = vadd.f32 %v3581_v4, %v3508_v0  ;;  %v3690_v42 = vadd.f32 %v3670_v31, %v3594_v29  ;;  %v3692_v33 = vadd.f32 %v9108_v34, %v3596_v22 }
0x1214   : > { %v3691_v59 = vadd.f32 %v3671_v2, %v3595_v48  ;;  %v3695_v53 = vadd.f32 %v9114_v55, %v3599_v39  ;;  %v3696_v29 = vadd.f32 %v3674_v16, %v3600_v28  ;;  %v3698_v22 = vadd.f32 %v9120_v24, %v3602_v58  ;;  %v11701_v16 = vld [vmem:[#allocation37_spill] sm:$0xff] }
0x1215   : > { %v9379_v3 = vpop.permute.xlu1 %4044  ;;  %v9381_v15 = vpop.permute.xlu0 %4042  ;;  %v3786_v34 = vadd.f32 %v9172_v49, %v3690_v42  ;;  %v3697_v50 = vadd.f32 %v3675_v35, %v3601_v46  ;;  %v3676_v55 = vsel %vm887_vm2, %v9122_v57, %v9124_v21  ;;  %v3767_v39 = vsel %vm984_vm3, %v9174_v41, %v9176_v47  ;;  %v11702_v35 = vld [vmem:[#allocation53_spill] sm:$0xff] }
0x1216   : > { %v3787_v12 = vadd.f32 %v3766_v14, %v3691_v59  ;;  %v9422_v32 = vadd.f32 %v9126_v7, %v3605_v17  ;;  %v3677_v24 = vsel %vm887_vm2, %v9124_v21, %v9126_v7  ;;  %v3768_v57 = vsel %vm984_vm3, %v9178_v25, %v9180_v30  ;;  %v11700_v17 = vld [vmem:[#allocation10_spill] sm:$0xff] }
0x1217   : > { %v3882_v49 = vadd.f32 %v9220_v13, %v3786_v34  ;;  %v3769_v41 = vsel %vm984_vm3, %v9180_v30, %v9182_v56  ;;  %v3863_v5 = vsel %vm1093_vm4, %v9222_v61, %v9224_v38  ;;  %v3699_v13 = vadd.f32 %v3676_v55, %v3603_v18  ;;  %v11705_v34 = vld [vmem:[#allocation78_spill] sm:$0xff] }
0x1218   : > { %v3883_v47 = vadd.f32 %v3862_v27, %v3787_v12  ;;  %v3788_v0 = vadd.f32 %v3767_v39, %v3692_v33  ;;  %v3789_v48 = vadd.f32 %v9178_v25, %v3693_v19  ;;  %v3959_v56 = vsel %vm1190_vm5, %v9270_v60, %v9272_v54  ;;  %v11706_v27 = vld [vmem:[#allocation27_spill] sm:$0xff] }
0x1219   : > { %v9406_v52 = vpop.permute.xlu1 %4048  ;;  %v9408_v20 = vpop.permute.xlu0 %4046  ;;  %v3978_v44 = vadd.f32 %v9268_v45, %v3882_v49  ;;  %v3790_v61 = vadd.f32 %v3768_v57, %v3694_v11  ;;  %v3791_v38 = vadd.f32 %v3769_v41, %v3695_v53  ;;  %v3864_v45 = vsel %vm1093_vm4, %v9226_v43, %v9228_v23  ;;  %v11703_v53 = vld [vmem:[#allocation93_spill] sm:$0xff]  ;;  %v11704_v11 = vld [vmem:[#allocation95_spill] sm:$0xff] }
0x121a   : > { %v3979_v30 = vadd.f32 %v3958_v40, %v3883_v47  ;;  %v3884_v36 = vadd.f32 %v3863_v5, %v3788_v0  ;;  %v3885_v63 = vadd.f32 %v9226_v43, %v3789_v48  ;;  %v4055_v25 = vsel %vm1287_vm7, %v9317_v9, %v9323_v51  ;;  %v11697_v43 = vld [vmem:[#allocation52_spill] sm:$0xff]  ;;  %v11707_v39 = vld [vmem:[#allocation17_spill] sm:$0xff]  ;;  %v11709_v48 = vld [vmem:[#allocation79_spill] sm:$0xff] }
0x121b   : > { %v4074_v4 = vadd.f32 %v9319_v1, %v3978_v44  ;;  %v3865_v54 = vsel %vm1093_vm4, %v9228_v23, %v9230_v10  ;;  %v3792_v2 = vadd.f32 %v11697_v43, %v3696_v29  ;;  %v11699_v9 = vld [vmem:[#allocation68_spill] sm:$0xff]  ;;  %v3770_v23 = vsel %vm984_vm3, %v11697_v43, %v11700_v17 }
0x121c   : > { %v4075_v28 = vadd.f32 %v4054_v6, %v3979_v30  ;;  %v3980_v1 = vadd.f32 %v3959_v56, %v3884_v36  ;;  %v3981_v8 = vadd.f32 %v11698_v26, %v3885_v63  ;;  %v3960_v51 = vsel %vm1190_vm5, %v11698_v26, %v11699_v9  ;;  %v11708_v6 = vld [vmem:[#allocation36_spill] sm:$0xff] }
0x121d   : > { %v9440_v21 = vpop.permute.xlu1 %4052  ;;  %v9442_v7 = vpop.permute.xlu0 %4050  ;;  %v3886_v10 = vadd.f32 %v3864_v45, %v3790_v61  ;;  %v3961_v42 = vsel %vm1190_vm5, %v11699_v9, %v11701_v16  ;;  %v3771_v14 = vsel %vm984_vm3, %v11700_v17, %v11702_v35  ;;  %v3887_v59 = vadd.f32 %v3865_v54, %v3791_v38  ;;  %v11710_v61 = vld [vmem:[#allocation57_spill] sm:$0xff]  ;;  %v11711_v38 = vld [vmem:[#allocation34_spill] sm:$0xff]  ;;  %v11716_v9 = vld [vmem:[#allocation35_spill] sm:$0xff] }
0x121e   : > { %v4076_v33 = vadd.f32 %v4055_v25, %v3980_v1  ;;  %v4077_v19 = vadd.f32 %v11703_v53, %v3981_v8  ;;  %v4056_v29 = vsel %vm1287_vm7, %v11703_v53, %v11704_v11  ;;  %v3866_v55 = vsel %vm1093_vm4, %v11706_v27, %v11705_v34  ;;  %v11715_v8 = vld [vmem:[#allocation32_spill] sm:$0xff]  ;;  %v11717_v17 = vld [vmem:[#allocation69_spill] sm:$0xff]  ;;  %v11718_v35 = vld [vmem:[#allocation94_spill] sm:$0xff] }
0x121f   : > { %v3982_v12 = vadd.f32 %v3960_v51, %v3886_v10  ;;  %v4057_v49 = vsel %vm1287_vm7, %v11704_v11, %v11707_v39  ;;  %v3700_v57 = vadd.f32 %v3677_v24, %v9392_v62  ;;  %v3793_v41 = vadd.f32 %v3770_v23, %v3697_v50  ;;  %v11712_v62 = vld [vmem:[#allocation64_spill] sm:$0xff] }
0x1220   : > { %v3983_v47 = vadd.f32 %v3961_v42, %v3887_v59  ;;  %v3794_v0 = vadd.f32 %v3771_v14, %v3698_v22  ;;  %v3888_v44 = vadd.f32 %v11706_v27, %v3792_v2  ;;  %v3962_v30 = vsel %vm1190_vm5, %v11709_v48, %v11708_v6  ;;  %v11713_v22 = vld [vmem:[#allocation49_spill] sm:$0xff] }
0x1221   : > { %v9460_v58 = vpop.permute.xlu1 %4097  ;;  %v9462_v60 = vpop.permute.xlu0 %4095  ;;  %v4078_v56 = vadd.f32 %v4056_v29, %v3982_v12  ;;  %v3773_v36 = vsel %vm984_vm3, %v11711_v38, %v11710_v61  ;;  %v3867_v50 = vsel %vm1093_vm4, %v11705_v34, %v11712_v62  ;;  %v3795_v63 = vadd.f32 %v11713_v22, %v3699_v13  ;;  %v11719_v14 = vld [vmem:[#allocation77_spill] sm:$0xff] }
0x1222   : > { %v4104_v31 = vmul.f32 %v9462_v60, %v4074_v4  ;;  %v9470_v46 = vsel %vm4099_vm10, %v9462_v60, %v9460_v58  ;;  %v4106_v40 = vmul.f32 %v9460_v58, %v4076_v33  ;;  %v4107_v5 = vmul.f32 %v9462_v60, %v4077_v19  ;;  %v11720_v19 = vld [vmem:[#allocation80_spill] sm:$0xff] }
0x1223   : > { %v4105_v18 = vmul.f32 %v9470_v46, %v4075_v28  ;;  %v3889_v4 = vadd.f32 %v3866_v55, %v3793_v41  ;;  %v4079_v24 = vadd.f32 %v4057_v49, %v3983_v47  ;;  %v3984_v45 = vadd.f32 %v11709_v48, %v3888_v44 }
0x1224   : > { %4128 = vrot.lane.b32.xlu0 %v4104_v31, %s6286_s15  ;;  %v4058_v28 = vsel %vm1287_vm7, %v9381_v15, %v9379_v3  ;;  %v4108_v25 = vmul.f32 %v9470_v46, %v4078_v56  ;;  %v3772_v54 = vsel %vm984_vm3, %v11713_v22, %v11711_v38  ;;  %v11714_v31 = vld [vmem:[#allocation48_spill] sm:$0xff]  ;;  %v3797_v13 = vadd.f32 %v3773_v36, %v9422_v32 }
0x1225   : > { %4130 = vrot.lane.b32.xlu1 %v4105_v18, %s6286_s15  ;;  %v3985_v1 = vadd.f32 %v3962_v30, %v3889_v4  ;;  %v3963_v43 = vsel %vm1190_vm5, %v11708_v6, %v11714_v31  ;;  %v4109_v2 = vmul.f32 %v9460_v58, %v4079_v24  ;;  %v3890_v26 = vadd.f32 %v3867_v50, %v3794_v0  ;;  %v11723_v0 = vld [vmem:[#allocation21_spill] sm:$0xff] }
0x1226   : > { %v3869_v51 = vsel %vm1093_vm4, %v11716_v9, %v11715_v8  ;;  %v4080_v18 = vadd.f32 %v9381_v15, %v3984_v45  ;;  %v3891_v23 = vadd.f32 %v11717_v17, %v3795_v63  ;;  %v3868_v10 = vsel %vm1093_vm4, %v11717_v17, %v11716_v9  ;;  %v11740_v9 = vld [vmem:[#allocation41_spill] sm:$0xff] }
0x1227   : > { %v4081_v16 = vadd.f32 %v4058_v28, %v3985_v1  ;;  %v4059_v32 = vsel %vm1287_vm7, %v9379_v3, %v9408_v20  ;;  %v3796_v42 = vadd.f32 %v3772_v54, %v3700_v57  ;;  %v3986_v33 = vadd.f32 %v3963_v43, %v3890_v26  ;;  %v11738_v1 = vld [vmem:[#allocation39_spill] sm:$0xff] }
0x1228   : > { %4132 = vrot.lane.b32.xlu0 %v4106_v40, %s6286_s15  ;;  %v3965_v15 = vsel %vm1190_vm5, %v11719_v14, %v11718_v35  ;;  %v4110_v59 = vmul.f32 %v9462_v60, %v4080_v18  ;;  %v3893_v53 = vadd.f32 %v3869_v51, %v3797_v13  ;;  %v3987_v11 = vadd.f32 %v11720_v19, %v3891_v23  ;;  %v11739_v13 = vld [vmem:[#allocation40_spill] sm:$0xff]  ;;  %v11741_v18 = vld [vmem:[#allocation42_spill] sm:$0xff] }
0x1229   : > { %4134 = vrot.lane.b32.xlu1 %v4107_v5, %s6286_s15  ;;  %v3964_v29 = vsel %vm1190_vm5, %v11720_v19, %v11719_v14  ;;  %v4111_v34 = vmul.f32 %v9470_v46, %v4081_v16  ;;  %v3892_v3 = vadd.f32 %v3868_v10, %v3796_v42  ;;  %v4082_v20 = vadd.f32 %v4059_v32, %v3986_v33  ;;  %v11742_v10 = vld [vmem:[#allocation43_spill] sm:$0xff]  ;;  %v11743_v42 = vld [vmem:[#allocation44_spill] sm:$0xff]  ;;  %v11744_v14 = vld [vmem:[#allocation45_spill] sm:$0xff] }
0x122a   : > { %v4061_v27 = vsel %vm1287_vm7, %v9442_v7, %v9440_v21  ;;  %v3989_v55 = vadd.f32 %v3965_v15, %v3893_v53  ;;  %v4083_v12 = vadd.f32 %v9406_v52, %v3987_v11  ;;  %v4060_v39 = vsel %vm1287_vm7, %v9406_v52, %v9442_v7  ;;  %v11721_v52 = vld [vmem:[#allocation25_spill] sm:$0xff] }
0x122b   : > { %v3988_v49 = vadd.f32 %v3964_v29, %v3892_v3  ;;  %v4112_v40 = vmul.f32 %v9460_v58, %v4082_v20  ;;  %v11722_v7 = vld [vmem:[#allocation61_spill] sm:$0xff]  ;;  %v6287_v44 = vmov 12   ;;  %v6289_v53 = vmov 26  }
0x122c   : > { %4136 = vrot.lane.b32.xlu0 %v4108_v25, %s6286_s15  ;;  %v4085_v57 = vadd.f32 %v4061_v27, %v3989_v55  ;;  %v4113_v41 = vmul.f32 %v9462_v60, %v4083_v12  ;;  %v11724_v60 = vld [vmem:[#allocation63_spill] sm:$0xff] }
0x122d   : > { %4138 = vrot.lane.b32.xlu1 %v4109_v2, %s6286_s15  ;;  %v4084_v47 = vadd.f32 %v4060_v39, %v3988_v49 }
0x122e   : > { %v4115_v5 = vmul.f32 %v9460_v58, %v4085_v57  ;;  %v6288_v58 = vmov 19  }
0x122f   : > { %v4114_v21 = vmul.f32 %v9470_v46, %v4084_v47 }
0x1230   : > { %4140 = vrot.lane.b32.xlu0 %v4110_v59, %s6286_s15 }
0x1231   : > { %4142 = vrot.lane.b32.xlu1 %v4111_v34, %s6286_s15 }
0x1234   : > { %4144 = vrot.lane.b32.xlu0 %v4112_v40, %s6286_s15 }
0x1235   : > { %4146 = vrot.lane.b32.xlu1 %v4113_v41, %s6286_s15 }
0x1238   : > { %4148 = vrot.lane.b32.xlu0 %v4114_v21, %s6286_s15 }
0x1239   : > { %4150 = vrot.lane.b32.xlu1 %v4115_v5, %s6286_s15  ;;  %s5814_s15 = sshll.u32 %s406_s17, 4  ;;  %s10972_s15 = int_to_ptr.vmem [resolvable:$true] %s5814_s15 }
0x123c   : > { %4180 = vperm.xlu0 %6080, %v11721_v52  }
0x123d   : > { %4184 = vperm.xlu1 %6081, %v11722_v7  }
0x1240   : > { %4192 = vperm.xlu0 %6080, %v11723_v0  }
0x1241   : > { %4188 = vperm.xlu1 %6081, %v11724_v60  }
0x1244   : > { %6083 = vset.pattern.permute.xlu0 %v6287_v44 }
0x1245   : > { %4212 = vperm.xlu0 %6083, %v11722_v7   ;;  %6082 = vset.pattern.permute.xlu1 %v6287_v44 }
0x1246   : > { %4208 = vperm.xlu1 %6082, %v11721_v52  }
0x1249   : > { %6084 = vset.pattern.permute.xlu0 %v6288_v58 }
0x124a   : > { %4216 = vperm.xlu1 %6082, %v11724_v60  }
0x124e   : > { %4220 = vperm.xlu1 %6082, %v11723_v0  }
0x1252   : > { %6085 = vset.pattern.permute.xlu1 %v6288_v58 }
0x1296   : > { %v9575_v46 = vpop.permute.xlu0 %4128 }
0x1297   : > { %11725 = vst [vmem:[#allocation52_spill] sm:$0xff] %v9575_v46  ;;  %v9577_v6 = vpop.permute.xlu1 %4130  ;;  %v6172_v46 = vld [vmem:[%s11024_s4 + $0x18] sm:$0xff] }
0x1298   : > { %11726 = vst [vmem:[#allocation55_spill] sm:$0xff] %v9577_v6 }
0x129a   : > { %v9579_v48 = vpop.permute.xlu0 %4132 }
0x129b   : > { %11727 = vst [vmem:[#allocation68_spill] sm:$0xff] %v9579_v48  ;;  %v9581_v30 = vpop.permute.xlu1 %4134 }
0x129c   : > { %11728 = vst [vmem:[#allocation10_spill] sm:$0xff] %v9581_v30 }
0x129e   : > { %v9583_v56 = vpop.permute.xlu0 %4136 }
0x129f   : > { %11729 = vst [vmem:[#allocation37_spill] sm:$0xff] %v9583_v56  ;;  %v9585_v61 = vpop.permute.xlu1 %4138 }
0x12a0   : > { %11730 = vst [vmem:[#allocation53_spill] sm:$0xff] %v9585_v61 }
0x12a2   : > { %v9587_v38 = vpop.permute.xlu0 %4140 }
0x12a3   : > { %11731 = vst [vmem:[#allocation93_spill] sm:$0xff] %v9587_v38  ;;  %v9589_v36 = vpop.permute.xlu1 %4142 }
0x12a4   : > { %11732 = vst [vmem:[#allocation95_spill] sm:$0xff] %v9589_v36 }
0x12a6   : > { %v9591_v4 = vpop.permute.xlu0 %4144 }
0x12a7   : > { %11733 = vst [vmem:[#allocation78_spill] sm:$0xff] %v9591_v4  ;;  %v9593_v62 = vpop.permute.xlu1 %4146  ;;  %v6170_v4 = vld [vmem:[%s11024_s4] sm:$0xff] }
0x12a8   : > { %11734 = vst [vmem:[#allocation27_spill] sm:$0xff] %v9593_v62 }
0x12aa   : > { %v9595_v50 = vpop.permute.xlu0 %4148 }
0x12ab   : > { %11735 = vst [vmem:[#allocation17_spill] sm:$0xff] %v9595_v50  ;;  %v9597_v24 = vpop.permute.xlu1 %4150  ;;  %v6169_v50 = vld [vmem:[%s11024_s4 + $0x8] sm:$0xff] }
0x12ac   : > { %11736 = vst [vmem:[#allocation36_spill] sm:$0xff] %v9597_v24 }
0x12bb   : > { %v9599_v22 = vpop.permute.xlu0 %4180 }
0x12bc   : > { %v9601_v63 = vpop.permute.xlu1 %4184 }
0x12bf   : > { %v9605_v28 = vpop.permute.xlu0 %4192 }
0x12c0   : > { %v9603_v45 = vpop.permute.xlu1 %4188 }
0x12c1   : > { %11737 = vst [vmem:[#allocation79_spill] sm:$0xff] %v9603_v45 }
0x12c4   : > { %v4213_v43 = vpop.permute.xlu0 %4212 }
0x12c5   : > { %v4209_v25 = vpop.permute.xlu1 %4208  ;;  %v4226_v2 = vmul.f32 0.0, %v4213_v43  ;;  %v4227_v51 = vmul.f32 %v4213_v43, %v11740_v9  ;;  %v4228_v17 = vmul.f32 %v4213_v43, %v11741_v18 }
0x12c6   : > { %v4223_v54 = vmul.f32 0.0, %v4209_v25  ;;  %v4224_v31 = vmul.f32 %v4209_v25, %v11738_v1  ;;  %v4225_v26 = vmul.f32 %v4209_v25, %v11739_v13 }
0x12c8   : > { %4249 = vrot.lane.b32.xlu1 %v4224_v31, %s11509_s29  ;;  %4247 = vrot.lane.b32.xlu0 %v4223_v54, %s11509_s29 }
0x12c9   : > { %v4217_v8 = vpop.permute.xlu1 %4216 }
0x12ca   : > { %v4229_v23 = vmul.f32 0.0, %v4217_v8  ;;  %v4230_v16 = vmul.f32 %v4217_v8, %v11742_v10  ;;  %v4231_v33 = vmul.f32 %v4217_v8, %v11743_v42 }
0x12cc   : > { %4253 = vrot.lane.b32.xlu1 %v4226_v2, %s11509_s29  ;;  %4251 = vrot.lane.b32.xlu0 %v4225_v26, %s11509_s29 }
0x12cd   : > { %v4221_v32 = vpop.permute.xlu1 %4220 }
0x12ce   : > { %v4232_v35 = vmul.f32 0.0, %v4221_v32  ;;  %v4233_v15 = vmul.f32 %v4221_v32, %v11744_v14  ;;  %v4234_v59 = vmul.f32 %v4221_v32, %v11666_v37 }
0x12d0   : > { %4257 = vrot.lane.b32.xlu1 %v4228_v17, %s11509_s29  ;;  %4255 = vrot.lane.b32.xlu0 %v4227_v51, %s11509_s29 }
0x12d4   : > { %4261 = vrot.lane.b32.xlu1 %v4230_v16, %s11509_s29  ;;  %4259 = vrot.lane.b32.xlu0 %v4229_v23, %s11509_s29  ;;  %v6290_v23 = vmov 33  }
0x12d8   : > { %4263 = vrot.lane.b32.xlu0 %v4231_v33, %s11509_s29  ;;  %4265 = vrot.lane.b32.xlu1 %v4232_v35, %s11509_s29 }
0x12dc   : > { %4267 = vrot.lane.b32.xlu0 %v4233_v15, %s11509_s29  ;;  %4269 = vrot.lane.b32.xlu1 %v4234_v59, %s11509_s29 }
0x12e0   : > { %4304 = vperm.xlu0 %6084, %v11721_v52   ;;  %4308 = vperm.xlu1 %6085, %v11722_v7  }
0x12e4   : > { %4316 = vperm.xlu0 %6084, %v11723_v0   ;;  %4312 = vperm.xlu1 %6085, %v11724_v60  }
0x12e8   : > { %6087 = vset.pattern.permute.xlu0 %v6289_v53  ;;  %6086 = vset.pattern.permute.xlu1 %v6289_v53 }
0x133a   : > { %v9631_v19 = vpop.permute.xlu0 %4247  ;;  %v9633_v11 = vpop.permute.xlu1 %4249 }
0x133e   : > { %v9635_v29 = vpop.permute.xlu0 %4251  ;;  %v9637_v34 = vpop.permute.xlu1 %4253 }
0x1342   : > { %v9639_v3 = vpop.permute.xlu0 %4255  ;;  %v9641_v20 = vpop.permute.xlu1 %4257 }
0x1346   : > { %v9643_v27 = vpop.permute.xlu0 %4259  ;;  %v9645_v55 = vpop.permute.xlu1 %4261 }
0x1347   : > { %11745 = vst [vmem:[#allocation57_spill] sm:$0xff] %v9643_v27 }
0x134a   : > { %v9647_v12 = vpop.permute.xlu0 %4263  ;;  %v9649_v39 = vpop.permute.xlu1 %4265 }
0x134e   : > { %v9651_v49 = vpop.permute.xlu0 %4267  ;;  %v9653_v40 = vpop.permute.xlu1 %4269 }
0x135f   : > { %v4305_v57 = vpop.permute.xlu0 %4304  ;;  %v4309_v21 = vpop.permute.xlu1 %4308 }
0x1360   : > { %v4319_v41 = vmul.f32 0.0, %v4305_v57  ;;  %v4320_v47 = vmul.f32 %v4305_v57, %v11738_v1  ;;  %v4322_v5 = vmul.f32 0.0, %v4309_v21  ;;  %v4321_v44 = vmul.f32 %v4305_v57, %v11739_v13 }
0x1361   : > { %v4323_v58 = vmul.f32 %v4309_v21, %v11740_v9  ;;  %v4324_v25 = vmul.f32 %v4309_v21, %v11741_v18 }
0x1362   : > { %4345 = vrot.lane.b32.xlu0 %v4320_v47, %s11517_s20  ;;  %4343 = vrot.lane.b32.xlu1 %v4319_v41, %s11517_s20 }
0x1363   : > { %v4313_v54 = vpop.permute.xlu1 %4312  ;;  %v4317_v2 = vpop.permute.xlu0 %4316 }
0x1364   : > { %v4325_v31 = vmul.f32 0.0, %v4313_v54  ;;  %v4326_v43 = vmul.f32 %v4313_v54, %v11742_v10  ;;  %v4328_v26 = vmul.f32 0.0, %v4317_v2  ;;  %v4327_v8 = vmul.f32 %v4313_v54, %v11743_v42 }
0x1365   : > { %v4329_v51 = vmul.f32 %v4317_v2, %v11744_v14  ;;  %v4330_v17 = vmul.f32 %v4317_v2, %v11666_v37 }
0x1366   : > { %4347 = vrot.lane.b32.xlu1 %v4321_v44, %s11517_s20  ;;  %4349 = vrot.lane.b32.xlu0 %v4322_v5, %s11517_s20 }
0x136a   : > { %4351 = vrot.lane.b32.xlu1 %v4323_v58, %s11517_s20  ;;  %4353 = vrot.lane.b32.xlu0 %v4324_v25, %s11517_s20 }
0x136e   : > { %4357 = vrot.lane.b32.xlu0 %v4326_v43, %s11517_s20  ;;  %4355 = vrot.lane.b32.xlu1 %v4325_v31, %s11517_s20 }
0x1372   : > { %4361 = vrot.lane.b32.xlu0 %v4328_v26, %s11517_s20  ;;  %4359 = vrot.lane.b32.xlu1 %v4327_v8, %s11517_s20 }
0x1376   : > { %4365 = vrot.lane.b32.xlu0 %v4330_v17, %s11517_s20  ;;  %4363 = vrot.lane.b32.xlu1 %v4329_v51, %s11517_s20 }
0x137a   : > { %4404 = vperm.xlu0 %6087, %v11722_v7   ;;  %4400 = vperm.xlu1 %6086, %v11721_v52  }
0x137e   : > { %4408 = vperm.xlu1 %6086, %v11724_v60   ;;  %6088 = vset.pattern.permute.xlu0 %v6290_v23 }
0x1382   : > { %4412 = vperm.xlu1 %6086, %v11723_v0  }
0x1386   : > { %6089 = vset.pattern.permute.xlu1 %v6290_v23 }
0x13d4   : > { %v9679_v16 = vpop.permute.xlu1 %4343  ;;  %v9681_v32 = vpop.permute.xlu0 %4345 }
0x13d8   : > { %v9683_v33 = vpop.permute.xlu1 %4347  ;;  %v9685_v35 = vpop.permute.xlu0 %4349 }
0x13dc   : > { %v9687_v15 = vpop.permute.xlu1 %4351  ;;  %v9689_v59 = vpop.permute.xlu0 %4353 }
0x13e0   : > { %v9691_v53 = vpop.permute.xlu1 %4355  ;;  %v9693_v57 = vpop.permute.xlu0 %4357 }
0x13e1   : > { %11746 = vst [vmem:[#allocation34_spill] sm:$0xff] %v9691_v53 }
0x13e4   : > { %v9695_v41 = vpop.permute.xlu1 %4359  ;;  %v9697_v47 = vpop.permute.xlu0 %4361 }
0x13e8   : > { %v9699_v21 = vpop.permute.xlu1 %4363  ;;  %v9701_v5 = vpop.permute.xlu0 %4365 }
0x13f9   : > { %v4401_v44 = vpop.permute.xlu1 %4400  ;;  %v4405_v54 = vpop.permute.xlu0 %4404 }
0x13fa   : > { %v4415_v58 = vmul.f32 %v4401_v44, %v11738_v1  ;;  %v4416_v25 = vmul.f32 %v4401_v44, %v11739_v13  ;;  %v4417_v31 = vmul.f32 0.0, %v4401_v44  ;;  %v4418_v43 = vmul.f32 %v4405_v54, %v11740_v9 }
0x13fb   : > { %v4420_v2 = vmul.f32 0.0, %v4405_v54  ;;  %v4419_v26 = vmul.f32 %v4405_v54, %v11741_v18 }
0x13fc   : > { %4439 = vrot.lane.b32.xlu0 %v4415_v58, %s11600_s1  ;;  %4441 = vrot.lane.b32.xlu1 %v4416_v25, %s11600_s1 }
0x13fd   : > { %v4409_v8 = vpop.permute.xlu1 %4408 }
0x13fe   : > { %v4421_v51 = vmul.f32 %v4409_v8, %v11742_v10  ;;  %v4422_v17 = vmul.f32 %v4409_v8, %v11743_v42  ;;  %v4423_v44 = vmul.f32 0.0, %v4409_v8  ;;  %v11230_v8 = vmov 41  }
0x1400   : > { %4443 = vrot.lane.b32.xlu0 %v4417_v31, %s11600_s1  ;;  %4445 = vrot.lane.b32.xlu1 %v4418_v43, %s11600_s1  ;;  %v6291_v31 = vmov 13   ;;  %v6292_v43 = vmov 20  }
0x1401   : > { %v4413_v23 = vpop.permute.xlu1 %4412 }
0x1402   : > { %v4424_v58 = vmul.f32 %v4413_v23, %v11744_v14  ;;  %v4425_v25 = vmul.f32 %v4413_v23, %v11666_v37  ;;  %v4426_v54 = vmul.f32 0.0, %v4413_v23  ;;  %v6298_v23 = vmov 48  }
0x1404   : > { %4447 = vrot.lane.b32.xlu0 %v4419_v26, %s11600_s1  ;;  %4449 = vrot.lane.b32.xlu1 %v4420_v2, %s11600_s1  ;;  %v6293_v2 = vmov 27   ;;  %v6294_v26 = vmov 34  }
0x1408   : > { %4451 = vrot.lane.b32.xlu0 %v4421_v51, %s11600_s1  ;;  %4453 = vrot.lane.b32.xlu1 %v4422_v17, %s11600_s1  ;;  %v6296_v51 = vmov 40   ;;  %v6297_v17 = vmov 47  }
0x140c   : > { %4455 = vrot.lane.b32.xlu0 %v4423_v44, %s11600_s1  ;;  %4457 = vrot.lane.b32.xlu1 %v4424_v58, %s11600_s1  ;;  %v6299_v44 = vmov 6   ;;  %v11747_v58 = vmov 0  }
0x1410   : > { %4459 = vrot.lane.b32.xlu0 %v4425_v25, %s11600_s1  ;;  %4461 = vrot.lane.b32.xlu1 %v4426_v54, %s11600_s1 }
0x1414   : > { %4496 = vperm.xlu0 %6088, %v11721_v52   ;;  %4500 = vperm.xlu1 %6089, %v11722_v7  }
0x1418   : > { %4508 = vperm.xlu0 %6088, %v11723_v0   ;;  %4504 = vperm.xlu1 %6089, %v11724_v60  }
0x141c   : > { %6090 = vset.pattern.permute.xlu0 %v6291_v31  ;;  %6091 = vset.pattern.permute.xlu1 %v6291_v31 }
0x141d   : > { %4905 = vperm.xlu0 %6090, %v11721_v52  }
0x1421   : > { %6093 = vset.pattern.permute.xlu0 %v6292_v43 }
0x1422   : > { %5005 = vperm.xlu0 %6093, %v11722_v7  }
0x1426   : > { %6095 = vset.pattern.permute.xlu0 %v6293_v2 }
0x1427   : > { %5097 = vperm.xlu0 %6095, %v11721_v52  }
0x142b   : > { %6099 = vset.pattern.permute.xlu0 %v6294_v26 }
0x142c   : > { %5193 = vperm.xlu0 %6099, %v11721_v52  }
0x1430   : > { %6103 = vset.pattern.permute.xlu0 %v11230_v8 }
0x1431   : > { %5289 = vperm.xlu0 %6103, %v11721_v52  }
0x1435   : > { %6104 = vset.pattern.permute.xlu0 %v6296_v51 }
0x1436   : > { %4596 = vperm.xlu0 %6104, %v11722_v7  }
0x143a   : > { %4604 = vperm.xlu0 %6104, %v11723_v0  }
0x143e   : > { %6107 = vset.pattern.permute.xlu0 %v6297_v17 }
0x143f   : > { %4692 = vperm.xlu0 %6107, %v11722_v7  }
0x1443   : > { %4700 = vperm.xlu0 %6107, %v11723_v0  }
0x1447   : > { %6111 = vset.pattern.permute.xlu0 %v6298_v23 }
0x1448   : > { %5385 = vperm.xlu0 %6111, %v11721_v52  }
0x144c   : > { %5393 = vperm.xlu0 %6111, %v11724_v60  }
0x1450   : > { %6115 = vset.pattern.permute.xlu0 %v6299_v44 }
0x1451   : > { %4881 = vperm.xlu0 %6115, %v11722_v7  }
0x1455   : > { %6117 = vset.pattern.permute.xlu0 %v11747_v58 }
0x146e   : > { %v9741_v25 = vpop.permute.xlu0 %4439 }
0x1472   : > { %v9743_v54 = vpop.permute.xlu0 %4443 }
0x1476   : > { %v9745_v8 = vpop.permute.xlu0 %4447 }
0x147a   : > { %v9747_v62 = vpop.permute.xlu0 %4451 }
0x147b   : > { %11748 = vst [vmem:[#allocation64_spill] sm:$0xff] %v9747_v62 }
0x147e   : > { %v9749_v0 = vpop.permute.xlu0 %4455 }
0x147f   : > { %11749 = vst [vmem:[#allocation49_spill] sm:$0xff] %v9749_v0 }
0x1482   : > { %v9751_v38 = vpop.permute.xlu0 %4459 }
0x1483   : > { %11750 = vst [vmem:[#allocation48_spill] sm:$0xff] %v9751_v38 }
0x1493   : > { %v9753_v52 = vpop.permute.xlu0 %4496 }
0x1494   : > { %v4511_v60 = vmul.f32 %v9753_v52, %v11738_v1 }
0x1496   : > { %4535 = vrot.lane.b32.xlu1 %v4511_v60, %s11605_s18  ;;  %v6171_v60 = vld [vmem:[%s11024_s4 + $0x10] sm:$0xff] }
0x1497   : > { %v9758_v7 = vpop.permute.xlu0 %4508 }
0x149a   : > { %4909 = vperm.xlu1 %6091, %v6169_v50  }
0x149c   : > { %v4906_v24 = vpop.permute.xlu0 %4905 }
0x149d   : > { %v4921_v36 = vmul.f32 %v4906_v24, %v11738_v1 }
0x149e   : > { %6092 = vset.pattern.permute.xlu1 %v6292_v43 }
0x149f   : > { %4946 = vrot.lane.b32.xlu0 %v4921_v36, %s11509_s29  ;;  %5001 = vperm.xlu1 %6092, %v6170_v4   ;;  %v11751_v36 = vmov 41  }
0x14a1   : > { %v5006_v6 = vpop.permute.xlu0 %5005 }
0x14a3   : > { %6094 = vset.pattern.permute.xlu1 %v6291_v31  ;;  %v9775_v31 = vpop.permute.xlu1 %4441 }
0x14a4   : > { %4913 = vperm.xlu1 %6094, %v6171_v60  }
0x14a8   : > { %4917 = vperm.xlu1 %6094, %v6172_v46  }
0x14ac   : > { %6096 = vset.pattern.permute.xlu1 %v6293_v2 }
0x14ad   : > { %5101 = vperm.xlu1 %6096, %v6169_v50  }
0x14b1   : > { %6097 = vset.pattern.permute.xlu1 %v6296_v51 }
0x14b2   : > { %4592 = vperm.xlu1 %6097, %v6170_v4  }
0x14b6   : > { %6098 = vset.pattern.permute.xlu1 %v6292_v43  ;;  %v9777_v43 = vpop.permute.xlu1 %4445 }
0x14b7   : > { %5009 = vperm.xlu1 %6098, %v6171_v60   ;;  %11752 = vst [vmem:[#allocation32_spill] sm:$0xff] %v9777_v43 }
0x14bb   : > { %5013 = vperm.xlu1 %6098, %v6172_v46  }
0x14bf   : > { %6100 = vset.pattern.permute.xlu1 %v6294_v26 }
0x14c0   : > { %5197 = vperm.xlu1 %6100, %v6169_v50  }
0x14c4   : > { %6101 = vset.pattern.permute.xlu1 %v6297_v17 }
0x14c5   : > { %4688 = vperm.xlu1 %6101, %v6170_v4  }
0x14c9   : > { %6102 = vset.pattern.permute.xlu1 %v6293_v2  ;;  %v9780_v2 = vpop.permute.xlu1 %4449 }
0x14ca   : > { %5105 = vperm.xlu1 %6102, %v6171_v60   ;;  %11753 = vst [vmem:[#allocation35_spill] sm:$0xff] %v9780_v2 }
0x14ce   : > { %5109 = vperm.xlu1 %6102, %v6172_v46  }
0x14d2   : > { %6105 = vset.pattern.permute.xlu1 %v11751_v36 }
0x14d3   : > { %5293 = vperm.xlu1 %6105, %v6169_v50  }
0x14d7   : > { %6106 = vset.pattern.permute.xlu1 %v6296_v51  ;;  %v9782_v51 = vpop.permute.xlu1 %4453 }
0x14d8   : > { %4600 = vperm.xlu1 %6106, %v6171_v60   ;;  %11754 = vst [vmem:[#allocation69_spill] sm:$0xff] %v9782_v51 }
0x14dc   : > { %6108 = vset.pattern.permute.xlu1 %v6294_v26  ;;  %v9784_v26 = vpop.permute.xlu1 %4457 }
0x14dd   : > { %5201 = vperm.xlu1 %6108, %v6171_v60   ;;  %11755 = vst [vmem:[#allocation94_spill] sm:$0xff] %v9784_v26 }
0x14e1   : > { %5205 = vperm.xlu1 %6108, %v6172_v46  }
0x14e5   : > { %6109 = vset.pattern.permute.xlu1 %v6298_v23 }
0x14e6   : > { %5389 = vperm.xlu1 %6109, %v6169_v50   ;;  %v9786_v50 = vpop.permute.xlu1 %4461 }
0x14e7   : > { %11756 = vst [vmem:[#allocation77_spill] sm:$0xff] %v9786_v50 }
0x14ea   : > { %6110 = vset.pattern.permute.xlu1 %v6297_v17  ;;  %v4922_v17 = vmul.f32 %v4906_v24, %v11739_v13 }
0x14eb   : > { %4696 = vperm.xlu1 %6110, %v6171_v60  }
0x14ef   : > { %6112 = vset.pattern.permute.xlu1 %v11751_v36  ;;  %v4501_v36 = vpop.permute.xlu1 %4500 }
0x14f0   : > { %5297 = vperm.xlu1 %6112, %v6171_v60  }
0x14f3   : > { %v9791_v30 = vpop.permute.xlu1 %4504 }
0x14f4   : > { %5301 = vperm.xlu1 %6112, %v6172_v46  }
0x14f8   : > { %6113 = vset.pattern.permute.xlu1 %v6298_v23 }
0x14f9   : > { %5397 = vperm.xlu1 %6113, %v6172_v46  }
0x14fd   : > { %6114 = vset.pattern.permute.xlu1 %v6299_v44 }
0x14fe   : > { %4877 = vperm.xlu1 %6114, %v6170_v4  }
0x1502   : > { %4885 = vperm.xlu1 %6114, %v6171_v60  }
0x1506   : > { %4889 = vperm.xlu1 %6114, %v6172_v46   ;;  %v4920_v46 = vmul.f32 0.0, %v4906_v24  ;;  %v5021_v24 = vmul.f32 %v5006_v6, %v11741_v18 }
0x1508   : > { %v9793_v23 = vpop.permute.xlu1 %4535 }
0x1509   : > { %11757 = vst [vmem:[#allocation80_spill] sm:$0xff] %v9793_v23 }
0x150a   : > { %4948 = vrot.lane.b32.xlu1 %v4922_v17, %s11509_s29 }
0x150b   : > { %6116 = vset.pattern.permute.xlu1 %v11747_v58 }
0x1519   : > { %v4910_v56 = vpop.permute.xlu1 %4909 }
0x151a   : > { %v4924_v4 = vmul.f32 %v4910_v56, %v11740_v9  ;;  %v4925_v44 = vmul.f32 %v4910_v56, %v11741_v18  ;;  %v4923_v60 = vmul.f32 0.0, %v4910_v56 }
0x151c   : > { %4954 = vrot.lane.b32.xlu1 %v4925_v44, %s11509_s29  ;;  %4952 = vrot.lane.b32.xlu0 %v4924_v4, %s11509_s29  ;;  %v5020_v44 = vmul.f32 %v5006_v6, %v11740_v9  ;;  %v5019_v4 = vmul.f32 0.0, %v5006_v6  ;;  %v4515_v6 = vmul.f32 %v4501_v36, %v11741_v18 }
0x151e   : > { %v5002_v61 = vpop.permute.xlu1 %5001 }
0x151f   : > { %v5017_v58 = vmul.f32 %v5002_v61, %v11738_v1  ;;  %v5018_v17 = vmul.f32 %v5002_v61, %v11739_v13 }
0x1520   : > { %4944 = vrot.lane.b32.xlu0 %v4920_v46, %s11509_s29  ;;  %4950 = vrot.lane.b32.xlu1 %v4923_v60, %s11509_s29  ;;  %v5016_v46 = vmul.f32 0.0, %v5002_v61  ;;  %v4516_v61 = vmul.f32 0.0, %v4501_v36 }
0x1523   : > { %v4914_v48 = vpop.permute.xlu1 %4913 }
0x1524   : > { %5044 = vrot.lane.b32.xlu1 %v5018_v17, %s11517_s20  ;;  %5042 = vrot.lane.b32.xlu0 %v5017_v58, %s11517_s20  ;;  %v4512_v17 = vmul.f32 %v9753_v52, %v11739_v13  ;;  %v4513_v58 = vmul.f32 0.0, %v9753_v52  ;;  %v4928_v52 = vmul.f32 %v4914_v48, %v11743_v42 }
0x1527   : > { %v4918_v56 = vpop.permute.xlu1 %4917 }
0x1528   : > { %5050 = vrot.lane.b32.xlu1 %v5021_v24, %s11517_s20  ;;  %5048 = vrot.lane.b32.xlu0 %v5020_v44, %s11517_s20  ;;  %v4514_v24 = vmul.f32 %v4501_v36, %v11740_v9  ;;  %v4927_v44 = vmul.f32 %v4914_v48, %v11742_v10 }
0x152c   : > { %5046 = vrot.lane.b32.xlu1 %v5019_v4, %s11517_s20  ;;  %5040 = vrot.lane.b32.xlu0 %v5016_v46, %s11517_s20  ;;  %v5102_v60 = vpop.permute.xlu1 %5101  ;;  %v4930_v46 = vmul.f32 %v4918_v56, %v11744_v14 }
0x152d   : > { %v5117_v50 = vmul.f32 0.0, %v5102_v60 }
0x1530   : > { %4539 = vrot.lane.b32.xlu1 %v4513_v58, %s11605_s18  ;;  %4537 = vrot.lane.b32.xlu0 %v4512_v17, %s11605_s18  ;;  %v5098_v58 = vpop.permute.xlu0 %5097 }
0x1531   : > { %v4593_v53 = vpop.permute.xlu1 %4592  ;;  %v5112_v36 = vmul.f32 %v5098_v58, %v11738_v1  ;;  %v5114_v27 = vmul.f32 0.0, %v5098_v58 }
0x1532   : > { %v4607_v26 = vmul.f32 %v4593_v53, %v11738_v1 }
0x1534   : > { %4543 = vrot.lane.b32.xlu1 %v4515_v6, %s11605_s18  ;;  %4541 = vrot.lane.b32.xlu0 %v4514_v24, %s11605_s18  ;;  %v4931_v24 = vmul.f32 %v4918_v56, %v11666_v37  ;;  %v5194_v23 = vpop.permute.xlu0 %5193 }
0x1535   : > { %v5210_v38 = vmul.f32 0.0, %v5194_v23 }
0x1536   : > { %v9821_v4 = vpop.permute.xlu1 %5009 }
0x1538   : > { %4545 = vrot.lane.b32.xlu0 %v4516_v61, %s11605_s18  ;;  %4958 = vrot.lane.b32.xlu1 %v4927_v44, %s11509_s29  ;;  %v5113_v61 = vmul.f32 %v5098_v58, %v11739_v13 }
0x153a   : > { %v9827_v17 = vpop.permute.xlu1 %5013 }
0x153c   : > { %4960 = vrot.lane.b32.xlu0 %v4928_v52, %s11509_s29  ;;  %4964 = vrot.lane.b32.xlu1 %v4930_v46, %s11509_s29  ;;  %v5115_v52 = vmul.f32 %v5102_v60, %v11740_v9  ;;  %v5116_v46 = vmul.f32 %v5102_v60, %v11741_v18 }
0x153f   : > { %v5198_v6 = vpop.permute.xlu1 %5197 }
0x1540   : > { %4966 = vrot.lane.b32.xlu0 %v4931_v24, %s11509_s29  ;;  %5136 = vrot.lane.b32.xlu1 %v5112_v36, %s11600_s1  ;;  %v4926_v36 = vmul.f32 0.0, %v4914_v48 }
0x1544   : > { %5138 = vrot.lane.b32.xlu0 %v5113_v61, %s11600_s1  ;;  %5140 = vrot.lane.b32.xlu1 %v5114_v27, %s11600_s1  ;;  %v9838_v44 = vpop.permute.xlu1 %4688  ;;  %v9848_v27 = vpop.permute.xlu0 %5289  ;;  %v4929_v61 = vmul.f32 0.0, %v4918_v56 }
0x1548   : > { %5144 = vrot.lane.b32.xlu1 %v5116_v46, %s11600_s1  ;;  %5142 = vrot.lane.b32.xlu0 %v5115_v52, %s11600_s1  ;;  %v4608_v52 = vmul.f32 %v4593_v53, %v11739_v13  ;;  %v4609_v46 = vmul.f32 0.0, %v4593_v53  ;;  %v4597_v60 = vpop.permute.xlu0 %4596  ;;  %v5023_v53 = vmul.f32 %v9821_v4, %v11742_v10 }
0x1549   : > { %v9844_v24 = vpop.permute.xlu1 %5105  ;;  %v4611_v56 = vmul.f32 %v4597_v60, %v11741_v18 }
0x154c   : > { %4956 = vrot.lane.b32.xlu1 %v4926_v36, %s11509_s29  ;;  %5146 = vrot.lane.b32.xlu0 %v5117_v50, %s11600_s1  ;;  %v4610_v50 = vmul.f32 %v4597_v60, %v11740_v9  ;;  %v9888_v0 = vpop.permute.xlu0 %4604 }
0x154d   : > { %v9850_v58 = vpop.permute.xlu1 %5109 }
0x1550   : > { %4962 = vrot.lane.b32.xlu0 %v4929_v61, %s11509_s29  ;;  %4631 = vrot.lane.b32.xlu1 %v4607_v26, %s11531_s19  ;;  %v4612_v26 = vmul.f32 0.0, %v4597_v60 }
0x1552   : > { %v9856_v48 = vpop.permute.xlu1 %5293 }
0x1554   : > { %4633 = vrot.lane.b32.xlu0 %v4608_v52, %s11531_s19  ;;  %4635 = vrot.lane.b32.xlu1 %v4609_v46, %s11531_s19  ;;  %v5024_v52 = vmul.f32 %v9821_v4, %v11743_v42  ;;  %v5026_v46 = vmul.f32 %v9827_v17, %v11744_v14 }
0x1557   : > { %v9862_v36 = vpop.permute.xlu1 %4600 }
0x1558   : > { %4637 = vrot.lane.b32.xlu0 %v4610_v50, %s11531_s19  ;;  %4639 = vrot.lane.b32.xlu1 %v4611_v56, %s11531_s19  ;;  %v5208_v50 = vmul.f32 %v5194_v23, %v11738_v1  ;;  %v5027_v56 = vmul.f32 %v9827_v17, %v11666_v37 }
0x155c   : > { %4641 = vrot.lane.b32.xlu0 %v4612_v26, %s11531_s19  ;;  %5054 = vrot.lane.b32.xlu1 %v5023_v53, %s11517_s20  ;;  %v9870_v61 = vpop.permute.xlu1 %5201  ;;  %v5209_v53 = vmul.f32 %v5194_v23, %v11739_v13  ;;  %v5213_v23 = vmul.f32 0.0, %v5198_v6 }
0x1560   : > { %5056 = vrot.lane.b32.xlu0 %v5024_v52, %s11517_s20  ;;  %5060 = vrot.lane.b32.xlu1 %v5026_v46, %s11517_s20  ;;  %v9878_v60 = vpop.permute.xlu1 %5205  ;;  %v5211_v52 = vmul.f32 %v5198_v6, %v11740_v9  ;;  %v5212_v46 = vmul.f32 %v5198_v6, %v11741_v18  ;;  %v4519_v6 = vmul.f32 0.0, %v9791_v30 }
0x1564   : > { %5062 = vrot.lane.b32.xlu0 %v5027_v56, %s11517_s20  ;;  %5232 = vrot.lane.b32.xlu1 %v5208_v50, %s11605_s18  ;;  %v4693_v50 = vpop.permute.xlu0 %4692  ;;  %v5022_v56 = vmul.f32 0.0, %v9821_v4  ;;  %v4518_v4 = vmul.f32 %v9791_v30, %v11743_v42 }
0x1565   : > { %v9885_v26 = vpop.permute.xlu1 %5389  ;;  %v4707_v43 = vmul.f32 %v4693_v50, %v11741_v18 }
0x1568   : > { %5234 = vrot.lane.b32.xlu0 %v5209_v53, %s11605_s18  ;;  %5236 = vrot.lane.b32.xlu1 %v5210_v38, %s11605_s18  ;;  %v4517_v38 = vmul.f32 %v9791_v30, %v11742_v10  ;;  %v5025_v53 = vmul.f32 0.0, %v9827_v17  ;;  %v4520_v17 = vmul.f32 %v9758_v7, %v11744_v14  ;;  %v4522_v30 = vmul.f32 0.0, %v9758_v7 }
0x156a   : > { %v9894_v62 = vpop.permute.xlu1 %4696 }
0x156c   : > { %5240 = vrot.lane.b32.xlu1 %v5212_v46, %s11605_s18  ;;  %5238 = vrot.lane.b32.xlu0 %v5211_v52, %s11605_s18  ;;  %v9908_v46 = vpop.permute.xlu0 %4700 }
0x156f   : > { %v9899_v51 = vpop.permute.xlu1 %5297 }
0x1570   : > { %5052 = vrot.lane.b32.xlu1 %v5022_v56, %s11517_s20  ;;  %5242 = vrot.lane.b32.xlu0 %v5213_v23, %s11605_s18  ;;  %v4521_v56 = vmul.f32 %v9758_v7, %v11666_v37  ;;  %v9923_v23 = vpop.permute.xlu0 %5385 }
0x1573   : > { %v9906_v2 = vpop.permute.xlu1 %5301 }
0x1574   : > { %4547 = vrot.lane.b32.xlu1 %v4517_v38, %s11605_s18  ;;  %5058 = vrot.lane.b32.xlu0 %v5025_v53, %s11517_s20  ;;  %v4703_v53 = vmul.f32 %v9838_v44, %v11738_v1 }
0x1578   : > { %4551 = vrot.lane.b32.xlu1 %v4519_v6, %s11605_s18  ;;  %4549 = vrot.lane.b32.xlu0 %v4518_v4, %s11605_s18  ;;  %v9917_v52 = vpop.permute.xlu1 %5397  ;;  %v9932_v4 = vpop.permute.xlu0 %5393 }
0x157c   : > { %4555 = vrot.lane.b32.xlu1 %v4521_v56, %s11605_s18  ;;  %4553 = vrot.lane.b32.xlu0 %v4520_v17, %s11605_s18  ;;  %v4704_v56 = vmul.f32 %v9838_v44, %v11739_v13  ;;  %v4705_v17 = vmul.f32 0.0, %v9838_v44 }
0x157d   : > { %v9927_v38 = vpop.permute.xlu1 %4877 }
0x157e   : > { %11758 = vst [vmem:[#allocation25_spill] sm:$0xff] %v9927_v38  ;;  %v4706_v38 = vmul.f32 %v4693_v50, %v11740_v9 }
0x1580   : > { %4557 = vrot.lane.b32.xlu0 %v4522_v30, %s11605_s18  ;;  %4727 = vrot.lane.b32.xlu1 %v4703_v53, %s11444_s26  ;;  %v9947_v30 = vpop.permute.xlu0 %4881 }
0x1581   : > { %v9936_v6 = vpop.permute.xlu1 %4885  ;;  %11760 = vst [vmem:[#allocation21_spill] sm:$0xff] %v9947_v30  ;;  %v5120_v30 = vmul.f32 0.0, %v9844_v24 }
0x1582   : > { %11759 = vst [vmem:[#allocation61_spill] sm:$0xff] %v9936_v6  ;;  %v4708_v6 = vmul.f32 0.0, %v4693_v50  ;;  %v5121_v50 = vmul.f32 %v9850_v58, %v11744_v14 }
0x1584   : > { %4729 = vrot.lane.b32.xlu0 %v4704_v56, %s11444_s26  ;;  %4731 = vrot.lane.b32.xlu1 %v4705_v17, %s11444_s26  ;;  %v9953_v44 = vpop.permute.xlu0 %4946  ;;  %v5118_v56 = vmul.f32 %v9844_v24, %v11742_v10  ;;  %v5119_v17 = vmul.f32 %v9844_v24, %v11743_v42  ;;  %v5304_v24 = vmul.f32 %v9848_v27, %v11738_v1 }
0x1585   : > { %v9943_v7 = vpop.permute.xlu1 %4889  ;;  %11762 = vst [vmem:[#allocation96_spill] sm:$0xff] %v9953_v44 }
0x1588   : > { %4733 = vrot.lane.b32.xlu0 %v4706_v38, %s11444_s26  ;;  %4735 = vrot.lane.b32.xlu1 %v4707_v43, %s11444_s26 }
0x1589   : > { %v9951_v53 = vpop.permute.xlu1 %4948 }
0x158a   : > { %11761 = vst [vmem:[#allocation63_spill] sm:$0xff] %v9951_v53 }
0x158c   : > { %4737 = vrot.lane.b32.xlu0 %v4708_v6, %s11444_s26  ;;  %5148 = vrot.lane.b32.xlu1 %v5118_v56, %s11600_s1  ;;  %v5122_v6 = vmul.f32 %v9850_v58, %v11666_v37 }
0x158e   : > { %v9962_v38 = vpop.permute.xlu0 %4952  ;;  %v9964_v43 = vpop.permute.xlu1 %4954 }
0x158f   : > { %11763 = vst [vmem:[#allocation97_spill] sm:$0xff] %v9962_v38  ;;  %11764 = vst [vmem:[#allocation98_spill] sm:$0xff] %v9964_v43 }
0x1590   : > { %5150 = vrot.lane.b32.xlu0 %v5119_v17, %s11600_s1  ;;  %5152 = vrot.lane.b32.xlu1 %v5120_v30, %s11600_s1  ;;  %v5123_v17 = vmul.f32 0.0, %v9850_v58  ;;  %v5307_v58 = vmul.f32 %v9856_v48, %v11740_v9 }
0x1592   : > { %v9972_v56 = vpop.permute.xlu0 %4944  ;;  %v9974_v44 = vpop.permute.xlu1 %4950 }
0x1593   : > { %11765 = vst [vmem:[#allocation99_spill] sm:$0xff] %v9972_v56  ;;  %11766 = vst [vmem:[#allocation100_spill] sm:$0xff] %v9974_v44  ;;  %v5305_v44 = vmul.f32 %v9848_v27, %v11739_v13 }
0x1594   : > { %5156 = vrot.lane.b32.xlu1 %v5122_v6, %s11600_s1  ;;  %5154 = vrot.lane.b32.xlu0 %v5121_v50, %s11600_s1  ;;  %v5306_v6 = vmul.f32 0.0, %v9848_v27  ;;  %v5309_v27 = vmul.f32 0.0, %v9856_v48 }
0x1596   : > { %v9981_v30 = vpop.permute.xlu0 %5042  ;;  %v9983_v38 = vpop.permute.xlu1 %5044 }
0x1597   : > { %11767 = vst [vmem:[#allocation101_spill] sm:$0xff] %v9981_v30  ;;  %11768 = vst [vmem:[#allocation102_spill] sm:$0xff] %v9983_v38  ;;  %v4618_v30 = vmul.f32 0.0, %v9888_v0 }
0x1598   : > { %5328 = vrot.lane.b32.xlu1 %v5304_v24, %s11531_s19  ;;  %5158 = vrot.lane.b32.xlu0 %v5123_v17, %s11600_s1  ;;  %v5308_v24 = vmul.f32 %v9856_v48, %v11741_v18  ;;  %v5891_v48 = vld [vmem:[%s11026_s6 + $0x5] ss:$8 sm:$0x3]  ;;  %s6300_s1 = smov 82  }
0x159a   : > { %v9990_v56 = vpop.permute.xlu0 %5048  ;;  %v9992_v50 = vpop.permute.xlu1 %5050 }
0x159b   : > { %11769 = vst [vmem:[#allocation103_spill] sm:$0xff] %v9990_v56  ;;  %11770 = vst [vmem:[#allocation104_spill] sm:$0xff] %v9992_v50 }
0x159c   : > { %5332 = vrot.lane.b32.xlu1 %v5306_v6, %s11531_s19  ;;  %5330 = vrot.lane.b32.xlu0 %v5305_v44, %s11531_s19  ;;  %v4613_v6 = vmul.f32 %v9862_v36, %v11742_v10 }
0x159e   : > { %v10000_v17 = vpop.permute.xlu0 %5040  ;;  %v10002_v43 = vpop.permute.xlu1 %5046 }
0x159f   : > { %11771 = vst [vmem:[#allocation105_spill] sm:$0xff] %v10000_v17  ;;  %11772 = vst [vmem:[#allocation106_spill] sm:$0xff] %v10002_v43  ;;  %v4614_v17 = vmul.f32 %v9862_v36, %v11743_v42 }
0x15a0   : > { %5336 = vrot.lane.b32.xlu1 %v5308_v24, %s11531_s19  ;;  %5334 = vrot.lane.b32.xlu0 %v5307_v58, %s11531_s19  ;;  %v4615_v24 = vmul.f32 0.0, %v9862_v36 }
0x15a2   : > { %v10009_v44 = vpop.permute.xlu0 %4537  ;;  %v10011_v56 = vpop.permute.xlu1 %4539 }
0x15a4   : > { %5338 = vrot.lane.b32.xlu0 %v5309_v27, %s11531_s19  ;;  %4643 = vrot.lane.b32.xlu1 %v4613_v6, %s11531_s19  ;;  %v4616_v27 = vmul.f32 %v9888_v0, %v11744_v14  ;;  %v4617_v6 = vmul.f32 %v9888_v0, %v11666_v37  ;;  %v5215_v0 = vmul.f32 %v9870_v61, %v11743_v42 }
0x15a6   : > { %v10018_v43 = vpop.permute.xlu0 %4541  ;;  %v10020_v58 = vpop.permute.xlu1 %4543 }
0x15a7   : > { %11773 = vst [vmem:[#allocation107_spill] sm:$0xff] %v10018_v43  ;;  %v11778_v43 = vld [vmem:[#allocation14_spill] sm:$0xff] }
0x15a8   : > { %4645 = vrot.lane.b32.xlu0 %v4614_v17, %s11531_s19  ;;  %4647 = vrot.lane.b32.xlu1 %v4615_v24, %s11531_s19  ;;  %v11776_v17 = vld [vmem:[#allocation13_spill] sm:$0xff] }
0x15a9   : > { %v4787_v24 = vrot.slane %v5891_v48, %v11776_v17 }
0x15aa   : > { %v10031_v50 = vpop.permute.xlu0 %4545  ;;  %v10033_v36 = vpop.permute.xlu1 %4958 }
0x15ab   : > { %11774 = vst [vmem:[#allocation108_spill] sm:$0xff] %v10031_v50  ;;  %11775 = vst [vmem:[#allocation109_spill] sm:$0xff] %v10033_v36  ;;  %v4791_v50 = vrot.slane %v5891_v48, %v11778_v43  ;;  %v5214_v36 = vmul.f32 %v9870_v61, %v11742_v10  ;;  %v5217_v48 = vmul.f32 %v9878_v60, %v11744_v14 }
0x15ac   : > { %4649 = vrot.lane.b32.xlu0 %v4616_v27, %s11531_s19  ;;  %4651 = vrot.lane.b32.xlu1 %v4617_v6, %s11531_s19 }
0x15ae   : > { %v10039_v38 = vpop.permute.xlu0 %4960  ;;  %v10041_v53 = vpop.permute.xlu1 %4964 }
0x15af   : > { %11777 = vst [vmem:[#allocation13_spill] sm:$0xff] %v10041_v53  ;;  %v5216_v53 = vmul.f32 0.0, %v9870_v61  ;;  %v5400_v61 = vmul.f32 %v9923_v23, %v11738_v1 }
0x15b0   : > { %4653 = vrot.lane.b32.xlu0 %v4618_v30, %s11531_s19  ;;  %4792 = vrot.lane.b32.xlu1 %v4787_v24, %s6300_s1 }
0x15b2   : > { %v10047_v27 = vpop.permute.xlu0 %4966  ;;  %v10049_v6 = vpop.permute.xlu1 %5136 }
0x15b3   : > { %11779 = vst [vmem:[#allocation14_spill] sm:$0xff] %v10047_v27  ;;  %11780 = vst [vmem:[#allocation110_spill] sm:$0xff] %v10049_v6 }
0x15b4   : > { %4794 = vrot.lane.b32.xlu0 %v4791_v50, %s6300_s1  ;;  %5244 = vrot.lane.b32.xlu1 %v5214_v36, %s11605_s18  ;;  %v5218_v50 = vmul.f32 %v9878_v60, %v11666_v37  ;;  %s10977_s1 = scalar_lea.hbm %s11032_s12, %s5901_s28 }
0x15b6   : > { %v10055_v30 = vpop.permute.xlu0 %5138  ;;  %v10057_v24 = vpop.permute.xlu1 %5140 }
0x15b7   : > { %11781 = vst [vmem:[#allocation111_spill] sm:$0xff] %v10055_v30  ;;  %11782 = vst [vmem:[#allocation112_spill] sm:$0xff] %v10057_v24 }
0x15b8   : > { %5246 = vrot.lane.b32.xlu0 %v5215_v0, %s11605_s18  ;;  %5248 = vrot.lane.b32.xlu1 %v5216_v53, %s11605_s18  ;;  %v5219_v0 = vmul.f32 0.0, %v9878_v60  ;;  %v5403_v60 = vmul.f32 %v9885_v26, %v11740_v9 }
0x15ba   : > { %v10065_v36 = vpop.permute.xlu0 %5142  ;;  %v10067_v6 = vpop.permute.xlu1 %5144 }
0x15bb   : > { %11783 = vst [vmem:[#allocation113_spill] sm:$0xff] %v10065_v36  ;;  %11784 = vst [vmem:[#allocation114_spill] sm:$0xff] %v10067_v6  ;;  %v5401_v36 = vmul.f32 %v9923_v23, %v11739_v13 }
0x15bc   : > { %5250 = vrot.lane.b32.xlu0 %v5217_v48, %s11605_s18  ;;  %5252 = vrot.lane.b32.xlu1 %v5218_v50, %s11605_s18  ;;  %v5402_v48 = vmul.f32 0.0, %v9923_v23  ;;  %v5405_v23 = vmul.f32 0.0, %v9885_v26 }
0x15be   : > { %v10074_v53 = vpop.permute.xlu0 %5146  ;;  %v10076_v30 = vpop.permute.xlu1 %4956 }
0x15bf   : > { %11785 = vst [vmem:[#allocation115_spill] sm:$0xff] %v10074_v53 }
0x15c0   : > { %5254 = vrot.lane.b32.xlu0 %v5219_v0, %s11605_s18  ;;  %5424 = vrot.lane.b32.xlu1 %v5400_v61, %s11444_s26  ;;  %v5404_v0 = vmul.f32 %v9885_v26, %v11741_v18  ;;  %v4712_v26 = vmul.f32 %v9908_v46, %v11744_v14  ;;  %s6173_s18 = scalar_lea.vmem %s10972_s15, 512 }
0x15c1   : > { %p6174_p11 = scmp.ne.s32.totalorder %s10972_s15, %s6173_s18 }
0x15c2   : > { %v10083_v6 = vpop.permute.xlu0 %4962  ;;  %v10085_v50 = vpop.permute.xlu1 %4631 }
0x15c3   : > { %11786 = vst [vmem:[#allocation116_spill] sm:$0xff] %v10083_v6  ;;  %11787 = vst [vmem:[#allocation117_spill] sm:$0xff] %v10085_v50  ;;  %v4710_v6 = vmul.f32 %v9894_v62, %v11743_v42  ;;  %p6175_p12 = pnand %p6174_p11, %p6410_p5 }
0x15c4   : > { %5426 = vrot.lane.b32.xlu0 %v5401_v36, %s11444_s26  ;;  %5428 = vrot.lane.b32.xlu1 %v5402_v48, %s11444_s26  ;;  %v4709_v36 = vmul.f32 %v9894_v62, %v11742_v10 }
0x15c5   : > { %p6176_p13 = pneg %p6175_p12 }
0x15c6   : > { %v10093_v61 = vpop.permute.xlu0 %4633  ;;  %v10095_v53 = vpop.permute.xlu1 %4635 }
0x15c8   : > { %5430 = vrot.lane.b32.xlu0 %v5403_v60, %s11444_s26  ;;  %5432 = vrot.lane.b32.xlu1 %v5404_v0, %s11444_s26  ;;  %v4711_v60 = vmul.f32 0.0, %v9894_v62  ;;  %v4714_v62 = vmul.f32 0.0, %v9908_v46 }
0x15ca   : > { %v10102_v48 = vpop.permute.xlu0 %4637  ;;  %v10104_v24 = vpop.permute.xlu1 %4639 }
0x15cb   : > { %11788 = vst [vmem:[#allocation118_spill] sm:$0xff] %v10102_v48  ;;  %11789 = vst [vmem:[#allocation119_spill] sm:$0xff] %v10104_v24 }
0x15cc   : > { %5434 = vrot.lane.b32.xlu0 %v5405_v23, %s11444_s26  ;;  %4739 = vrot.lane.b32.xlu1 %v4709_v36, %s11444_s26  ;;  %v4713_v23 = vmul.f32 %v9908_v46, %v11666_v37  ;;  %v5892_v46 = vld [vmem:[%s11026_s6 + $0x6] ss:$8 sm:$0x3] }
0x15ce   : > { %v10111_v50 = vpop.permute.xlu0 %4641  ;;  %v10113_v0 = vpop.permute.xlu1 %5054 }
0x15cf   : > { %11790 = vst [vmem:[#allocation120_spill] sm:$0xff] %v10111_v50  ;;  %11791 = vst [vmem:[#allocation121_spill] sm:$0xff] %v10113_v0 }
0x15d0   : > { %4741 = vrot.lane.b32.xlu0 %v4710_v6, %s11444_s26  ;;  %4743 = vrot.lane.b32.xlu1 %v4711_v60, %s11444_s26  ;;  %v5310_v6 = vmul.f32 %v9899_v51, %v11742_v10 }
0x15d2   : > { %v10121_v36 = vpop.permute.xlu0 %5056  ;;  %v10123_v48 = vpop.permute.xlu1 %5060 }
0x15d3   : > { %11792 = vst [vmem:[#allocation122_spill] sm:$0xff] %v10121_v36  ;;  %11793 = vst [vmem:[#allocation123_spill] sm:$0xff] %v10123_v48  ;;  %v5311_v48 = vmul.f32 %v9899_v51, %v11743_v42 }
0x15d4   : > { %4745 = vrot.lane.b32.xlu0 %v4712_v26, %s11444_s26  ;;  %4747 = vrot.lane.b32.xlu1 %v4713_v23, %s11444_s26  ;;  %v5312_v26 = vmul.f32 0.0, %v9899_v51 }
0x15d6   : > { %v10130_v60 = vpop.permute.xlu0 %5062  ;;  %v10132_v50 = vpop.permute.xlu1 %5232 }
0x15d7   : > { %11794 = vst [vmem:[#allocation124_spill] sm:$0xff] %v10130_v60  ;;  %11795 = vst [vmem:[#allocation125_spill] sm:$0xff] %v10132_v50 }
0x15d8   : > { %4749 = vrot.lane.b32.xlu0 %v4714_v62, %s11444_s26  ;;  %5340 = vrot.lane.b32.xlu1 %v5310_v6, %s11531_s19  ;;  %v5313_v62 = vmul.f32 %v9906_v2, %v11744_v14  ;;  %v5314_v6 = vmul.f32 %v9906_v2, %v11666_v37 }
0x15da   : > { %v10139_v36 = vpop.permute.xlu0 %5234  ;;  %v10141_v23 = vpop.permute.xlu1 %5236 }
0x15db   : > { %11796 = vst [vmem:[#allocation126_spill] sm:$0xff] %v10139_v36  ;;  %11797 = vst [vmem:[#allocation127_spill] sm:$0xff] %v10141_v23 }
0x15dc   : > { %5342 = vrot.lane.b32.xlu0 %v5311_v48, %s11531_s19  ;;  %5344 = vrot.lane.b32.xlu1 %v5312_v26, %s11531_s19  ;;  %v5484_v48 = vrot.slane %v5892_v46, %v11776_v17  ;;  %v5315_v26 = vmul.f32 0.0, %v9906_v2  ;;  %v5407_v2 = vmul.f32 %v9932_v4, %v11743_v42  ;;  %v5408_v17 = vmul.f32 0.0, %v9932_v4 }
0x15de   : > { %v10152_v50 = vpop.permute.xlu0 %5238  ;;  %v10154_v51 = vpop.permute.xlu1 %5240 }
0x15df   : > { %11798 = vst [vmem:[#allocation128_spill] sm:$0xff] %v10152_v50  ;;  %11799 = vst [vmem:[#allocation129_spill] sm:$0xff] %v10154_v51  ;;  %v5488_v50 = vrot.slane %v5892_v46, %v11778_v43  ;;  %v5406_v51 = vmul.f32 %v9932_v4, %v11742_v10  ;;  %v5409_v43 = vmul.f32 %v9917_v52, %v11744_v14 }
0x15e0   : > { %5346 = vrot.lane.b32.xlu0 %v5313_v62, %s11531_s19  ;;  %5348 = vrot.lane.b32.xlu1 %v5314_v6, %s11531_s19 }
0x15e2   : > { %v10160_v36 = vpop.permute.xlu0 %5242  ;;  %v10162_v23 = vpop.permute.xlu1 %5052 }
0x15e3   : > { %11800 = vst [vmem:[#allocation130_spill] sm:$0xff] %v10160_v36  ;;  %11801 = vst [vmem:[#allocation131_spill] sm:$0xff] %v10162_v23 }
0x15e4   : > { %5350 = vrot.lane.b32.xlu0 %v5315_v26, %s11531_s19  ;;  %5489 = vrot.lane.b32.xlu1 %v5484_v48, %s6301_s16  ;;  %s6303_s19 = smov 45  }
0x15e6   : > { %v10168_v62 = vpop.permute.xlu0 %5058  ;;  %v10170_v6 = vpop.permute.xlu1 %4547 }
0x15e7   : > { %11802 = vst [vmem:[#allocation132_spill] sm:$0xff] %v10168_v62 }
0x15e8   : > { %5491 = vrot.lane.b32.xlu0 %v5488_v50, %s6301_s16  ;;  %5436 = vrot.lane.b32.xlu1 %v5406_v51, %s11444_s26  ;;  %v5410_v50 = vmul.f32 %v9917_v52, %v11666_v37  ;;  %s6177_s16 = sshll.u32 %s6304_s0, 4  ;;  %s6178_s16 = int_to_ptr.vmem [resolvable:$false] %s6177_s16 }
0x15e9   : > { %p6180_p0 = scmp.lt.s32.totalorder %s10972_s15, %s6178_s16 }
0x15ea   : > { %v10176_v26 = vpop.permute.xlu0 %4549  ;;  %v10178_v48 = vpop.permute.xlu1 %4551 }
0x15ec   : > { %5438 = vrot.lane.b32.xlu0 %v5407_v2, %s11444_s26  ;;  %5440 = vrot.lane.b32.xlu1 %v5408_v17, %s11444_s26  ;;  %v5411_v2 = vmul.f32 0.0, %v9917_v52 }
0x15ee   : > { %v10186_v46 = vpop.permute.xlu0 %4553  ;;  %v4556_v51 = vpop.permute.xlu1 %4555 }
0x15ef   : > { %v10190_v4 = vsel %vm1093_vm4, %v10186_v46, %v4556_v51 }
0x15f0   : > { %5442 = vrot.lane.b32.xlu0 %v5409_v43, %s11444_s26  ;;  %5444 = vrot.lane.b32.xlu1 %v5410_v50, %s11444_s26 }
0x15f2   : > { %v4558_v17 = vpop.permute.xlu0 %4557  ;;  %v10195_v36 = vpop.permute.xlu1 %4727 }
0x15f3   : > { %11803 = vst [vmem:[#allocation133_spill] sm:$0xff] %v10195_v36  ;;  %v10198_v60 = vsel %vm1093_vm4, %v4556_v51, %v4558_v17  ;;  %v4195_v17 = vmul.f32 0.0, %v9599_v22 }
0x15f4   : > { %11804 = vst [vmem:[#allocation134_spill] sm:$0xff] %v10198_v60  ;;  %5446 = vrot.lane.b32.xlu0 %v5411_v2, %s11444_s26  ;;  %s6302_s26 = smov 46  }
0x15f6   : > { %v10201_v62 = vpop.permute.xlu0 %4729  ;;  %v10203_v24 = vpop.permute.xlu1 %4731 }
0x15f7   : > { %11805 = vst [vmem:[#allocation135_spill] sm:$0xff] %v10201_v62  ;;  %11806 = vst [vmem:[#allocation136_spill] sm:$0xff] %v10203_v24  ;;  %v4197_v62 = vmul.f32 %v9599_v22, %v11739_v13  ;;  %v4273_v13 = vsel %vm790_vm1, %v9637_v34, %v9639_v3  ;;  %v4276_v34 = vsel %vm790_vm1, %v9645_v55, %v9647_v12 }
0x15f9   : > { %v4293_v24 = vadd.f32 %v9635_v29, %v4197_v62  ;;  %v4367_v62 = vsel %vm887_vm2, %v9679_v16, %v9681_v32 }
0x15fa   : > { %v10205_v27 = vpop.permute.xlu0 %4733  ;;  %v10207_v23 = vpop.permute.xlu1 %4735 }
0x15fb   : > { %11807 = vst [vmem:[#allocation137_spill] sm:$0xff] %v10205_v27  ;;  %11808 = vst [vmem:[#allocation138_spill] sm:$0xff] %v10207_v23  ;;  %v4196_v23 = vmul.f32 %v9599_v22, %v11738_v1  ;;  %v4200_v1 = vmul.f32 %v9601_v63, %v11741_v18  ;;  %v4272_v22 = vsel %vm790_vm1, %v9633_v11, %v9635_v29 }
0x15fc   : > { %v4206_v18 = vmul.f32 %v9605_v28, %v11666_v37  ;;  %v4278_v29 = vsel %vm790_vm1, %v9651_v49, %v9653_v40 }
0x15fe   : > { %v10209_v43 = vpop.permute.xlu0 %4737  ;;  %v10211_v50 = vpop.permute.xlu1 %5148 }
0x15ff   : > { %11809 = vst [vmem:[#allocation139_spill] sm:$0xff] %v10209_v43  ;;  %11810 = vst [vmem:[#allocation140_spill] sm:$0xff] %v10211_v50  ;;  %v4271_v43 = vsel %vm790_vm1, %v9631_v19, %v9633_v11  ;;  %v4205_v19 = vmul.f32 %v9605_v28, %v11744_v14 }
0x1602   : > { %v5151_v52 = vpop.permute.xlu0 %5150  ;;  %v5153_v0 = vpop.permute.xlu1 %5152 }
0x1603   : > { %v10215_v51 = vsel %vm984_vm3, %v10211_v50, %v5151_v52  ;;  %v10218_v2 = vsel %vm984_vm3, %v5151_v52, %v5153_v0  ;;  %v4198_v0 = vmul.f32 0.0, %v9601_v63  ;;  %v4199_v52 = vmul.f32 %v9601_v63, %v11740_v9 }
0x1604   : > { %11811 = vst [vmem:[#allocation141_spill] sm:$0xff] %v10215_v51  ;;  %11812 = vst [vmem:[#allocation142_spill] sm:$0xff] %v10218_v2  ;;  %v4204_v2 = vmul.f32 0.0, %v9605_v28  ;;  %v4274_v9 = vsel %vm790_vm1, %v9639_v3, %v9641_v20  ;;  %v4203_v63 = vmul.f32 %v9603_v45, %v11743_v42  ;;  %v4277_v3 = vsel %vm790_vm1, %v9649_v39, %v9651_v49 }
0x1605   : > { %v4295_v60 = vadd.f32 %v4274_v9, %v4199_v52  ;;  %v4296_v28 = vadd.f32 %v9641_v20, %v4200_v1  ;;  %v4368_v39 = vsel %vm887_vm2, %v9681_v32, %v9683_v33  ;;  %v4369_v1 = vsel %vm887_vm2, %v9685_v35, %v9687_v15 }
0x1606   : > { %v10221_v36 = vpop.permute.xlu0 %5154  ;;  %v5157_v27 = vpop.permute.xlu1 %5156  ;;  %v4299_v37 = vadd.f32 %v9647_v12, %v4203_v63  ;;  %v4370_v12 = vsel %vm887_vm2, %v9687_v15, %v9689_v59  ;;  %v4372_v49 = vsel %vm887_vm2, %v9693_v57, %v9695_v41  ;;  %v4373_v15 = vsel %vm887_vm2, %v9697_v47, %v9699_v21 }
0x1607   : > { %11813 = vst [vmem:[#allocation143_spill] sm:$0xff] %v10221_v36  ;;  %v10232_v51 = vsel %vm984_vm3, %v10221_v36, %v5157_v27  ;;  %v4291_v36 = vadd.f32 %v4271_v43, %v4195_v17  ;;  %v4292_v17 = vadd.f32 %v4272_v22, %v4196_v23  ;;  %v4300_v23 = vadd.f32 %v4277_v3, %v4204_v2 }
0x1608   : > { %11814 = vst [vmem:[#allocation144_spill] sm:$0xff] %v10232_v51  ;;  %v4202_v51 = vmul.f32 %v9603_v45, %v11742_v10  ;;  %v4294_v45 = vadd.f32 %v4273_v13, %v4198_v0  ;;  %v4302_v13 = vadd.f32 %v9653_v40, %v4206_v18  ;;  %v4301_v40 = vadd.f32 %v4278_v29, %v4205_v19 }
0x1609   : > { %v4387_v32 = vadd.f32 %v4367_v62, %v4291_v36  ;;  %v4388_v35 = vadd.f32 %v4368_v39, %v4292_v17  ;;  %v4374_v0 = vsel %vm887_vm2, %v9699_v21, %v9701_v5  ;;  %v4391_v52 = vadd.f32 %v4370_v12, %v4295_v60  ;;  %v11817_v17 = vld [vmem:[#allocation69_spill] sm:$0xff]  ;;  %v11820_v62 = vld [vmem:[#allocation48_spill] sm:$0xff]  ;;  %v11821_v39 = vld [vmem:[#allocation94_spill] sm:$0xff] }
0x160a   : > { %v5159_v50 = vpop.permute.xlu0 %5158  ;;  %v10257_v11 = vpop.permute.xlu1 %5328  ;;  %v4390_v2 = vadd.f32 %v4369_v1, %v4294_v45  ;;  %v4395_v63 = vadd.f32 %v9695_v41, %v4299_v37  ;;  %v4463_v36 = vsel %vm984_vm3, %v9741_v25, %v9775_v31  ;;  %v4398_v45 = vadd.f32 %v9701_v5, %v4302_v13  ;;  %v11822_v1 = vld [vmem:[#allocation77_spill] sm:$0xff] }
0x160b   : > { %v10267_v43 = vsel %vm984_vm3, %v5157_v27, %v5159_v50  ;;  %v4298_v27 = vadd.f32 %v4276_v34, %v4202_v51  ;;  %v4389_v50 = vadd.f32 %v9683_v33, %v4293_v24  ;;  %v4392_v51 = vadd.f32 %v9689_v59, %v4296_v28  ;;  %v11815_v24 = vld [vmem:[#allocation32_spill] sm:$0xff]  ;;  %v11816_v34 = vld [vmem:[#allocation35_spill] sm:$0xff] }
0x160c   : > { %v4464_v47 = vsel %vm984_vm3, %v9775_v31, %v9743_v54  ;;  %v4465_v21 = vsel %vm984_vm3, %v11815_v24, %v9745_v8  ;;  %v4396_v41 = vadd.f32 %v4373_v15, %v4300_v23  ;;  %v4397_v60 = vadd.f32 %v4374_v0, %v4301_v40  ;;  %v11818_v28 = vld [vmem:[#allocation64_spill] sm:$0xff]  ;;  %v11819_v31 = vld [vmem:[#allocation49_spill] sm:$0xff] }
0x160d   : > { %v4394_v22 = vadd.f32 %v4372_v49, %v4298_v27  ;;  %v4483_v19 = vadd.f32 %v9741_v25, %v4387_v32  ;;  %v4466_v5 = vsel %vm984_vm3, %v9745_v8, %v11816_v34  ;;  %v4484_v3 = vadd.f32 %v4463_v36, %v4388_v35  ;;  %v11825_v34 = vld [vmem:[#allocation107_spill] sm:$0xff] }
0x160e   : > { %v5331_v9 = vpop.permute.xlu0 %5330  ;;  %v5333_v20 = vpop.permute.xlu1 %5332  ;;  %v4467_v54 = vsel %vm984_vm3, %v11818_v28, %v11817_v17  ;;  %v4468_v29 = vsel %vm984_vm3, %v11817_v17, %v11819_v31  ;;  %v4469_v27 = vsel %vm984_vm3, %v11821_v39, %v11820_v62  ;;  %v4485_v23 = vadd.f32 %v4464_v47, %v4389_v50 }
0x160f   : > { %v10292_v16 = vsel %vm1190_vm5, %v10257_v11, %v5331_v9  ;;  %v10295_v18 = vsel %vm1190_vm5, %v5331_v9, %v5333_v20  ;;  %v4486_v25 = vadd.f32 %v11815_v24, %v4390_v2  ;;  %v4487_v13 = vadd.f32 %v4465_v21, %v4391_v52  ;;  %v11823_v52 = vld [vmem:[#allocation80_spill] sm:$0xff] }
0x1610   : > { %v4470_v8 = vsel %vm984_vm3, %v11820_v62, %v11822_v1  ;;  %v4488_v12 = vadd.f32 %v4466_v5, %v4392_v51  ;;  %v4563_v49 = vsel %vm1093_vm4, %v10170_v6, %v10176_v26  ;;  %v4564_v40 = vsel %vm1093_vm4, %v10176_v26, %v10178_v48  ;;  %v11824_v51 = vld [vmem:[#allocation61_spill] sm:$0xff] }
0x1611   : > { %v4490_v35 = vadd.f32 %v4467_v54, %v4394_v22  ;;  %v4491_v50 = vadd.f32 %v4468_v29, %v4395_v63  ;;  %v4492_v2 = vadd.f32 %v11821_v39, %v4396_v41  ;;  %v4493_v15 = vadd.f32 %v4469_v27, %v4397_v60  ;;  %v11826_v29 = vld [vmem:[#allocation108_spill] sm:$0xff]  ;;  %v11827_v1 = vld [vmem:[#allocation109_spill] sm:$0xff] }
0x1612   : > { %v10309_v33 = vpop.permute.xlu0 %5334  ;;  %v5337_v59 = vpop.permute.xlu1 %5336  ;;  %v4494_v0 = vadd.f32 %v4470_v8, %v4398_v45  ;;  %v10352_v36 = vadd.f32 %v11823_v52, %v4483_v19  ;;  %v4899_v47 = vmul.f32 %v11824_v51, %v11742_v10  ;;  %v4900_v24 = vmul.f32 %v11824_v51, %v11743_v42  ;;  %v11877_v42 = vld [vmem:[#allocation126_spill] sm:$0xff] }
0x1613   : > { %v10320_v37 = vsel %vm1190_vm5, %v10309_v33, %v5337_v59  ;;  %v4559_v26 = vsel %vm1093_vm4, %v11823_v52, %v10009_v44  ;;  %v4560_v48 = vsel %vm1093_vm4, %v10009_v44, %v10011_v56  ;;  %v4586_v22 = vadd.f32 %v4563_v49, %v4490_v35  ;;  %v11831_v52 = vld [vmem:[#allocation13_spill] sm:$0xff] }
0x1614   : > { %v4587_v63 = vadd.f32 %v4564_v40, %v4491_v50  ;;  %v4902_v21 = vmul.f32 %v9943_v7, %v11744_v14  ;;  %v4898_v41 = vmul.f32 0.0, %v11824_v51  ;;  %v4561_v5 = vsel %vm1093_vm4, %v11825_v34, %v10020_v58  ;;  %v11829_v50 = vld [vmem:[#allocation131_spill] sm:$0xff] }
0x1615   : > { %v4901_v56 = vmul.f32 0.0, %v9943_v7  ;;  %v4580_v54 = vadd.f32 %v4559_v26, %v4484_v3  ;;  %v4581_v31 = vadd.f32 %v4560_v48, %v4485_v23  ;;  %v4562_v62 = vsel %vm1093_vm4, %v10020_v58, %v11826_v29  ;;  %v11832_v26 = vld [vmem:[#allocation117_spill] sm:$0xff]  ;;  %v11838_v29 = vld [vmem:[#allocation120_spill] sm:$0xff] }
0x1616   : > { %v5339_v9 = vpop.permute.xlu0 %5338  ;;  %v10339_v20 = vpop.permute.xlu1 %4643  ;;  %v4588_v39 = vadd.f32 %v10186_v46, %v4492_v2  ;;  %v4582_v27 = vadd.f32 %v11825_v34, %v4486_v25  ;;  %v4972_v8 = vsel %vm790_vm1, %v10076_v30, %v11827_v1  ;;  %v4583_v35 = vadd.f32 %v4561_v5, %v4487_v13  ;;  %v11828_v30 = vld [vmem:[#allocation121_spill] sm:$0xff]  ;;  %v11837_v34 = vld [vmem:[#allocation135_spill] sm:$0xff] }
0x1617   : > { %v10348_v32 = vsel %vm1190_vm5, %v5337_v59, %v5339_v9  ;;  %v4589_v9 = vadd.f32 %v10190_v4, %v4493_v15  ;;  %v4656_v3 = vsel %vm1190_vm5, %v10093_v61, %v10095_v53  ;;  %v4584_v46 = vadd.f32 %v4562_v62, %v4488_v12  ;;  %v11830_v15 = vld [vmem:[#allocation14_spill] sm:$0xff] }
0x1618   : > { %v4973_v25 = vsel %vm790_vm1, %v11827_v1, %v10039_v38  ;;  %v5068_v4 = vsel %vm887_vm2, %v11829_v50, %v11828_v30  ;;  %v4996_v13 = vadd.f32 %v10039_v38, %v4900_v24  ;;  %v4975_v53 = vsel %vm790_vm1, %v11831_v52, %v11830_v15 }
0x1619   : > { %v4994_v51 = vadd.f32 %v4972_v8, %v4898_v41  ;;  %v4655_v12 = vsel %vm1190_vm5, %v11832_v26, %v10093_v61  ;;  %v4677_v48 = vadd.f32 %v4656_v3, %v4581_v31  ;;  %v11839_v61 = vld [vmem:[#allocation133_spill] sm:$0xff]  ;;  %v4995_v1 = vadd.f32 %v4973_v25, %v4899_v47  ;;  %v11844_v47 = vld [vmem:[#allocation138_spill] sm:$0xff] }
0x161a   : > { %v4646_v59 = vpop.permute.xlu0 %4645  ;;  %v4648_v45 = vpop.permute.xlu1 %4647  ;;  %v4751_v31 = vsel %vm1287_vm7, %v11839_v61, %v11837_v34  ;;  %v4676_v8 = vadd.f32 %v4655_v12, %v4580_v54 }
0x161b   : > { %v4659_v60 = vsel %vm1190_vm5, %v10339_v20, %v4646_v59  ;;  %v4660_v19 = vsel %vm1190_vm5, %v4646_v59, %v4648_v45  ;;  %v11835_v45 = vld [vmem:[#allocation134_spill] sm:$0xff]  ;;  %v5090_v62 = vadd.f32 %v5068_v4, %v4994_v51  ;;  %v11842_v51 = vld [vmem:[#allocation140_spill] sm:$0xff] }
0x161c   : > { %v10374_v44 = vadd.f32 %v4659_v60, %v4586_v22  ;;  %v10376_v17 = vadd.f32 %v4660_v19, %v4587_v63  ;;  %v11833_v22 = vld [vmem:[#allocation119_spill] sm:$0xff]  ;;  %v11834_v63 = vld [vmem:[#allocation118_spill] sm:$0xff]  ;;  %v4590_v60 = vadd.f32 %v11835_v45, %v4494_v0  ;;  %v11836_v19 = vld [vmem:[#allocation136_spill] sm:$0xff]  ;;  %v4998_v0 = vadd.f32 %v4975_v53, %v4902_v21 }
0x161d   : > { %v4657_v59 = vsel %vm1190_vm5, %v11834_v63, %v11833_v22  ;;  %v4752_v38 = vsel %vm1287_vm7, %v11837_v34, %v11836_v19  ;;  %v4658_v41 = vsel %vm1190_vm5, %v11833_v22, %v11838_v29  ;;  %v5186_v22 = vadd.f32 %v11842_v51, %v5090_v62  ;;  %v11845_v53 = vld [vmem:[#allocation137_spill] sm:$0xff]  ;;  %v11849_v62 = vld [vmem:[#allocation124_spill] sm:$0xff] }
0x161e   : > { %v4650_v49 = vpop.permute.xlu0 %4649  ;;  %v4652_v40 = vpop.permute.xlu1 %4651  ;;  %v4773_v4 = vadd.f32 %v4752_v38, %v4677_v48  ;;  %v4679_v45 = vadd.f32 %v4657_v59, %v4583_v35  ;;  %v4680_v19 = vadd.f32 %v4658_v41, %v4584_v46  ;;  %v4772_v34 = vadd.f32 %v4751_v31, %v4676_v8  ;;  %v11847_v59 = vld [vmem:[#allocation123_spill] sm:$0xff]  ;;  %v11850_v8 = vld [vmem:[#allocation141_spill] sm:$0xff] }
0x161f   : > { %v10390_v23 = vadd.f32 %v4650_v49, %v4588_v39  ;;  %v4661_v58 = vsel %vm1190_vm5, %v4650_v49, %v4652_v40  ;;  %v11840_v49 = vld [vmem:[#allocation116_spill] sm:$0xff]  ;;  %v4675_v41 = vadd.f32 %v11832_v26, %v10352_v36  ;;  %v5071_v31 = vsel %vm887_vm2, %v11847_v59, %v11849_v62 }
0x1620   : > { %v10399_v2 = vadd.f32 %v4661_v58, %v4589_v9  ;;  %v4974_v3 = vsel %vm790_vm1, %v11840_v49, %v11831_v52  ;;  %v11841_v58 = vld [vmem:[#allocation122_spill] sm:$0xff]  ;;  %v4753_v52 = vsel %vm1287_vm7, %v11845_v53, %v11844_v47 }
0x1621   : > { %v5069_v50 = vsel %vm887_vm2, %v11828_v30, %v11841_v58  ;;  %v5092_v48 = vadd.f32 %v11841_v58, %v4996_v13  ;;  %v4997_v29 = vadd.f32 %v4974_v3, %v4901_v56  ;;  %v4678_v13 = vadd.f32 %v11834_v63, %v4582_v27  ;;  %v11851_v58 = vld [vmem:[#allocation142_spill] sm:$0xff] }
0x1622   : > { %v4654_v24 = vpop.permute.xlu0 %4653  ;;  %v10415_v5 = vpop.permute.xlu1 %4792  ;;  %v5091_v46 = vadd.f32 %v5069_v50, %v4995_v1  ;;  %v4775_v1 = vadd.f32 %v4753_v52, %v4679_v45 }
0x1623   : > { %v4662_v39 = vsel %vm1190_vm5, %v4652_v40, %v4654_v24  ;;  %v11843_v40 = vld [vmem:[#allocation139_spill] sm:$0xff]  ;;  %v5188_v50 = vadd.f32 %v11851_v58, %v5092_v48  ;;  %v4774_v45 = vadd.f32 %v11845_v53, %v4678_v13 }
0x1624   : > { %v10424_v9 = vadd.f32 %v4662_v39, %v4590_v60  ;;  %v4754_v21 = vsel %vm1287_vm7, %v11844_v47, %v11843_v40  ;;  %v11848_v60 = vld [vmem:[#allocation132_spill] sm:$0xff]  ;;  %v5187_v49 = vadd.f32 %v11850_v8, %v5091_v46  ;;  %v4771_v47 = vadd.f32 %v11839_v61, %v4675_v41  ;;  %v11854_v61 = vld [vmem:[#allocation57_spill] sm:$0xff] }
0x1625   : > { %v5070_v38 = vsel %vm887_vm2, %v11848_v60, %v11847_v59  ;;  %v4776_v39 = vadd.f32 %v4754_v21, %v4680_v19  ;;  %v11853_v21 = vld [vmem:[#allocation144_spill] sm:$0xff]  ;;  %v4804_v53 = vmul.f32 %v10415_v5, %v4774_v45  ;;  %v4275_v60 = vsel %vm790_vm1, %v11854_v61, %v9645_v55 }
0x1626   : > { %v10436_v54 = vpop.permute.xlu0 %4794  ;;  %v5245_v25 = vpop.permute.xlu1 %5244  ;;  %v5093_v36 = vadd.f32 %v5070_v38, %v4997_v29  ;;  %v4801_v59 = vmul.f32 %v10415_v5, %v4771_v47  ;;  %v11855_v29 = vld [vmem:[#allocation79_spill] sm:$0xff] }
0x1627   : > { %v10444_v30 = vsel %vm4796_vm11, %v10415_v5, %v10436_v54  ;;  %v10446_v12 = vadd.f32 %v5245_v25, %v5186_v22  ;;  %v4803_v35 = vmul.f32 %v10436_v54, %v4773_v4  ;;  %v4806_v51 = vmul.f32 %v10436_v54, %v4776_v39 }
0x1628   : > { %v4802_v24 = vmul.f32 %v10444_v30, %v4772_v34  ;;  %v5094_v22 = vadd.f32 %v5071_v31, %v4998_v0  ;;  %v4805_v63 = vmul.f32 %v10444_v30, %v4775_v1  ;;  %v11852_v34 = vld [vmem:[#allocation143_spill] sm:$0xff]  ;;  %v4201_v41 = vmul.f32 0.0, %v11855_v29  ;;  %v11856_v31 = vld [vmem:[#allocation34_spill] sm:$0xff]  ;;  %v11858_v29 = vld [vmem:[#allocation25_spill] sm:$0xff] }
0x1629   : > { %11846 = vst [vmem:[#allocation32_spill] sm:$0xff] %v10446_v12  ;;  %4829 = vrot.lane.b32.xlu0 %v4803_v35, %s6302_s26  ;;  %v5189_v40 = vadd.f32 %v11852_v34, %v5093_v36  ;;  %v4371_v39 = vsel %vm887_vm2, %v11856_v31, %v9693_v57  ;;  %v11860_v31 = vld [vmem:[#allocation96_spill] sm:$0xff]  ;;  %v11881_v12 = vld [vmem:[#allocation106_spill] sm:$0xff] }
0x162a   : > { %v5247_v4 = vpop.permute.xlu0 %5246  ;;  %4827 = vrot.lane.b32.xlu1 %v4802_v24, %s6302_s26  ;;  %v5249_v56 = vpop.permute.xlu1 %5248  ;;  %v4297_v13 = vadd.f32 %v4275_v60, %v4201_v41  ;;  %v11857_v60 = vld [vmem:[#allocation40_spill] sm:$0xff]  ;;  %v11859_v41 = vld [vmem:[#allocation63_spill] sm:$0xff] }
0x162b   : > { %v5260_v26 = vsel %vm1093_vm4, %v5245_v25, %v5247_v4  ;;  %v5261_v3 = vsel %vm1093_vm4, %v5247_v4, %v5249_v56  ;;  %v5190_v25 = vadd.f32 %v11853_v21, %v5094_v22 }
0x162c   : > { %v10467_v19 = vadd.f32 %v5260_v26, %v5187_v49  ;;  %v10469_v27 = vadd.f32 %v5261_v3, %v5188_v50  ;;  %v4393_v49 = vadd.f32 %v4371_v39, %v4297_v13  ;;  %v11861_v39 = vld [vmem:[#allocation41_spill] sm:$0xff] }
0x162d   : > { %4835 = vrot.lane.b32.xlu0 %v4806_v51, %s6302_s26 }
0x162e   : > { %v5251_v52 = vpop.permute.xlu0 %5250  ;;  %4833 = vrot.lane.b32.xlu1 %v4805_v63, %s6302_s26  ;;  %v10478_v0 = vpop.permute.xlu1 %5252  ;;  %v4489_v55 = vadd.f32 %v11818_v28, %v4393_v49  ;;  %v11863_v49 = vld [vmem:[#allocation39_spill] sm:$0xff] }
0x162f   : > { %v10480_v35 = vadd.f32 %v5251_v52, %v5189_v40  ;;  %v5262_v46 = vsel %vm1093_vm4, %v5251_v52, %v10478_v0 }
0x1630   : > { %v10485_v48 = vadd.f32 %v5262_v46, %v5190_v25  ;;  %v4585_v4 = vadd.f32 %v10170_v6, %v4489_v55 }
0x1631   : > { %4831 = vrot.lane.b32.xlu0 %v4804_v53, %s6302_s26 }
0x1632   : > { %v10492_v38 = vpop.permute.xlu0 %5254  ;;  %4825 = vrot.lane.b32.xlu1 %v4801_v59, %s6302_s26  ;;  %v10495_v24 = vpop.permute.xlu1 %5424  ;;  %v4681_v56 = vadd.f32 %v10339_v20, %v4585_v4 }
0x1636   : > { %v10501_v1 = vpop.permute.xlu0 %5426  ;;  %v10503_v8 = vpop.permute.xlu1 %5428 }
0x163a   : > { %v10506_v58 = vpop.permute.xlu0 %5430  ;;  %v10508_v50 = vpop.permute.xlu1 %5432 }
0x163e   : > { %v10512_v36 = vpop.permute.xlu0 %5434  ;;  %v4740_v26 = vpop.permute.xlu1 %4739 }
0x163f   : > { %v4777_v57 = vadd.f32 %v4740_v26, %v4681_v56 }
0x1641   : > { %v10515_v3 = vmul.f32 %v10415_v5, %v4777_v57 }
0x1642   : > { %v4742_v51 = vpop.permute.xlu0 %4741  ;;  %v4744_v22 = vpop.permute.xlu1 %4743 }
0x1643   : > { %v4755_v63 = vsel %vm1287_vm7, %v4740_v26, %v4742_v51  ;;  %v4756_v28 = vsel %vm1287_vm7, %v4742_v51, %v4744_v22  ;;  %v11864_v26 = vld [vmem:[#allocation42_spill] sm:$0xff] }
0x1644   : > { %v4778_v45 = vadd.f32 %v4755_v63, %v10374_v44  ;;  %v4779_v34 = vadd.f32 %v4756_v28, %v10376_v17  ;;  %v11865_v22 = vld [vmem:[#allocation102_spill] sm:$0xff]  ;;  %v11866_v63 = vld [vmem:[#allocation101_spill] sm:$0xff] }
0x1645   : > { %v5065_v28 = vsel %vm887_vm2, %v11866_v63, %v11865_v22 }
0x1646   : > { %v10522_v6 = vmul.f32 %v10444_v30, %v4778_v45  ;;  %v10525_v20 = vmul.f32 %v10436_v54, %v4779_v34  ;;  %v4746_v40 = vpop.permute.xlu0 %4745  ;;  %v4748_v47 = vpop.permute.xlu1 %4747  ;;  %v11867_v34 = vld [vmem:[#allocation98_spill] sm:$0xff] }
0x1647   : > { %v4780_v21 = vadd.f32 %v4746_v40, %v10390_v23  ;;  %v4757_v25 = vsel %vm1287_vm7, %v4746_v40, %v4748_v47  ;;  %v4894_v23 = vmul.f32 %v11858_v29, %v11857_v60  ;;  %v11868_v40 = vld [vmem:[#allocation97_spill] sm:$0xff] }
0x1648   : > { %v4781_v52 = vadd.f32 %v4757_v25, %v10399_v2  ;;  %v4969_v2 = vsel %vm790_vm1, %v11860_v31, %v11859_v41  ;;  %v11870_v25 = vld [vmem:[#allocation112_spill] sm:$0xff] }
0x1649   : > { %v10531_v46 = vmul.f32 %v10415_v5, %v4780_v21  ;;  %v11862_v5 = vld [vmem:[#allocation21_spill] sm:$0xff] }
0x164a   : > { %v10534_v44 = vmul.f32 %v10444_v30, %v4781_v52  ;;  %v4750_v17 = vpop.permute.xlu0 %4749  ;;  %v10536_v53 = vpop.permute.xlu1 %5340  ;;  %v4896_v13 = vmul.f32 %v11862_v5, %v11861_v39  ;;  %v4893_v30 = vmul.f32 %v11858_v29, %v11863_v49  ;;  %v4897_v57 = vmul.f32 %v11862_v5, %v11864_v26  ;;  %v11871_v52 = vld [vmem:[#allocation111_spill] sm:$0xff] }
0x164b   : > { %v4758_v59 = vsel %vm1287_vm7, %v4748_v47, %v4750_v17  ;;  %v4895_v51 = vmul.f32 0.0, %v11862_v5  ;;  %v11869_v47 = vld [vmem:[#allocation99_spill] sm:$0xff]  ;;  %v5161_v17 = vsel %vm984_vm3, %v11871_v52, %v11870_v25 }
0x164c   : > { %v4782_v61 = vadd.f32 %v4758_v59, %v10424_v9  ;;  %v4990_v9 = vadd.f32 %v11859_v41, %v4894_v23  ;;  %v4989_v45 = vadd.f32 %v4969_v2, %v4893_v30  ;;  %v4968_v21 = vsel %vm790_vm1, %v11869_v47, %v11860_v31  ;;  %v11873_v2 = vld [vmem:[#allocation110_spill] sm:$0xff]  ;;  %v11874_v31 = vld [vmem:[#allocation104_spill] sm:$0xff]  ;;  %v11875_v47 = vld [vmem:[#allocation103_spill] sm:$0xff] }
0x164d   : > { %v4892_v59 = vmul.f32 0.0, %v11858_v29  ;;  %v5160_v5 = vsel %vm984_vm3, %v11873_v2, %v11871_v52  ;;  %v4993_v30 = vadd.f32 %v11867_v34, %v4897_v57  ;;  %v5067_v10 = vsel %vm887_vm2, %v11875_v47, %v11874_v31  ;;  %v11876_v25 = vld [vmem:[#allocation127_spill] sm:$0xff] }
0x164e   : > { %v10550_v55 = vmul.f32 %v10436_v54, %v4782_v61  ;;  %v10552_v4 = vpop.permute.xlu0 %5342  ;;  %v10554_v56 = vpop.permute.xlu1 %5344  ;;  %v4971_v54 = vsel %vm790_vm1, %v11868_v40, %v11867_v34  ;;  %v11872_v61 = vld [vmem:[#allocation100_spill] sm:$0xff]  ;;  %v5086_v41 = vadd.f32 %v11865_v22, %v4990_v9  ;;  %v5085_v14 = vadd.f32 %v5065_v28, %v4989_v45  ;;  %v11878_v22 = vld [vmem:[#allocation125_spill] sm:$0xff]  ;;  %v11879_v45 = vld [vmem:[#allocation115_spill] sm:$0xff] }
0x164f   : > { %v4970_v23 = vsel %vm790_vm1, %v11872_v61, %v11868_v40  ;;  %v5257_v29 = vsel %vm1093_vm4, %v11877_v42, %v11876_v25  ;;  %v4992_v40 = vadd.f32 %v4971_v54, %v4896_v13  ;;  %v4988_v61 = vadd.f32 %v4968_v21, %v4892_v59  ;;  %v11880_v34 = vld [vmem:[#allocation114_spill] sm:$0xff]  ;;  %v11882_v54 = vld [vmem:[#allocation113_spill] sm:$0xff] }
0x1650   : > { %v5182_v9 = vadd.f32 %v5161_v17, %v5086_v41  ;;  %v5256_v52 = vsel %vm1093_vm4, %v11878_v22, %v11877_v42  ;;  %v4991_v26 = vadd.f32 %v4970_v23, %v4895_v51  ;;  %v5089_v57 = vadd.f32 %v11874_v31, %v4993_v30  ;;  %v11883_v51 = vld [vmem:[#allocation105_spill] sm:$0xff]  ;;  %v11884_v59 = vld [vmem:[#allocation130_spill] sm:$0xff]  ;;  %v11886_v30 = vld [vmem:[#allocation128_spill] sm:$0xff] }
0x1651   : > { %v5181_v28 = vadd.f32 %v5160_v5, %v5085_v14  ;;  %v5163_v49 = vsel %vm984_vm3, %v11880_v34, %v11879_v45  ;;  %v5088_v25 = vadd.f32 %v5067_v10, %v4992_v40  ;;  %v5066_v13 = vsel %vm887_vm2, %v11881_v12, %v11875_v47  ;;  %v11885_v23 = vld [vmem:[#allocation129_spill] sm:$0xff] }
0x1652   : > { %v10587_v39 = vpop.permute.xlu0 %5346  ;;  %v10596_v60 = vpop.permute.xlu1 %5348  ;;  %v5162_v21 = vsel %vm984_vm3, %v11882_v54, %v11880_v34  ;;  %v5278_v42 = vadd.f32 %v5257_v29, %v5182_v9  ;;  %v5064_v14 = vsel %vm887_vm2, %v11883_v51, %v11866_v63  ;;  %v5259_v41 = vsel %vm1093_vm4, %v11885_v23, %v11884_v59 }
0x1653   : > { %v5277_v17 = vadd.f32 %v5256_v52, %v5181_v28  ;;  %v5449_v10 = vsel %vm1287_vm7, %v10501_v1, %v10503_v8  ;;  %v5185_v12 = vadd.f32 %v5163_v49, %v5089_v57  ;;  %v5258_v31 = vsel %vm1093_vm4, %v11886_v30, %v11885_v23 }
0x1654   : > { %v5374_v47 = vadd.f32 %v10295_v18, %v5278_v42  ;;  %v5448_v63 = vsel %vm1287_vm7, %v10495_v24, %v10501_v1  ;;  %v5087_v29 = vadd.f32 %v5066_v13, %v4991_v26  ;;  %v5184_v40 = vadd.f32 %v5162_v21, %v5088_v25 }
0x1655   : > { %v5373_v9 = vadd.f32 %v10292_v16, %v5277_v17  ;;  %v5084_v52 = vadd.f32 %v5064_v14, %v4988_v61  ;;  %v5281_v8 = vadd.f32 %v5259_v41, %v5185_v12  ;;  %v5451_v18 = vsel %vm1287_vm7, %v10508_v50, %v10512_v36 }
0x1656   : > { %v10613_v5 = vpop.permute.xlu0 %5350  ;;  %v5470_v28 = vadd.f32 %v5449_v10, %v5374_v47  ;;  %v5183_v49 = vadd.f32 %v11882_v54, %v5087_v29  ;;  %v5280_v57 = vadd.f32 %v5258_v31, %v5184_v40  ;;  %v10627_v34 = vpop.permute.xlu1 %5489  ;;  %v5450_v16 = vsel %vm1287_vm7, %v10506_v58, %v10508_v50 }
0x1657   : > { %v5469_v45 = vadd.f32 %v5448_v63, %v5373_v9  ;;  %v5377_v1 = vadd.f32 %v10348_v32, %v5281_v8  ;;  %v5180_v25 = vadd.f32 %v11873_v2, %v5084_v52  ;;  %v5381_v8 = vadd.f32 %v10587_v39, %v10480_v35 }
0x1658   : > { %v5376_v36 = vadd.f32 %v10320_v37, %v5280_v57  ;;  %v5279_v54 = vadd.f32 %v11886_v30, %v5183_v49  ;;  %vm4849_vm1 = vcmask 375808   ;;  %vm5546_vm2 = vcmask 367616  }
0x1659   : > { %v5473_v21 = vadd.f32 %v5451_v18, %v5377_v1  ;;  %v5276_v32 = vadd.f32 %v11878_v22, %v5180_v25  ;;  %v5645_v18 = vld [vmem:[%s11027_s7 + $0x10] sm:$0xff]  ;;  %v5676_v1 = vld [vmem:[%s11028_s8 + $0x8] sm:$0xff]  ;;  %v5678_v25 = vld [vmem:[%s11028_s8 + $0x18] sm:$0xff] }
0x165a   : > { %v10629_v42 = vpop.permute.xlu0 %5491  ;;  %v5472_v50 = vadd.f32 %v5450_v16, %v5376_v36  ;;  %v5375_v51 = vadd.f32 %v10309_v33, %v5279_v54  ;;  %v5437_v41 = vpop.permute.xlu1 %5436  ;;  %v5764_v16 = vld [vmem:[%s11030_s10] sm:$0xff]  ;;  %v5765_v36 = vld [vmem:[%s11030_s10 + $0x8] sm:$0xff] }
0x165b   : > { %v10637_v26 = vsel %vm5493_vm12, %v10627_v34, %v10629_v42  ;;  %v5500_v61 = vmul.f32 %v10629_v42, %v5470_v28  ;;  %v5503_v14 = vmul.f32 %v10629_v42, %v5473_v21  ;;  %v5372_v2 = vadd.f32 %v10257_v11, %v5276_v32  ;;  %v11887_v11 = vld [vmem:[#allocation46_spill] sm:$0xff]  ;;  %v11888_v28 = vld [vmem:[#allocation32_spill] sm:$0xff] }
0x165c   : > { %v5499_v13 = vmul.f32 %v10637_v26, %v5469_v45  ;;  %v5502_v37 = vmul.f32 %v10637_v26, %v5472_v50  ;;  %v5471_v17 = vadd.f32 %v10506_v58, %v5375_v51  ;;  %v4903_v10 = vmul.f32 %v9943_v7, %v11887_v11  ;;  %v11889_v50 = vld [vmem:[#allocation12_spill] sm:$0xff]  ;;  %v11890_v51 = vld [vmem:[#allocation23_spill] sm:$0xff] }
0x165d   : > { %5526 = vrot.lane.b32.xlu0 %v5500_v61, %s6303_s19  ;;  %v5468_v23 = vadd.f32 %v10495_v24, %v5372_v2  ;;  %v5357_v24 = vsel %vm1190_vm5, %v10552_v4, %v10554_v56  ;;  %v5356_v7 = vsel %vm1190_vm5, %v10536_v53, %v10552_v4  ;;  %v5378_v49 = vadd.f32 %v10536_v53, %v11888_v28  ;;  %v5644_v53 = vld [vmem:[%s11027_s7 + $0x8] sm:$0xff]  ;;  %v5780_v61 = vld [vmem:[%s11031_s11] sm:$0xff]  ;;  %v11909_v28 = vld [vmem:[#allocation89_spill] sm:$0xff] }
0x165e   : > { %5524 = vrot.lane.b32.xlu1 %v5499_v13, %s6303_s19  ;;  %v5439_v59 = vpop.permute.xlu0 %5438  ;;  %v5501_v22 = vmul.f32 %v10627_v34, %v5471_v17  ;;  %v5441_v12 = vpop.permute.xlu1 %5440  ;;  %v4999_v30 = vadd.f32 %v11830_v15, %v4903_v10  ;;  %v5263_v15 = vsel %vm1093_vm4, %v10478_v0, %v10492_v38  ;;  %v5380_v63 = vadd.f32 %v5357_v24, %v10469_v27  ;;  %v5781_v13 = vld [vmem:[%s11031_s11 + $0x8] sm:$0xff]  ;;  %v11895_v10 = vld [vmem:[#allocation16_spill] sm:$0xff]  ;;  %v11898_v24 = vld [vmem:[#allocation30_spill] sm:$0xff] }
0x165f   : > { %v5498_v33 = vmul.f32 %v10627_v34, %v5468_v23  ;;  %v5453_v47 = vsel %vm1287_vm7, %v5439_v59, %v5441_v12  ;;  %v5452_v56 = vsel %vm1287_vm7, %v5437_v41, %v5439_v59  ;;  %v11892_v17 = vld [vmem:[#allocation7_spill] sm:$0xff] }
0x1660   : > { %v5095_v31 = vadd.f32 %v11849_v62, %v4999_v30  ;;  %v5379_v62 = vadd.f32 %v5356_v7, %v10467_v19  ;;  %v5476_v27 = vadd.f32 %v5453_v47, %v5380_v63  ;;  %v11893_v23 = vld [vmem:[#allocation39_spill] sm:$0xff]  ;;  %v11899_v7 = vld [vmem:[#allocation42_spill] sm:$0xff]  ;;  %v11901_v63 = vld [vmem:[#allocation28_spill] sm:$0xff] }
0x1661   : > { %5532 = vrot.lane.b32.xlu0 %v5503_v14, %s6303_s19  ;;  %v1388_v14 = vsel %vm1386_vm13, %v11890_v51, %v11889_v50  ;;  %v11897_v30 = vld [vmem:[#allocation59_spill] sm:$0xff] }
0x1662   : > { %5530 = vrot.lane.b32.xlu1 %v5502_v37, %s6303_s19  ;;  %v5443_v58 = vpop.permute.xlu0 %5442  ;;  %v5445_v4 = vpop.permute.xlu1 %5444  ;;  %v5475_v38 = vadd.f32 %v5452_v56, %v5379_v62  ;;  %v11891_v37 = vld [vmem:[#allocation40_spill] sm:$0xff]  ;;  %v11918_v50 = vld [vmem:[#allocation55_spill] sm:$0xff] }
0x1663   : > { %v5454_v19 = vsel %vm1287_vm7, %v5443_v58, %v5445_v4  ;;  %v670_v59 = vadd.f32 %v11892_v17, %v11891_v37 }
0x1665   : > { %5528 = vrot.lane.b32.xlu0 %v5501_v22, %s6303_s19  ;;  %v11894_v22 = vld [vmem:[#allocation11_spill] sm:$0xff] }
0x1666   : > { %5522 = vrot.lane.b32.xlu1 %v5498_v33, %s6303_s19  ;;  %v5447_v29 = vpop.permute.xlu0 %5446  ;;  %v1387_v33 = vsel %vm1386_vm13, %v11894_v22, %v11890_v51 }
0x1667   : > { %v5455_v40 = vsel %vm1287_vm7, %v5445_v4, %v5447_v29  ;;  %v11902_v29 = vld [vmem:[#allocation41_spill] sm:$0xff] }
0x1669   : > { %4841 = vrot.lane.b32.xlu0 %v10525_v20, %s6302_s26  ;;  %v5191_v20 = vadd.f32 %v10267_v43, %v5095_v31  ;;  %v5358_v43 = vsel %vm1190_vm5, %v10587_v39, %v10596_v60  ;;  %v5643_v39 = vld [vmem:[%s11027_s7] sm:$0xff]  ;;  %v2085_v31 = vsel %vm2083_vm14, %v11898_v24, %v11897_v30 }
0x166a   : > { %4839 = vrot.lane.b32.xlu1 %v10522_v6, %s6302_s26  ;;  %v5359_v6 = vsel %vm1190_vm5, %v10596_v60, %v10613_v5  ;;  %v5382_v5 = vadd.f32 %v5358_v43, %v10485_v48  ;;  %v5505_v60 = vmul.f32 %v10637_v26, %v5475_v38  ;;  %v5477_v48 = vadd.f32 %v5443_v58, %v5381_v8  ;;  %v11896_v58 = vld [vmem:[#allocation20_spill] sm:$0xff]  ;;  %v11905_v43 = vld [vmem:[#allocation62_spill] sm:$0xff] }
0x166b   : > { %v5287_v0 = vadd.f32 %v5263_v15, %v5191_v20  ;;  %v1390_v12 = vsel %vm1386_vm13, %v11896_v58, %v11895_v10  ;;  %v11900_v15 = vld [vmem:[#allocation6_spill] sm:$0xff]  ;;  %v1404_v20 = vadd.f32 %v1388_v14, %v670_v59  ;;  %v1389_v56 = vsel %vm1386_vm13, %v11901_v63, %v11896_v58  ;;  %v11922_v58 = vld [vmem:[#allocation29_spill] sm:$0xff] }
0x166c   : > { %v5478_v52 = vadd.f32 %v5454_v19, %v5382_v5  ;;  %v5507_v45 = vmul.f32 %v10627_v34, %v5477_v48  ;;  %v672_v47 = vadd.f32 %v11900_v15, %v11899_v7  ;;  %v671_v62 = vadd.f32 %v11900_v15, %v11902_v29  ;;  %v11906_v38 = vld [vmem:[#allocation82_spill] sm:$0xff] }
0x166d   : > { %4847 = vrot.lane.b32.xlu0 %v10550_v55, %s6302_s26  ;;  %v5383_v55 = vadd.f32 %v5359_v6, %v5287_v0  ;;  %v11903_v6 = vld [vmem:[#allocation54_spill] sm:$0xff]  ;;  %v11904_v0 = vld [vmem:[#allocation56_spill] sm:$0xff] }
0x166e   : > { %4845 = vrot.lane.b32.xlu1 %v10534_v44, %s6302_s26  ;;  %v5506_v44 = vmul.f32 %v10629_v42, %v5476_v27  ;;  %v5508_v57 = vmul.f32 %v10637_v26, %v5478_v52  ;;  %v5646_v26 = vld [vmem:[%s11027_s7 + $0x18] sm:$0xff]  ;;  %v2084_v4 = vsel %vm2083_vm14, %v11903_v6, %v11898_v24  ;;  %v2087_v27 = vsel %vm2083_vm14, %v11905_v43, %v11904_v0  ;;  %v11923_v15 = vld [vmem:[#allocation10_spill] sm:$0xff] }
0x166f   : > { %v5479_v9 = vadd.f32 %v5455_v40, %v5383_v55  ;;  %v11907_v40 = vld [vmem:[#allocation87_spill] sm:$0xff]  ;;  %v1406_v5 = vadd.f32 %v1390_v12, %v672_v47  ;;  %v11908_v52 = vld [vmem:[#allocation65_spill] sm:$0xff] }
0x1670   : > { %v2782_v55 = vsel %vm2780_vm15, %v11907_v40, %v11906_v38  ;;  %v2086_v8 = vsel %vm2083_vm14, %v11908_v52, %v11905_v43 }
0x1671   : > { %4843 = vrot.lane.b32.xlu0 %v10531_v46, %s6302_s26  ;;  %v5509_v46 = vmul.f32 %v10629_v42, %v5479_v9  ;;  %v5677_v42 = vld [vmem:[%s11028_s8 + $0x10] sm:$0xff] }
0x1672   : > { %4837 = vrot.lane.b32.xlu1 %v10515_v3, %s6302_s26  ;;  %v5474_v3 = vadd.f32 %v5437_v41, %v5378_v49  ;;  %v669_v41 = vadd.f32 %v11892_v17, %v11893_v23  ;;  %v11910_v49 = vld [vmem:[#allocation83_spill] sm:$0xff]  ;;  %v11919_v17 = vld [vmem:[#allocation50_spill] sm:$0xff]  ;;  %v11920_v23 = vld [vmem:[#allocation53_spill] sm:$0xff]  ;;  %s6179_s26 = scalar_lea.vmem %s6178_s16, 1024 }
0x1673   : > { %v2784_v48 = vsel %vm2780_vm15, %v11910_v49, %v11909_v28  ;;  %p6181_p1 = scmp.lt.s32.totalorder %s6179_s26, %s6173_s18 }
0x1674   : > { %v5504_v35 = vmul.f32 %v10627_v34, %v5474_v3  ;;  %v5675_v34 = vld [vmem:[%s11028_s8] sm:$0xff]  ;;  %v1403_v19 = vadd.f32 %v1387_v33, %v669_v41  ;;  %v11921_v41 = vld [vmem:[#allocation37_spill] sm:$0xff] }
0x1675   : > { %5538 = vrot.lane.b32.xlu0 %v5506_v44, %s6303_s19  ;;  %v2101_v44 = vadd.f32 %v2085_v31, %v1404_v20  ;;  %v4156_v22 = vsel %vm4152_vm0, %v11921_v41, %v11920_v23  ;;  %v4155_v47 = vsel %vm4152_vm0, %v11923_v15, %v11921_v41  ;;  %v11936_v23 = vld [vmem:[#allocation22_spill] sm:$0xff]  ;;  %p6182_p2 = por %p6181_p1, %p6180_p0 }
0x1676   : > { %5536 = vrot.lane.b32.xlu1 %v5505_v60, %s6303_s19  ;;  %v1405_v60 = vadd.f32 %v1389_v56, %v671_v62  ;;  %v2100_v3 = vadd.f32 %v2084_v4, %v1403_v19  ;;  %v11924_v56 = vld [vmem:[#allocation52_spill] sm:$0xff] }
0x1677   : > { %v4153_v29 = vsel %vm4152_vm0, %v11924_v56, %v11918_v50  ;;  %v11941_v56 = vld [vmem:[#allocation66_spill] sm:$0xff]  ;;  %p6183_p3 = pnand %p6182_p2, %p6176_p13 }
0x1679   : > { %5544 = vrot.lane.b32.xlu0 %v5509_v46, %s6303_s19 }
0x167a   : > { %5542 = vrot.lane.b32.xlu1 %v5508_v57, %s6303_s19  ;;  %v2103_v57 = vadd.f32 %v2087_v27, %v1406_v5 }
0x167d   : > { %5540 = vrot.lane.b32.xlu0 %v5507_v45, %s6303_s19  ;;  %v2798_v45 = vadd.f32 %v2782_v55, %v2101_v44 }
0x167e   : > { %5534 = vrot.lane.b32.xlu1 %v5504_v35, %s6303_s19  ;;  %v11911_v35 = vld [vmem:[#allocation70_spill] sm:$0xff] }
0x1681   : > { %5654 = vperm.xlu0 %6117, %v5644_v53   ;;  %v11912_v53 = vld [vmem:[#allocation72_spill] sm:$0xff] }
0x1682   : > { %5649 = vperm.xlu1 %6116, %v5643_v39   ;;  %v3457_v39 = vsel %vm1190_vm5, %v11912_v53, %v11911_v35  ;;  %v3456_v12 = vsel %vm1190_vm5, %v11922_v58, %v11912_v53  ;;  %v11927_v53 = vld [vmem:[#allocation44_spill] sm:$0xff] }
0x1683   : > { %v3473_v37 = vadd.f32 %v3457_v39, %v2798_v45  ;;  %v11928_v39 = vld [vmem:[#allocation9_spill] sm:$0xff] }
0x1685   : > { %5659 = vperm.xlu0 %6117, %v5645_v18   ;;  %v11913_v18 = vld [vmem:[#allocation81_spill] sm:$0xff] }
0x1686   : > { %5681 = vperm.xlu1 %6116, %v5675_v34   ;;  %v2783_v34 = vsel %vm2780_vm15, %v11913_v18, %v11910_v49  ;;  %v674_v18 = vadd.f32 %v11928_v39, %v11927_v53 }
0x1689   : > { %5691 = vperm.xlu0 %6117, %v5677_v42   ;;  %v11914_v42 = vld [vmem:[#allocation71_spill] sm:$0xff] }
0x168a   : > { %5686 = vperm.xlu1 %6116, %v5676_v1   ;;  %v11915_v1 = vld [vmem:[#allocation74_spill] sm:$0xff] }
0x168b   : > { %v3458_v59 = vsel %vm1190_vm5, %v11919_v17, %v11915_v1 }
0x168d   : > { %5768 = vperm.xlu0 %6117, %v5764_v16   ;;  %v3459_v16 = vsel %vm1190_vm5, %v11915_v1, %v11914_v42 }
0x168e   : > { %5664 = vperm.xlu1 %6116, %v5646_v26   ;;  %v2102_v26 = vadd.f32 %v2086_v8, %v1405_v60 }
0x1690   : > { %v2799_v10 = vadd.f32 %v2783_v34, %v2102_v26  ;;  %v11929_v34 = vld [vmem:[#allocation31_spill] sm:$0xff] }
0x1691   : > { %5784 = vperm.xlu0 %6117, %v5780_v61   ;;  %v11916_v61 = vld [vmem:[#allocation88_spill] sm:$0xff]  ;;  %v11930_v26 = vld [vmem:[#allocation43_spill] sm:$0xff] }
0x1692   : > { %5696 = vperm.xlu1 %6116, %v5678_v25   ;;  %v2781_v25 = vsel %vm2780_vm15, %v11916_v61, %v11907_v40  ;;  %v3474_v63 = vadd.f32 %v3458_v59, %v2799_v10  ;;  %v673_v61 = vadd.f32 %v11928_v39, %v11930_v26  ;;  %v11935_v59 = vld [vmem:[#allocation15_spill] sm:$0xff] }
0x1693   : > { %v2797_v31 = vadd.f32 %v2781_v25, %v2100_v3  ;;  %v11926_v3 = vld [vmem:[#allocation18_spill] sm:$0xff]  ;;  %v11931_v25 = vld [vmem:[#allocation45_spill] sm:$0xff]  ;;  %v1393_v41 = vsel %vm1386_vm13, %v11936_v23, %v11935_v59 }
0x1694   : > { %v4171_v38 = vadd.f32 %v4155_v47, %v3474_v63  ;;  %v1391_v42 = vsel %vm1386_vm13, %v11929_v34, %v11926_v3  ;;  %v11940_v47 = vld [vmem:[#allocation26_spill] sm:$0xff]  ;;  %v11952_v34 = vld [vmem:[#allocation76_spill] sm:$0xff] }
0x1695   : > { %v3472_v0 = vadd.f32 %v3456_v12, %v2797_v31  ;;  %v1407_v12 = vadd.f32 %v1391_v42, %v673_v61 }
0x1696   : > { %5773 = vperm.xlu1 %6116, %v5765_v36   ;;  %v2800_v36 = vadd.f32 %v2784_v48, %v2103_v57 }
0x1697   : > { %v4169_v19 = vadd.f32 %v4153_v29, %v3472_v0  ;;  %v11942_v29 = vld [vmem:[#allocation67_spill] sm:$0xff] }
0x1698   : > { %v3475_v30 = vadd.f32 %v3459_v16, %v2800_v36  ;;  %v11932_v36 = vld [vmem:[#allocation8_spill] sm:$0xff] }
0x1699   : > { %v676_v58 = vadd.f32 %v11932_v36, %v11887_v11 }
0x169a   : > { %5789 = vperm.xlu1 %6116, %v5781_v13   ;;  %v11917_v13 = vld [vmem:[#allocation68_spill] sm:$0xff]  ;;  %v4172_v62 = vadd.f32 %v4156_v22, %v3475_v30  ;;  %v11937_v22 = vld [vmem:[#allocation19_spill] sm:$0xff] }
0x169b   : > { %v4830_v54 = vpop.permute.xlu0 %4829  ;;  %v4154_v51 = vsel %vm4152_vm0, %v11918_v50, %v11917_v13  ;;  %v675_v13 = vadd.f32 %v11932_v36, %v11931_v25  ;;  %v11933_v50 = vld [vmem:[#allocation33_spill] sm:$0xff]  ;;  %v11938_v30 = vld [vmem:[#allocation91_spill] sm:$0xff] }
0x169c   : > { %v10750_v21 = vpop.permute.xlu1 %4827  ;;  %v4170_v7 = vadd.f32 %v4154_v51, %v3473_v37  ;;  %v11934_v51 = vld [vmem:[#allocation58_spill] sm:$0xff] }
0x169d   : > { %v4851_v24 = vsel %vm4849_vm1, %v10750_v21, %v4830_v54 }
0x169e   : > { %v4867_v43 = vadd.f32 %v4851_v24, %v4170_v7  ;;  %v11939_v24 = vld [vmem:[#allocation84_spill] sm:$0xff] }
0x169f   : > { %v4836_v32 = vpop.permute.xlu0 %4835  ;;  %v2786_v31 = vsel %vm2780_vm15, %v11939_v24, %v11938_v30 }
0x16a0   : > { %v4834_v2 = vpop.permute.xlu1 %4833 }
0x16a1   : > { %v4853_v20 = vsel %vm4849_vm1, %v4834_v2, %v4836_v32 }
0x16a2   : > { %v4869_v40 = vadd.f32 %v4853_v20, %v4172_v62  ;;  %v2088_v20 = vsel %vm2083_vm14, %v11940_v47, %v11934_v51  ;;  %v2091_v62 = vsel %vm2083_vm14, %v11942_v29, %v11941_v56 }
0x16a3   : > { %v4832_v9 = vpop.permute.xlu0 %4831 }
0x16a4   : > { %v4826_v46 = vpop.permute.xlu1 %4825  ;;  %v4852_v54 = vsel %vm4849_vm1, %v4832_v9, %v4834_v2 }
0x16a5   : > { %v4850_v55 = vsel %vm4849_vm1, %v4826_v46, %v10750_v21  ;;  %v4868_v44 = vadd.f32 %v4852_v54, %v4171_v38  ;;  %v11925_v46 = vld [vmem:[#allocation24_spill] sm:$0xff]  ;;  %v11944_v54 = vld [vmem:[#allocation51_spill] sm:$0xff] }
0x16a6   : > { %v4866_v8 = vadd.f32 %v4850_v55, %v4169_v19  ;;  %v1392_v57 = vsel %vm1386_vm13, %v11926_v3, %v11925_v46  ;;  %v11946_v19 = vld [vmem:[#allocation92_spill] sm:$0xff] }
0x16a7   : > { %v1408_v17 = vadd.f32 %v1392_v57, %v674_v18  ;;  %v11951_v18 = vld [vmem:[#allocation73_spill] sm:$0xff] }
0x16a8   : > { %v3463_v42 = vsel %vm1190_vm5, %v11952_v34, %v11951_v18 }
0x16cf   : > { %v5527_v14 = vpop.permute.xlu0 %5526 }
0x16d0   : > { %v5525_v33 = vpop.permute.xlu1 %5524 }
0x16d1   : > { %v5548_v6 = vsel %vm5546_vm2, %v5525_v33, %v5527_v14  ;;  %v2089_v14 = vsel %vm2083_vm14, %v11934_v51, %v11933_v50  ;;  %v11953_v50 = vld [vmem:[#allocation90_spill] sm:$0xff] }
0x16d2   : > { %v10828_v5 = vadd.f32 %v5548_v6, %v4867_v43  ;;  %v2105_v63 = vadd.f32 %v2089_v14, %v1408_v17  ;;  %v11943_v43 = vld [vmem:[#allocation38_spill] sm:$0xff]  ;;  %v11955_v17 = vld [vmem:[#allocation17_spill] sm:$0xff] }
0x16d3   : > { %v5533_v4 = vpop.permute.xlu0 %5532 }
0x16d4   : > { %v5531_v27 = vpop.permute.xlu1 %5530  ;;  %v5572_v21 = vmul.f32 %v10828_v5, %v10828_v5 }
0x16d5   : > { %v5550_v32 = vsel %vm5546_vm2, %v5531_v27, %v5533_v4  ;;  %v1409_v4 = vadd.f32 %v1393_v41, %v675_v13 }
0x16d6   : > { %v10830_v60 = vadd.f32 %v5550_v32, %v4869_v40  ;;  %v5580_v10 = vmul.f32 %v5572_v21, %v10828_v5  ;;  %v11945_v40 = vld [vmem:[#allocation60_spill] sm:$0xff]  ;;  %v2802_v32 = vadd.f32 %v2786_v31, %v2105_v63  ;;  %v11949_v21 = vld [vmem:[#allocation95_spill] sm:$0xff] }
0x16d7   : > { %v5529_v52 = vpop.permute.xlu0 %5528  ;;  %v2090_v55 = vsel %vm2083_vm14, %v11945_v40, %v11942_v29 }
0x16d8   : > { %v5549_v28 = vsel %vm5546_vm2, %v5529_v52, %v5531_v27  ;;  %v5523_v49 = vpop.permute.xlu1 %5522  ;;  %v5574_v45 = vmul.f32 %v10830_v60, %v10830_v60  ;;  %v3461_v27 = vsel %vm1190_vm5, %v11944_v54, %v11943_v43  ;;  %v2106_v61 = vadd.f32 %v2090_v55, %v1409_v4  ;;  %v11959_v4 = vld [vmem:[#allocation27_spill] sm:$0xff] }
0x16d9   : > { %v10833_v2 = vadd.f32 %v5549_v28, %v4868_v44  ;;  %v5547_v9 = vsel %vm5546_vm2, %v5523_v49, %v5525_v33  ;;  %v1394_v33 = vsel %vm1386_vm13, %v11935_v59, %v11937_v22  ;;  %v11947_v44 = vld [vmem:[#allocation86_spill] sm:$0xff]  ;;  %v2104_v28 = vadd.f32 %v2088_v20, %v1407_v12  ;;  %v11956_v22 = vld [vmem:[#allocation47_spill] sm:$0xff] }
0x16da   : > { %v10838_v48 = vadd.f32 %v5547_v9, %v4866_v8  ;;  %v5582_v7 = vmul.f32 %v5574_v45, %v10830_v60  ;;  %v1410_v0 = vadd.f32 %v1394_v33, %v676_v58  ;;  %v2788_v52 = vsel %vm2780_vm15, %v11947_v44, %v11946_v19  ;;  %v11948_v9 = vld [vmem:[#allocation78_spill] sm:$0xff]  ;;  %v11950_v45 = vld [vmem:[#allocation85_spill] sm:$0xff]  ;;  %v11957_v12 = vld [vmem:[#allocation75_spill] sm:$0xff] }
0x16db   : > { %v4842_v35 = vpop.permute.xlu0 %4841  ;;  %v5573_v37 = vmul.f32 %v10833_v2, %v10833_v2  ;;  %v5588_v8 = vmul.f32 0.044715, %v5580_v10  ;;  %v4158_v46 = vsel %vm4152_vm0, %v11949_v21, %v11948_v9  ;;  %v2785_v53 = vsel %vm2780_vm15, %v11950_v45, %v11939_v24 }
0x16dc   : > { %v5571_v1 = vmul.f32 %v10838_v48, %v10838_v48  ;;  %v10852_v16 = vpop.permute.xlu1 %4839  ;;  %v2107_v49 = vadd.f32 %v2091_v62, %v1410_v0  ;;  %v5590_v3 = vmul.f32 0.044715, %v5582_v7  ;;  %v3477_v39 = vadd.f32 %v3461_v27, %v2802_v32  ;;  %v11958_v62 = vld [vmem:[#allocation93_spill] sm:$0xff] }
0x16dd   : > { %v5581_v38 = vmul.f32 %v5573_v37, %v10833_v2  ;;  %v4855_v13 = vsel %vm4849_vm1, %v10852_v16, %v4842_v35  ;;  %v2787_v51 = vsel %vm2780_vm15, %v11953_v50, %v11947_v44  ;;  %v11954_v37 = vld [vmem:[#allocation36_spill] sm:$0xff]  ;;  %v5596_v23 = vadd.f32 %v5588_v8, %v10828_v5 }
0x16de   : > { %v5579_v6 = vmul.f32 %v5571_v1, %v10838_v48  ;;  %v2804_v25 = vadd.f32 %v2788_v52, %v2107_v49  ;;  %v4174_v14 = vadd.f32 %v4158_v46, %v3477_v39  ;;  %v4160_v59 = vsel %vm4152_vm0, %v11955_v17, %v11954_v37 }
0x16df   : > { %v4848_v15 = vpop.permute.xlu0 %4847  ;;  %v5589_v36 = vmul.f32 0.044715, %v5581_v38  ;;  %v2801_v41 = vadd.f32 %v2785_v53, %v2104_v28  ;;  %v3460_v33 = vsel %vm1190_vm5, %v11956_v22, %v11944_v54  ;;  %v5598_v35 = vadd.f32 %v5590_v3, %v10830_v60 }
0x16e0   : > { %v4846_v11 = vpop.permute.xlu1 %4845  ;;  %v5587_v1 = vmul.f32 0.044715, %v5579_v6  ;;  %v3479_v10 = vadd.f32 %v3463_v42, %v2804_v25  ;;  %v3462_v30 = vsel %vm1190_vm5, %v11957_v12, %v11952_v34  ;;  %v4871_v24 = vadd.f32 %v4855_v13, %v4174_v14 }
0x16e1   : > { %v4857_v31 = vsel %vm4849_vm1, %v4846_v11, %v4848_v15  ;;  %v2803_v20 = vadd.f32 %v2787_v51, %v2106_v61  ;;  %v5597_v29 = vadd.f32 %v5589_v36, %v10833_v2  ;;  %v4157_v6 = vsel %vm4152_vm0, %v11958_v62, %v11949_v21 }
0x16e2   : > { %v5595_v47 = vadd.f32 %v5587_v1, %v10838_v48  ;;  %v4176_v63 = vadd.f32 %v4160_v59, %v3479_v10  ;;  %v4159_v0 = vsel %vm4152_vm0, %v11959_v4, %v11955_v17  ;;  %v5604_v15 = vmul.f32 0.7978846, %v5596_v23 }
0x16e3   : > { %v4844_v57 = vpop.permute.xlu0 %4843  ;;  %v3476_v54 = vadd.f32 %v3460_v33, %v2801_v41  ;;  %v3478_v27 = vadd.f32 %v3462_v30, %v2803_v20  ;;  %v5606_v55 = vmul.f32 0.7978846, %v5598_v35  ;;  %v5605_v21 = vmul.f32 0.7978846, %v5597_v29 }
0x16e4   : > { %v4838_v26 = vpop.permute.xlu1 %4837  ;;  %v4873_v38 = vadd.f32 %v4857_v31, %v4176_v63  ;;  %v4856_v32 = vsel %vm4849_vm1, %v4844_v57, %v4846_v11  ;;  %v5603_v8 = vmul.f32 0.7978846, %v5595_v47  ;;  %6137 = vtanh.f32 %v5604_v15 }
0x16e5   : > { %v4854_v19 = vsel %vm4849_vm1, %v4838_v26, %v10852_v16  ;;  %v4173_v28 = vadd.f32 %v4157_v6, %v3476_v54  ;;  %v4175_v49 = vadd.f32 %v4159_v0, %v3478_v27  ;;  %6139 = vtanh.f32 %v5606_v55 }
0x16e6   : > { %6141 = vtanh.f32 %v5603_v8 }
0x16e7   : > { %v5539_v58 = vpop.permute.xlu0 %5538  ;;  %v4872_v45 = vadd.f32 %v4856_v32, %v4175_v49  ;;  %v4870_v11 = vadd.f32 %v4854_v19, %v4173_v28  ;;  %6143 = vtanh.f32 %v5605_v21 }
0x16e8   : > { %v5537_v7 = vpop.permute.xlu1 %5536 }
0x16e9   : > { %v5552_v56 = vsel %vm5546_vm2, %v5537_v7, %v5539_v58 }
0x16ea   : > { %v10928_v43 = vadd.f32 %v5552_v56, %v4871_v24 }
0x16eb   : > { %v5545_v40 = vpop.permute.xlu0 %5544 }
0x16ec   : > { %v5576_v44 = vmul.f32 %v10928_v43, %v10928_v43  ;;  %v5543_v52 = vpop.permute.xlu1 %5542 }
0x16ed   : > { %v5554_v9 = vsel %vm5546_vm2, %v5543_v52, %v5545_v40 }
0x16ee   : > { %v5584_v46 = vmul.f32 %v5576_v44, %v10928_v43  ;;  %v10937_v3 = vadd.f32 %v5554_v9, %v4873_v38  ;;  %v6138_v59 = vpop.eup %6137 }
0x16ef   : > { %v5541_v57 = vpop.permute.xlu0 %5540  ;;  %v6140_v22 = vpop.eup %6139  ;;  %v5620_v31 = vadd.f32 1.0, %v6138_v59 }
0x16f0   : > { %v5592_v16 = vmul.f32 0.044715, %v5584_v46  ;;  %v5578_v53 = vmul.f32 %v10937_v3, %v10937_v3  ;;  %v5553_v39 = vsel %vm5546_vm2, %v5541_v57, %v5543_v52  ;;  %v5535_v18 = vpop.permute.xlu1 %5534  ;;  %v6142_v10 = vpop.eup %6141  ;;  %v5622_v47 = vadd.f32 1.0, %v6140_v22 }
0x16f1   : > { %v10942_v34 = vadd.f32 %v5553_v39, %v4872_v45  ;;  %v5551_v42 = vsel %vm5546_vm2, %v5535_v18, %v5537_v7  ;;  %v6144_v35 = vpop.eup %6143  ;;  %v5619_v24 = vadd.f32 1.0, %v6142_v10  ;;  %v5628_v56 = vmul.f32 0.5, %v5620_v31 }
0x16f2   : > { %v5586_v1 = vmul.f32 %v5578_v53, %v10937_v3  ;;  %v10946_v26 = vadd.f32 %v5551_v42, %v4870_v11  ;;  %v5600_v61 = vadd.f32 %v5592_v16, %v10928_v43  ;;  %v5621_v7 = vadd.f32 1.0, %v6144_v35 }
0x16f3   : > { %v5577_v25 = vmul.f32 %v10942_v34, %v10942_v34  ;;  %v5627_v63 = vmul.f32 0.5, %v5619_v24  ;;  %v5630_v4 = vmul.f32 0.5, %v5622_v47  ;;  %v5636_v27 = vmul.f32 %v5628_v56, %v10828_v5 }
0x16f4   : > { %v5594_v36 = vmul.f32 0.044715, %v5586_v1  ;;  %v5575_v13 = vmul.f32 %v10946_v26, %v10946_v26  ;;  %v5608_v50 = vmul.f32 0.7978846, %v5600_v61  ;;  %v5629_v6 = vmul.f32 0.5, %v5621_v7 }
0x16f5   : > { %v5585_v51 = vmul.f32 %v5577_v25, %v10942_v34  ;;  %v5635_v54 = vmul.f32 %v5627_v63, %v10838_v48  ;;  %v5638_v32 = vmul.f32 %v5630_v4, %v10830_v60 }
0x16f6   : > { %v5583_v14 = vmul.f32 %v5575_v13, %v10946_v26  ;;  %6145 = vtanh.f32 %v5608_v50  ;;  %v5602_v37 = vadd.f32 %v5594_v36, %v10937_v3  ;;  %v5637_v55 = vmul.f32 %v5629_v6, %v10833_v2 }
0x16f7   : > { %v5593_v17 = vmul.f32 0.044715, %v5585_v51 }
0x16f8   : > { %v5591_v23 = vmul.f32 0.044715, %v5583_v14  ;;  %v5610_v41 = vmul.f32 0.7978846, %v5602_v37 }
0x16f9   : > { %v5601_v33 = vadd.f32 %v5593_v17, %v10942_v34 }
0x16fa   : > { %v5599_v58 = vadd.f32 %v5591_v23, %v10946_v26  ;;  %6147 = vtanh.f32 %v5610_v41 }
0x16fb   : > { %v5609_v12 = vmul.f32 0.7978846, %v5601_v33 }
0x16fc   : > { %v5607_v30 = vmul.f32 0.7978846, %v5599_v58 }
0x16fd   : > { %6149 = vtanh.f32 %v5609_v12 }
0x16fe   : > { %6151 = vtanh.f32 %v5607_v30 }
0x1700   : > { %v6146_v20 = vpop.eup %6145  ;;  %v5655_v0 = vpop.permute.xlu0 %5654 }
0x1701   : > { %v5650_v29 = vpop.permute.xlu1 %5649  ;;  %v5624_v62 = vadd.f32 1.0, %v6146_v20  ;;  %v5669_v49 = vmul.f32 %v5655_v0, %v5637_v55  ;;  %v5670_v9 = vmul.f32 %v5655_v0, %v5638_v32 }
0x1702   : > { %v5667_v52 = vmul.f32 %v5650_v29, %v5635_v54  ;;  %v5668_v8 = vmul.f32 %v5650_v29, %v5636_v27 }
0x1703   : > { %v5632_v38 = vmul.f32 0.5, %v5624_v62 }
0x1704   : > { %v6148_v15 = vpop.eup %6147  ;;  %v5660_v46 = vpop.permute.xlu0 %5659 }
0x1705   : > { %v5682_v40 = vpop.permute.xlu1 %5681  ;;  %v5626_v19 = vadd.f32 1.0, %v6148_v15  ;;  %v5640_v48 = vmul.f32 %v5632_v38, %v10928_v43 }
0x1706   : > { %v5699_v11 = vadd.f32 %v5682_v40, %v5667_v52  ;;  %v5700_v5 = vadd.f32 %v5682_v40, %v5668_v8 }
0x1707   : > { %v6150_v44 = vpop.eup %6149  ;;  %v5634_v39 = vmul.f32 0.5, %v5626_v19  ;;  %v5672_v36 = vmul.f32 %v5660_v46, %v5640_v48 }
0x1708   : > { %v6152_v28 = vpop.eup %6151  ;;  %v5625_v21 = vadd.f32 1.0, %v6150_v44  ;;  %v5692_v50 = vpop.permute.xlu0 %5691 }
0x1709   : > { %v5623_v45 = vadd.f32 1.0, %v6152_v28  ;;  %v5687_v57 = vpop.permute.xlu1 %5686  ;;  %v5642_v13 = vmul.f32 %v5634_v39, %v10937_v3  ;;  %v5704_v59 = vadd.f32 %v5692_v50, %v5672_v36 }
0x170a   : > { %v5701_v16 = vadd.f32 %v5687_v57, %v5669_v49  ;;  %v5702_v53 = vadd.f32 %v5687_v57, %v5670_v9  ;;  %v5633_v2 = vmul.f32 0.5, %v5625_v21 }
0x170b   : > { %v5631_v60 = vmul.f32 0.5, %v5623_v45 }
0x170c   : > { %v5641_v18 = vmul.f32 %v5633_v2, %v10942_v34  ;;  %v5710_v42 = vpack.c.bf16 %v5702_v53, %v5700_v5  ;;  %v5709_v1 = vpack.c.bf16 %v5701_v16, %v5699_v11  ;;  %v5769_v3 = vpop.permute.xlu0 %5768 }
0x170d   : > { %v5639_v61 = vmul.f32 %v5631_v60, %v10946_v26  ;;  %v5665_v25 = vpop.permute.xlu1 %5664  ;;  %v6120_v26 = vld [vmem:[%s11029_s9] sm:$0xff]  }
0x170e   : > { %5721 = vmatprep.subr.bf16.mxu1 %v5710_v42  ;;  %v5673_v51 = vmul.f32 %v5665_v25, %v5641_v18  ;;  %v5674_v14 = vmul.f32 %v5665_v25, %v5642_v13 }
0x170f   : > { %v5671_v43 = vmul.f32 %v5660_v46, %v5639_v61  ;;  %5722 = vmatpush1.bf16.msra.mxu1 %v5709_v1 }
0x1710   : > { %v5785_v12 = vpop.permute.xlu0 %5784 }
0x1711   : > { %v5703_v37 = vadd.f32 %v5692_v50, %v5671_v43  ;;  %v5697_v17 = vpop.permute.xlu1 %5696 }
0x1712   : > { %v5705_v23 = vadd.f32 %v5697_v17, %v5673_v51  ;;  %v5706_v34 = vadd.f32 %v5697_v17, %v5674_v14 }
0x1714   : > { %v5711_v41 = vpack.c.bf16 %v5705_v23, %v5703_v37  ;;  %v5712_v22 = vpack.c.bf16 %v5706_v34, %v5704_v59 }
0x1715   : > { %v5774_v33 = vpop.permute.xlu1 %5773 }
0x1716   : > { %5723 = vmatprep.subr.bf16.mxu1 %v5712_v22 }
0x1717   : > { %5724 = vmatpush1.bf16.msra.mxu1 %v5711_v41 }
0x1719   : > { %v5790_v20 = vpop.permute.xlu1 %5789 }
0x171a   : > { %5894 = vmatmul.mubr.msk.bf16.vlgmr.msra.gmra.mrb[0].mxu1 %vm1287_vm7, %v6120_v26 }
0x17ed   : > { %v5755_v10 = vpop.f32.mrb[0].mxu1 }
0x17ee   : > { %v5776_v58 = vmul.f32 %v5769_v3, %v5755_v10  ;;  %v5757_v35 = vpop.f32.mrb[1].mxu1 }
0x17ef   : > { %v5777_v30 = vmul.f32 %v5769_v3, %v5757_v35  ;;  %v5759_v24 = vpop.f32.mrb[2].mxu1 }
0x17f0   : > { %v5792_v31 = vadd.f32 %v5785_v12, %v5776_v58  ;;  %v5778_v7 = vmul.f32 %v5774_v33, %v5759_v24  ;;  %v5761_v47 = vpop.f32.mrb[3].mxu1 }
0x17f1   : > { %v5793_v63 = vadd.f32 %v5785_v12, %v5777_v30  ;;  %v5779_v56 = vmul.f32 %v5774_v33, %v5761_v47 }
0x17f2   : > { %5796 = vst [vmem:[%s406_s17] sm:$0xff] %v5792_v31  ;;  %v5794_v29 = vadd.f32 %v5790_v20, %v5778_v7 }
0x17f3   : > { %5797 = vst [vmem:[%s406_s17 + $0x8] sm:$0xff] %v5793_v63  ;;  %v5795_v62 = vadd.f32 %v5790_v20, %v5779_v56 }
0x17f4   : > { %5798 = vst [vmem:[%s406_s17 + $0x10] sm:$0xff] %v5794_v29 }
0x17f5   : > { %5799 = vst [vmem:[%s406_s17 + $0x18] sm:$0xff] %v5795_v62 }
0x17f6   : > { %6186 = shalt.err (!%p6183_p3)
}
0x17f7   : > { %s6187_s19 = scalar_lea.hbm %s10977_s1, 512  ;;  %s6191_s17 = scalar_lea.hbm %s11032_s12, 1024 }
0x17f8   : > { %p6188_p4 = scmp.ne.s32.totalorder %s10977_s1, %s6187_s19  ;;  %p6192_p9 = scmp.lt.u32.totalorder %s10977_s1, %s11032_s12 }
0x17f9   : > { %p6193_p10 = scmp.lt.u32.totalorder %s6191_s17, %s6187_s19  ;;  %p6195_p12 = scmp.lt.u32.totalorder %s6187_s19, %s10977_s1 }
0x17fa   : > { %p6189_p7 = pnand %p6188_p4, %p6410_p5 }
0x17fb   : > { %p6194_p11 = por %p6193_p10, %p6192_p9 }
0x17fc   : > { %p6190_p8 = pneg %p6189_p7 }
0x17fd   : > { %p6196_p13 = por %p6195_p12, %p6194_p11 }
0x17ff   : > { %p6197_p0 = pnand %p6196_p13, %p6190_p8 }
0x1801   : > { %6200 = shalt.err (!%p6197_p0)
}
0x1802   : > { %s6305_s20 = smov 256   ;;  %s6306_s18 = smov 16  }
0x1803   : > { %5902 = dma.vmem_to_hbm [thread:$0]  (%p6410_p5), %s10972_s15, 512, %s10977_s1, %s10979_s25, %s6305_s20, %s6305_s20, %s6306_s18  }
0x1804 PF: > { %p5908_p1 = scmp.ge.s32.totalorder %s6235_s24, 2  ;;  %s5829_s0 = sand.u32 1, %s6223_s21  }
0x1805   : > { %s5830_s16 = scalar_lea.sflag [#allocation4], %s5829_s0 }
0x1806   : > { %p5905_p2 = pnand %p5908_p1, %p6414_p6 }
0x1808   : > { %6218 = dma.done.wait (!%p5905_p2), %s5830_s16, 512  }
0x1809   : > { %6220 = vsyncadd (!%p5905_p2), %s5830_s16, 4294966784  ;;  %p22_p3 = scmp.ge.s32.totalorder %s6397_s27, 4   ;;  %s11960_s21 = smov %s6227_s22 }
0x180a   : > { %s11961_s22 = smov %s6231_s23  ;;  %s11962_s23 = smov %s6408_s30 }
0x180b   : > { %s11963_s24 = smov %s6397_s27  ;;  %24 = sbr.rel (!%p22_p3) target bundleno = 8 (0x8), region = 109 }
0x1812   :  { %5835 = vsyncpa [#allocation4], 1 }
0x1813   :  { %5837 = vsyncpa [#allocation4 + $0x1], 1 }

</bundles_post_ra>
